<compile_context>
chip_gen: v7x
topology: tpu7x:2x2x1
jax: 0.10.0
libtpu: 0.0.40
codegen_flags: <defaults>
</compile_context>

<pallas_src>
import math
from functools import partial

import jax
import jax.numpy as jnp
from jax import lax
from jax.experimental import pallas as pl
from jax.experimental.pallas import tpu as pltpu


# ----------------------------- kernel helpers ------------------------------

def _layernorm(x, gamma, eps=1e-5):
    # one-pass stats: mu = E[x], var = E[x^2] - mu^2 (biased, matches torch)
    mu = jnp.mean(x, axis=-1, keepdims=True)
    var = jnp.mean(x * x, axis=-1, keepdims=True) - mu * mu
    return (x - mu) * lax.rsqrt(var + eps) * gamma


def _mha(q, k, v, wout_ref, num_heads):
    # q: (Tq, D) f32, k/v: (Skv, D) bf16, wout_ref: (D, D) bf16 ref -> (Tq, D) f32
    Tq, D = q.shape
    dk = D // num_heads
    # fold 1/sqrt(dk) into q (O(Tq*dk) instead of O(Tq*Skv) multiplies)
    qs = (q * (1.0 / math.sqrt(dk))).astype(jnp.bfloat16)
    out = jnp.zeros((Tq, D), jnp.float32)
    # static per-head loop; lane-dense (full MXU passes) when dk % 128 == 0
    for h in range(num_heads):
        lo = h * dk
        qh = qs[:, lo:lo + dk]
        kh = k[:, lo:lo + dk]
        vh = v[:, lo:lo + dk]
        s = lax.dot_general(qh, kh, (((1,), (1,)), ((), ())),
                            preferred_element_type=jnp.float32)       # (Tq, Skv)
        s = s - jnp.max(s, axis=-1, keepdims=True)
        e = jnp.exp(s)
        p = e * pl.reciprocal(jnp.sum(e, axis=-1, keepdims=True), approx=True)
        ctx = jnp.dot(p.astype(jnp.bfloat16), vh,
                      preferred_element_type=jnp.float32)              # (Tq, dk)
        # concat-over-heads + output_fc == sum of per-head partial matmuls
        out = out + jnp.dot(ctx.astype(jnp.bfloat16), wout_ref[lo:lo + dk, :],
                            preferred_element_type=jnp.float32)
    return out


# ------------------------------- the kernel --------------------------------

def decoder_block_kernel(num_heads, tile_t,
                         x_ref, enc_ref,
                         wq1_ref, wkv1_ref, wout1_ref, g1_ref,
                         wq2_ref, wkv2_ref, wout2_ref, g2_ref,
                         wm1_ref, wm2_ref, g3_ref,
                         o_ref,
                         kself_ref, vself_ref, kcross_ref, vcross_ref):
    tt = pl.program_id(1)
    D = x_ref.shape[-1]

    # --- once per batch row: project K,V for self- and cross-attention into scratch ---
    @pl.when(tt == 0)
    def _():
        kv_s = jnp.dot(x_ref[...], wkv1_ref[...], preferred_element_type=jnp.float32)
        kself_ref[...] = kv_s[:, :D].astype(kself_ref.dtype)
        vself_ref[...] = kv_s[:, D:].astype(vself_ref.dtype)
        kv_c = jnp.dot(enc_ref[...], wkv2_ref[...], preferred_element_type=jnp.float32)
        kcross_ref[...] = kv_c[:, :D].astype(kcross_ref.dtype)
        vcross_ref[...] = kv_c[:, D:].astype(vcross_ref.dtype)

    start = pl.multiple_of(tt * tile_t, tile_t)
    x_tile = x_ref[pl.ds(start, tile_t), :]                  # (tile_t, D) bf16

    # --- masked self-attention (mask=None path) + residual + LN1 ---
    q1 = jnp.dot(x_tile, wq1_ref[...], preferred_element_type=jnp.float32)
    a1 = _mha(q1, kself_ref[...], vself_ref[...], wout1_ref, num_heads)
    a1 = _layernorm(a1 + x_tile.astype(jnp.float32), g1_ref[...])

    # --- cross-attention against encoder output + residual + LN2 ---
    q2 = jnp.dot(a1.astype(jnp.bfloat16), wq2_ref[...], preferred_element_type=jnp.float32)
    a2 = _mha(q2, kcross_ref[...], vcross_ref[...], wout2_ref, num_heads)
    a2 = _layernorm(a2 + a1, g2_ref[...])

    # --- MLP (D -> 4D -> D), hidden dim chunked to bound the (tile_t, 4D) activation ---
    a2b = a2.astype(jnp.bfloat16)
    hidden = wm1_ref.shape[-1]
    m = jnp.zeros((tile_t, D), jnp.float32)
    for c in range(hidden // D):
        lo = c * D
        hc = jnp.maximum(
            jnp.dot(a2b, wm1_ref[:, lo:lo + D], preferred_element_type=jnp.float32), 0.0)
        m = m + jnp.dot(hc.astype(jnp.bfloat16), wm2_ref[lo:lo + D, :],
                        preferred_element_type=jnp.float32)

    o_ref[...] = _layernorm(m + a2, g3_ref[...]).astype(o_ref.dtype)


# -------------------------------- wrapper -----------------------------------

def decoder_block(x, enc, params, num_heads, *, tile_t=None, single_buffer_weights=True):
    (wqkv, wout1, g1, wq2, wkv, wout2, g2, wm1, wm2, g3) = params
    B, T, D = x.shape
    S = enc.shape[1]
    H4 = wm1.shape[-1]
    assert D % num_heads == 0 and H4 % D == 0

    if tile_t is None:
        tile_t = min(T, 128)
    assert T % tile_t == 0
    n_t = T // tile_t

    bf16 = jnp.bfloat16
    x_b = x.astype(bf16)
    enc_b = enc.astype(bf16)
    # split the fused qkv weight host-side: q applied per-tile, kv applied to the full seq
    weights = [wqkv[:, :D].astype(bf16), wqkv[:, D:].astype(bf16),
               wout1.astype(bf16), g1.astype(jnp.float32),
               wq2.astype(bf16), wkv.astype(bf16),
               wout2.astype(bf16), g2.astype(jnp.float32),
               wm1.astype(bf16), wm2.astype(bf16), g3.astype(jnp.float32)]

    def wspec(arr):
        shape = arr.shape
        idx = lambda b, t: (0,) * len(shape)
        if single_buffer_weights:
            # resident weights: block index never changes -> no need to double-buffer
            return pl.BlockSpec(shape, idx, pipeline_mode=pl.Buffered(1))
        return pl.BlockSpec(shape, idx)

    in_specs = [
        pl.BlockSpec((pl.Squeezed(), T, D), lambda b, t: (b, 0, 0)),   # x (full, per b)
        pl.BlockSpec((pl.Squeezed(), S, D), lambda b, t: (b, 0, 0)),   # enc_output
    ] + [wspec(w) for w in weights]

    out_spec = pl.BlockSpec((pl.Squeezed(), tile_t, D), lambda b, t: (b, t, 0))

    scratch = [
        pltpu.VMEM((T, D), bf16), pltpu.VMEM((T, D), bf16),    # self-attn K, V
        pltpu.VMEM((S, D), bf16), pltpu.VMEM((S, D), bf16),    # cross-attn K, V
    ]

    # VMEM budget: single-copy weights + pipelined activation blocks + scratch + headroom
    w_bytes = sum(int(w.size) * w.dtype.itemsize for w in weights)
    act_bytes = 2 * (T * D + S * D) * 2 + 2 * tile_t * D * 4
    scratch_bytes = 2 * (T + S) * D * 2
    vmem_limit = int(min(max(2 * (w_bytes + act_bytes + scratch_bytes) + (16 << 20),
                             32 << 20), 64 << 20))

    flops = 2 * B * (T * D * 3 * D          # self qkv projection
                     + 2 * T * T * D        # self scores + context
                     + T * D * D            # self output_fc
                     + T * D * D            # cross q projection
                     + S * D * 2 * D        # cross kv projection
                     + 2 * T * S * D        # cross scores + context
                     + T * D * D            # cross output_fc
                     + 2 * T * D * H4)      # mlp fc1 + fc2
    cost = pl.CostEstimate(
        flops=int(flops),
        transcendentals=int(B * (T * T + T * S + 3 * T)),
        bytes_accessed=int(x_b.size * 2 + enc_b.size * 2 + w_bytes + B * T * D * 4))

    return pl.pallas_call(
        partial(decoder_block_kernel, num_heads, tile_t),
        out_shape=jax.ShapeDtypeStruct((B, T, D), jnp.float32),
        grid=(B, n_t),
        in_specs=in_specs,
        out_specs=out_spec,
        scratch_shapes=scratch,
        compiler_params=pltpu.CompilerParams(
            # t axis stays in-order per b: K/V scratch is filled at t == 0
            dimension_semantics=("parallel", "arbitrary"),
            vmem_limit_bytes=vmem_limit),
        cost_estimate=cost,
    )(x_b, enc_b, *weights)


# ---------------------- pure-JAX reference (for checking) -------------------
# Mirrors the kernel's mixed-precision policy (bf16 matmul operands, f32 accumulation),
# so the comparison isolates kernel correctness rather than bf16 rounding.

def _bf(a):
    return a.astype(jnp.bfloat16).astype(jnp.float32)


def _ref_layernorm(x, g, eps=1e-5):
    mu = jnp.mean(x, axis=-1, keepdims=True)
    var = jnp.mean((x - mu) ** 2, axis=-1, keepdims=True)
    return (x - mu) * lax.rsqrt(var + eps) * g


def _ref_mha(q, k, v, wout, num_heads):
    B, T, D = q.shape
    S = k.shape[1]
    dk = D // num_heads
    q = _bf(q * (1.0 / math.sqrt(dk)))
    k, v = _bf(k), _bf(v)
    qh = q.reshape(B, T, num_heads, dk).transpose(0, 2, 1, 3)
    kh = k.reshape(B, S, num_heads, dk).transpose(0, 2, 1, 3)
    vh = v.reshape(B, S, num_heads, dk).transpose(0, 2, 1, 3)
    s = jnp.einsum('bhtd,bhsd->bhts', qh, kh)
    p = jax.nn.softmax(s, axis=-1)
    ctx = jnp.einsum('bhts,bhsd->bhtd', _bf(p), vh)
    ctx = ctx.transpose(0, 2, 1, 3).reshape(B, T, D)
    return _bf(ctx) @ wout


def decoder_block_ref(x, enc, params, num_heads):
    (wqkv, wout1, g1, wq2, wkv, wout2, g2, wm1, wm2, g3) = [
        p.astype(jnp.float32) for p in params]
    x = x.astype(jnp.float32)
    enc = enc.astype(jnp.float32)
    D = x.shape[-1]
    qkv = x @ wqkv
    q, k, v = qkv[..., :D], qkv[..., D:2 * D], qkv[..., 2 * D:]
    a1 = _ref_layernorm(_ref_mha(q, k, v, wout1, num_heads) + x, g1)
    q2 = _bf(a1) @ wq2
    kv = enc @ wkv
    k2, v2 = kv[..., :D], kv[..., D:]
    a2 = _ref_layernorm(_ref_mha(q2, k2, v2, wout2, num_heads) + a1, g2)
    h = _bf(jnp.maximum(_bf(a2) @ wm1, 0.0))
    m = h @ wm2
    return _ref_layernorm(m + a2, g3)


# ----------------------------------- main ------------------------------------

if __name__ == "__main__":
    # dk = D / H = 128 -> lane-dense per-head matmuls; D multiple of 128 -> unmasked stores
    B, T, S, D, H = 2, 16, 16, 256, 2
    TILE_T = 8

    key = jax.random.PRNGKey(0)
    ks = jax.random.split(key, 13)

    def linear_w(k, fan_in, fan_out):
        bound = 1.0 / math.sqrt(fan_in)
        w = jax.random.uniform(k, (fan_in, fan_out), jnp.float32, -bound, bound)
        return w.astype(jnp.bfloat16)          # weights carried in bf16 (kernel compute dtype)

    def ln_w(k):
        return jax.random.uniform(k, (1, D), jnp.float32, 0.5, 1.5)

    params = (
        linear_w(ks[0], D, 3 * D),   # qkv_proj        (stored [in, out])
        linear_w(ks[1], D, D),       # attention1.output_fc
        ln_w(ks[2]),                 # layer_norm1 weight
        linear_w(ks[3], D, D),       # q_proj
        linear_w(ks[4], D, 2 * D),   # kv_proj
        linear_w(ks[5], D, D),       # attention2.output_fc
        ln_w(ks[6]),                 # layer_norm2 weight
        linear_w(ks[7], D, 4 * D),   # mlp.fc1
        linear_w(ks[8], 4 * D, D),   # mlp.fc2
        ln_w(ks[9]),                 # layer_norm3 weight
    )

    x = jax.random.normal(ks[10], (B, T, D), jnp.float32).astype(jnp.bfloat16)
    enc = jax.random.normal(ks[11], (B, S, D), jnp.float32).astype(jnp.bfloat16)

    try:
        out = decoder_block(x, enc, params, H, tile_t=TILE_T)
        out = jax.block_until_ready(out)
    except Exception:
        # fall back if single-buffered weight BlockSpecs (pl.Buffered(1)) are not
        # supported by this jax/Mosaic build
        out = decoder_block(x, enc, params, H, tile_t=TILE_T, single_buffer_weights=False)
        out = jax.block_until_ready(out)

    ref = decoder_block_ref(x, enc, params, H)
    assert out.shape == (B, T, D)
    err = jnp.max(jnp.abs(out - ref))
    assert jnp.allclose(out, ref, atol=2e-2, rtol=2e-2), f"max err {err}"

    print("KERNEL_OK")
</pallas_src>

<mosaic_0001>
module attributes {stable_mosaic.version = 11 : i64} {
  func.func @decoder_block_kernel(%arg0: i32, %arg1: i32, %arg2: memref<1x16x256xbf16, #tpu.memory_space<vmem>>, %arg3: memref<1x16x256xbf16, #tpu.memory_space<vmem>>, %arg4: memref<256x256xbf16, #tpu.memory_space<vmem>>, %arg5: memref<256x512xbf16, #tpu.memory_space<vmem>>, %arg6: memref<256x256xbf16, #tpu.memory_space<vmem>>, %arg7: memref<1x256xf32, #tpu.memory_space<vmem>>, %arg8: memref<256x256xbf16, #tpu.memory_space<vmem>>, %arg9: memref<256x512xbf16, #tpu.memory_space<vmem>>, %arg10: memref<256x256xbf16, #tpu.memory_space<vmem>>, %arg11: memref<1x256xf32, #tpu.memory_space<vmem>>, %arg12: memref<256x1024xbf16, #tpu.memory_space<vmem>>, %arg13: memref<1024x256xbf16, #tpu.memory_space<vmem>>, %arg14: memref<1x256xf32, #tpu.memory_space<vmem>>, %arg15: memref<1x8x256xf32, #tpu.memory_space<vmem>>, %arg16: memref<16x256xbf16, #tpu.memory_space<vmem>>, %arg17: memref<16x256xbf16, #tpu.memory_space<vmem>>, %arg18: memref<16x256xbf16, #tpu.memory_space<vmem>>, %arg19: memref<16x256xbf16, #tpu.memory_space<vmem>>) attributes {dimension_semantics = [#tpu.dimension_semantics<parallel>, #tpu.dimension_semantics<arbitrary>], iteration_bounds = array<i64: 2, 2>, scalar_prefetch = 0 : i64, scratch_operands = 4 : i64, tpu.core_type = #tpu.core_type<tc>, window_params = [{transform_indices = @transform_0, window_bounds = array<i64: 1, 16, 256>}, {transform_indices = @transform_1, window_bounds = array<i64: 1, 16, 256>}, {pipeline_mode = #tpu.pipeline_mode<synchronous>, transform_indices = @transform_2, window_bounds = array<i64: 256, 256>}, {pipeline_mode = #tpu.pipeline_mode<synchronous>, transform_indices = @transform_3, window_bounds = array<i64: 256, 512>}, {pipeline_mode = #tpu.pipeline_mode<synchronous>, transform_indices = @transform_4, window_bounds = array<i64: 256, 256>}, {pipeline_mode = #tpu.pipeline_mode<synchronous>, transform_indices = @transform_5, window_bounds = array<i64: 1, 256>}, {pipeline_mode = #tpu.pipeline_mode<synchronous>, transform_indices = @transform_6, window_bounds = array<i64: 256, 256>}, {pipeline_mode = #tpu.pipeline_mode<synchronous>, transform_indices = @transform_7, window_bounds = array<i64: 256, 512>}, {pipeline_mode = #tpu.pipeline_mode<synchronous>, transform_indices = @transform_8, window_bounds = array<i64: 256, 256>}, {pipeline_mode = #tpu.pipeline_mode<synchronous>, transform_indices = @transform_9, window_bounds = array<i64: 1, 256>}, {pipeline_mode = #tpu.pipeline_mode<synchronous>, transform_indices = @transform_10, window_bounds = array<i64: 256, 1024>}, {pipeline_mode = #tpu.pipeline_mode<synchronous>, transform_indices = @transform_11, window_bounds = array<i64: 1024, 256>}, {pipeline_mode = #tpu.pipeline_mode<synchronous>, transform_indices = @transform_12, window_bounds = array<i64: 1, 256>}, {transform_indices = @transform_13, window_bounds = array<i64: 1, 8, 256>}]} {
    %c0_i32 = arith.constant 0 : i32
    %0 = arith.cmpi eq, %arg1, %c0_i32 : i32
    %1 = arith.extui %0 : i1 to i32
    %c0_i32_0 = arith.constant 0 : i32
    %2 = arith.cmpi ne, %1, %c0_i32_0 : i32
    scf.if %2 {
      %c0_96 = arith.constant 0 : index
      %c0_97 = arith.constant 0 : index
      %c0_98 = arith.constant 0 : index
      %209 = vector.load %arg2[%c0_96, %c0_97, %c0_98] : memref<1x16x256xbf16, #tpu.memory_space<vmem>>, vector<1x16x256xbf16>
      %210 = vector.shape_cast %209 : vector<1x16x256xbf16> to vector<16x256xbf16>
      %c0_99 = arith.constant 0 : index
      %c0_100 = arith.constant 0 : index
      %211 = vector.load %arg5[%c0_99, %c0_100] : memref<256x512xbf16, #tpu.memory_space<vmem>>, vector<256x512xbf16>
      %cst_101 = arith.constant dense<0.000000e+00> : vector<16x512xf32>
      %212 = tpu.matmul %210, %211, %cst_101 {dimension_numbers = #tpu.dot_dimension_numbers<[1], [0], [0], [1], [0, 0, 1, 1], [], []>} : vector<16x256xbf16>, vector<256x512xbf16>, vector<16x512xf32> -> vector<16x512xf32>
      %213 = vector.extract_strided_slice %212 {offsets = [0, 0], sizes = [16, 256], strides = [1, 1]} : vector<16x512xf32> to vector<16x256xf32>
      %214 = arith.truncf %213 : vector<16x256xf32> to vector<16x256xbf16>
      %c0_102 = arith.constant 0 : index
      %c0_103 = arith.constant 0 : index
      %215 = vector.load %arg16[%c0_102, %c0_103] : memref<16x256xbf16, #tpu.memory_space<vmem>>, vector<16x256xbf16>
      tpu.vector_store %arg16[%c0_102, %c0_103], %214 {strides = array<i32>} : memref<16x256xbf16, #tpu.memory_space<vmem>>, vector<16x256xbf16>,
      %216 = vector.extract_strided_slice %212 {offsets = [0, 256], sizes = [16, 256], strides = [1, 1]} : vector<16x512xf32> to vector<16x256xf32>
      %217 = arith.truncf %216 : vector<16x256xf32> to vector<16x256xbf16>
      %c0_104 = arith.constant 0 : index
      %c0_105 = arith.constant 0 : index
      %218 = vector.load %arg17[%c0_104, %c0_105] : memref<16x256xbf16, #tpu.memory_space<vmem>>, vector<16x256xbf16>
      tpu.vector_store %arg17[%c0_104, %c0_105], %217 {strides = array<i32>} : memref<16x256xbf16, #tpu.memory_space<vmem>>, vector<16x256xbf16>,
      %c0_106 = arith.constant 0 : index
      %c0_107 = arith.constant 0 : index
      %c0_108 = arith.constant 0 : index
      %219 = vector.load %arg3[%c0_106, %c0_107, %c0_108] : memref<1x16x256xbf16, #tpu.memory_space<vmem>>, vector<1x16x256xbf16>
      %220 = vector.shape_cast %219 : vector<1x16x256xbf16> to vector<16x256xbf16>
      %c0_109 = arith.constant 0 : index
      %c0_110 = arith.constant 0 : index
      %221 = vector.load %arg9[%c0_109, %c0_110] : memref<256x512xbf16, #tpu.memory_space<vmem>>, vector<256x512xbf16>
      %cst_111 = arith.constant dense<0.000000e+00> : vector<16x512xf32>
      %222 = tpu.matmul %220, %221, %cst_111 {dimension_numbers = #tpu.dot_dimension_numbers<[1], [0], [0], [1], [0, 0, 1, 1], [], []>} : vector<16x256xbf16>, vector<256x512xbf16>, vector<16x512xf32> -> vector<16x512xf32>
      %223 = vector.extract_strided_slice %222 {offsets = [0, 0], sizes = [16, 256], strides = [1, 1]} : vector<16x512xf32> to vector<16x256xf32>
      %224 = arith.truncf %223 : vector<16x256xf32> to vector<16x256xbf16>
      %c0_112 = arith.constant 0 : index
      %c0_113 = arith.constant 0 : index
      %225 = vector.load %arg18[%c0_112, %c0_113] : memref<16x256xbf16, #tpu.memory_space<vmem>>, vector<16x256xbf16>
      tpu.vector_store %arg18[%c0_112, %c0_113], %224 {strides = array<i32>} : memref<16x256xbf16, #tpu.memory_space<vmem>>, vector<16x256xbf16>,
      %226 = vector.extract_strided_slice %222 {offsets = [0, 256], sizes = [16, 256], strides = [1, 1]} : vector<16x512xf32> to vector<16x256xf32>
      %227 = arith.truncf %226 : vector<16x256xf32> to vector<16x256xbf16>
      %c0_114 = arith.constant 0 : index
      %c0_115 = arith.constant 0 : index
      %228 = vector.load %arg19[%c0_114, %c0_115] : memref<16x256xbf16, #tpu.memory_space<vmem>>, vector<16x256xbf16>
      tpu.vector_store %arg19[%c0_114, %c0_115], %227 {strides = array<i32>} : memref<16x256xbf16, #tpu.memory_space<vmem>>, vector<16x256xbf16>,
    } else {
    }
    %c8_i32 = arith.constant 8 : i32
    %3 = arith.muli %arg1, %c8_i32 : i32
    %4 = tpu.assume_multiple %3, 8 : i32
    %c0 = arith.constant 0 : index
    %5 = arith.index_cast %4 : i32 to index
    %c0_1 = arith.constant 0 : index
    %6 = vector.load %arg2[%c0, %5, %c0_1] : memref<1x16x256xbf16, #tpu.memory_space<vmem>>, vector<1x8x256xbf16>
    %7 = vector.shape_cast %6 : vector<1x8x256xbf16> to vector<8x256xbf16>
    %c0_2 = arith.constant 0 : index
    %c0_3 = arith.constant 0 : index
    %8 = vector.load %arg4[%c0_2, %c0_3] : memref<256x256xbf16, #tpu.memory_space<vmem>>, vector<256x256xbf16>
    %cst = arith.constant dense<0.000000e+00> : vector<8x256xf32>
    %9 = tpu.matmul %7, %8, %cst {dimension_numbers = #tpu.dot_dimension_numbers<[1], [0], [0], [1], [0, 0, 1, 1], [], []>} : vector<8x256xbf16>, vector<256x256xbf16>, vector<8x256xf32> -> vector<8x256xf32>
    %c0_4 = arith.constant 0 : index
    %c0_5 = arith.constant 0 : index
    %10 = vector.load %arg16[%c0_4, %c0_5] : memref<16x256xbf16, #tpu.memory_space<vmem>>, vector<16x256xbf16>
    %c0_6 = arith.constant 0 : index
    %c0_7 = arith.constant 0 : index
    %11 = vector.load %arg17[%c0_6, %c0_7] : memref<16x256xbf16, #tpu.memory_space<vmem>>, vector<16x256xbf16>
    %cst_8 = arith.constant 0.0883883461 : f32
    %12 = vector.broadcast %cst_8 : f32 to vector<8x256xf32>
    %13 = arith.mulf %9, %12 : vector<8x256xf32>
    %14 = arith.truncf %13 : vector<8x256xf32> to vector<8x256xbf16>
    %cst_9 = arith.constant 0.000000e+00 : f32
    %15 = vector.broadcast %cst_9 : f32 to vector<8x256xf32>
    %16 = vector.extract_strided_slice %14 {offsets = [0, 0], sizes = [8, 128], strides = [1, 1]} : vector<8x256xbf16> to vector<8x128xbf16>
    %17 = vector.extract_strided_slice %10 {offsets = [0, 0], sizes = [16, 128], strides = [1, 1]} : vector<16x256xbf16> to vector<16x128xbf16>
    %18 = vector.extract_strided_slice %11 {offsets = [0, 0], sizes = [16, 128], strides = [1, 1]} : vector<16x256xbf16> to vector<16x128xbf16>
    %cst_10 = arith.constant dense<0.000000e+00> : vector<8x16xf32>
    %19 = tpu.matmul %16, %17, %cst_10 {dimension_numbers = #tpu.dot_dimension_numbers<[1], [1], [0], [0], [0, 0, 1, 0], [], []>} : vector<8x128xbf16>, vector<16x128xbf16>, vector<8x16xf32> -> vector<8x16xf32>
    %cst_11 = arith.constant dense<0xFF800000> : vector<8xf32>
    %20 = vector.multi_reduction <maximumf>, %19, %cst_11 [1] : vector<8x16xf32> to vector<8xf32>
    %21 = vector.shape_cast %20 : vector<8xf32> to vector<8x1xf32>
    %22 = vector.broadcast %21 : vector<8x1xf32> to vector<8x16xf32>
    %23 = arith.subf %19, %22 : vector<8x16xf32>
    %24 = math.exp %23 : vector<8x16xf32>
    %cst_12 = arith.constant dense<0.000000e+00> : vector<8xf32>
    %25 = vector.multi_reduction <add>, %24, %cst_12 [1] : vector<8x16xf32> to vector<8xf32>
    %26 = vector.shape_cast %25 : vector<8xf32> to vector<8x1xf32>
    %27 = tpu.reciprocal %26 {approx = true} : vector<8x1xf32> -> vector<8x1xf32>
    %28 = vector.broadcast %27 : vector<8x1xf32> to vector<8x16xf32>
    %29 = arith.mulf %24, %28 : vector<8x16xf32>
    %30 = arith.truncf %29 : vector<8x16xf32> to vector<8x16xbf16>
    %cst_13 = arith.constant dense<0.000000e+00> : vector<8x128xf32>
    %31 = tpu.matmul %30, %18, %cst_13 {dimension_numbers = #tpu.dot_dimension_numbers<[1], [0], [0], [1], [0, 0, 1, 1], [], []>} : vector<8x16xbf16>, vector<16x128xbf16>, vector<8x128xf32> -> vector<8x128xf32>
    %32 = arith.truncf %31 : vector<8x128xf32> to vector<8x128xbf16>
    %c0_14 = arith.constant 0 : index
    %c0_15 = arith.constant 0 : index
    %33 = vector.load %arg6[%c0_14, %c0_15] : memref<256x256xbf16, #tpu.memory_space<vmem>>, vector<128x256xbf16>
    %cst_16 = arith.constant dense<0.000000e+00> : vector<8x256xf32>
    %34 = tpu.matmul %32, %33, %cst_16 {dimension_numbers = #tpu.dot_dimension_numbers<[1], [0], [0], [1], [0, 0, 1, 1], [], []>} : vector<8x128xbf16>, vector<128x256xbf16>, vector<8x256xf32> -> vector<8x256xf32>
    %35 = arith.addf %15, %34 : vector<8x256xf32>
    %36 = vector.extract_strided_slice %14 {offsets = [0, 128], sizes = [8, 128], strides = [1, 1]} : vector<8x256xbf16> to vector<8x128xbf16>
    %37 = vector.extract_strided_slice %10 {offsets = [0, 128], sizes = [16, 128], strides = [1, 1]} : vector<16x256xbf16> to vector<16x128xbf16>
    %38 = vector.extract_strided_slice %11 {offsets = [0, 128], sizes = [16, 128], strides = [1, 1]} : vector<16x256xbf16> to vector<16x128xbf16>
    %cst_17 = arith.constant dense<0.000000e+00> : vector<8x16xf32>
    %39 = tpu.matmul %36, %37, %cst_17 {dimension_numbers = #tpu.dot_dimension_numbers<[1], [1], [0], [0], [0, 0, 1, 0], [], []>} : vector<8x128xbf16>, vector<16x128xbf16>, vector<8x16xf32> -> vector<8x16xf32>
    %cst_18 = arith.constant dense<0xFF800000> : vector<8xf32>
    %40 = vector.multi_reduction <maximumf>, %39, %cst_18 [1] : vector<8x16xf32> to vector<8xf32>
    %41 = vector.shape_cast %40 : vector<8xf32> to vector<8x1xf32>
    %42 = vector.broadcast %41 : vector<8x1xf32> to vector<8x16xf32>
    %43 = arith.subf %39, %42 : vector<8x16xf32>
    %44 = math.exp %43 : vector<8x16xf32>
    %cst_19 = arith.constant dense<0.000000e+00> : vector<8xf32>
    %45 = vector.multi_reduction <add>, %44, %cst_19 [1] : vector<8x16xf32> to vector<8xf32>
    %46 = vector.shape_cast %45 : vector<8xf32> to vector<8x1xf32>
    %47 = tpu.reciprocal %46 {approx = true} : vector<8x1xf32> -> vector<8x1xf32>
    %48 = vector.broadcast %47 : vector<8x1xf32> to vector<8x16xf32>
    %49 = arith.mulf %44, %48 : vector<8x16xf32>
    %50 = arith.truncf %49 : vector<8x16xf32> to vector<8x16xbf16>
    %cst_20 = arith.constant dense<0.000000e+00> : vector<8x128xf32>
    %51 = tpu.matmul %50, %38, %cst_20 {dimension_numbers = #tpu.dot_dimension_numbers<[1], [0], [0], [1], [0, 0, 1, 1], [], []>} : vector<8x16xbf16>, vector<16x128xbf16>, vector<8x128xf32> -> vector<8x128xf32>
    %52 = arith.truncf %51 : vector<8x128xf32> to vector<8x128xbf16>
    %c128 = arith.constant 128 : index
    %c0_21 = arith.constant 0 : index
    %53 = vector.load %arg6[%c128, %c0_21] : memref<256x256xbf16, #tpu.memory_space<vmem>>, vector<128x256xbf16>
    %cst_22 = arith.constant dense<0.000000e+00> : vector<8x256xf32>
    %54 = tpu.matmul %52, %53, %cst_22 {dimension_numbers = #tpu.dot_dimension_numbers<[1], [0], [0], [1], [0, 0, 1, 1], [], []>} : vector<8x128xbf16>, vector<128x256xbf16>, vector<8x256xf32> -> vector<8x256xf32>
    %55 = arith.addf %35, %54 : vector<8x256xf32>
    %56 = arith.extf %7 : vector<8x256xbf16> to vector<8x256xf32>
    %57 = arith.addf %55, %56 : vector<8x256xf32>
    %c0_23 = arith.constant 0 : index
    %c0_24 = arith.constant 0 : index
    %58 = vector.load %arg7[%c0_23, %c0_24] : memref<1x256xf32, #tpu.memory_space<vmem>>, vector<1x256xf32>
    %cst_25 = arith.constant dense<0.000000e+00> : vector<8xf32>
    %59 = vector.multi_reduction <add>, %57, %cst_25 [1] : vector<8x256xf32> to vector<8xf32>
    %60 = vector.shape_cast %59 : vector<8xf32> to vector<8x1xf32>
    %cst_26 = arith.constant 2.560000e+02 : f32
    %61 = vector.broadcast %cst_26 : f32 to vector<8x1xf32>
    %62 = arith.divf %60, %61 : vector<8x1xf32>
    %63 = arith.mulf %57, %57 : vector<8x256xf32>
    %cst_27 = arith.constant dense<0.000000e+00> : vector<8xf32>
    %64 = vector.multi_reduction <add>, %63, %cst_27 [1] : vector<8x256xf32> to vector<8xf32>
    %65 = vector.shape_cast %64 : vector<8xf32> to vector<8x1xf32>
    %cst_28 = arith.constant 2.560000e+02 : f32
    %66 = vector.broadcast %cst_28 : f32 to vector<8x1xf32>
    %67 = arith.divf %65, %66 : vector<8x1xf32>
    %68 = arith.mulf %62, %62 : vector<8x1xf32>
    %69 = arith.subf %67, %68 : vector<8x1xf32>
    %70 = vector.broadcast %62 : vector<8x1xf32> to vector<8x256xf32>
    %71 = arith.subf %57, %70 : vector<8x256xf32>
    %cst_29 = arith.constant 9.99999974E-6 : f32
    %72 = vector.broadcast %cst_29 : f32 to vector<8x1xf32>
    %73 = arith.addf %69, %72 : vector<8x1xf32>
    %74 = math.rsqrt %73 : vector<8x1xf32>
    %75 = vector.broadcast %74 : vector<8x1xf32> to vector<8x256xf32>
    %76 = arith.mulf %71, %75 : vector<8x256xf32>
    %77 = vector.broadcast %58 : vector<1x256xf32> to vector<8x256xf32>
    %78 = arith.mulf %76, %77 : vector<8x256xf32>
    %79 = arith.truncf %78 : vector<8x256xf32> to vector<8x256xbf16>
    %c0_30 = arith.constant 0 : index
    %c0_31 = arith.constant 0 : index
    %80 = vector.load %arg8[%c0_30, %c0_31] : memref<256x256xbf16, #tpu.memory_space<vmem>>, vector<256x256xbf16>
    %cst_32 = arith.constant dense<0.000000e+00> : vector<8x256xf32>
    %81 = tpu.matmul %79, %80, %cst_32 {dimension_numbers = #tpu.dot_dimension_numbers<[1], [0], [0], [1], [0, 0, 1, 1], [], []>} : vector<8x256xbf16>, vector<256x256xbf16>, vector<8x256xf32> -> vector<8x256xf32>
    %c0_33 = arith.constant 0 : index
    %c0_34 = arith.constant 0 : index
    %82 = vector.load %arg18[%c0_33, %c0_34] : memref<16x256xbf16, #tpu.memory_space<vmem>>, vector<16x256xbf16>
    %c0_35 = arith.constant 0 : index
    %c0_36 = arith.constant 0 : index
    %83 = vector.load %arg19[%c0_35, %c0_36] : memref<16x256xbf16, #tpu.memory_space<vmem>>, vector<16x256xbf16>
    %cst_37 = arith.constant 0.0883883461 : f32
    %84 = vector.broadcast %cst_37 : f32 to vector<8x256xf32>
    %85 = arith.mulf %81, %84 : vector<8x256xf32>
    %86 = arith.truncf %85 : vector<8x256xf32> to vector<8x256xbf16>
    %cst_38 = arith.constant 0.000000e+00 : f32
    %87 = vector.broadcast %cst_38 : f32 to vector<8x256xf32>
    %88 = vector.extract_strided_slice %86 {offsets = [0, 0], sizes = [8, 128], strides = [1, 1]} : vector<8x256xbf16> to vector<8x128xbf16>
    %89 = vector.extract_strided_slice %82 {offsets = [0, 0], sizes = [16, 128], strides = [1, 1]} : vector<16x256xbf16> to vector<16x128xbf16>
    %90 = vector.extract_strided_slice %83 {offsets = [0, 0], sizes = [16, 128], strides = [1, 1]} : vector<16x256xbf16> to vector<16x128xbf16>
    %cst_39 = arith.constant dense<0.000000e+00> : vector<8x16xf32>
    %91 = tpu.matmul %88, %89, %cst_39 {dimension_numbers = #tpu.dot_dimension_numbers<[1], [1], [0], [0], [0, 0, 1, 0], [], []>} : vector<8x128xbf16>, vector<16x128xbf16>, vector<8x16xf32> -> vector<8x16xf32>
    %cst_40 = arith.constant dense<0xFF800000> : vector<8xf32>
    %92 = vector.multi_reduction <maximumf>, %91, %cst_40 [1] : vector<8x16xf32> to vector<8xf32>
    %93 = vector.shape_cast %92 : vector<8xf32> to vector<8x1xf32>
    %94 = vector.broadcast %93 : vector<8x1xf32> to vector<8x16xf32>
    %95 = arith.subf %91, %94 : vector<8x16xf32>
    %96 = math.exp %95 : vector<8x16xf32>
    %cst_41 = arith.constant dense<0.000000e+00> : vector<8xf32>
    %97 = vector.multi_reduction <add>, %96, %cst_41 [1] : vector<8x16xf32> to vector<8xf32>
    %98 = vector.shape_cast %97 : vector<8xf32> to vector<8x1xf32>
    %99 = tpu.reciprocal %98 {approx = true} : vector<8x1xf32> -> vector<8x1xf32>
    %100 = vector.broadcast %99 : vector<8x1xf32> to vector<8x16xf32>
    %101 = arith.mulf %96, %100 : vector<8x16xf32>
    %102 = arith.truncf %101 : vector<8x16xf32> to vector<8x16xbf16>
    %cst_42 = arith.constant dense<0.000000e+00> : vector<8x128xf32>
    %103 = tpu.matmul %102, %90, %cst_42 {dimension_numbers = #tpu.dot_dimension_numbers<[1], [0], [0], [1], [0, 0, 1, 1], [], []>} : vector<8x16xbf16>, vector<16x128xbf16>, vector<8x128xf32> -> vector<8x128xf32>
    %104 = arith.truncf %103 : vector<8x128xf32> to vector<8x128xbf16>
    %c0_43 = arith.constant 0 : index
    %c0_44 = arith.constant 0 : index
    %105 = vector.load %arg10[%c0_43, %c0_44] : memref<256x256xbf16, #tpu.memory_space<vmem>>, vector<128x256xbf16>
    %cst_45 = arith.constant dense<0.000000e+00> : vector<8x256xf32>
    %106 = tpu.matmul %104, %105, %cst_45 {dimension_numbers = #tpu.dot_dimension_numbers<[1], [0], [0], [1], [0, 0, 1, 1], [], []>} : vector<8x128xbf16>, vector<128x256xbf16>, vector<8x256xf32> -> vector<8x256xf32>
    %107 = arith.addf %87, %106 : vector<8x256xf32>
    %108 = vector.extract_strided_slice %86 {offsets = [0, 128], sizes = [8, 128], strides = [1, 1]} : vector<8x256xbf16> to vector<8x128xbf16>
    %109 = vector.extract_strided_slice %82 {offsets = [0, 128], sizes = [16, 128], strides = [1, 1]} : vector<16x256xbf16> to vector<16x128xbf16>
    %110 = vector.extract_strided_slice %83 {offsets = [0, 128], sizes = [16, 128], strides = [1, 1]} : vector<16x256xbf16> to vector<16x128xbf16>
    %cst_46 = arith.constant dense<0.000000e+00> : vector<8x16xf32>
    %111 = tpu.matmul %108, %109, %cst_46 {dimension_numbers = #tpu.dot_dimension_numbers<[1], [1], [0], [0], [0, 0, 1, 0], [], []>} : vector<8x128xbf16>, vector<16x128xbf16>, vector<8x16xf32> -> vector<8x16xf32>
    %cst_47 = arith.constant dense<0xFF800000> : vector<8xf32>
    %112 = vector.multi_reduction <maximumf>, %111, %cst_47 [1] : vector<8x16xf32> to vector<8xf32>
    %113 = vector.shape_cast %112 : vector<8xf32> to vector<8x1xf32>
    %114 = vector.broadcast %113 : vector<8x1xf32> to vector<8x16xf32>
    %115 = arith.subf %111, %114 : vector<8x16xf32>
    %116 = math.exp %115 : vector<8x16xf32>
    %cst_48 = arith.constant dense<0.000000e+00> : vector<8xf32>
    %117 = vector.multi_reduction <add>, %116, %cst_48 [1] : vector<8x16xf32> to vector<8xf32>
    %118 = vector.shape_cast %117 : vector<8xf32> to vector<8x1xf32>
    %119 = tpu.reciprocal %118 {approx = true} : vector<8x1xf32> -> vector<8x1xf32>
    %120 = vector.broadcast %119 : vector<8x1xf32> to vector<8x16xf32>
    %121 = arith.mulf %116, %120 : vector<8x16xf32>
    %122 = arith.truncf %121 : vector<8x16xf32> to vector<8x16xbf16>
    %cst_49 = arith.constant dense<0.000000e+00> : vector<8x128xf32>
    %123 = tpu.matmul %122, %110, %cst_49 {dimension_numbers = #tpu.dot_dimension_numbers<[1], [0], [0], [1], [0, 0, 1, 1], [], []>} : vector<8x16xbf16>, vector<16x128xbf16>, vector<8x128xf32> -> vector<8x128xf32>
    %124 = arith.truncf %123 : vector<8x128xf32> to vector<8x128xbf16>
    %c128_50 = arith.constant 128 : index
    %c0_51 = arith.constant 0 : index
    %125 = vector.load %arg10[%c128_50, %c0_51] : memref<256x256xbf16, #tpu.memory_space<vmem>>, vector<128x256xbf16>
    %cst_52 = arith.constant dense<0.000000e+00> : vector<8x256xf32>
    %126 = tpu.matmul %124, %125, %cst_52 {dimension_numbers = #tpu.dot_dimension_numbers<[1], [0], [0], [1], [0, 0, 1, 1], [], []>} : vector<8x128xbf16>, vector<128x256xbf16>, vector<8x256xf32> -> vector<8x256xf32>
    %127 = arith.addf %107, %126 : vector<8x256xf32>
    %128 = arith.addf %127, %78 : vector<8x256xf32>
    %c0_53 = arith.constant 0 : index
    %c0_54 = arith.constant 0 : index
    %129 = vector.load %arg11[%c0_53, %c0_54] : memref<1x256xf32, #tpu.memory_space<vmem>>, vector<1x256xf32>
    %cst_55 = arith.constant dense<0.000000e+00> : vector<8xf32>
    %130 = vector.multi_reduction <add>, %128, %cst_55 [1] : vector<8x256xf32> to vector<8xf32>
    %131 = vector.shape_cast %130 : vector<8xf32> to vector<8x1xf32>
    %cst_56 = arith.constant 2.560000e+02 : f32
    %132 = vector.broadcast %cst_56 : f32 to vector<8x1xf32>
    %133 = arith.divf %131, %132 : vector<8x1xf32>
    %134 = arith.mulf %128, %128 : vector<8x256xf32>
    %cst_57 = arith.constant dense<0.000000e+00> : vector<8xf32>
    %135 = vector.multi_reduction <add>, %134, %cst_57 [1] : vector<8x256xf32> to vector<8xf32>
    %136 = vector.shape_cast %135 : vector<8xf32> to vector<8x1xf32>
    %cst_58 = arith.constant 2.560000e+02 : f32
    %137 = vector.broadcast %cst_58 : f32 to vector<8x1xf32>
    %138 = arith.divf %136, %137 : vector<8x1xf32>
    %139 = arith.mulf %133, %133 : vector<8x1xf32>
    %140 = arith.subf %138, %139 : vector<8x1xf32>
    %141 = vector.broadcast %133 : vector<8x1xf32> to vector<8x256xf32>
    %142 = arith.subf %128, %141 : vector<8x256xf32>
    %cst_59 = arith.constant 9.99999974E-6 : f32
    %143 = vector.broadcast %cst_59 : f32 to vector<8x1xf32>
    %144 = arith.addf %140, %143 : vector<8x1xf32>
    %145 = math.rsqrt %144 : vector<8x1xf32>
    %146 = vector.broadcast %145 : vector<8x1xf32> to vector<8x256xf32>
    %147 = arith.mulf %142, %146 : vector<8x256xf32>
    %148 = vector.broadcast %129 : vector<1x256xf32> to vector<8x256xf32>
    %149 = arith.mulf %147, %148 : vector<8x256xf32>
    %150 = arith.truncf %149 : vector<8x256xf32> to vector<8x256xbf16>
    %cst_60 = arith.constant 0.000000e+00 : f32
    %151 = vector.broadcast %cst_60 : f32 to vector<8x256xf32>
    %c0_61 = arith.constant 0 : index
    %c0_62 = arith.constant 0 : index
    %152 = vector.load %arg12[%c0_61, %c0_62] : memref<256x1024xbf16, #tpu.memory_space<vmem>>, vector<256x256xbf16>
    %cst_63 = arith.constant dense<0.000000e+00> : vector<8x256xf32>
    %153 = tpu.matmul %150, %152, %cst_63 {dimension_numbers = #tpu.dot_dimension_numbers<[1], [0], [0], [1], [0, 0, 1, 1], [], []>} : vector<8x256xbf16>, vector<256x256xbf16>, vector<8x256xf32> -> vector<8x256xf32>
    %cst_64 = arith.constant 0.000000e+00 : f32
    %154 = vector.broadcast %cst_64 : f32 to vector<8x256xf32>
    %155 = arith.maximumf %153, %154 : vector<8x256xf32>
    %156 = arith.truncf %155 : vector<8x256xf32> to vector<8x256xbf16>
    %c0_65 = arith.constant 0 : index
    %c0_66 = arith.constant 0 : index
    %157 = vector.load %arg13[%c0_65, %c0_66] : memref<1024x256xbf16, #tpu.memory_space<vmem>>, vector<256x256xbf16>
    %cst_67 = arith.constant dense<0.000000e+00> : vector<8x256xf32>
    %158 = tpu.matmul %156, %157, %cst_67 {dimension_numbers = #tpu.dot_dimension_numbers<[1], [0], [0], [1], [0, 0, 1, 1], [], []>} : vector<8x256xbf16>, vector<256x256xbf16>, vector<8x256xf32> -> vector<8x256xf32>
    %159 = arith.addf %151, %158 : vector<8x256xf32>
    %c0_68 = arith.constant 0 : index
    %c256 = arith.constant 256 : index
    %160 = vector.load %arg12[%c0_68, %c256] : memref<256x1024xbf16, #tpu.memory_space<vmem>>, vector<256x256xbf16>
    %cst_69 = arith.constant dense<0.000000e+00> : vector<8x256xf32>
    %161 = tpu.matmul %150, %160, %cst_69 {dimension_numbers = #tpu.dot_dimension_numbers<[1], [0], [0], [1], [0, 0, 1, 1], [], []>} : vector<8x256xbf16>, vector<256x256xbf16>, vector<8x256xf32> -> vector<8x256xf32>
    %cst_70 = arith.constant 0.000000e+00 : f32
    %162 = vector.broadcast %cst_70 : f32 to vector<8x256xf32>
    %163 = arith.maximumf %161, %162 : vector<8x256xf32>
    %164 = arith.truncf %163 : vector<8x256xf32> to vector<8x256xbf16>
    %c256_71 = arith.constant 256 : index
    %c0_72 = arith.constant 0 : index
    %165 = vector.load %arg13[%c256_71, %c0_72] : memref<1024x256xbf16, #tpu.memory_space<vmem>>, vector<256x256xbf16>
    %cst_73 = arith.constant dense<0.000000e+00> : vector<8x256xf32>
    %166 = tpu.matmul %164, %165, %cst_73 {dimension_numbers = #tpu.dot_dimension_numbers<[1], [0], [0], [1], [0, 0, 1, 1], [], []>} : vector<8x256xbf16>, vector<256x256xbf16>, vector<8x256xf32> -> vector<8x256xf32>
    %167 = arith.addf %159, %166 : vector<8x256xf32>
    %c0_74 = arith.constant 0 : index
    %c512 = arith.constant 512 : index
    %168 = vector.load %arg12[%c0_74, %c512] : memref<256x1024xbf16, #tpu.memory_space<vmem>>, vector<256x256xbf16>
    %cst_75 = arith.constant dense<0.000000e+00> : vector<8x256xf32>
    %169 = tpu.matmul %150, %168, %cst_75 {dimension_numbers = #tpu.dot_dimension_numbers<[1], [0], [0], [1], [0, 0, 1, 1], [], []>} : vector<8x256xbf16>, vector<256x256xbf16>, vector<8x256xf32> -> vector<8x256xf32>
    %cst_76 = arith.constant 0.000000e+00 : f32
    %170 = vector.broadcast %cst_76 : f32 to vector<8x256xf32>
    %171 = arith.maximumf %169, %170 : vector<8x256xf32>
    %172 = arith.truncf %171 : vector<8x256xf32> to vector<8x256xbf16>
    %c512_77 = arith.constant 512 : index
    %c0_78 = arith.constant 0 : index
    %173 = vector.load %arg13[%c512_77, %c0_78] : memref<1024x256xbf16, #tpu.memory_space<vmem>>, vector<256x256xbf16>
    %cst_79 = arith.constant dense<0.000000e+00> : vector<8x256xf32>
    %174 = tpu.matmul %172, %173, %cst_79 {dimension_numbers = #tpu.dot_dimension_numbers<[1], [0], [0], [1], [0, 0, 1, 1], [], []>} : vector<8x256xbf16>, vector<256x256xbf16>, vector<8x256xf32> -> vector<8x256xf32>
    %175 = arith.addf %167, %174 : vector<8x256xf32>
    %c0_80 = arith.constant 0 : index
    %c768 = arith.constant 768 : index
    %176 = vector.load %arg12[%c0_80, %c768] : memref<256x1024xbf16, #tpu.memory_space<vmem>>, vector<256x256xbf16>
    %cst_81 = arith.constant dense<0.000000e+00> : vector<8x256xf32>
    %177 = tpu.matmul %150, %176, %cst_81 {dimension_numbers = #tpu.dot_dimension_numbers<[1], [0], [0], [1], [0, 0, 1, 1], [], []>} : vector<8x256xbf16>, vector<256x256xbf16>, vector<8x256xf32> -> vector<8x256xf32>
    %cst_82 = arith.constant 0.000000e+00 : f32
    %178 = vector.broadcast %cst_82 : f32 to vector<8x256xf32>
    %179 = arith.maximumf %177, %178 : vector<8x256xf32>
    %180 = arith.truncf %179 : vector<8x256xf32> to vector<8x256xbf16>
    %c768_83 = arith.constant 768 : index
    %c0_84 = arith.constant 0 : index
    %181 = vector.load %arg13[%c768_83, %c0_84] : memref<1024x256xbf16, #tpu.memory_space<vmem>>, vector<256x256xbf16>
    %cst_85 = arith.constant dense<0.000000e+00> : vector<8x256xf32>
    %182 = tpu.matmul %180, %181, %cst_85 {dimension_numbers = #tpu.dot_dimension_numbers<[1], [0], [0], [1], [0, 0, 1, 1], [], []>} : vector<8x256xbf16>, vector<256x256xbf16>, vector<8x256xf32> -> vector<8x256xf32>
    %183 = arith.addf %175, %182 : vector<8x256xf32>
    %184 = arith.addf %183, %149 : vector<8x256xf32>
    %c0_86 = arith.constant 0 : index
    %c0_87 = arith.constant 0 : index
    %185 = vector.load %arg14[%c0_86, %c0_87] : memref<1x256xf32, #tpu.memory_space<vmem>>, vector<1x256xf32>
    %cst_88 = arith.constant dense<0.000000e+00> : vector<8xf32>
    %186 = vector.multi_reduction <add>, %184, %cst_88 [1] : vector<8x256xf32> to vector<8xf32>
    %187 = vector.shape_cast %186 : vector<8xf32> to vector<8x1xf32>
    %cst_89 = arith.constant 2.560000e+02 : f32
    %188 = vector.broadcast %cst_89 : f32 to vector<8x1xf32>
    %189 = arith.divf %187, %188 : vector<8x1xf32>
    %190 = arith.mulf %184, %184 : vector<8x256xf32>
    %cst_90 = arith.constant dense<0.000000e+00> : vector<8xf32>
    %191 = vector.multi_reduction <add>, %190, %cst_90 [1] : vector<8x256xf32> to vector<8xf32>
    %192 = vector.shape_cast %191 : vector<8xf32> to vector<8x1xf32>
    %cst_91 = arith.constant 2.560000e+02 : f32
    %193 = vector.broadcast %cst_91 : f32 to vector<8x1xf32>
    %194 = arith.divf %192, %193 : vector<8x1xf32>
    %195 = arith.mulf %189, %189 : vector<8x1xf32>
    %196 = arith.subf %194, %195 : vector<8x1xf32>
    %197 = vector.broadcast %189 : vector<8x1xf32> to vector<8x256xf32>
    %198 = arith.subf %184, %197 : vector<8x256xf32>
    %cst_92 = arith.constant 9.99999974E-6 : f32
    %199 = vector.broadcast %cst_92 : f32 to vector<8x1xf32>
    %200 = arith.addf %196, %199 : vector<8x1xf32>
    %201 = math.rsqrt %200 : vector<8x1xf32>
    %202 = vector.broadcast %201 : vector<8x1xf32> to vector<8x256xf32>
    %203 = arith.mulf %198, %202 : vector<8x256xf32>
    %204 = vector.broadcast %185 : vector<1x256xf32> to vector<8x256xf32>
    %205 = arith.mulf %203, %204 : vector<8x256xf32>
    %c0_93 = arith.constant 0 : index
    %c0_94 = arith.constant 0 : index
    %c0_95 = arith.constant 0 : index
    %206 = vector.load %arg15[%c0_93, %c0_94, %c0_95] : memref<1x8x256xf32, #tpu.memory_space<vmem>>, vector<1x8x256xf32>
    %207 = vector.shape_cast %206 : vector<1x8x256xf32> to vector<8x256xf32>
    %208 = vector.shape_cast %205 : vector<8x256xf32> to vector<1x8x256xf32>
    tpu.vector_store %arg15[%c0_93, %c0_94, %c0_95], %208 {strides = array<i32>} : memref<1x8x256xf32, #tpu.memory_space<vmem>>, vector<1x8x256xf32>,
    return
  }
  func.func @transform_0(%arg0: i32, %arg1: i32) -> (i32, i32, i32) {
    %c0_i32 = arith.constant 0 : i32
    %c0_i32_0 = arith.constant 0 : i32
    %c0_i32_1 = arith.constant 0 : i32
    return %arg0, %c0_i32, %c0_i32_0 : i32, i32, i32
  }
  func.func @transform_1(%arg0: i32, %arg1: i32) -> (i32, i32, i32) {
    %c0_i32 = arith.constant 0 : i32
    %c0_i32_0 = arith.constant 0 : i32
    %c0_i32_1 = arith.constant 0 : i32
    return %arg0, %c0_i32, %c0_i32_0 : i32, i32, i32
  }
  func.func @transform_2(%arg0: i32, %arg1: i32) -> (i32, i32) {
    %c0_i32 = arith.constant 0 : i32
    %c0_i32_0 = arith.constant 0 : i32
    %c0_i32_1 = arith.constant 0 : i32
    return %c0_i32, %c0_i32_0 : i32, i32
  }
  func.func @transform_3(%arg0: i32, %arg1: i32) -> (i32, i32) {
    %c0_i32 = arith.constant 0 : i32
    %c0_i32_0 = arith.constant 0 : i32
    %c0_i32_1 = arith.constant 0 : i32
    return %c0_i32, %c0_i32_0 : i32, i32
  }
  func.func @transform_4(%arg0: i32, %arg1: i32) -> (i32, i32) {
    %c0_i32 = arith.constant 0 : i32
    %c0_i32_0 = arith.constant 0 : i32
    %c0_i32_1 = arith.constant 0 : i32
    return %c0_i32, %c0_i32_0 : i32, i32
  }
  func.func @transform_5(%arg0: i32, %arg1: i32) -> (i32, i32) {
    %c0_i32 = arith.constant 0 : i32
    %c0_i32_0 = arith.constant 0 : i32
    %c0_i32_1 = arith.constant 0 : i32
    return %c0_i32, %c0_i32_0 : i32, i32
  }
  func.func @transform_6(%arg0: i32, %arg1: i32) -> (i32, i32) {
    %c0_i32 = arith.constant 0 : i32
    %c0_i32_0 = arith.constant 0 : i32
    %c0_i32_1 = arith.constant 0 : i32
    return %c0_i32, %c0_i32_0 : i32, i32
  }
  func.func @transform_7(%arg0: i32, %arg1: i32) -> (i32, i32) {
    %c0_i32 = arith.constant 0 : i32
    %c0_i32_0 = arith.constant 0 : i32
    %c0_i32_1 = arith.constant 0 : i32
    return %c0_i32, %c0_i32_0 : i32, i32
  }
  func.func @transform_8(%arg0: i32, %arg1: i32) -> (i32, i32) {
    %c0_i32 = arith.constant 0 : i32
    %c0_i32_0 = arith.constant 0 : i32
    %c0_i32_1 = arith.constant 0 : i32
    return %c0_i32, %c0_i32_0 : i32, i32
  }
  func.func @transform_9(%arg0: i32, %arg1: i32) -> (i32, i32) {
    %c0_i32 = arith.constant 0 : i32
    %c0_i32_0 = arith.constant 0 : i32
    %c0_i32_1 = arith.constant 0 : i32
    return %c0_i32, %c0_i32_0 : i32, i32
  }
  func.func @transform_10(%arg0: i32, %arg1: i32) -> (i32, i32) {
    %c0_i32 = arith.constant 0 : i32
    %c0_i32_0 = arith.constant 0 : i32
    %c0_i32_1 = arith.constant 0 : i32
    return %c0_i32, %c0_i32_0 : i32, i32
  }
  func.func @transform_11(%arg0: i32, %arg1: i32) -> (i32, i32) {
    %c0_i32 = arith.constant 0 : i32
    %c0_i32_0 = arith.constant 0 : i32
    %c0_i32_1 = arith.constant 0 : i32
    return %c0_i32, %c0_i32_0 : i32, i32
  }
  func.func @transform_12(%arg0: i32, %arg1: i32) -> (i32, i32) {
    %c0_i32 = arith.constant 0 : i32
    %c0_i32_0 = arith.constant 0 : i32
    %c0_i32_1 = arith.constant 0 : i32
    return %c0_i32, %c0_i32_0 : i32, i32
  }
  func.func @transform_13(%arg0: i32, %arg1: i32) -> (i32, i32, i32) {
    %c0_i32 = arith.constant 0 : i32
    %c0_i32_0 = arith.constant 0 : i32
    return %arg0, %arg1, %c0_i32 : i32, i32, i32
  }
}

module attributes {stable_mosaic.version = 11 : i64} {
  func.func @decoder_block_kernel(%arg0: i32, %arg1: i32, %arg2: memref<1x16x256xbf16, #tpu.memory_space<vmem>>, %arg3: memref<1x16x256xbf16, #tpu.memory_space<vmem>>, %arg4: memref<256x256xbf16, #tpu.memory_space<vmem>>, %arg5: memref<256x512xbf16, #tpu.memory_space<vmem>>, %arg6: memref<256x256xbf16, #tpu.memory_space<vmem>>, %arg7: memref<1x256xf32, #tpu.memory_space<vmem>>, %arg8: memref<256x256xbf16, #tpu.memory_space<vmem>>, %arg9: memref<256x512xbf16, #tpu.memory_space<vmem>>, %arg10: memref<256x256xbf16, #tpu.memory_space<vmem>>, %arg11: memref<1x256xf32, #tpu.memory_space<vmem>>, %arg12: memref<256x1024xbf16, #tpu.memory_space<vmem>>, %arg13: memref<1024x256xbf16, #tpu.memory_space<vmem>>, %arg14: memref<1x256xf32, #tpu.memory_space<vmem>>, %arg15: memref<1x8x256xf32, #tpu.memory_space<vmem>>, %arg16: memref<16x256xbf16, #tpu.memory_space<vmem>>, %arg17: memref<16x256xbf16, #tpu.memory_space<vmem>>, %arg18: memref<16x256xbf16, #tpu.memory_space<vmem>>, %arg19: memref<16x256xbf16, #tpu.memory_space<vmem>>) attributes {dimension_semantics = [#tpu.dimension_semantics<parallel>, #tpu.dimension_semantics<arbitrary>], iteration_bounds = array<i64: 2, 2>, scalar_prefetch = 0 : i64, scratch_operands = 4 : i64, tpu.core_type = #tpu.core_type<tc>, window_params = [{transform_indices = @transform_0, window_bounds = array<i64: 1, 16, 256>}, {transform_indices = @transform_1, window_bounds = array<i64: 1, 16, 256>}, {pipeline_mode = #tpu.pipeline_mode<synchronous>, transform_indices = @transform_2, window_bounds = array<i64: 256, 256>}, {pipeline_mode = #tpu.pipeline_mode<synchronous>, transform_indices = @transform_3, window_bounds = array<i64: 256, 512>}, {pipeline_mode = #tpu.pipeline_mode<synchronous>, transform_indices = @transform_4, window_bounds = array<i64: 256, 256>}, {pipeline_mode = #tpu.pipeline_mode<synchronous>, transform_indices = @transform_5, window_bounds = array<i64: 1, 256>}, {pipeline_mode = #tpu.pipeline_mode<synchronous>, transform_indices = @transform_6, window_bounds = array<i64: 256, 256>}, {pipeline_mode = #tpu.pipeline_mode<synchronous>, transform_indices = @transform_7, window_bounds = array<i64: 256, 512>}, {pipeline_mode = #tpu.pipeline_mode<synchronous>, transform_indices = @transform_8, window_bounds = array<i64: 256, 256>}, {pipeline_mode = #tpu.pipeline_mode<synchronous>, transform_indices = @transform_9, window_bounds = array<i64: 1, 256>}, {pipeline_mode = #tpu.pipeline_mode<synchronous>, transform_indices = @transform_10, window_bounds = array<i64: 256, 1024>}, {pipeline_mode = #tpu.pipeline_mode<synchronous>, transform_indices = @transform_11, window_bounds = array<i64: 1024, 256>}, {pipeline_mode = #tpu.pipeline_mode<synchronous>, transform_indices = @transform_12, window_bounds = array<i64: 1, 256>}, {transform_indices = @transform_13, window_bounds = array<i64: 1, 8, 256>}]} {
    %c0_i32 = arith.constant 0 : i32
    %0 = arith.cmpi eq, %arg1, %c0_i32 : i32
    %1 = arith.extui %0 : i1 to i32
    %c0_i32_0 = arith.constant 0 : i32
    %2 = arith.cmpi ne, %1, %c0_i32_0 : i32
    scf.if %2 {
      %c0_96 = arith.constant 0 : index
      %c0_97 = arith.constant 0 : index
      %c0_98 = arith.constant 0 : index
      %209 = vector.load %arg2[%c0_96, %c0_97, %c0_98] : memref<1x16x256xbf16, #tpu.memory_space<vmem>>, vector<1x16x256xbf16>
      %210 = vector.shape_cast %209 : vector<1x16x256xbf16> to vector<16x256xbf16>
      %c0_99 = arith.constant 0 : index
      %c0_100 = arith.constant 0 : index
      %211 = vector.load %arg5[%c0_99, %c0_100] : memref<256x512xbf16, #tpu.memory_space<vmem>>, vector<256x512xbf16>
      %cst_101 = arith.constant dense<0.000000e+00> : vector<16x512xf32>
      %212 = tpu.matmul %210, %211, %cst_101 {dimension_numbers = #tpu.dot_dimension_numbers<[1], [0], [0], [1], [0, 0, 1, 1], [], []>} : vector<16x256xbf16>, vector<256x512xbf16>, vector<16x512xf32> -> vector<16x512xf32>
      %213 = vector.extract_strided_slice %212 {offsets = [0, 0], sizes = [16, 256], strides = [1, 1]} : vector<16x512xf32> to vector<16x256xf32>
      %214 = arith.truncf %213 : vector<16x256xf32> to vector<16x256xbf16>
      %c0_102 = arith.constant 0 : index
      %c0_103 = arith.constant 0 : index
      %215 = vector.load %arg16[%c0_102, %c0_103] : memref<16x256xbf16, #tpu.memory_space<vmem>>, vector<16x256xbf16>
      tpu.vector_store %arg16[%c0_102, %c0_103], %214 {strides = array<i32>} : memref<16x256xbf16, #tpu.memory_space<vmem>>, vector<16x256xbf16>,
      %216 = vector.extract_strided_slice %212 {offsets = [0, 256], sizes = [16, 256], strides = [1, 1]} : vector<16x512xf32> to vector<16x256xf32>
      %217 = arith.truncf %216 : vector<16x256xf32> to vector<16x256xbf16>
      %c0_104 = arith.constant 0 : index
      %c0_105 = arith.constant 0 : index
      %218 = vector.load %arg17[%c0_104, %c0_105] : memref<16x256xbf16, #tpu.memory_space<vmem>>, vector<16x256xbf16>
      tpu.vector_store %arg17[%c0_104, %c0_105], %217 {strides = array<i32>} : memref<16x256xbf16, #tpu.memory_space<vmem>>, vector<16x256xbf16>,
      %c0_106 = arith.constant 0 : index
      %c0_107 = arith.constant 0 : index
      %c0_108 = arith.constant 0 : index
      %219 = vector.load %arg3[%c0_106, %c0_107, %c0_108] : memref<1x16x256xbf16, #tpu.memory_space<vmem>>, vector<1x16x256xbf16>
      %220 = vector.shape_cast %219 : vector<1x16x256xbf16> to vector<16x256xbf16>
      %c0_109 = arith.constant 0 : index
      %c0_110 = arith.constant 0 : index
      %221 = vector.load %arg9[%c0_109, %c0_110] : memref<256x512xbf16, #tpu.memory_space<vmem>>, vector<256x512xbf16>
      %cst_111 = arith.constant dense<0.000000e+00> : vector<16x512xf32>
      %222 = tpu.matmul %220, %221, %cst_111 {dimension_numbers = #tpu.dot_dimension_numbers<[1], [0], [0], [1], [0, 0, 1, 1], [], []>} : vector<16x256xbf16>, vector<256x512xbf16>, vector<16x512xf32> -> vector<16x512xf32>
      %223 = vector.extract_strided_slice %222 {offsets = [0, 0], sizes = [16, 256], strides = [1, 1]} : vector<16x512xf32> to vector<16x256xf32>
      %224 = arith.truncf %223 : vector<16x256xf32> to vector<16x256xbf16>
      %c0_112 = arith.constant 0 : index
      %c0_113 = arith.constant 0 : index
      %225 = vector.load %arg18[%c0_112, %c0_113] : memref<16x256xbf16, #tpu.memory_space<vmem>>, vector<16x256xbf16>
      tpu.vector_store %arg18[%c0_112, %c0_113], %224 {strides = array<i32>} : memref<16x256xbf16, #tpu.memory_space<vmem>>, vector<16x256xbf16>,
      %226 = vector.extract_strided_slice %222 {offsets = [0, 256], sizes = [16, 256], strides = [1, 1]} : vector<16x512xf32> to vector<16x256xf32>
      %227 = arith.truncf %226 : vector<16x256xf32> to vector<16x256xbf16>
      %c0_114 = arith.constant 0 : index
      %c0_115 = arith.constant 0 : index
      %228 = vector.load %arg19[%c0_114, %c0_115] : memref<16x256xbf16, #tpu.memory_space<vmem>>, vector<16x256xbf16>
      tpu.vector_store %arg19[%c0_114, %c0_115], %227 {strides = array<i32>} : memref<16x256xbf16, #tpu.memory_space<vmem>>, vector<16x256xbf16>,
    } else {
    }
    %c8_i32 = arith.constant 8 : i32
    %3 = arith.muli %arg1, %c8_i32 : i32
    %4 = tpu.assume_multiple %3, 8 : i32
    %c0 = arith.constant 0 : index
    %5 = arith.index_cast %4 : i32 to index
    %c0_1 = arith.constant 0 : index
    %6 = vector.load %arg2[%c0, %5, %c0_1] : memref<1x16x256xbf16, #tpu.memory_space<vmem>>, vector<1x8x256xbf16>
    %7 = vector.shape_cast %6 : vector<1x8x256xbf16> to vector<8x256xbf16>
    %c0_2 = arith.constant 0 : index
    %c0_3 = arith.constant 0 : index
    %8 = vector.load %arg4[%c0_2, %c0_3] : memref<256x256xbf16, #tpu.memory_space<vmem>>, vector<256x256xbf16>
    %cst = arith.constant dense<0.000000e+00> : vector<8x256xf32>
    %9 = tpu.matmul %7, %8, %cst {dimension_numbers = #tpu.dot_dimension_numbers<[1], [0], [0], [1], [0, 0, 1, 1], [], []>} : vector<8x256xbf16>, vector<256x256xbf16>, vector<8x256xf32> -> vector<8x256xf32>
    %c0_4 = arith.constant 0 : index
    %c0_5 = arith.constant 0 : index
    %10 = vector.load %arg16[%c0_4, %c0_5] : memref<16x256xbf16, #tpu.memory_space<vmem>>, vector<16x256xbf16>
    %c0_6 = arith.constant 0 : index
    %c0_7 = arith.constant 0 : index
    %11 = vector.load %arg17[%c0_6, %c0_7] : memref<16x256xbf16, #tpu.memory_space<vmem>>, vector<16x256xbf16>
    %cst_8 = arith.constant 0.0883883461 : f32
    %12 = vector.broadcast %cst_8 : f32 to vector<8x256xf32>
    %13 = arith.mulf %9, %12 : vector<8x256xf32>
    %14 = arith.truncf %13 : vector<8x256xf32> to vector<8x256xbf16>
    %cst_9 = arith.constant 0.000000e+00 : f32
    %15 = vector.broadcast %cst_9 : f32 to vector<8x256xf32>
    %16 = vector.extract_strided_slice %14 {offsets = [0, 0], sizes = [8, 128], strides = [1, 1]} : vector<8x256xbf16> to vector<8x128xbf16>
    %17 = vector.extract_strided_slice %10 {offsets = [0, 0], sizes = [16, 128], strides = [1, 1]} : vector<16x256xbf16> to vector<16x128xbf16>
    %18 = vector.extract_strided_slice %11 {offsets = [0, 0], sizes = [16, 128], strides = [1, 1]} : vector<16x256xbf16> to vector<16x128xbf16>
    %cst_10 = arith.constant dense<0.000000e+00> : vector<8x16xf32>
    %19 = tpu.matmul %16, %17, %cst_10 {dimension_numbers = #tpu.dot_dimension_numbers<[1], [1], [0], [0], [0, 0, 1, 0], [], []>} : vector<8x128xbf16>, vector<16x128xbf16>, vector<8x16xf32> -> vector<8x16xf32>
    %cst_11 = arith.constant dense<0xFF800000> : vector<8xf32>
    %20 = vector.multi_reduction <maximumf>, %19, %cst_11 [1] : vector<8x16xf32> to vector<8xf32>
    %21 = vector.shape_cast %20 : vector<8xf32> to vector<8x1xf32>
    %22 = vector.broadcast %21 : vector<8x1xf32> to vector<8x16xf32>
    %23 = arith.subf %19, %22 : vector<8x16xf32>
    %24 = math.exp %23 : vector<8x16xf32>
    %cst_12 = arith.constant dense<0.000000e+00> : vector<8xf32>
    %25 = vector.multi_reduction <add>, %24, %cst_12 [1] : vector<8x16xf32> to vector<8xf32>
    %26 = vector.shape_cast %25 : vector<8xf32> to vector<8x1xf32>
    %27 = tpu.reciprocal %26 {approx = true} : vector<8x1xf32> -> vector<8x1xf32>
    %28 = vector.broadcast %27 : vector<8x1xf32> to vector<8x16xf32>
    %29 = arith.mulf %24, %28 : vector<8x16xf32>
    %30 = arith.truncf %29 : vector<8x16xf32> to vector<8x16xbf16>
    %cst_13 = arith.constant dense<0.000000e+00> : vector<8x128xf32>
    %31 = tpu.matmul %30, %18, %cst_13 {dimension_numbers = #tpu.dot_dimension_numbers<[1], [0], [0], [1], [0, 0, 1, 1], [], []>} : vector<8x16xbf16>, vector<16x128xbf16>, vector<8x128xf32> -> vector<8x128xf32>
    %32 = arith.truncf %31 : vector<8x128xf32> to vector<8x128xbf16>
    %c0_14 = arith.constant 0 : index
    %c0_15 = arith.constant 0 : index
    %33 = vector.load %arg6[%c0_14, %c0_15] : memref<256x256xbf16, #tpu.memory_space<vmem>>, vector<128x256xbf16>
    %cst_16 = arith.constant dense<0.000000e+00> : vector<8x256xf32>
    %34 = tpu.matmul %32, %33, %cst_16 {dimension_numbers = #tpu.dot_dimension_numbers<[1], [0], [0], [1], [0, 0, 1, 1], [], []>} : vector<8x128xbf16>, vector<128x256xbf16>, vector<8x256xf32> -> vector<8x256xf32>
    %35 = arith.addf %15, %34 : vector<8x256xf32>
    %36 = vector.extract_strided_slice %14 {offsets = [0, 128], sizes = [8, 128], strides = [1, 1]} : vector<8x256xbf16> to vector<8x128xbf16>
    %37 = vector.extract_strided_slice %10 {offsets = [0, 128], sizes = [16, 128], strides = [1, 1]} : vector<16x256xbf16> to vector<16x128xbf16>
    %38 = vector.extract_strided_slice %11 {offsets = [0, 128], sizes = [16, 128], strides = [1, 1]} : vector<16x256xbf16> to vector<16x128xbf16>
    %cst_17 = arith.constant dense<0.000000e+00> : vector<8x16xf32>
    %39 = tpu.matmul %36, %37, %cst_17 {dimension_numbers = #tpu.dot_dimension_numbers<[1], [1], [0], [0], [0, 0, 1, 0], [], []>} : vector<8x128xbf16>, vector<16x128xbf16>, vector<8x16xf32> -> vector<8x16xf32>
    %cst_18 = arith.constant dense<0xFF800000> : vector<8xf32>
    %40 = vector.multi_reduction <maximumf>, %39, %cst_18 [1] : vector<8x16xf32> to vector<8xf32>
    %41 = vector.shape_cast %40 : vector<8xf32> to vector<8x1xf32>
    %42 = vector.broadcast %41 : vector<8x1xf32> to vector<8x16xf32>
    %43 = arith.subf %39, %42 : vector<8x16xf32>
    %44 = math.exp %43 : vector<8x16xf32>
    %cst_19 = arith.constant dense<0.000000e+00> : vector<8xf32>
    %45 = vector.multi_reduction <add>, %44, %cst_19 [1] : vector<8x16xf32> to vector<8xf32>
    %46 = vector.shape_cast %45 : vector<8xf32> to vector<8x1xf32>
    %47 = tpu.reciprocal %46 {approx = true} : vector<8x1xf32> -> vector<8x1xf32>
    %48 = vector.broadcast %47 : vector<8x1xf32> to vector<8x16xf32>
    %49 = arith.mulf %44, %48 : vector<8x16xf32>
    %50 = arith.truncf %49 : vector<8x16xf32> to vector<8x16xbf16>
    %cst_20 = arith.constant dense<0.000000e+00> : vector<8x128xf32>
    %51 = tpu.matmul %50, %38, %cst_20 {dimension_numbers = #tpu.dot_dimension_numbers<[1], [0], [0], [1], [0, 0, 1, 1], [], []>} : vector<8x16xbf16>, vector<16x128xbf16>, vector<8x128xf32> -> vector<8x128xf32>
    %52 = arith.truncf %51 : vector<8x128xf32> to vector<8x128xbf16>
    %c128 = arith.constant 128 : index
    %c0_21 = arith.constant 0 : index
    %53 = vector.load %arg6[%c128, %c0_21] : memref<256x256xbf16, #tpu.memory_space<vmem>>, vector<128x256xbf16>
    %cst_22 = arith.constant dense<0.000000e+00> : vector<8x256xf32>
    %54 = tpu.matmul %52, %53, %cst_22 {dimension_numbers = #tpu.dot_dimension_numbers<[1], [0], [0], [1], [0, 0, 1, 1], [], []>} : vector<8x128xbf16>, vector<128x256xbf16>, vector<8x256xf32> -> vector<8x256xf32>
    %55 = arith.addf %35, %54 : vector<8x256xf32>
    %56 = arith.extf %7 : vector<8x256xbf16> to vector<8x256xf32>
    %57 = arith.addf %55, %56 : vector<8x256xf32>
    %c0_23 = arith.constant 0 : index
    %c0_24 = arith.constant 0 : index
    %58 = vector.load %arg7[%c0_23, %c0_24] : memref<1x256xf32, #tpu.memory_space<vmem>>, vector<1x256xf32>
    %cst_25 = arith.constant dense<0.000000e+00> : vector<8xf32>
    %59 = vector.multi_reduction <add>, %57, %cst_25 [1] : vector<8x256xf32> to vector<8xf32>
    %60 = vector.shape_cast %59 : vector<8xf32> to vector<8x1xf32>
    %cst_26 = arith.constant 2.560000e+02 : f32
    %61 = vector.broadcast %cst_26 : f32 to vector<8x1xf32>
    %62 = arith.divf %60, %61 : vector<8x1xf32>
    %63 = arith.mulf %57, %57 : vector<8x256xf32>
    %cst_27 = arith.constant dense<0.000000e+00> : vector<8xf32>
    %64 = vector.multi_reduction <add>, %63, %cst_27 [1] : vector<8x256xf32> to vector<8xf32>
    %65 = vector.shape_cast %64 : vector<8xf32> to vector<8x1xf32>
    %cst_28 = arith.constant 2.560000e+02 : f32
    %66 = vector.broadcast %cst_28 : f32 to vector<8x1xf32>
    %67 = arith.divf %65, %66 : vector<8x1xf32>
    %68 = arith.mulf %62, %62 : vector<8x1xf32>
    %69 = arith.subf %67, %68 : vector<8x1xf32>
    %70 = vector.broadcast %62 : vector<8x1xf32> to vector<8x256xf32>
    %71 = arith.subf %57, %70 : vector<8x256xf32>
    %cst_29 = arith.constant 9.99999974E-6 : f32
    %72 = vector.broadcast %cst_29 : f32 to vector<8x1xf32>
    %73 = arith.addf %69, %72 : vector<8x1xf32>
    %74 = math.rsqrt %73 : vector<8x1xf32>
    %75 = vector.broadcast %74 : vector<8x1xf32> to vector<8x256xf32>
    %76 = arith.mulf %71, %75 : vector<8x256xf32>
    %77 = vector.broadcast %58 : vector<1x256xf32> to vector<8x256xf32>
    %78 = arith.mulf %76, %77 : vector<8x256xf32>
    %79 = arith.truncf %78 : vector<8x256xf32> to vector<8x256xbf16>
    %c0_30 = arith.constant 0 : index
    %c0_31 = arith.constant 0 : index
    %80 = vector.load %arg8[%c0_30, %c0_31] : memref<256x256xbf16, #tpu.memory_space<vmem>>, vector<256x256xbf16>
    %cst_32 = arith.constant dense<0.000000e+00> : vector<8x256xf32>
    %81 = tpu.matmul %79, %80, %cst_32 {dimension_numbers = #tpu.dot_dimension_numbers<[1], [0], [0], [1], [0, 0, 1, 1], [], []>} : vector<8x256xbf16>, vector<256x256xbf16>, vector<8x256xf32> -> vector<8x256xf32>
    %c0_33 = arith.constant 0 : index
    %c0_34 = arith.constant 0 : index
    %82 = vector.load %arg18[%c0_33, %c0_34] : memref<16x256xbf16, #tpu.memory_space<vmem>>, vector<16x256xbf16>
    %c0_35 = arith.constant 0 : index
    %c0_36 = arith.constant 0 : index
    %83 = vector.load %arg19[%c0_35, %c0_36] : memref<16x256xbf16, #tpu.memory_space<vmem>>, vector<16x256xbf16>
    %cst_37 = arith.constant 0.0883883461 : f32
    %84 = vector.broadcast %cst_37 : f32 to vector<8x256xf32>
    %85 = arith.mulf %81, %84 : vector<8x256xf32>
    %86 = arith.truncf %85 : vector<8x256xf32> to vector<8x256xbf16>
    %cst_38 = arith.constant 0.000000e+00 : f32
    %87 = vector.broadcast %cst_38 : f32 to vector<8x256xf32>
    %88 = vector.extract_strided_slice %86 {offsets = [0, 0], sizes = [8, 128], strides = [1, 1]} : vector<8x256xbf16> to vector<8x128xbf16>
    %89 = vector.extract_strided_slice %82 {offsets = [0, 0], sizes = [16, 128], strides = [1, 1]} : vector<16x256xbf16> to vector<16x128xbf16>
    %90 = vector.extract_strided_slice %83 {offsets = [0, 0], sizes = [16, 128], strides = [1, 1]} : vector<16x256xbf16> to vector<16x128xbf16>
    %cst_39 = arith.constant dense<0.000000e+00> : vector<8x16xf32>
    %91 = tpu.matmul %88, %89, %cst_39 {dimension_numbers = #tpu.dot_dimension_numbers<[1], [1], [0], [0], [0, 0, 1, 0], [], []>} : vector<8x128xbf16>, vector<16x128xbf16>, vector<8x16xf32> -> vector<8x16xf32>
    %cst_40 = arith.constant dense<0xFF800000> : vector<8xf32>
    %92 = vector.multi_reduction <maximumf>, %91, %cst_40 [1] : vector<8x16xf32> to vector<8xf32>
    %93 = vector.shape_cast %92 : vector<8xf32> to vector<8x1xf32>
    %94 = vector.broadcast %93 : vector<8x1xf32> to vector<8x16xf32>
    %95 = arith.subf %91, %94 : vector<8x16xf32>
    %96 = math.exp %95 : vector<8x16xf32>
    %cst_41 = arith.constant dense<0.000000e+00> : vector<8xf32>
    %97 = vector.multi_reduction <add>, %96, %cst_41 [1] : vector<8x16xf32> to vector<8xf32>
    %98 = vector.shape_cast %97 : vector<8xf32> to vector<8x1xf32>
    %99 = tpu.reciprocal %98 {approx = true} : vector<8x1xf32> -> vector<8x1xf32>
    %100 = vector.broadcast %99 : vector<8x1xf32> to vector<8x16xf32>
    %101 = arith.mulf %96, %100 : vector<8x16xf32>
    %102 = arith.truncf %101 : vector<8x16xf32> to vector<8x16xbf16>
    %cst_42 = arith.constant dense<0.000000e+00> : vector<8x128xf32>
    %103 = tpu.matmul %102, %90, %cst_42 {dimension_numbers = #tpu.dot_dimension_numbers<[1], [0], [0], [1], [0, 0, 1, 1], [], []>} : vector<8x16xbf16>, vector<16x128xbf16>, vector<8x128xf32> -> vector<8x128xf32>
    %104 = arith.truncf %103 : vector<8x128xf32> to vector<8x128xbf16>
    %c0_43 = arith.constant 0 : index
    %c0_44 = arith.constant 0 : index
    %105 = vector.load %arg10[%c0_43, %c0_44] : memref<256x256xbf16, #tpu.memory_space<vmem>>, vector<128x256xbf16>
    %cst_45 = arith.constant dense<0.000000e+00> : vector<8x256xf32>
    %106 = tpu.matmul %104, %105, %cst_45 {dimension_numbers = #tpu.dot_dimension_numbers<[1], [0], [0], [1], [0, 0, 1, 1], [], []>} : vector<8x128xbf16>, vector<128x256xbf16>, vector<8x256xf32> -> vector<8x256xf32>
    %107 = arith.addf %87, %106 : vector<8x256xf32>
    %108 = vector.extract_strided_slice %86 {offsets = [0, 128], sizes = [8, 128], strides = [1, 1]} : vector<8x256xbf16> to vector<8x128xbf16>
    %109 = vector.extract_strided_slice %82 {offsets = [0, 128], sizes = [16, 128], strides = [1, 1]} : vector<16x256xbf16> to vector<16x128xbf16>
    %110 = vector.extract_strided_slice %83 {offsets = [0, 128], sizes = [16, 128], strides = [1, 1]} : vector<16x256xbf16> to vector<16x128xbf16>
    %cst_46 = arith.constant dense<0.000000e+00> : vector<8x16xf32>
    %111 = tpu.matmul %108, %109, %cst_46 {dimension_numbers = #tpu.dot_dimension_numbers<[1], [1], [0], [0], [0, 0, 1, 0], [], []>} : vector<8x128xbf16>, vector<16x128xbf16>, vector<8x16xf32> -> vector<8x16xf32>
    %cst_47 = arith.constant dense<0xFF800000> : vector<8xf32>
    %112 = vector.multi_reduction <maximumf>, %111, %cst_47 [1] : vector<8x16xf32> to vector<8xf32>
    %113 = vector.shape_cast %112 : vector<8xf32> to vector<8x1xf32>
    %114 = vector.broadcast %113 : vector<8x1xf32> to vector<8x16xf32>
    %115 = arith.subf %111, %114 : vector<8x16xf32>
    %116 = math.exp %115 : vector<8x16xf32>
    %cst_48 = arith.constant dense<0.000000e+00> : vector<8xf32>
    %117 = vector.multi_reduction <add>, %116, %cst_48 [1] : vector<8x16xf32> to vector<8xf32>
    %118 = vector.shape_cast %117 : vector<8xf32> to vector<8x1xf32>
    %119 = tpu.reciprocal %118 {approx = true} : vector<8x1xf32> -> vector<8x1xf32>
    %120 = vector.broadcast %119 : vector<8x1xf32> to vector<8x16xf32>
    %121 = arith.mulf %116, %120 : vector<8x16xf32>
    %122 = arith.truncf %121 : vector<8x16xf32> to vector<8x16xbf16>
    %cst_49 = arith.constant dense<0.000000e+00> : vector<8x128xf32>
    %123 = tpu.matmul %122, %110, %cst_49 {dimension_numbers = #tpu.dot_dimension_numbers<[1], [0], [0], [1], [0, 0, 1, 1], [], []>} : vector<8x16xbf16>, vector<16x128xbf16>, vector<8x128xf32> -> vector<8x128xf32>
    %124 = arith.truncf %123 : vector<8x128xf32> to vector<8x128xbf16>
    %c128_50 = arith.constant 128 : index
    %c0_51 = arith.constant 0 : index
    %125 = vector.load %arg10[%c128_50, %c0_51] : memref<256x256xbf16, #tpu.memory_space<vmem>>, vector<128x256xbf16>
    %cst_52 = arith.constant dense<0.000000e+00> : vector<8x256xf32>
    %126 = tpu.matmul %124, %125, %cst_52 {dimension_numbers = #tpu.dot_dimension_numbers<[1], [0], [0], [1], [0, 0, 1, 1], [], []>} : vector<8x128xbf16>, vector<128x256xbf16>, vector<8x256xf32> -> vector<8x256xf32>
    %127 = arith.addf %107, %126 : vector<8x256xf32>
    %128 = arith.addf %127, %78 : vector<8x256xf32>
    %c0_53 = arith.constant 0 : index
    %c0_54 = arith.constant 0 : index
    %129 = vector.load %arg11[%c0_53, %c0_54] : memref<1x256xf32, #tpu.memory_space<vmem>>, vector<1x256xf32>
    %cst_55 = arith.constant dense<0.000000e+00> : vector<8xf32>
    %130 = vector.multi_reduction <add>, %128, %cst_55 [1] : vector<8x256xf32> to vector<8xf32>
    %131 = vector.shape_cast %130 : vector<8xf32> to vector<8x1xf32>
    %cst_56 = arith.constant 2.560000e+02 : f32
    %132 = vector.broadcast %cst_56 : f32 to vector<8x1xf32>
    %133 = arith.divf %131, %132 : vector<8x1xf32>
    %134 = arith.mulf %128, %128 : vector<8x256xf32>
    %cst_57 = arith.constant dense<0.000000e+00> : vector<8xf32>
    %135 = vector.multi_reduction <add>, %134, %cst_57 [1] : vector<8x256xf32> to vector<8xf32>
    %136 = vector.shape_cast %135 : vector<8xf32> to vector<8x1xf32>
    %cst_58 = arith.constant 2.560000e+02 : f32
    %137 = vector.broadcast %cst_58 : f32 to vector<8x1xf32>
    %138 = arith.divf %136, %137 : vector<8x1xf32>
    %139 = arith.mulf %133, %133 : vector<8x1xf32>
    %140 = arith.subf %138, %139 : vector<8x1xf32>
    %141 = vector.broadcast %133 : vector<8x1xf32> to vector<8x256xf32>
    %142 = arith.subf %128, %141 : vector<8x256xf32>
    %cst_59 = arith.constant 9.99999974E-6 : f32
    %143 = vector.broadcast %cst_59 : f32 to vector<8x1xf32>
    %144 = arith.addf %140, %143 : vector<8x1xf32>
    %145 = math.rsqrt %144 : vector<8x1xf32>
    %146 = vector.broadcast %145 : vector<8x1xf32> to vector<8x256xf32>
    %147 = arith.mulf %142, %146 : vector<8x256xf32>
    %148 = vector.broadcast %129 : vector<1x256xf32> to vector<8x256xf32>
    %149 = arith.mulf %147, %148 : vector<8x256xf32>
    %150 = arith.truncf %149 : vector<8x256xf32> to vector<8x256xbf16>
    %cst_60 = arith.constant 0.000000e+00 : f32
    %151 = vector.broadcast %cst_60 : f32 to vector<8x256xf32>
    %c0_61 = arith.constant 0 : index
    %c0_62 = arith.constant 0 : index
    %152 = vector.load %arg12[%c0_61, %c0_62] : memref<256x1024xbf16, #tpu.memory_space<vmem>>, vector<256x256xbf16>
    %cst_63 = arith.constant dense<0.000000e+00> : vector<8x256xf32>
    %153 = tpu.matmul %150, %152, %cst_63 {dimension_numbers = #tpu.dot_dimension_numbers<[1], [0], [0], [1], [0, 0, 1, 1], [], []>} : vector<8x256xbf16>, vector<256x256xbf16>, vector<8x256xf32> -> vector<8x256xf32>
    %cst_64 = arith.constant 0.000000e+00 : f32
    %154 = vector.broadcast %cst_64 : f32 to vector<8x256xf32>
    %155 = arith.maximumf %153, %154 : vector<8x256xf32>
    %156 = arith.truncf %155 : vector<8x256xf32> to vector<8x256xbf16>
    %c0_65 = arith.constant 0 : index
    %c0_66 = arith.constant 0 : index
    %157 = vector.load %arg13[%c0_65, %c0_66] : memref<1024x256xbf16, #tpu.memory_space<vmem>>, vector<256x256xbf16>
    %cst_67 = arith.constant dense<0.000000e+00> : vector<8x256xf32>
    %158 = tpu.matmul %156, %157, %cst_67 {dimension_numbers = #tpu.dot_dimension_numbers<[1], [0], [0], [1], [0, 0, 1, 1], [], []>} : vector<8x256xbf16>, vector<256x256xbf16>, vector<8x256xf32> -> vector<8x256xf32>
    %159 = arith.addf %151, %158 : vector<8x256xf32>
    %c0_68 = arith.constant 0 : index
    %c256 = arith.constant 256 : index
    %160 = vector.load %arg12[%c0_68, %c256] : memref<256x1024xbf16, #tpu.memory_space<vmem>>, vector<256x256xbf16>
    %cst_69 = arith.constant dense<0.000000e+00> : vector<8x256xf32>
    %161 = tpu.matmul %150, %160, %cst_69 {dimension_numbers = #tpu.dot_dimension_numbers<[1], [0], [0], [1], [0, 0, 1, 1], [], []>} : vector<8x256xbf16>, vector<256x256xbf16>, vector<8x256xf32> -> vector<8x256xf32>
    %cst_70 = arith.constant 0.000000e+00 : f32
    %162 = vector.broadcast %cst_70 : f32 to vector<8x256xf32>
    %163 = arith.maximumf %161, %162 : vector<8x256xf32>
    %164 = arith.truncf %163 : vector<8x256xf32> to vector<8x256xbf16>
    %c256_71 = arith.constant 256 : index
    %c0_72 = arith.constant 0 : index
    %165 = vector.load %arg13[%c256_71, %c0_72] : memref<1024x256xbf16, #tpu.memory_space<vmem>>, vector<256x256xbf16>
    %cst_73 = arith.constant dense<0.000000e+00> : vector<8x256xf32>
    %166 = tpu.matmul %164, %165, %cst_73 {dimension_numbers = #tpu.dot_dimension_numbers<[1], [0], [0], [1], [0, 0, 1, 1], [], []>} : vector<8x256xbf16>, vector<256x256xbf16>, vector<8x256xf32> -> vector<8x256xf32>
    %167 = arith.addf %159, %166 : vector<8x256xf32>
    %c0_74 = arith.constant 0 : index
    %c512 = arith.constant 512 : index
    %168 = vector.load %arg12[%c0_74, %c512] : memref<256x1024xbf16, #tpu.memory_space<vmem>>, vector<256x256xbf16>
    %cst_75 = arith.constant dense<0.000000e+00> : vector<8x256xf32>
    %169 = tpu.matmul %150, %168, %cst_75 {dimension_numbers = #tpu.dot_dimension_numbers<[1], [0], [0], [1], [0, 0, 1, 1], [], []>} : vector<8x256xbf16>, vector<256x256xbf16>, vector<8x256xf32> -> vector<8x256xf32>
    %cst_76 = arith.constant 0.000000e+00 : f32
    %170 = vector.broadcast %cst_76 : f32 to vector<8x256xf32>
    %171 = arith.maximumf %169, %170 : vector<8x256xf32>
    %172 = arith.truncf %171 : vector<8x256xf32> to vector<8x256xbf16>
    %c512_77 = arith.constant 512 : index
    %c0_78 = arith.constant 0 : index
    %173 = vector.load %arg13[%c512_77, %c0_78] : memref<1024x256xbf16, #tpu.memory_space<vmem>>, vector<256x256xbf16>
    %cst_79 = arith.constant dense<0.000000e+00> : vector<8x256xf32>
    %174 = tpu.matmul %172, %173, %cst_79 {dimension_numbers = #tpu.dot_dimension_numbers<[1], [0], [0], [1], [0, 0, 1, 1], [], []>} : vector<8x256xbf16>, vector<256x256xbf16>, vector<8x256xf32> -> vector<8x256xf32>
    %175 = arith.addf %167, %174 : vector<8x256xf32>
    %c0_80 = arith.constant 0 : index
    %c768 = arith.constant 768 : index
    %176 = vector.load %arg12[%c0_80, %c768] : memref<256x1024xbf16, #tpu.memory_space<vmem>>, vector<256x256xbf16>
    %cst_81 = arith.constant dense<0.000000e+00> : vector<8x256xf32>
    %177 = tpu.matmul %150, %176, %cst_81 {dimension_numbers = #tpu.dot_dimension_numbers<[1], [0], [0], [1], [0, 0, 1, 1], [], []>} : vector<8x256xbf16>, vector<256x256xbf16>, vector<8x256xf32> -> vector<8x256xf32>
    %cst_82 = arith.constant 0.000000e+00 : f32
    %178 = vector.broadcast %cst_82 : f32 to vector<8x256xf32>
    %179 = arith.maximumf %177, %178 : vector<8x256xf32>
    %180 = arith.truncf %179 : vector<8x256xf32> to vector<8x256xbf16>
    %c768_83 = arith.constant 768 : index
    %c0_84 = arith.constant 0 : index
    %181 = vector.load %arg13[%c768_83, %c0_84] : memref<1024x256xbf16, #tpu.memory_space<vmem>>, vector<256x256xbf16>
    %cst_85 = arith.constant dense<0.000000e+00> : vector<8x256xf32>
    %182 = tpu.matmul %180, %181, %cst_85 {dimension_numbers = #tpu.dot_dimension_numbers<[1], [0], [0], [1], [0, 0, 1, 1], [], []>} : vector<8x256xbf16>, vector<256x256xbf16>, vector<8x256xf32> -> vector<8x256xf32>
    %183 = arith.addf %175, %182 : vector<8x256xf32>
    %184 = arith.addf %183, %149 : vector<8x256xf32>
    %c0_86 = arith.constant 0 : index
    %c0_87 = arith.constant 0 : index
    %185 = vector.load %arg14[%c0_86, %c0_87] : memref<1x256xf32, #tpu.memory_space<vmem>>, vector<1x256xf32>
    %cst_88 = arith.constant dense<0.000000e+00> : vector<8xf32>
    %186 = vector.multi_reduction <add>, %184, %cst_88 [1] : vector<8x256xf32> to vector<8xf32>
    %187 = vector.shape_cast %186 : vector<8xf32> to vector<8x1xf32>
    %cst_89 = arith.constant 2.560000e+02 : f32
    %188 = vector.broadcast %cst_89 : f32 to vector<8x1xf32>
    %189 = arith.divf %187, %188 : vector<8x1xf32>
    %190 = arith.mulf %184, %184 : vector<8x256xf32>
    %cst_90 = arith.constant dense<0.000000e+00> : vector<8xf32>
    %191 = vector.multi_reduction <add>, %190, %cst_90 [1] : vector<8x256xf32> to vector<8xf32>
    %192 = vector.shape_cast %191 : vector<8xf32> to vector<8x1xf32>
    %cst_91 = arith.constant 2.560000e+02 : f32
    %193 = vector.broadcast %cst_91 : f32 to vector<8x1xf32>
    %194 = arith.divf %192, %193 : vector<8x1xf32>
    %195 = arith.mulf %189, %189 : vector<8x1xf32>
    %196 = arith.subf %194, %195 : vector<8x1xf32>
    %197 = vector.broadcast %189 : vector<8x1xf32> to vector<8x256xf32>
    %198 = arith.subf %184, %197 : vector<8x256xf32>
    %cst_92 = arith.constant 9.99999974E-6 : f32
    %199 = vector.broadcast %cst_92 : f32 to vector<8x1xf32>
    %200 = arith.addf %196, %199 : vector<8x1xf32>
    %201 = math.rsqrt %200 : vector<8x1xf32>
    %202 = vector.broadcast %201 : vector<8x1xf32> to vector<8x256xf32>
    %203 = arith.mulf %198, %202 : vector<8x256xf32>
    %204 = vector.broadcast %185 : vector<1x256xf32> to vector<8x256xf32>
    %205 = arith.mulf %203, %204 : vector<8x256xf32>
    %c0_93 = arith.constant 0 : index
    %c0_94 = arith.constant 0 : index
    %c0_95 = arith.constant 0 : index
    %206 = vector.load %arg15[%c0_93, %c0_94, %c0_95] : memref<1x8x256xf32, #tpu.memory_space<vmem>>, vector<1x8x256xf32>
    %207 = vector.shape_cast %206 : vector<1x8x256xf32> to vector<8x256xf32>
    %208 = vector.shape_cast %205 : vector<8x256xf32> to vector<1x8x256xf32>
    tpu.vector_store %arg15[%c0_93, %c0_94, %c0_95], %208 {strides = array<i32>} : memref<1x8x256xf32, #tpu.memory_space<vmem>>, vector<1x8x256xf32>,
    return
  }
  func.func @transform_0(%arg0: i32, %arg1: i32) -> (i32, i32, i32) {
    %c0_i32 = arith.constant 0 : i32
    %c0_i32_0 = arith.constant 0 : i32
    %c0_i32_1 = arith.constant 0 : i32
    return %arg0, %c0_i32, %c0_i32_0 : i32, i32, i32
  }
  func.func @transform_1(%arg0: i32, %arg1: i32) -> (i32, i32, i32) {
    %c0_i32 = arith.constant 0 : i32
    %c0_i32_0 = arith.constant 0 : i32
    %c0_i32_1 = arith.constant 0 : i32
    return %arg0, %c0_i32, %c0_i32_0 : i32, i32, i32
  }
  func.func @transform_2(%arg0: i32, %arg1: i32) -> (i32, i32) {
    %c0_i32 = arith.constant 0 : i32
    %c0_i32_0 = arith.constant 0 : i32
    %c0_i32_1 = arith.constant 0 : i32
    return %c0_i32, %c0_i32_0 : i32, i32
  }
  func.func @transform_3(%arg0: i32, %arg1: i32) -> (i32, i32) {
    %c0_i32 = arith.constant 0 : i32
    %c0_i32_0 = arith.constant 0 : i32
    %c0_i32_1 = arith.constant 0 : i32
    return %c0_i32, %c0_i32_0 : i32, i32
  }
  func.func @transform_4(%arg0: i32, %arg1: i32) -> (i32, i32) {
    %c0_i32 = arith.constant 0 : i32
    %c0_i32_0 = arith.constant 0 : i32
    %c0_i32_1 = arith.constant 0 : i32
    return %c0_i32, %c0_i32_0 : i32, i32
  }
  func.func @transform_5(%arg0: i32, %arg1: i32) -> (i32, i32) {
    %c0_i32 = arith.constant 0 : i32
    %c0_i32_0 = arith.constant 0 : i32
    %c0_i32_1 = arith.constant 0 : i32
    return %c0_i32, %c0_i32_0 : i32, i32
  }
  func.func @transform_6(%arg0: i32, %arg1: i32) -> (i32, i32) {
    %c0_i32 = arith.constant 0 : i32
    %c0_i32_0 = arith.constant 0 : i32
    %c0_i32_1 = arith.constant 0 : i32
    return %c0_i32, %c0_i32_0 : i32, i32
  }
  func.func @transform_7(%arg0: i32, %arg1: i32) -> (i32, i32) {
    %c0_i32 = arith.constant 0 : i32
    %c0_i32_0 = arith.constant 0 : i32
    %c0_i32_1 = arith.constant 0 : i32
    return %c0_i32, %c0_i32_0 : i32, i32
  }
  func.func @transform_8(%arg0: i32, %arg1: i32) -> (i32, i32) {
    %c0_i32 = arith.constant 0 : i32
    %c0_i32_0 = arith.constant 0 : i32
    %c0_i32_1 = arith.constant 0 : i32
    return %c0_i32, %c0_i32_0 : i32, i32
  }
  func.func @transform_9(%arg0: i32, %arg1: i32) -> (i32, i32) {
    %c0_i32 = arith.constant 0 : i32
    %c0_i32_0 = arith.constant 0 : i32
    %c0_i32_1 = arith.constant 0 : i32
    return %c0_i32, %c0_i32_0 : i32, i32
  }
  func.func @transform_10(%arg0: i32, %arg1: i32) -> (i32, i32) {
    %c0_i32 = arith.constant 0 : i32
    %c0_i32_0 = arith.constant 0 : i32
    %c0_i32_1 = arith.constant 0 : i32
    return %c0_i32, %c0_i32_0 : i32, i32
  }
  func.func @transform_11(%arg0: i32, %arg1: i32) -> (i32, i32) {
    %c0_i32 = arith.constant 0 : i32
    %c0_i32_0 = arith.constant 0 : i32
    %c0_i32_1 = arith.constant 0 : i32
    return %c0_i32, %c0_i32_0 : i32, i32
  }
  func.func @transform_12(%arg0: i32, %arg1: i32) -> (i32, i32) {
    %c0_i32 = arith.constant 0 : i32
    %c0_i32_0 = arith.constant 0 : i32
    %c0_i32_1 = arith.constant 0 : i32
    return %c0_i32, %c0_i32_0 : i32, i32
  }
  func.func @transform_13(%arg0: i32, %arg1: i32) -> (i32, i32, i32) {
    %c0_i32 = arith.constant 0 : i32
    %c0_i32_0 = arith.constant 0 : i32
    return %arg0, %arg1, %c0_i32 : i32, i32, i32
  }
}

</mosaic_0001>

<bundles_post_ra>
// kernel: tpu_custom_call.1
= control target key start
LH: loop header
LB: loop body
LE: loop exit
PB: predicated region body
PF: predicated region fallthrough
CT: control target
= control target key end

     0   :  { %s7854_s0 = inlined_call_operand.hbm [shape: bf16[2,16,256], index: 0, kind: input, shape index: {}]   ;;  %s7855_s1 = inlined_call_operand.hbm [shape: bf16[2,16,256], index: 1, kind: input, shape index: {}]   ;;  %s7856_s2 = inlined_call_operand.hbm [shape: bf16[256,256], index: 2, kind: input, shape index: {}]   ;;  %s7857_s3 = inlined_call_operand.hbm [shape: bf16[256,512], index: 3, kind: input, shape index: {}]   ;;  %s7858_s4 = inlined_call_operand.hbm [shape: bf16[256,256], index: 4, kind: input, shape index: {}]   ;;  %s7859_s5 = inlined_call_operand.vmem [shape: f32[1,256], index: 5, kind: input, shape index: {}]   ;;  %s7860_s6 = inlined_call_operand.hbm [shape: bf16[256,256], index: 6, kind: input, shape index: {}]   ;;  %s7861_s7 = inlined_call_operand.hbm [shape: bf16[256,512], index: 7, kind: input, shape index: {}]   ;;  %s7862_s8 = inlined_call_operand.hbm [shape: bf16[256,256], index: 8, kind: input, shape index: {}]   ;;  %s7863_s9 = inlined_call_operand.vmem [shape: f32[1,256], index: 9, kind: input, shape index: {}]   ;;  %s7864_s10 = inlined_call_operand.hbm [shape: bf16[256,1024], index: 10, kind: input, shape index: {}]   ;;  %s7865_s11 = inlined_call_operand.hbm [shape: bf16[1024,256], index: 11, kind: input, shape index: {}]   ;;  %s7866_s12 = inlined_call_operand.vmem [shape: f32[1,256], index: 12, kind: input, shape index: {}]   ;;  %s7867_s13 = inlined_call_operand.hbm [shape: f32[2,16,256], index: 13, kind: output, shape index: {}]  }
   0x1   :  { %7888 = sst [smem:[#allocation41_spill]] %s7854_s0 }
   0x2   :  { %7889 = sst [smem:[#allocation42_spill]] %s7855_s1 }
   0x3   :  { %7890 = sst [smem:[#allocation43_spill]] %s7856_s2 }
   0x4   :  { %7891 = sst [smem:[#allocation44_spill]] %s7857_s3 }
   0x5   :  { %7892 = sst [smem:[#allocation45_spill]] %s7858_s4 }
   0x6   :  { %7893 = sst [smem:[#allocation46_spill]] %s7859_s5 }
   0x7   :  { %7894 = sst [smem:[#allocation47_spill]] %s7860_s6 }
   0x8   :  { %7895 = sst [smem:[#allocation48_spill]] %s7861_s7 }
   0x9   :  { %7896 = sst [smem:[#allocation49_spill]] %s7862_s8 }
   0xa   :  { %7897 = sst [smem:[#allocation50_spill]] %s7863_s9 }
   0xb   :  { %7898 = sst [smem:[#allocation51_spill]] %s7864_s10 }
   0xc   :  { %7899 = sst [smem:[#allocation52_spill]] %s7865_s11 }
   0xd   :  { %7900 = sst [smem:[#allocation53_spill]] %s7866_s12 }
   0xe   :  { %7901 = sst [smem:[#allocation54_spill]] %s7867_s13 }
   0xf   :  { %18 = vsyncpa [#allocation7], 0 }
  0x10   :  { %20 = vsyncpa [#allocation7 + $0x1], 0 }
  0x11   :  { %21 = vsyncpa [#allocation10], 0 }
  0x12   :  { %23 = vsyncpa [#allocation10 + $0x1], 0 }
  0x13   :  { %24 = vsyncpa [#allocation13], 0 }
  0x14   :  { %25 = vsyncpa [#allocation16], 0 }
  0x15   :  { %26 = vsyncpa [#allocation19], 0 }
  0x16   :  { %27 = vsyncpa [#allocation22], 0 }
  0x17   :  { %28 = vsyncpa [#allocation8], 0 }
  0x18   :  { %30 = vsyncpa [#allocation8 + $0x1], 0  ;;  %s7194_s25 = smov 0   ;;  %s7196_s26 = smov 0  }
  0x19   :  { %s7198_s27 = smov 0   ;;  %s7200_s28 = smov 0  }
  0x1a   :  { %s7202_s29 = smov 0   ;;  %s7204_s30 = smov 0  }
  0x1b   :  { %s7206_s14 = smov 0   ;;  %s7208_s15 = smov 0  }
  0x1c   :  { %s7210_s16 = smov 0   ;;  %s7212_s17 = smov 0  }
  0x1d   :  { %s7214_s18 = smov 0  }
  0x1e LB: > { %7902 = sst [smem:[#allocation32_spill]] %s7062_s25  ;;  %s7250_s19 = sadd.s32 4294967295, %s7102_s18   ;;  %s7102_s18 = sphi %s7214_s18, %s36_s18   ;;  %s7098_s17 = sphi %s7212_s17, %s7966_s17   ;;  %s7094_s16 = sphi %s7210_s16, %s7965_s16   ;;  %s7090_s15 = sphi %s7208_s15, %s7964_s15   ;;  %s7086_s14 = sphi %s7206_s14, %s7963_s14   ;;  %s7082_s30 = sphi %s7204_s30, %s7971_s30   ;;  %s7078_s29 = sphi %s7202_s29, %s7970_s29   ;;  %s7074_s28 = sphi %s7200_s28, %s7969_s28   ;;  %s7070_s27 = sphi %s7198_s27, %s7968_s27   ;;  %s7066_s26 = sphi %s7196_s26, %s7967_s26   ;;  %s7062_s25 = sphi %s7194_s25, %s7962_s25  }
  0x1f   : > { %7903 = sst [smem:[#allocation33_spill]] %s7066_s26  ;;  %p5242_p0 = scmp.ge.s32.totalorder %s7102_s18, 1 }
  0x20   : > { %7904 = sst [smem:[#allocation34_spill]] %s7086_s14  ;;  %p7871_p1 = scmp.eq.s32.totalorder %s7250_s19, 0 }
  0x21   : > { %7905 = sst [smem:[#allocation35_spill]] %s7090_s15  ;;  %p364_p2 = scmp.lt.s32.totalorder %s7102_s18, 5 }
  0x22   : > { %7906 = sst [smem:[#allocation36_spill]] %s7094_s16  ;;  %s7104_s21 = smov [#allocation11]  }
  0x23   : > { %7907 = sst [smem:[#allocation37_spill]] %s7098_s17  ;;  %p7255_p3 = pnand %p5242_p0, %p364_p2 }
  0x24   : > { %s376_s22 = sshll.u32 %s7104_s21, 4  ;;  %s7105_s24 = smov [#allocation12]   ;;  %s377_s22 = int_to_ptr.vmem [resolvable:$true] %s376_s22 }
  0x25   : > { %s7908_s20 = scalar_select %p7255_p3, 1, 0 }
  0x26   : > { %p5907_p4 = pneg %p7255_p3  ;;  %s389_s13 = sshll.u32 %s7105_s24, 4  ;;  %s7267_s13 = int_to_ptr.vmem [resolvable:$true] %s389_s13 }
  0x27   : > { %7909 = sst [smem:[#allocation38_spill]] %s7908_s20  ;;  %s7911_s2 = sld [smem:[#allocation43_spill]] }
  0x28   : > { %p7263_p5 = pnand %p5907_p4, %p7871_p1 }
  0x2a   : > { %p7277_p7 = pneg %p7263_p5 }
  0x2d   : > { %s6672_s9 = scalar_lea.hbm %s7911_s2, 4096 }
  0x2e   : > { %p6673_p6 = scmp.ne.s32.totalorder %s7911_s2, %s6672_s9  ;;  %p6679_p10 = scmp.lt.u32.totalorder %s6672_s9, %s7911_s2 }
  0x30   : > { %p6675_p8 = pnand %p7277_p7, %p6673_p6 }
  0x32   : > { %p6676_p9 = pneg %p6675_p8 }
  0x34   : > { %p6681_p11 = pnand %p6679_p10, %p6676_p9 }
  0x36   : > { %6684 = shalt.err (!%p6681_p11)
}
  0x37   : > { %s6685_s12 = scalar_lea.vmem %s377_s22, 4096  ;;  %p6693_p2 = scmp.lt.s32.totalorder %s377_s22, %s377_s22 }
  0x38   : > { %p6686_p12 = scmp.ne.s32.totalorder %s377_s22, %s6685_s12  ;;  %p6694_p4 = scmp.lt.s32.totalorder %s6685_s12, %s6685_s12 }
  0x3a   : > { %p6688_p13 = pnand %p6686_p12, %p7277_p7  ;;  %p6695_p1 = por %p6694_p4, %p6693_p2 }
  0x3c   : > { %p6689_p0 = pneg %p6688_p13 }
  0x3e   : > { %p6696_p3 = pnand %p6695_p1, %p6689_p0 }
  0x40   : > { %6699 = shalt.err (!%p6696_p3)
}
  0x41   : > { %s7877_s5 = smov 128   ;;  %s7879_s14 = smov 8  }
  0x42   : > { %5910 = dma.hbm_to_vmem [thread:$0]  (!%p7263_p5), %s7911_s2, 4096, %s377_s22, [#allocation10], %s7877_s5, %s7877_s5, %s7879_s14  }
  0x43   : > { %s7913_s3 = sld [smem:[#allocation44_spill]] }
  0x49   : > { %s6700_s1 = scalar_lea.hbm %s7913_s3, 8192 }
  0x4a   : > { %p6701_p1 = scmp.ne.s32.totalorder %s7913_s3, %s6700_s1  ;;  %p6707_p8 = scmp.lt.u32.totalorder %s6700_s1, %s7913_s3 }
  0x4c   : > { %p6703_p3 = pnand %p6701_p1, %p7277_p7 }
  0x4e   : > { %p6704_p6 = pneg %p6703_p3 }
  0x50   : > { %p6709_p9 = pnand %p6707_p8, %p6704_p6 }
  0x52   : > { %6712 = shalt.err (!%p6709_p9)
}
  0x53   : > { %s6713_s22 = scalar_lea.vmem %s7267_s13, 8192  ;;  %p6721_p13 = scmp.lt.s32.totalorder %s7267_s13, %s7267_s13 }
  0x54   : > { %p6714_p10 = scmp.ne.s32.totalorder %s7267_s13, %s6713_s22  ;;  %p6722_p0 = scmp.lt.s32.totalorder %s6713_s22, %s6713_s22 }
  0x56   : > { %p6716_p11 = pnand %p6714_p10, %p7277_p7  ;;  %p6723_p2 = por %p6722_p0, %p6721_p13 }
  0x58   : > { %p6717_p12 = pneg %p6716_p11 }
  0x5a   : > { %p6724_p4 = pnand %p6723_p2, %p6717_p12 }
  0x5c   : > { %6727 = shalt.err (!%p6724_p4)
}
  0x5d   : > { %s7881_s0 = smov 256   ;;  %s7882_s1 = smov 16  }
  0x5e   : > { %5913 = dma.hbm_to_vmem [thread:$0]  (!%p7263_p5), %s7913_s3, 8192, %s7267_s13, [#allocation13], %s7881_s0, %s7881_s0, %s7882_s1  }
  0x5f   : > { %s7110_s9 = smov [#allocation15]   ;;  %s7111_s20 = smov [#allocation18]  }
  0x60   : > { %s418_s15 = sshll.u32 %s7110_s9, 4  ;;  %s444_s24 = sshll.u32 %s7111_s20, 4  ;;  %s419_s15 = int_to_ptr.vmem [resolvable:$true] %s418_s15  ;;  %s7322_s24 = int_to_ptr.vmem [resolvable:$true] %s444_s24 }
  0x61   : > { %s7914_s6 = sld [smem:[#allocation47_spill]] }
  0x67   : > { %s6728_s5 = scalar_lea.hbm %s7914_s6, 4096 }
  0x68   : > { %p6729_p1 = scmp.ne.s32.totalorder %s7914_s6, %s6728_s5  ;;  %p6735_p8 = scmp.lt.u32.totalorder %s6728_s5, %s7914_s6 }
  0x6a   : > { %p6731_p3 = pnand %p6729_p1, %p7277_p7 }
  0x6c   : > { %p6732_p6 = pneg %p6731_p3 }
  0x6e   : > { %p6737_p9 = pnand %p6735_p8, %p6732_p6 }
  0x70   : > { %6740 = shalt.err (!%p6737_p9)
}
  0x71   : > { %s6741_s26 = scalar_lea.vmem %s419_s15, 4096  ;;  %p6749_p13 = scmp.lt.s32.totalorder %s419_s15, %s419_s15 }
  0x72   : > { %p6742_p10 = scmp.ne.s32.totalorder %s419_s15, %s6741_s26  ;;  %p6750_p0 = scmp.lt.s32.totalorder %s6741_s26, %s6741_s26 }
  0x74   : > { %p6744_p11 = pnand %p6742_p10, %p7277_p7  ;;  %p6751_p2 = por %p6750_p0, %p6749_p13 }
  0x76   : > { %p6745_p12 = pneg %p6744_p11 }
  0x78   : > { %p6752_p4 = pnand %p6751_p2, %p6745_p12 }
  0x7a   : > { %6755 = shalt.err (!%p6752_p4)
}
  0x7b   : > { %s7915_s2 = smov 8   ;;  %s7916_s14 = smov 128  }
  0x7c   : > { %5919 = dma.hbm_to_vmem [thread:$0]  (!%p7263_p5), %s7914_s6, 4096, %s419_s15, [#allocation16], %s7916_s14, %s7916_s14, %s7915_s2  }
  0x7d   : > { %s7917_s8 = sld [smem:[#allocation49_spill]] }
  0x83   : > { %s6756_s22 = scalar_lea.hbm %s7917_s8, 4096 }
  0x84   : > { %p6757_p1 = scmp.ne.s32.totalorder %s7917_s8, %s6756_s22  ;;  %p6763_p8 = scmp.lt.u32.totalorder %s6756_s22, %s7917_s8 }
  0x86   : > { %p6759_p3 = pnand %p6757_p1, %p7277_p7 }
  0x88   : > { %p6760_p6 = pneg %p6759_p3 }
  0x8a   : > { %p6765_p9 = pnand %p6763_p8, %p6760_p6 }
  0x8c   : > { %6768 = shalt.err (!%p6765_p9)
}
  0x8d   : > { %s6769_s15 = scalar_lea.vmem %s7322_s24, 4096  ;;  %p6777_p13 = scmp.lt.s32.totalorder %s7322_s24, %s7322_s24 }
  0x8e   : > { %p6770_p10 = scmp.ne.s32.totalorder %s7322_s24, %s6769_s15  ;;  %p6778_p0 = scmp.lt.s32.totalorder %s6769_s15, %s6769_s15 }
  0x90   : > { %p6772_p11 = pnand %p6770_p10, %p7277_p7  ;;  %p6779_p2 = por %p6778_p0, %p6777_p13 }
  0x92   : > { %p6773_p12 = pneg %p6772_p11 }
  0x94   : > { %p6780_p4 = pnand %p6779_p2, %p6773_p12 }
  0x96   : > { %6783 = shalt.err (!%p6780_p4)
}
  0x97   : > { %5925 = dma.hbm_to_vmem [thread:$0]  (!%p7263_p5), %s7917_s8, 4096, %s7322_s24, [#allocation19], %s7916_s14, %s7916_s14, %s7915_s2  }
  0x98   : > { %s7112_s5 = smov [#allocation14]   ;;  %s7113_s12 = smov [#allocation17]  }
  0x99   : > { %s402_s20 = sshll.u32 %s7112_s5, 4  ;;  %s431_s22 = sshll.u32 %s7113_s12, 4  ;;  %s403_s20 = int_to_ptr.vmem [resolvable:$true] %s402_s20  ;;  %s7371_s22 = int_to_ptr.vmem [resolvable:$true] %s431_s22 }
  0x9a   : > { %s7918_s4 = sld [smem:[#allocation45_spill]] }
  0xa0   : > { %s6784_s26 = scalar_lea.hbm %s7918_s4, 4096 }
  0xa1   : > { %p6785_p1 = scmp.ne.s32.totalorder %s7918_s4, %s6784_s26  ;;  %p6791_p8 = scmp.lt.u32.totalorder %s6784_s26, %s7918_s4 }
  0xa3   : > { %p6787_p3 = pnand %p6785_p1, %p7277_p7 }
  0xa5   : > { %p6788_p6 = pneg %p6787_p3 }
  0xa7   : > { %p6793_p9 = pnand %p6791_p8, %p6788_p6 }
  0xa9   : > { %6796 = shalt.err (!%p6793_p9)
}
  0xaa   : > { %s6797_s9 = scalar_lea.vmem %s403_s20, 4096  ;;  %p6805_p13 = scmp.lt.s32.totalorder %s403_s20, %s403_s20 }
  0xab   : > { %p6798_p10 = scmp.ne.s32.totalorder %s403_s20, %s6797_s9  ;;  %p6806_p0 = scmp.lt.s32.totalorder %s6797_s9, %s6797_s9 }
  0xad   : > { %p6800_p11 = pnand %p6798_p10, %p7277_p7  ;;  %p6807_p2 = por %p6806_p0, %p6805_p13 }
  0xaf   : > { %p6801_p12 = pneg %p6800_p11 }
  0xb1   : > { %p6808_p4 = pnand %p6807_p2, %p6801_p12 }
  0xb3   : > { %6811 = shalt.err (!%p6808_p4)
}
  0xb4   : > { %5916 = dma.hbm_to_vmem [thread:$0]  (!%p7263_p5), %s7918_s4, 4096, %s403_s20, [#allocation13], %s7916_s14, %s7916_s14, %s7915_s2  }
  0xb5   : > { %s7919_s7 = sld [smem:[#allocation48_spill]] }
  0xbb   : > { %s6812_s13 = scalar_lea.hbm %s7919_s7, 8192 }
  0xbc   : > { %p6813_p1 = scmp.ne.s32.totalorder %s7919_s7, %s6812_s13  ;;  %p6819_p8 = scmp.lt.u32.totalorder %s6812_s13, %s7919_s7 }
  0xbe   : > { %p6815_p3 = pnand %p6813_p1, %p7277_p7 }
  0xc0   : > { %p6816_p6 = pneg %p6815_p3 }
  0xc2   : > { %p6821_p9 = pnand %p6819_p8, %p6816_p6 }
  0xc4   : > { %6824 = shalt.err (!%p6821_p9)
}
  0xc5   : > { %s6825_s20 = scalar_lea.vmem %s7371_s22, 8192  ;;  %p6833_p13 = scmp.lt.s32.totalorder %s7371_s22, %s7371_s22 }
  0xc6   : > { %p6826_p10 = scmp.ne.s32.totalorder %s7371_s22, %s6825_s20  ;;  %p6834_p0 = scmp.lt.s32.totalorder %s6825_s20, %s6825_s20 }
  0xc8   : > { %p6828_p11 = pnand %p6826_p10, %p7277_p7  ;;  %p6835_p2 = por %p6834_p0, %p6833_p13 }
  0xca   : > { %p6829_p12 = pneg %p6828_p11 }
  0xcc   : > { %p6836_p4 = pnand %p6835_p2, %p6829_p12 }
  0xce   : > { %6839 = shalt.err (!%p6836_p4)
}
  0xcf   : > { %s7920_s9 = smov 16   ;;  %s7921_s1 = smov 256  }
  0xd0   : > { %5922 = dma.hbm_to_vmem [thread:$0]  (!%p7263_p5), %s7919_s7, 8192, %s7371_s22, [#allocation16], %s7921_s1, %s7921_s1, %s7920_s9  }
  0xd1   : > { %s7114_s25 = smov [#allocation20]   ;;  %s7922_s10 = sld [smem:[#allocation51_spill]] }
  0xd2   : > { %s460_s13 = sshll.u32 %s7114_s25, 4  ;;  %s461_s13 = int_to_ptr.vmem [resolvable:$true] %s460_s13 }
  0xd7   : > { %s6840_s0 = scalar_lea.hbm %s7922_s10, 16384 }
  0xd8   : > { %p6841_p1 = scmp.ne.s32.totalorder %s7922_s10, %s6840_s0  ;;  %p6847_p8 = scmp.lt.u32.totalorder %s6840_s0, %s7922_s10 }
  0xda   : > { %p6843_p3 = pnand %p6841_p1, %p7277_p7 }
  0xdc   : > { %p6844_p6 = pneg %p6843_p3 }
  0xde   : > { %p6849_p9 = pnand %p6847_p8, %p6844_p6 }
  0xe0   : > { %6852 = shalt.err (!%p6849_p9)
}
  0xe1   : > { %s6853_s22 = scalar_lea.vmem %s461_s13, 16384  ;;  %p6861_p13 = scmp.lt.s32.totalorder %s461_s13, %s461_s13 }
  0xe2   : > { %p6854_p10 = scmp.ne.s32.totalorder %s461_s13, %s6853_s22  ;;  %p6862_p0 = scmp.lt.s32.totalorder %s6853_s22, %s6853_s22 }
  0xe4   : > { %p6856_p11 = pnand %p6854_p10, %p7277_p7  ;;  %p6863_p2 = por %p6862_p0, %p6861_p13 }
  0xe6   : > { %p6857_p12 = pneg %p6856_p11 }
  0xe8   : > { %p6864_p4 = pnand %p6863_p2, %p6857_p12 }
  0xea   : > { %6867 = shalt.err (!%p6864_p4)
}
  0xeb   : > { %s7115_s9 = smov 512   ;;  %s7116_s1 = smov 32  }
  0xec   : > { %5928 = dma.hbm_to_vmem [thread:$0]  (!%p7263_p5), %s7922_s10, 16384, %s461_s13, [#allocation19], %s7115_s9, %s7115_s9, %s7116_s1  }
  0xed   : > { %s7117_s5 = smov [#allocation21]   ;;  %s7923_s11 = sld [smem:[#allocation52_spill]] }
  0xee   : > { %s473_s12 = sshll.u32 %s7117_s5, 4  ;;  %s474_s12 = int_to_ptr.vmem [resolvable:$true] %s473_s12 }
  0xf3   : > { %s6868_s15 = scalar_lea.hbm %s7923_s11, 16384 }
  0xf4   : > { %p6869_p1 = scmp.ne.s32.totalorder %s7923_s11, %s6868_s15  ;;  %p6875_p8 = scmp.lt.u32.totalorder %s6868_s15, %s7923_s11 }
  0xf6   : > { %p6871_p3 = pnand %p6869_p1, %p7277_p7 }
  0xf8   : > { %p6872_p6 = pneg %p6871_p3 }
  0xfa   : > { %p6877_p9 = pnand %p6875_p8, %p6872_p6 }
  0xfc   : > { %6880 = shalt.err (!%p6877_p9)
}
  0xfd   : > { %s6881_s13 = scalar_lea.vmem %s474_s12, 16384  ;;  %p6889_p13 = scmp.lt.s32.totalorder %s474_s12, %s474_s12 }
  0xfe   : > { %p6882_p10 = scmp.ne.s32.totalorder %s474_s12, %s6881_s13  ;;  %p6890_p0 = scmp.lt.s32.totalorder %s6881_s13, %s6881_s13 }
 0x100   : > { %p6884_p11 = pnand %p6882_p10, %p7277_p7  ;;  %p6891_p2 = por %p6890_p0, %p6889_p13 }
 0x102   : > { %p6885_p12 = pneg %p6884_p11 }
 0x104   : > { %p6892_p4 = pnand %p6891_p2, %p6885_p12 }
 0x106   : > { %6895 = shalt.err (!%p6892_p4)
}
 0x107   : > { %5931 = dma.hbm_to_vmem [thread:$0]  (!%p7263_p5), %s7923_s11, 16384, %s474_s12, [#allocation22], %s7916_s14, %s7916_s14, %s7915_s2  }
 0x108   : > { %s5241_s23 = sadd.s32 4294967294, %s7102_s18   ;;  %s7924_s21 = sld [smem:[#allocation33_spill]] }
 0x109   : > { %s45_s3 = sadd.s32 1, %s7094_s16  ;;  %s48_s4 = sadd.s32 1, %s7098_s17 }
 0x10a   : > { %p46_p7 = scmp.ge.s32.totalorder %s45_s3, 2  ;;  %s55_s5 = sadd.s32 1, %s7082_s30 }
 0x10b   : > { %p62_p1 = scmp.ne.s32.totalorder %s7082_s30, %s7078_s29  ;;  %p63_p3 = scmp.eq.s32.totalorder %s7102_s18, 0 }
 0x10c   : > { %s7973_s3 = smov (%p46_p7, %s45_s3), 0  ;;  %s7975_s4 = smov (!%p46_p7, %s48_s4), %s7098_s17 }
 0x10d   : > { %7925 = sst [smem:[#allocation39_spill]] %s7973_s3  ;;  %p68_p6 = scmp.ne.s32.totalorder %s7078_s29, %s7074_s28 }
 0x10e   : > { %s7926_s12 = sld [smem:[#allocation32_spill]]  ;;  %p50_p5 = scmp.ge.s32.totalorder %s7975_s4, 2 }
 0x10f   : > { %s336_s25 = ssub.s32 %s7094_s16, %s7973_s3  ;;  %p7473_p8 = por %p63_p3, %p62_p1 }
 0x110   : > { %p7928_p9 = scmp.eq.s32.totalorder %s7250_s19, 0  ;;  %s7977_s4 = smov (%p50_p5, %s7975_s4), 0 }
 0x111   : > { %7930 = sst [smem:[#allocation40_spill]] %s7977_s4  ;;  %s340_s0 = sadd.s32 1, %s7070_s27 }
 0x112   : > { %p7479_p10 = por %p7928_p9, %p68_p6  ;;  %p350_p11 = scmp.ne.s32.totalorder %s7070_s27, %s7924_s21 }
 0x113   : > { %s52_s28 = ssub.s32 %s7098_s17, %s7977_s4  ;;  %p351_p12 = scmp.eq.s32.totalorder %s7250_s19, 3 }
 0x114   : > { %p53_p13 = scmp.eq.s32.totalorder %s52_s28, 0  ;;  %s337_s24 = sor.u32 %s336_s25, %s52_s28 }
 0x115   : > { %p338_p0 = scmp.eq.s32.totalorder %s337_s24, 0  ;;  %p7491_p2 = por %p351_p12, %p350_p11 }
 0x116   : > { %s7496_s22 = scalar_select %p53_p13, %s7082_s30, %s55_s5  }
 0x117   : > { %s7931_s20 = scalar_select %p7491_p2, 1, 0 }
 0x118   : > { %s7499_s13 = scalar_select %p338_p0, %s7070_s27, %s340_s0  }
 0x119   : > { %p356_p4 = scmp.ne.s32.totalorder %s7924_s21, %s7926_s12  ;;  %p357_p7 = scmp.eq.s32.totalorder %s5241_s23, 3 }
 0x11a   : > { %p5951_p1 = scmp.lt.s32.totalorder %s7102_s18, 4  ;;  %s490_s9 = sand.u32 1, %s7082_s30  }
 0x11b   : > { %p7505_p3 = por %p357_p7, %p356_p4  ;;  %s7509_s6 = sshll.u32 %s490_s9, 4 }
 0x11c   : > { %s5802_s25 = sshll.u32 %s7098_s17, 8  ;;  %s7933_s7 = sld [smem:[#allocation41_spill]] }
 0x11d   : > { %s7932_s1 = scalar_select %p7505_p3, 1, 0 }
 0x11e   : > { %s494_s23 = scalar_lea.vmem [#allocation6], %s7509_s6  ;;  %p7520_p6 = pnand %p5951_p1, %p7473_p8 }
 0x11f   : > { %s501_s21 = sshll.u32 %s494_s23, 4  ;;  %s7935_s28 = sld [smem:[#allocation42_spill]]  ;;  %s7524_s21 = int_to_ptr.vmem [resolvable:$true] %s501_s21 }
 0x120   : > { %s7531_s11 = scalar_lea.sflag [#allocation7], %s490_s9  ;;  %p6898_p9 = pneg %p7520_p6 }
 0x122   : > { %s7515_s8 = scalar_lea.hbm %s7933_s7, %s5802_s25  ;;  %s6901_s3 = scalar_lea.hbm %s7933_s7, 512 }
 0x123   : > { %s6896_s4 = scalar_lea.hbm %s7515_s8, 256  ;;  %p6902_p12 = scmp.lt.u32.totalorder %s7515_s8, %s7933_s7 }
 0x124   : > { %p6897_p5 = scmp.ne.s32.totalorder %s7515_s8, %s6896_s4  ;;  %p6903_p13 = scmp.lt.u32.totalorder %s6901_s3, %s6896_s4 }
 0x125   : > { %s7936_s24 = smov %s7935_s28  ;;  %s7529_s10 = scalar_lea.hbm %s7935_s28, %s5802_s25 }
 0x126   : > { %p6899_p8 = pnand %p6898_p9, %p6897_p5  ;;  %p6904_p0 = por %p6903_p13, %p6902_p12 }
 0x127   : > { %p6905_p4 = scmp.lt.u32.totalorder %s6896_s4, %s7515_s8 }
 0x128   : > { %p6900_p11 = pneg %p6899_p8 }
 0x129   : > { %p6906_p7 = por %p6905_p4, %p6904_p0 }
 0x12b   : > { %p6907_p1 = pnand %p6906_p7, %p6900_p11 }
 0x12d   : > { %6910 = shalt.err (!%p6907_p1)
}
 0x12e   : > { %s6911_s9 = scalar_lea.vmem %s7524_s21, 256  ;;  %s7118_s25 = smov [#allocation6]  }
 0x12f   : > { %p6912_p5 = scmp.ne.s32.totalorder %s7524_s21, %s6911_s9  ;;  %s6916_s12 = sshll.u32 %s7118_s25, 4  ;;  %s6917_s12 = int_to_ptr.vmem [resolvable:$false] %s6916_s12 }
 0x130   : > { %s6918_s16 = scalar_lea.vmem %s6917_s12, 512  ;;  %p6919_p2 = scmp.lt.s32.totalorder %s7524_s21, %s6917_s12 }
 0x131   : > { %p6914_p8 = pnand %p6912_p5, %p6898_p9  ;;  %p6920_p12 = scmp.lt.s32.totalorder %s6918_s16, %s6911_s9 }
 0x133   : > { %p6915_p3 = pneg %p6914_p8  ;;  %p6921_p13 = por %p6920_p12, %p6919_p2 }
 0x135   : > { %p6922_p0 = pnand %p6921_p13, %p6915_p3 }
 0x137   : > { %6925 = shalt.err (!%p6922_p0)
}
 0x138   : > { %5935 = dma.hbm_to_vmem [thread:$0]  (!%p7520_p6), %s7515_s8, 256, %s7524_s21, %s7531_s11, %s7916_s14, %s7916_s14, %s7915_s2  }
 0x139   : > { %s515_s17 = scalar_lea.vmem [#allocation9], %s7509_s6  ;;  %s511_s4 = sand.u32 1, %s7102_s18  }
 0x13a   : > { %s522_s3 = sshll.u32 %s515_s17, 4  ;;  %s7566_s0 = scalar_lea.sflag [#allocation10], %s511_s4  ;;  %s7564_s3 = int_to_ptr.vmem [resolvable:$true] %s522_s3 }
 0x13b   : > { %s6926_s28 = scalar_lea.hbm %s7529_s10, 256  ;;  %s6931_s9 = scalar_lea.hbm %s7936_s24, 512 }
 0x13c   : > { %p6927_p2 = scmp.ne.s32.totalorder %s7529_s10, %s6926_s28  ;;  %p6932_p4 = scmp.lt.u32.totalorder %s7529_s10, %s7936_s24 }
 0x13d   : > { %p6933_p7 = scmp.lt.u32.totalorder %s6931_s9, %s6926_s28  ;;  %p6935_p5 = scmp.lt.u32.totalorder %s6926_s28, %s7529_s10 }
 0x13e   : > { %p6929_p3 = pnand %p6927_p2, %p6898_p9 }
 0x13f   : > { %p6934_p1 = por %p6933_p7, %p6932_p4 }
 0x140   : > { %p6930_p11 = pneg %p6929_p3 }
 0x141   : > { %p6936_p8 = por %p6935_p5, %p6934_p1 }
 0x143   : > { %p6937_p12 = pnand %p6936_p8, %p6930_p11 }
 0x145   : > { %6940 = shalt.err (!%p6937_p12)
}
 0x146   : > { %s6941_s6 = scalar_lea.vmem %s7564_s3, 256  ;;  %s7119_s8 = smov [#allocation9]  }
 0x147   : > { %p6942_p13 = scmp.ne.s32.totalorder %s7564_s3, %s6941_s6  ;;  %s6946_s11 = sshll.u32 %s7119_s8, 4  ;;  %s6947_s11 = int_to_ptr.vmem [resolvable:$false] %s6946_s11 }
 0x148   : > { %s6948_s21 = scalar_lea.vmem %s6947_s11, 512  ;;  %p6949_p3 = scmp.lt.s32.totalorder %s7564_s3, %s6947_s11 }
 0x149   : > { %p6944_p0 = pnand %p6942_p13, %p6898_p9  ;;  %p6950_p4 = scmp.lt.s32.totalorder %s6948_s21, %s6941_s6 }
 0x14b   : > { %p6945_p2 = pneg %p6944_p0  ;;  %p6951_p7 = por %p6950_p4, %p6949_p3 }
 0x14d   : > { %p6952_p1 = pnand %p6951_p7, %p6945_p2 }
 0x14f   : > { %6955 = shalt.err (!%p6952_p1)
}
 0x150   : > { %5938 = dma.hbm_to_vmem [thread:$0]  (!%p7520_p6), %s7529_s10, 256, %s7564_s3, %s7566_s0, %s7916_s14, %s7916_s14, %s7915_s2  }
 0x151   : > { %s7937_s16 = sld [smem:[#allocation38_spill]] }
 0x157   : > { %p7938_p9 = scmp.ne.s32.totalorder %s7937_s16, 0 }
 0x158   : > { %s536_s17 = sand.u32 (!%p7938_p9), 1, %s7078_s29  }
 0x159   : > { %534 = sbr.rel (%p7938_p9) target bundleno = 5515 (0x158b), region = 72  ;;  %s7598_s4 = sshll.u32 (!%p7938_p9), %s536_s17, 4 }
 0x15a   : > { %s537_s28 = scalar_lea.sflag (!%p7938_p9), [#allocation7], %s536_s17  ;;  %s7601_s26 = scalar_lea.vmem (!%p7938_p9), [#allocation6], %s7598_s4 }
 0x160   : > { %7029 = dma.done.wait (%p7479_p10), %s537_s28, 256  }
 0x161   : > { %7031 = vsyncadd (%p7479_p10), %s537_s28, 4294967040  ;;  %s545_s10 = sand.u32 1, %s7250_s19   ;;  %s549_s14 = scalar_lea.vmem [#allocation9], %s7598_s4 }
 0x162   : > { %s546_s2 = scalar_lea.sflag [#allocation10], %s545_s10 }
 0x163   : > { %7033 = dma.done.wait (%p7479_p10), %s546_s2, 256  }
 0x164   : > { %7035 = vsyncadd (%p7479_p10), %s546_s2, 4294967040  ;;  %p7939_p6 = scmp.eq.s32.totalorder %s7250_s19, 0 }
 0x166   : > { %7037 = dma.done.wait (%p7939_p6), [#allocation10], 4096   ;;  %p7940_p11 = pmov %p7939_p6 }
 0x167   : > { %p7941_p5 = pmov %p7939_p6 }
 0x168   : > { %7039 = vsyncadd (%p7940_p11), [#allocation10], 4294963200 }
 0x169   : > { %7041 = dma.done.wait (%p7941_p5), [#allocation13], 12288   ;;  %p7942_p8 = pmov %p7941_p5 }
 0x16a   : > { %p7943_p12 = pmov %p7941_p5 }
 0x16b   : > { %7043 = vsyncadd (%p7942_p8), [#allocation13], 4294955008 }
 0x16c   : > { %7045 = dma.done.wait (%p7943_p12), [#allocation16], 12288   ;;  %p7944_p13 = pmov %p7941_p5 }
 0x16d   : > { %p7945_p10 = pmov %p7941_p5 }
 0x16e   : > { %7047 = vsyncadd (%p7944_p13), [#allocation16], 4294955008 }
 0x16f   : > { %7049 = dma.done.wait (%p7945_p10), [#allocation19], 20480   ;;  %p7946_p0 = pmov %p7941_p5 }
 0x171   : > { %7051 = vsyncadd (%p7946_p0), [#allocation19], 4294946816  ;;  %p7947_p2 = pmov %p7946_p0 }
 0x172   : > { %p7948_p3 = pmov %p7946_p0 }
 0x173   : > { %7053 = dma.done.wait (%p7947_p2), [#allocation22], 16384  }
 0x174   : > { %7055 = vsyncadd (%p7948_p3), [#allocation22], 4294950912  ;;  %s7949_s15 = sld [smem:[#allocation33_spill]]  ;;  %s7950_s23 = sld [smem:[#allocation34_spill]] }
 0x17a   : > { %s626_s5 = sand.u32 1, %s7949_s15   ;;  %p5270_p4 = scmp.ne.s32.totalorder %s7950_s23, 0 }
 0x17b   : > { %s5269_s3 = sshll.u32 %s626_s5, 4  ;;  %v6066_v0 = vld [vmem:[#allocation12 + $0x4] ss:$16 sps:$4 sm:$0xff] (!%p5270_p4)   ;;  %v6068_v1 = vld [vmem:[#allocation12 + $0xc] ss:$16 sps:$4 sm:$0xff] (!%p5270_p4)  }
 0x17c   : > { %s7636_s0 = scalar_lea.vmem [#allocation23], %s5269_s3  ;;  %633 = sbr.rel (%p5270_p4) target bundleno = 726 (0x2d6), region = 116  ;;  %1030 = vmatprep.subr.bf16.mxu0 (!%p5270_p4), %v6066_v0  ;;  %v6070_v2 = vld [vmem:[#allocation12] ss:$16 sps:$4 sm:$0xff] (!%p5270_p4)   ;;  %v6071_v3 = vld [vmem:[#allocation12 + $0x8] ss:$16 sps:$4 sm:$0xff] (!%p5270_p4)   ;;  %1073 = vmatprep.subr.bf16.mxu1 (!%p5270_p4), %v6068_v1 }
 0x17d   : > { %v6072_v4 = vld [vmem:[#allocation12 + $0x24] ss:$16 sps:$4 sm:$0xff] (!%p5270_p4)   ;;  %1031 = vmatpush1.bf16.msra.mxu0 (!%p5270_p4), %v6070_v2  ;;  %1074 = vmatpush1.bf16.msra.mxu1 (!%p5270_p4), %v6071_v3  ;;  %v6074_v5 = vld [vmem:[#allocation12 + $0x2c] ss:$16 sps:$4 sm:$0xff] (!%p5270_p4)   ;;  %v6076_v6 = vld [vmem:[#allocation12 + $0x20] ss:$16 sps:$4 sm:$0xff] (!%p5270_p4)  }
 0x17e   : > { %1032 = vmatprep.subr.bf16.mxu0 (!%p5270_p4), %v6072_v4  ;;  %v6077_v7 = vld [vmem:[#allocation12 + $0x28] ss:$16 sps:$4 sm:$0xff] (!%p5270_p4)   ;;  %1075 = vmatprep.subr.bf16.mxu1 (!%p5270_p4), %v6074_v5  ;;  %v6078_v8 = vld [vmem:[#allocation12 + $0x44] ss:$16 sps:$4 sm:$0xff] (!%p5270_p4)   ;;  %v6080_v9 = vld [vmem:[#allocation12 + $0x4c] ss:$16 sps:$4 sm:$0xff] (!%p5270_p4)  }
 0x17f   : > { %v6082_v10 = vld [vmem:[#allocation12 + $0x40] ss:$16 sps:$4 sm:$0xff] (!%p5270_p4)   ;;  %v6083_v11 = vld [vmem:[#allocation12 + $0x48] ss:$16 sps:$4 sm:$0xff] (!%p5270_p4)   ;;  %v6084_v12 = vld [vmem:[#allocation12 + $0x64] ss:$16 sps:$4 sm:$0xff] (!%p5270_p4)  }
 0x180   : > { %v6086_v13 = vld [vmem:[#allocation12 + $0x6c] ss:$16 sps:$4 sm:$0xff] (!%p5270_p4)   ;;  %v6088_v14 = vld [vmem:[#allocation12 + $0x60] ss:$16 sps:$4 sm:$0xff] (!%p5270_p4)   ;;  %v6089_v15 = vld [vmem:[#allocation12 + $0x68] ss:$16 sps:$4 sm:$0xff] (!%p5270_p4)  }
 0x181   : > { %1033 = vmatpush1.bf16.msra.mxu0 (!%p5270_p4), %v6076_v6  ;;  %1076 = vmatpush1.bf16.msra.mxu1 (!%p5270_p4), %v6077_v7  ;;  %v6090_v16 = vld [vmem:[#allocation12 + $0x84] ss:$16 sps:$4 sm:$0xff] (!%p5270_p4)   ;;  %v6092_v17 = vld [vmem:[#allocation12 + $0x8c] ss:$16 sps:$4 sm:$0xff] (!%p5270_p4)   ;;  %v6094_v18 = vld [vmem:[#allocation12 + $0x80] ss:$16 sps:$4 sm:$0xff] (!%p5270_p4)  }
 0x182   : > { %1034 = vmatprep.subr.bf16.mxu0 (!%p5270_p4), %v6078_v8  ;;  %1077 = vmatprep.subr.bf16.mxu1 (!%p5270_p4), %v6080_v9  ;;  %v6095_v19 = vld [vmem:[#allocation12 + $0x88] ss:$16 sps:$4 sm:$0xff] (!%p5270_p4)   ;;  %v6096_v20 = vld [vmem:[#allocation12 + $0xa4] ss:$16 sps:$4 sm:$0xff] (!%p5270_p4)   ;;  %v6098_v21 = vld [vmem:[#allocation12 + $0xac] ss:$16 sps:$4 sm:$0xff] (!%p5270_p4)  }
 0x183   : > { %v6100_v22 = vld [vmem:[#allocation12 + $0xa0] ss:$16 sps:$4 sm:$0xff]   ;;  %v6101_v23 = vld [vmem:[#allocation12 + $0xa8] ss:$16 sps:$4 sm:$0xff]   ;;  %v6102_v24 = vld [vmem:[#allocation12 + $0xc4] ss:$16 sps:$4 sm:$0xff]  }
 0x184   : > { %v6104_v25 = vld [vmem:[#allocation12 + $0xcc] ss:$16 sps:$4 sm:$0xff]   ;;  %v6106_v26 = vld [vmem:[#allocation12 + $0xc0] ss:$16 sps:$4 sm:$0xff]   ;;  %v6107_v27 = vld [vmem:[#allocation12 + $0xc8] ss:$16 sps:$4 sm:$0xff]  }
 0x185   : > { %1035 = vmatpush1.bf16.msra.mxu0 %v6082_v10  ;;  %1078 = vmatpush1.bf16.msra.mxu1 %v6083_v11  ;;  %v6108_v28 = vld [vmem:[#allocation12 + $0xe4] ss:$16 sps:$4 sm:$0xff]   ;;  %v6110_v29 = vld [vmem:[#allocation12 + $0xec] ss:$16 sps:$4 sm:$0xff]   ;;  %v6112_v30 = vld [vmem:[#allocation12 + $0xe0] ss:$16 sps:$4 sm:$0xff]  }
 0x186   : > { %1036 = vmatprep.subr.bf16.mxu0 %v6084_v12  ;;  %1079 = vmatprep.subr.bf16.mxu1 %v6086_v13  ;;  %v6113_v31 = vld [vmem:[#allocation12 + $0xe8] ss:$16 sps:$4 sm:$0xff]   ;;  %v6114_v32 = vld [vmem:[#allocation12 + $0x104] ss:$16 sps:$4 sm:$0xff]   ;;  %v6116_v33 = vld [vmem:[#allocation12 + $0x10c] ss:$16 sps:$4 sm:$0xff]  }
 0x187   : > { %v6118_v34 = vld [vmem:[#allocation12 + $0x100] ss:$16 sps:$4 sm:$0xff]   ;;  %v6119_v35 = vld [vmem:[#allocation12 + $0x108] ss:$16 sps:$4 sm:$0xff]   ;;  %v6120_v36 = vld [vmem:[#allocation12 + $0x124] ss:$16 sps:$4 sm:$0xff]  }
 0x188   : > { %v6122_v37 = vld [vmem:[#allocation12 + $0x12c] ss:$16 sps:$4 sm:$0xff]   ;;  %v6124_v38 = vld [vmem:[#allocation12 + $0x120] ss:$16 sps:$4 sm:$0xff]   ;;  %v6125_v39 = vld [vmem:[#allocation12 + $0x128] ss:$16 sps:$4 sm:$0xff]  }
 0x189   : > { %1037 = vmatpush1.bf16.msra.mxu0 %v6088_v14  ;;  %1080 = vmatpush1.bf16.msra.mxu1 %v6089_v15  ;;  %v6126_v40 = vld [vmem:[#allocation12 + $0x144] ss:$16 sps:$4 sm:$0xff]   ;;  %v6128_v41 = vld [vmem:[#allocation12 + $0x14c] ss:$16 sps:$4 sm:$0xff]   ;;  %v6130_v42 = vld [vmem:[#allocation12 + $0x140] ss:$16 sps:$4 sm:$0xff]  }
 0x18a   : > { %1038 = vmatprep.subr.bf16.mxu0 %v6090_v16  ;;  %1081 = vmatprep.subr.bf16.mxu1 %v6092_v17  ;;  %v6131_v43 = vld [vmem:[#allocation12 + $0x148] ss:$16 sps:$4 sm:$0xff]   ;;  %v6132_v44 = vld [vmem:[#allocation12 + $0x164] ss:$16 sps:$4 sm:$0xff]   ;;  %v6134_v45 = vld [vmem:[#allocation12 + $0x16c] ss:$16 sps:$4 sm:$0xff]  }
 0x18b   : > { %v6136_v46 = vld [vmem:[#allocation12 + $0x160] ss:$16 sps:$4 sm:$0xff]   ;;  %v6137_v47 = vld [vmem:[#allocation12 + $0x168] ss:$16 sps:$4 sm:$0xff]   ;;  %v6164_v48 = vld [vmem:[%s7601_s26 + $0x4] ss:$8 sps:$4 sm:$0xff]  }
 0x18c   : > { %v6138_v49 = vld [vmem:[#allocation12 + $0x184] ss:$16 sps:$4 sm:$0xff]   ;;  %v6140_v50 = vld [vmem:[#allocation12 + $0x18c] ss:$16 sps:$4 sm:$0xff]   ;;  %1062 = vmatprep.mubr.bf16.mxu0 %v6164_v48  ;;  %1105 = vmatprep.mubr.bf16.mxu1 %v6164_v48  ;;  %v6142_v51 = vld [vmem:[#allocation12 + $0x180] ss:$16 sps:$4 sm:$0xff]  }
 0x18d   : > { %1039 = vmatpush1.bf16.msra.mxu0 %v6094_v18  ;;  %1082 = vmatpush1.bf16.msra.mxu1 %v6095_v19  ;;  %v6143_v52 = vld [vmem:[#allocation12 + $0x188] ss:$16 sps:$4 sm:$0xff]   ;;  %v6144_v53 = vld [vmem:[#allocation12 + $0x1a4] ss:$16 sps:$4 sm:$0xff]   ;;  %v6146_v54 = vld [vmem:[#allocation12 + $0x1ac] ss:$16 sps:$4 sm:$0xff]  }
 0x18e   : > { %1040 = vmatprep.subr.bf16.mxu0 %v6096_v20  ;;  %1083 = vmatprep.subr.bf16.mxu1 %v6098_v21  ;;  %v6148_v55 = vld [vmem:[#allocation12 + $0x1a0] ss:$16 sps:$4 sm:$0xff]   ;;  %v6149_v56 = vld [vmem:[#allocation12 + $0x1a8] ss:$16 sps:$4 sm:$0xff]   ;;  %v6150_v57 = vld [vmem:[#allocation12 + $0x1c4] ss:$16 sps:$4 sm:$0xff]  }
 0x18f   : > { %v6152_v58 = vld [vmem:[#allocation12 + $0x1cc] ss:$16 sps:$4 sm:$0xff]   ;;  %v6154_v59 = vld [vmem:[#allocation12 + $0x1c0] ss:$16 sps:$4 sm:$0xff]   ;;  %v6155_v60 = vld [vmem:[#allocation12 + $0x1c8] ss:$16 sps:$4 sm:$0xff]  }
 0x190   : > { %v6156_v61 = vld [vmem:[#allocation12 + $0x1e4] ss:$16 sps:$4 sm:$0xff]   ;;  %v6158_v62 = vld [vmem:[#allocation12 + $0x1ec] ss:$16 sps:$4 sm:$0xff]   ;;  %v6160_v63 = vld [vmem:[#allocation12 + $0x1e0] ss:$16 sps:$4 sm:$0xff]  }
 0x191   : > { %1041 = vmatpush1.bf16.msra.mxu0 %v6100_v22  ;;  %1084 = vmatpush1.bf16.msra.mxu1 %v6101_v23  ;;  %v6161_v0 = vld [vmem:[#allocation12 + $0x1e8] ss:$16 sps:$4 sm:$0xff]   ;;  %v6167_v1 = vld [vmem:[#allocation17 + $0x4] ss:$16 sps:$4 sm:$0xff]   ;;  %v6170_v2 = vld [vmem:[#allocation17 + $0xc] ss:$16 sps:$4 sm:$0xff]  }
 0x192   : > { %1042 = vmatprep.subr.bf16.mxu0 %v6102_v24  ;;  %1085 = vmatprep.subr.bf16.mxu1 %v6104_v25  ;;  %v6162_v3 = vld [vmem:[%s7601_s26] ss:$8 sps:$4 sm:$0xff]   ;;  %v6173_v6 = vld [vmem:[#allocation17 + $0x24] ss:$16 sps:$4 sm:$0xff]   ;;  %v6176_v7 = vld [vmem:[#allocation17 + $0x2c] ss:$16 sps:$4 sm:$0xff]  }
 0x193   : > { %v6165_v4 = vld [vmem:[#allocation17] ss:$16 sps:$4 sm:$0xff]   ;;  %v6168_v5 = vld [vmem:[#allocation17 + $0x8] ss:$16 sps:$4 sm:$0xff]   ;;  %v6179_v10 = vld [vmem:[#allocation17 + $0x44] ss:$16 sps:$4 sm:$0xff]  }
 0x194   : > { %v6171_v8 = vld [vmem:[#allocation17 + $0x20] ss:$16 sps:$4 sm:$0xff]   ;;  %v6174_v9 = vld [vmem:[#allocation17 + $0x28] ss:$16 sps:$4 sm:$0xff]   ;;  %v6182_v11 = vld [vmem:[#allocation17 + $0x4c] ss:$16 sps:$4 sm:$0xff]  }
 0x195   : > { %1043 = vmatpush1.bf16.msra.mxu0 %v6106_v26  ;;  %1086 = vmatpush1.bf16.msra.mxu1 %v6107_v27  ;;  %v6177_v12 = vld [vmem:[#allocation17 + $0x40] ss:$16 sps:$4 sm:$0xff]   ;;  %v6180_v13 = vld [vmem:[#allocation17 + $0x48] ss:$16 sps:$4 sm:$0xff]   ;;  %v6185_v14 = vld [vmem:[#allocation17 + $0x64] ss:$16 sps:$4 sm:$0xff]  }
 0x196   : > { %1044 = vmatprep.subr.bf16.mxu0 %v6108_v28  ;;  %1087 = vmatprep.subr.bf16.mxu1 %v6110_v29  ;;  %v6188_v15 = vld [vmem:[#allocation17 + $0x6c] ss:$16 sps:$4 sm:$0xff]   ;;  %v6183_v16 = vld [vmem:[#allocation17 + $0x60] ss:$16 sps:$4 sm:$0xff]   ;;  %v6186_v17 = vld [vmem:[#allocation17 + $0x68] ss:$16 sps:$4 sm:$0xff]  }
 0x197   : > { %v6191_v18 = vld [vmem:[#allocation17 + $0x84] ss:$16 sps:$4 sm:$0xff]   ;;  %v6194_v19 = vld [vmem:[#allocation17 + $0x8c] ss:$16 sps:$4 sm:$0xff]   ;;  %v6189_v20 = vld [vmem:[#allocation17 + $0x80] ss:$16 sps:$4 sm:$0xff]  }
 0x198   : > { %v6192_v21 = vld [vmem:[#allocation17 + $0x88] ss:$16 sps:$4 sm:$0xff]   ;;  %v6197_v22 = vld [vmem:[#allocation17 + $0xa4] ss:$16 sps:$4 sm:$0xff]   ;;  %v6200_v23 = vld [vmem:[#allocation17 + $0xac] ss:$16 sps:$4 sm:$0xff]  }
 0x199   : > { %1045 = vmatpush1.bf16.msra.mxu0 %v6112_v30  ;;  %1088 = vmatpush1.bf16.msra.mxu1 %v6113_v31  ;;  %v6195_v24 = vld [vmem:[#allocation17 + $0xa0] ss:$16 sps:$4 sm:$0xff]   ;;  %v6198_v25 = vld [vmem:[#allocation17 + $0xa8] ss:$16 sps:$4 sm:$0xff]   ;;  %v6203_v26 = vld [vmem:[#allocation17 + $0xc4] ss:$16 sps:$4 sm:$0xff]  }
 0x19a   : > { %1046 = vmatprep.subr.bf16.mxu0 %v6114_v32  ;;  %1089 = vmatprep.subr.bf16.mxu1 %v6116_v33  ;;  %v6206_v27 = vld [vmem:[#allocation17 + $0xcc] ss:$16 sps:$4 sm:$0xff]   ;;  %v6201_v29 = vld [vmem:[#allocation17 + $0xc0] ss:$16 sps:$4 sm:$0xff]   ;;  %v6204_v30 = vld [vmem:[#allocation17 + $0xc8] ss:$16 sps:$4 sm:$0xff]  }
 0x19b   : > { %v6263_v28 = vld [vmem:[%s549_s14 + $0x4] ss:$8 sps:$4 sm:$0xff]   ;;  %v6207_v33 = vld [vmem:[#allocation17 + $0xe0] ss:$16 sps:$4 sm:$0xff]  }
 0x19c   : > { %v6209_v31 = vld [vmem:[#allocation17 + $0xe4] ss:$16 sps:$4 sm:$0xff]   ;;  %v6212_v32 = vld [vmem:[#allocation17 + $0xec] ss:$16 sps:$4 sm:$0xff]  }
 0x19d   : > { %1047 = vmatpush1.bf16.msra.mxu0 %v6118_v34  ;;  %1090 = vmatpush1.bf16.msra.mxu1 %v6119_v35  ;;  %v6210_v34 = vld [vmem:[#allocation17 + $0xe8] ss:$16 sps:$4 sm:$0xff]   ;;  %v6215_v35 = vld [vmem:[#allocation17 + $0x104] ss:$16 sps:$4 sm:$0xff]   ;;  %v6236_v48 = vld [vmem:[#allocation17 + $0x16c] ss:$16 sps:$4 sm:$0xff]  }
 0x19e   : > { %1048 = vmatprep.subr.bf16.mxu0 %v6120_v36  ;;  %1091 = vmatprep.subr.bf16.mxu1 %v6122_v37  ;;  %v6218_v36 = vld [vmem:[#allocation17 + $0x10c] ss:$16 sps:$4 sm:$0xff]   ;;  %v6213_v37 = vld [vmem:[#allocation17 + $0x100] ss:$16 sps:$4 sm:$0xff]  }
 0x1a1   : > { %1049 = vmatpush1.bf16.msra.mxu0 %v6124_v38  ;;  %1092 = vmatpush1.bf16.msra.mxu1 %v6125_v39  ;;  %v6216_v38 = vld [vmem:[#allocation17 + $0x108] ss:$16 sps:$4 sm:$0xff]   ;;  %v6221_v39 = vld [vmem:[#allocation17 + $0x124] ss:$16 sps:$4 sm:$0xff]  }
 0x1a2   : > { %1050 = vmatprep.subr.bf16.mxu0 %v6126_v40  ;;  %1093 = vmatprep.subr.bf16.mxu1 %v6128_v41  ;;  %v6224_v40 = vld [vmem:[#allocation17 + $0x12c] ss:$16 sps:$4 sm:$0xff]   ;;  %v6219_v41 = vld [vmem:[#allocation17 + $0x120] ss:$16 sps:$4 sm:$0xff]  }
 0x1a5   : > { %1051 = vmatpush1.bf16.msra.mxu0 %v6130_v42  ;;  %1094 = vmatpush1.bf16.msra.mxu1 %v6131_v43  ;;  %v6222_v42 = vld [vmem:[#allocation17 + $0x128] ss:$16 sps:$4 sm:$0xff]   ;;  %v6227_v43 = vld [vmem:[#allocation17 + $0x144] ss:$16 sps:$4 sm:$0xff]  }
 0x1a6   : > { %1052 = vmatprep.subr.bf16.mxu0 %v6132_v44  ;;  %1095 = vmatprep.subr.bf16.mxu1 %v6134_v45  ;;  %v6230_v44 = vld [vmem:[#allocation17 + $0x14c] ss:$16 sps:$4 sm:$0xff]   ;;  %v6225_v45 = vld [vmem:[#allocation17 + $0x140] ss:$16 sps:$4 sm:$0xff]  }
 0x1a9   : > { %1053 = vmatpush1.bf16.msra.mxu0 %v6136_v46  ;;  %1096 = vmatpush1.bf16.msra.mxu1 %v6137_v47  ;;  %v6228_v46 = vld [vmem:[#allocation17 + $0x148] ss:$16 sps:$4 sm:$0xff]   ;;  %v6233_v47 = vld [vmem:[#allocation17 + $0x164] ss:$16 sps:$4 sm:$0xff]  }
 0x1aa   : > { %1054 = vmatprep.subr.bf16.mxu0 %v6138_v49  ;;  %1097 = vmatprep.subr.bf16.mxu1 %v6140_v50  ;;  %v6231_v49 = vld [vmem:[#allocation17 + $0x160] ss:$16 sps:$4 sm:$0xff]   ;;  %v6234_v50 = vld [vmem:[#allocation17 + $0x168] ss:$16 sps:$4 sm:$0xff]  }
 0x1ad   : > { %1055 = vmatpush1.bf16.msra.mxu0 %v6142_v51  ;;  %1098 = vmatpush1.bf16.msra.mxu1 %v6143_v52  ;;  %v6239_v51 = vld [vmem:[#allocation17 + $0x184] ss:$16 sps:$4 sm:$0xff]   ;;  %v6242_v52 = vld [vmem:[#allocation17 + $0x18c] ss:$16 sps:$4 sm:$0xff]  }
 0x1ae   : > { %1056 = vmatprep.subr.bf16.mxu0 %v6144_v53  ;;  %1099 = vmatprep.subr.bf16.mxu1 %v6146_v54  ;;  %v6237_v53 = vld [vmem:[#allocation17 + $0x180] ss:$16 sps:$4 sm:$0xff]   ;;  %v6240_v54 = vld [vmem:[#allocation17 + $0x188] ss:$16 sps:$4 sm:$0xff]  }
 0x1b1   : > { %1057 = vmatpush1.bf16.msra.mxu0 %v6148_v55  ;;  %1100 = vmatpush1.bf16.msra.mxu1 %v6149_v56  ;;  %v6245_v55 = vld [vmem:[#allocation17 + $0x1a4] ss:$16 sps:$4 sm:$0xff]   ;;  %v6248_v56 = vld [vmem:[#allocation17 + $0x1ac] ss:$16 sps:$4 sm:$0xff]  }
 0x1b2   : > { %1058 = vmatprep.subr.bf16.mxu0 %v6150_v57  ;;  %1101 = vmatprep.subr.bf16.mxu1 %v6152_v58  ;;  %v6243_v57 = vld [vmem:[#allocation17 + $0x1a0] ss:$16 sps:$4 sm:$0xff]   ;;  %v6246_v58 = vld [vmem:[#allocation17 + $0x1a8] ss:$16 sps:$4 sm:$0xff]  }
 0x1b5   : > { %1059 = vmatpush1.bf16.msra.mxu0 %v6154_v59  ;;  %1102 = vmatpush1.bf16.msra.mxu1 %v6155_v60  ;;  %v6251_v59 = vld [vmem:[#allocation17 + $0x1c4] ss:$16 sps:$4 sm:$0xff]   ;;  %v6254_v60 = vld [vmem:[#allocation17 + $0x1cc] ss:$16 sps:$4 sm:$0xff]  }
 0x1b6   : > { %1060 = vmatprep.subr.bf16.mxu0 %v6156_v61  ;;  %1103 = vmatprep.subr.bf16.mxu1 %v6158_v62  ;;  %v6249_v61 = vld [vmem:[#allocation17 + $0x1c0] ss:$16 sps:$4 sm:$0xff]   ;;  %v6252_v62 = vld [vmem:[#allocation17 + $0x1c8] ss:$16 sps:$4 sm:$0xff]  }
 0x1b9   : > { %1061 = vmatpush1.bf16.msra.mxu0 %v6160_v63  ;;  %1104 = vmatpush1.bf16.msra.mxu1 %v6161_v0  ;;  %v6257_v63 = vld [vmem:[#allocation17 + $0x1e4] ss:$16 sps:$4 sm:$0xff]   ;;  %v6260_v0 = vld [vmem:[#allocation17 + $0x1ec] ss:$16 sps:$4 sm:$0xff]  }
 0x1ba   : > { %1520 = vmatprep.subr.bf16.mxu0 %v6167_v1  ;;  %1563 = vmatprep.subr.bf16.mxu1 %v6170_v2  ;;  %v6255_v1 = vld [vmem:[#allocation17 + $0x1e0] ss:$16 sps:$4 sm:$0xff]   ;;  %v6258_v2 = vld [vmem:[#allocation17 + $0x1e8] ss:$16 sps:$4 sm:$0xff]  }
 0x1bc   : > { %1063 = vmatmul.mubr.bf16.vlgmr.msra.gmra.mrb[0].mxu0 %v6162_v3  ;;  %1106 = vmatmul.mubr.bf16.vlgmr.msra.gmra.mrb[0].mxu1 %v6162_v3  ;;  %v6261_v3 = vld [vmem:[%s549_s14] ss:$8 sps:$4 sm:$0xff]  }
 0x1bd   : > { %1521 = vmatpush1.bf16.msra.mxu0 %v6165_v4  ;;  %1564 = vmatpush1.bf16.msra.mxu1 %v6168_v5 }
 0x1be   : > { %1522 = vmatprep.subr.bf16.mxu0 %v6173_v6  ;;  %1565 = vmatprep.subr.bf16.mxu1 %v6176_v7 }
 0x1bf   : > { %1552 = vmatprep.mubr.bf16.mxu0 %v6263_v28  ;;  %1595 = vmatprep.mubr.bf16.mxu1 %v6263_v28 }
 0x1c1   : > { %1523 = vmatpush1.bf16.msra.mxu0 %v6171_v8  ;;  %1566 = vmatpush1.bf16.msra.mxu1 %v6174_v9 }
 0x1c2   : > { %1524 = vmatprep.subr.bf16.mxu0 %v6179_v10  ;;  %1567 = vmatprep.subr.bf16.mxu1 %v6182_v11 }
 0x1c5   : > { %1525 = vmatpush1.bf16.msra.mxu0 %v6177_v12  ;;  %1568 = vmatpush1.bf16.msra.mxu1 %v6180_v13 }
 0x1c6   : > { %1526 = vmatprep.subr.bf16.mxu0 %v6185_v14  ;;  %1569 = vmatprep.subr.bf16.mxu1 %v6188_v15 }
 0x1c9   : > { %1527 = vmatpush1.bf16.msra.mxu0 %v6183_v16  ;;  %1570 = vmatpush1.bf16.msra.mxu1 %v6186_v17 }
 0x1ca   : > { %1528 = vmatprep.subr.bf16.mxu0 %v6191_v18  ;;  %1571 = vmatprep.subr.bf16.mxu1 %v6194_v19 }
 0x1cd   : > { %1529 = vmatpush1.bf16.msra.mxu0 %v6189_v20  ;;  %1572 = vmatpush1.bf16.msra.mxu1 %v6192_v21 }
 0x1ce   : > { %1530 = vmatprep.subr.bf16.mxu0 %v6197_v22  ;;  %1573 = vmatprep.subr.bf16.mxu1 %v6200_v23 }
 0x1d1   : > { %1531 = vmatpush1.bf16.msra.mxu0 %v6195_v24  ;;  %1574 = vmatpush1.bf16.msra.mxu1 %v6198_v25 }
 0x1d2   : > { %1532 = vmatprep.subr.bf16.mxu0 %v6203_v26  ;;  %1575 = vmatprep.subr.bf16.mxu1 %v6206_v27 }
 0x1d5   : > { %1533 = vmatpush1.bf16.msra.mxu0 %v6201_v29  ;;  %1576 = vmatpush1.bf16.msra.mxu1 %v6204_v30 }
 0x1d6   : > { %1534 = vmatprep.subr.bf16.mxu0 %v6209_v31  ;;  %1577 = vmatprep.subr.bf16.mxu1 %v6212_v32 }
 0x1d9   : > { %1535 = vmatpush1.bf16.msra.mxu0 %v6207_v33  ;;  %1578 = vmatpush1.bf16.msra.mxu1 %v6210_v34 }
 0x1da   : > { %1536 = vmatprep.subr.bf16.mxu0 %v6215_v35  ;;  %1579 = vmatprep.subr.bf16.mxu1 %v6218_v36 }
 0x1dd   : > { %1537 = vmatpush1.bf16.msra.mxu0 %v6213_v37  ;;  %1580 = vmatpush1.bf16.msra.mxu1 %v6216_v38 }
 0x1de   : > { %1538 = vmatprep.subr.bf16.mxu0 %v6221_v39  ;;  %1581 = vmatprep.subr.bf16.mxu1 %v6224_v40 }
 0x1e1   : > { %1539 = vmatpush1.bf16.msra.mxu0 %v6219_v41  ;;  %1582 = vmatpush1.bf16.msra.mxu1 %v6222_v42 }
 0x1e2   : > { %1540 = vmatprep.subr.bf16.mxu0 %v6227_v43  ;;  %1583 = vmatprep.subr.bf16.mxu1 %v6230_v44 }
 0x1e5   : > { %1541 = vmatpush1.bf16.msra.mxu0 %v6225_v45  ;;  %1584 = vmatpush1.bf16.msra.mxu1 %v6228_v46 }
 0x1e6   : > { %1542 = vmatprep.subr.bf16.mxu0 %v6233_v47  ;;  %1585 = vmatprep.subr.bf16.mxu1 %v6236_v48 }
 0x1e9   : > { %1543 = vmatpush1.bf16.msra.mxu0 %v6231_v49  ;;  %1586 = vmatpush1.bf16.msra.mxu1 %v6234_v50 }
 0x1ea   : > { %1544 = vmatprep.subr.bf16.mxu0 %v6239_v51  ;;  %1587 = vmatprep.subr.bf16.mxu1 %v6242_v52 }
 0x1ed   : > { %1545 = vmatpush1.bf16.msra.mxu0 %v6237_v53  ;;  %1588 = vmatpush1.bf16.msra.mxu1 %v6240_v54 }
 0x1ee   : > { %1546 = vmatprep.subr.bf16.mxu0 %v6245_v55  ;;  %1589 = vmatprep.subr.bf16.mxu1 %v6248_v56 }
 0x1f1   : > { %1547 = vmatpush1.bf16.msra.mxu0 %v6243_v57  ;;  %1590 = vmatpush1.bf16.msra.mxu1 %v6246_v58 }
 0x1f2   : > { %1548 = vmatprep.subr.bf16.mxu0 %v6251_v59  ;;  %1591 = vmatprep.subr.bf16.mxu1 %v6254_v60 }
 0x1f5   : > { %1549 = vmatpush1.bf16.msra.mxu0 %v6249_v61  ;;  %1592 = vmatpush1.bf16.msra.mxu1 %v6252_v62 }
 0x1f6   : > { %1550 = vmatprep.subr.bf16.mxu0 %v6257_v63  ;;  %1593 = vmatprep.subr.bf16.mxu1 %v6260_v0 }
 0x1f9   : > { %1551 = vmatpush1.bf16.msra.mxu0 %v6255_v1  ;;  %1594 = vmatpush1.bf16.msra.mxu1 %v6258_v2 }
 0x1fc   : > { %1553 = vmatmul.mubr.bf16.vlgmr.msra.gmra.mrb[4].mxu0 %v6261_v3  ;;  %1596 = vmatmul.mubr.bf16.vlgmr.msra.gmra.mrb[4].mxu1 %v6261_v3 }
 0x28f   : > { %v1064_v4 = vpop.f32.mrb[0].mxu0  ;;  %v1107_v5 = vpop.f32.mrb[0].mxu1 }
 0x290   : > { %v1066_v6 = vpop.f32.mrb[1].mxu0  ;;  %v1109_v7 = vpop.f32.mrb[1].mxu1 }
 0x291   : > { %v1068_v8 = vpop.f32.mrb[2].mxu0  ;;  %v1111_v9 = vpop.f32.mrb[2].mxu1 }
 0x292   : > { %v1116_v10 = vpack.c.bf16 %v1068_v8, %v1064_v4  ;;  %v1120_v11 = vpack.c.bf16 %v1111_v9, %v1107_v5  ;;  %v1070_v12 = vpop.f32.mrb[3].mxu0  ;;  %v1113_v13 = vpop.f32.mrb[3].mxu1 }
 0x293   : > { %v1117_v14 = vpack.c.bf16 %v1070_v12, %v1066_v6  ;;  %v1121_v15 = vpack.c.bf16 %v1113_v13, %v1109_v7 }
 0x294   : > { %1118 = vst [vmem:[#allocation2] sm:$0xff] %v1116_v10  ;;  %1122 = vst [vmem:[#allocation3] sm:$0xff] %v1120_v11 }
 0x295   : > { %1119 = vst [vmem:[#allocation2 + $0x8] sm:$0xff] %v1117_v14  ;;  %1123 = vst [vmem:[#allocation3 + $0x8] sm:$0xff] %v1121_v15 }
 0x2cf   : > { %v1554_v16 = vpop.f32.mrb[4].mxu0  ;;  %v1597_v17 = vpop.f32.mrb[4].mxu1 }
 0x2d0   : > { %v1556_v18 = vpop.f32.mrb[5].mxu0  ;;  %v1599_v19 = vpop.f32.mrb[5].mxu1 }
 0x2d1   : > { %v1558_v20 = vpop.f32.mrb[6].mxu0  ;;  %v1601_v21 = vpop.f32.mrb[6].mxu1 }
 0x2d2   : > { %v1606_v22 = vpack.c.bf16 %v1558_v20, %v1554_v16  ;;  %v1610_v23 = vpack.c.bf16 %v1601_v21, %v1597_v17  ;;  %v1560_v24 = vpop.f32.mrb[7].mxu0  ;;  %v1603_v25 = vpop.f32.mrb[7].mxu1 }
 0x2d3   : > { %v1607_v26 = vpack.c.bf16 %v1560_v24, %v1556_v18  ;;  %v1611_v27 = vpack.c.bf16 %v1603_v25, %v1599_v19 }
 0x2d4   : > { %1608 = vst [vmem:[#allocation4] sm:$0xff] %v1606_v22  ;;  %1612 = vst [vmem:[#allocation5] sm:$0xff] %v1610_v23 }
 0x2d5   : > { %1609 = vst [vmem:[#allocation4 + $0x8] sm:$0xff] %v1607_v26  ;;  %1613 = vst [vmem:[#allocation5 + $0x8] sm:$0xff] %v1611_v27 }
 0x2d6 PF: > { %v6264_v28 = vld [vmem:[#allocation11 + $0x4] ss:$8 sps:$4 sm:$0xff]   ;;  %v6266_v29 = vld [vmem:[#allocation11] ss:$8 sps:$4 sm:$0xff]   ;;  %v7120_v30 = vmov 0.0   ;;  %s7951_s19 = sld [smem:[#allocation34_spill]] }
 0x2d7   : > { %5821 = vmatprep.subr.bf16.mxu1 %v7120_v30  ;;  %1820 = vmatprep.subr.bf16.mxu0 %v6264_v28  ;;  %v6267_v31 = vld [vmem:[#allocation11 + $0x14] ss:$8 sps:$4 sm:$0xff]   ;;  %v6269_v32 = vld [vmem:[#allocation11 + $0x10] ss:$8 sps:$4 sm:$0xff]   ;;  %v6270_v33 = vld [vmem:[#allocation11 + $0x24] ss:$8 sps:$4 sm:$0xff]  }
 0x2d8   : > { %1821 = vmatpush1.bf16.msra.mxu0 %v6266_v29  ;;  %v6272_v34 = vld [vmem:[#allocation11 + $0x20] ss:$8 sps:$4 sm:$0xff]   ;;  %v6273_v35 = vld [vmem:[#allocation11 + $0x34] ss:$8 sps:$4 sm:$0xff]   ;;  %v6275_v36 = vld [vmem:[#allocation11 + $0x30] ss:$8 sps:$4 sm:$0xff]  }
 0x2d9   : > { %1822 = vmatprep.subr.bf16.mxu0 %v6267_v31  ;;  %v6276_v37 = vld [vmem:[#allocation11 + $0x44] ss:$8 sps:$4 sm:$0xff]   ;;  %v6278_v38 = vld [vmem:[#allocation11 + $0x40] ss:$8 sps:$4 sm:$0xff]   ;;  %v6279_v39 = vld [vmem:[#allocation11 + $0x54] ss:$8 sps:$4 sm:$0xff]  }
 0x2da   : > { %v6281_v40 = vld [vmem:[#allocation11 + $0x50] ss:$8 sps:$4 sm:$0xff]   ;;  %v6282_v41 = vld [vmem:[#allocation11 + $0x64] ss:$8 sps:$4 sm:$0xff]   ;;  %v6284_v42 = vld [vmem:[#allocation11 + $0x60] ss:$8 sps:$4 sm:$0xff]  }
 0x2db   : > { %v1861_v44 = vld [vmem:[#allocation2] sm:$0xff]  ;;  %v6285_v45 = vld [vmem:[#allocation11 + $0x74] ss:$8 sps:$4 sm:$0xff]   ;;  %v6287_v47 = vld [vmem:[#allocation11 + $0x70] ss:$8 sps:$4 sm:$0xff]   ;;  %vm7121_vm0 = vmmov 0  }
 0x2dc   : > { %1823 = vmatpush1.bf16.msra.mxu0 %v6269_v32  ;;  %s5403_s9 = sshll.u32 %s7951_s19, 3  ;;  %5822 = vmatpush3.bf16.xpose.msra.mxu1 %v1861_v44  ;;  %v6288_v48 = vld [vmem:[#allocation11 + $0x84] ss:$8 sps:$4 sm:$0xff]   ;;  %v6290_v49 = vld [vmem:[#allocation11 + $0x80] ss:$8 sps:$4 sm:$0xff]   ;;  %vm1909_vm1 = vcmask 130048  }
 0x2dd   : > { %1824 = vmatprep.subr.bf16.mxu0 %v6270_v33  ;;  %s1619_s25 = scalar_lea.vmem %s7601_s26, %s5403_s9 [#allocation6]  ;;  %5827 = vmatprep.subr.bf16.mxu1 %v7120_v30  ;;  %v6291_v50 = vld [vmem:[#allocation11 + $0x94] ss:$8 sps:$4 sm:$0xff]   ;;  %v6293_v51 = vld [vmem:[#allocation11 + $0x90] ss:$8 sps:$4 sm:$0xff]   ;;  %v6294_v52 = vld [vmem:[#allocation11 + $0xa4] ss:$8 sps:$4 sm:$0xff]  }
 0x2de   : > { %v7648_v43 = vld [vmem:[%s1619_s25] sm:$0xff]  ;;  %v6297_v54 = vld [vmem:[#allocation11 + $0xb4] ss:$8 sps:$4 sm:$0xff]   ;;  %v6299_v55 = vld [vmem:[#allocation11 + $0xb0] ss:$8 sps:$4 sm:$0xff]   ;;  %5823 = vmatprep.mubr.msk.bf16.mxu1 %vm7121_vm0, %v7120_v30  ;;  %s7952_s8 = sld [smem:[#allocation46_spill]] }
 0x2df   : > { %v5407_v46 = vcombine.high %v7648_v43, %v7648_v43  ;;  %v6296_v53 = vld [vmem:[#allocation11 + $0xa0] ss:$8 sps:$4 sm:$0xff]   ;;  %v6300_v56 = vld [vmem:[#allocation11 + $0xc4] ss:$8 sps:$4 sm:$0xff]   ;;  %v6303_v58 = vld [vmem:[#allocation11 + $0xd4] ss:$8 sps:$4 sm:$0xff]   ;;  %v5406_v0 = vcombine.low %v7648_v43, %v7648_v43 }
 0x2e0   : > { %1825 = vmatpush1.bf16.msra.mxu0 %v6272_v34  ;;  %v6302_v57 = vld [vmem:[#allocation11 + $0xc0] ss:$8 sps:$4 sm:$0xff]   ;;  %v6305_v59 = vld [vmem:[#allocation11 + $0xd0] ss:$8 sps:$4 sm:$0xff]   ;;  %v6306_v60 = vld [vmem:[#allocation11 + $0xe4] ss:$8 sps:$4 sm:$0xff]  }
 0x2e1   : > { %1826 = vmatprep.subr.bf16.mxu0 %v6273_v35  ;;  %1852 = vmatprep.mubr.bf16.mxu0 %v5407_v46  ;;  %v6308_v61 = vld [vmem:[#allocation11 + $0xe0] ss:$8 sps:$4 sm:$0xff]   ;;  %v6309_v62 = vld [vmem:[#allocation11 + $0xf4] ss:$8 sps:$4 sm:$0xff]   ;;  %v6311_v63 = vld [vmem:[#allocation11 + $0xf0] ss:$8 sps:$4 sm:$0xff]  }
 0x2e2   : > { %v1863_v17 = vld [vmem:[#allocation3] sm:$0xff]  ;;  %v6314_v18 = vld [vmem:[#allocation14] ss:$8 sps:$4 sm:$0xff]   ;;  %v6316_v19 = vld [vmem:[#allocation14 + $0x4] ss:$8 sps:$4 sm:$0xff]   ;;  %s7953_s16 = sld [smem:[#allocation50_spill]] }
 0x2e3   : > { %v6319_v20 = vld [vmem:[#allocation14 + $0x14] ss:$8 sps:$4 sm:$0xff]   ;;  %v6317_v21 = vld [vmem:[#allocation14 + $0x10] ss:$8 sps:$4 sm:$0xff]   ;;  %v6322_v22 = vld [vmem:[#allocation14 + $0x24] ss:$8 sps:$4 sm:$0xff]  }
 0x2e4   : > { %1827 = vmatpush1.bf16.msra.mxu0 %v6275_v36  ;;  %v6320_v23 = vld [vmem:[#allocation14 + $0x20] ss:$8 sps:$4 sm:$0xff]   ;;  %v6325_v24 = vld [vmem:[#allocation14 + $0x34] ss:$8 sps:$4 sm:$0xff]   ;;  %v6323_v25 = vld [vmem:[#allocation14 + $0x30] ss:$8 sps:$4 sm:$0xff]  }
 0x2e5   : > { %1828 = vmatprep.subr.bf16.mxu0 %v6276_v37  ;;  %v6328_v26 = vld [vmem:[#allocation14 + $0x44] ss:$8 sps:$4 sm:$0xff]   ;;  %v6326_v27 = vld [vmem:[#allocation14 + $0x40] ss:$8 sps:$4 sm:$0xff]   ;;  %v6331_v28 = vld [vmem:[#allocation14 + $0x54] ss:$8 sps:$4 sm:$0xff]  }
 0x2e6   : > { %v6329_v29 = vld [vmem:[#allocation14 + $0x50] ss:$8 sps:$4 sm:$0xff]   ;;  %v6334_v31 = vld [vmem:[#allocation14 + $0x64] ss:$8 sps:$4 sm:$0xff]   ;;  %v6332_v32 = vld [vmem:[#allocation14 + $0x60] ss:$8 sps:$4 sm:$0xff]  }
 0x2e7   : > { %v6337_v33 = vld [vmem:[#allocation14 + $0x74] ss:$8 sps:$4 sm:$0xff]   ;;  %v6335_v34 = vld [vmem:[#allocation14 + $0x70] ss:$8 sps:$4 sm:$0xff]   ;;  %s7954_s17 = sld [smem:[#allocation35_spill]]  ;;  %s5797_s4 = sshll.u32 %s7951_s19, 1 }
 0x2e8   : > { %1829 = vmatpush1.bf16.msra.mxu0 %v6278_v38  ;;  %s7955_s2 = sld [smem:[#allocation53_spill]]  ;;  %s5055_s23 = sshll.u32 %s7636_s0, 4  ;;  %s7790_s23 = int_to_ptr.vmem [resolvable:$true] %s5055_s23 }
 0x2e9   : > { %1830 = vmatprep.subr.bf16.mxu0 %v6279_v39  ;;  %v1862_v39 = vld [vmem:[#allocation2 + $0x8] sm:$0xff]  ;;  %s7957_s25 = sld [smem:[#allocation54_spill]]  ;;  %s6956_s11 = scalar_lea.vmem %s7790_s23, 256 }
 0x2ea   : > { %p6957_p7 = scmp.ne.s32.totalorder %s7790_s23, %s6956_s11  ;;  %p7959_p1 = scmp.ne.s32.totalorder %s7931_s20, 0 }
 0x2eb   : > { %s7123_s21 = smov [#allocation23]  }
 0x2ec   : > { %1831 = vmatpush1.bf16.msra.mxu0 %v6281_v40  ;;  %p6958_p9 = pnand %p6957_p7, %p7959_p1 }
 0x2ed   : > { %1832 = vmatprep.subr.bf16.mxu0 %v6282_v41  ;;  %s5798_s28 = sshll.u32 %s7954_s17, 2 }
 0x2ee   : > { %s5051_s14 = sadd.s32 %s5798_s28, %s5797_s4  ;;  %p6959_p6 = pneg %p6958_p9 }
 0x2ef   : > { %s5799_s3 = sshll.u32 %s5051_s14, 7  ;;  %s7958_s12 = smov %s7957_s25 }
 0x2f0   : > { %1833 = vmatpush1.bf16.msra.mxu0 %v6284_v42  ;;  %v7122_v42 = vmov 0   ;;  %s7788_s6 = scalar_lea.hbm %s7957_s25, %s5799_s3 }
 0x2f1   : > { %1834 = vmatprep.subr.bf16.mxu0 %v6285_v45 }
 0x2f4   : > { %1835 = vmatpush1.bf16.msra.mxu0 %v6287_v47 }
 0x2f5   : > { %1836 = vmatprep.subr.bf16.mxu0 %v6288_v48 }
 0x2f8   : > { %1837 = vmatpush1.bf16.msra.mxu0 %v6290_v49 }
 0x2f9   : > { %1838 = vmatprep.subr.bf16.mxu0 %v6291_v50 }
 0x2fc   : > { %1839 = vmatpush1.bf16.msra.mxu0 %v6293_v51 }
 0x2fd   : > { %1840 = vmatprep.subr.bf16.mxu0 %v6294_v52 }
 0x300   : > { %1841 = vmatpush1.bf16.msra.mxu0 %v6296_v53 }
 0x301   : > { %1842 = vmatprep.subr.bf16.mxu0 %v6297_v54 }
 0x304   : > { %1843 = vmatpush1.bf16.msra.mxu0 %v6299_v55 }
 0x305   : > { %1844 = vmatprep.subr.bf16.mxu0 %v6300_v56 }
 0x308   : > { %1845 = vmatpush1.bf16.msra.mxu0 %v6302_v57 }
 0x309   : > { %1846 = vmatprep.subr.bf16.mxu0 %v6303_v58 }
 0x30c   : > { %1847 = vmatpush1.bf16.msra.mxu0 %v6305_v59  ;;  %v1864_v59 = vld [vmem:[#allocation3 + $0x8] sm:$0xff] }
 0x30d   : > { %1848 = vmatprep.subr.bf16.mxu0 %v6306_v60  ;;  %v6340_v60 = vld [vmem:[#allocation14 + $0x84] ss:$8 sps:$4 sm:$0xff]  }
 0x310   : > { %1849 = vmatpush1.bf16.msra.mxu0 %v6308_v61 }
 0x311   : > { %1850 = vmatprep.subr.bf16.mxu0 %v6309_v62 }
 0x314   : > { %1851 = vmatpush1.bf16.msra.mxu0 %v6311_v63 }
 0x315   : > { %2295 = vmatprep.subr.bf16.mxu0 %v6316_v19  ;;  %v6359_v19 = vld [vmem:[#allocation14 + $0xf0] ss:$8 sps:$4 sm:$0xff]  }
 0x317   : > { %1853 = vmatmul.mubr.bf16.vlgmr.msra.gmra.mrb[0].mxu0 %v5406_v0 }
 0x318   : > { %2296 = vmatpush1.bf16.msra.mxu0 %v6314_v18  ;;  %2327 = vmatprep.mubr.bf16.mxu0 %v7122_v42  ;;  %v6361_v18 = vld [vmem:[#allocation14 + $0xf4] ss:$8 sps:$4 sm:$0xff]  }
 0x319   : > { %2297 = vmatprep.subr.bf16.mxu0 %v6319_v20 }
 0x31c   : > { %2298 = vmatpush1.bf16.msra.mxu0 %v6317_v21 }
 0x31d   : > { %2299 = vmatprep.subr.bf16.mxu0 %v6322_v22 }
 0x320   : > { %2300 = vmatpush1.bf16.msra.mxu0 %v6320_v23 }
 0x321   : > { %2301 = vmatprep.subr.bf16.mxu0 %v6325_v24 }
 0x324   : > { %2302 = vmatpush1.bf16.msra.mxu0 %v6323_v25  ;;  %v6362_v25 = vld [vmem:[#allocation15] ss:$8 sps:$4 sm:$0xff]  }
 0x325   : > { %2303 = vmatprep.subr.bf16.mxu0 %v6328_v26  ;;  %v6364_v26 = vld [vmem:[#allocation15 + $0x4] ss:$8 sps:$4 sm:$0xff]  }
 0x328   : > { %2304 = vmatpush1.bf16.msra.mxu0 %v6326_v27  ;;  %v6367_v27 = vld [vmem:[#allocation15 + $0x14] ss:$8 sps:$4 sm:$0xff]  }
 0x329   : > { %2305 = vmatprep.subr.bf16.mxu0 %v6331_v28  ;;  %v6365_v28 = vld [vmem:[#allocation15 + $0x10] ss:$8 sps:$4 sm:$0xff]  }
 0x32c   : > { %2306 = vmatpush1.bf16.msra.mxu0 %v6329_v29  ;;  %v6370_v29 = vld [vmem:[#allocation15 + $0x24] ss:$8 sps:$4 sm:$0xff]  }
 0x32d   : > { %2307 = vmatprep.subr.bf16.mxu0 %v6334_v31  ;;  %v6368_v31 = vld [vmem:[#allocation15 + $0x20] ss:$8 sps:$4 sm:$0xff]  }
 0x330   : > { %2308 = vmatpush1.bf16.msra.mxu0 %v6332_v32  ;;  %v6373_v32 = vld [vmem:[#allocation15 + $0x34] ss:$8 sps:$4 sm:$0xff]  }
 0x331   : > { %2309 = vmatprep.subr.bf16.mxu0 %v6337_v33  ;;  %v6371_v33 = vld [vmem:[#allocation15 + $0x30] ss:$8 sps:$4 sm:$0xff]  }
 0x334   : > { %2310 = vmatpush1.bf16.msra.mxu0 %v6335_v34  ;;  %v6376_v34 = vld [vmem:[#allocation15 + $0x44] ss:$8 sps:$4 sm:$0xff]  }
 0x335   : > { %5845 = vmatprep.subr.bf16.mxu0 %v7120_v30 }
 0x3ea   : > { %v1854_v1 = vpop.f32.mrb[0].mxu0 }
 0x3eb   : > { %v1865_v2 = vmul.f32 0.088388346, %v1854_v1  ;;  %v7657_v3 = vpop.f32.mrb[1].mxu0 }
 0x3ec   : > { %v1858_v4 = vpop.f32.mrb[2].mxu0  ;;  %v1866_v40 = vmul.f32 0.088388346, %v7657_v3 }
 0x3ed   : > { %v1867_v5 = vpack.c.bf16 %v1865_v2, %v1865_v2  ;;  %v1859_v6 = vpop.f32.mrb[3].mxu0  ;;  %v6338_v4 = vld [vmem:[#allocation14 + $0x80] ss:$8 sps:$4 sm:$0xff]  }
 0x3ee   : > { %v1868_v41 = vpack.c.bf16 %v1866_v40, %v1866_v40  ;;  %v6343_v6 = vld [vmem:[#allocation14 + $0x94] ss:$8 sps:$4 sm:$0xff]  }
 0x3ef   : > { %5824 = vmatmul.mubr.bf16.vlgmr.msra.gmra.mrb[0].mxu1 %v1867_v5  ;;  %v6385_v40 = vld [vmem:[#allocation15 + $0x74] ss:$8 sps:$4 sm:$0xff]  }
 0x3f0   : > { %5829 = vmatprep.mubr.msk.bf16.mxu1 %vm7121_vm0, %v7120_v30  ;;  %5828 = vmatpush3.bf16.msra.mxu1 %v1863_v17  ;;  %v6356_v17 = vld [vmem:[#allocation14 + $0xe0] ss:$8 sps:$4 sm:$0xff]  }
 0x3f1   : > { %5833 = vmatprep.subr.bf16.mxu1 %v7120_v30 }
 0x4c2   : > { %v1903_v7 = vpop.f32.mrb[0].mxu1 }
 0x4c3   : > { %v5825_v8 = vpop.f32.mrb[1].mxu1  ;;  %v1910_v9 = vsel %vm1909_vm1, %v1903_v7, -inf }
 0x4c4   : > { %1911 = vmax.xlane.f32.xlu0 %v1910_v9  ;;  %v1906_v10 = vpop.f32.mrb[2].mxu1  ;;  %v6346_v8 = vld [vmem:[#allocation14 + $0xa4] ss:$8 sps:$4 sm:$0xff]   ;;  %v6344_v9 = vld [vmem:[#allocation14 + $0xa0] ss:$8 sps:$4 sm:$0xff]  }
 0x4c5   : > { %v5826_v11 = vpop.f32.mrb[3].mxu1  ;;  %v6349_v10 = vld [vmem:[#allocation14 + $0xb4] ss:$8 sps:$4 sm:$0xff]  }
 0x4c6   : > { %v6347_v11 = vld [vmem:[#allocation14 + $0xb0] ss:$8 sps:$4 sm:$0xff]  }
 0x551   : > { %v1912_v12 = vpop.xlane.xlu0 %1911 }
 0x552   : > { %v1913_v13 = vsub.f32 %v1903_v7, %v1912_v12  ;;  %v6341_v7 = vld [vmem:[#allocation14 + $0x90] ss:$8 sps:$4 sm:$0xff]   ;;  %v6352_v12 = vld [vmem:[#allocation14 + $0xc4] ss:$8 sps:$4 sm:$0xff]  }
 0x554   : > { %v1914_v14 = vmul.f32 1.442695, %v1913_v13  ;;  %v6350_v13 = vld [vmem:[#allocation14 + $0xc0] ss:$8 sps:$4 sm:$0xff]  }
 0x556   : > { %6650 = vpow2.f32 %v1914_v14  ;;  %v6355_v14 = vld [vmem:[#allocation14 + $0xd4] ss:$8 sps:$4 sm:$0xff]  }
 0x560   : > { %v6651_v15 = vpop.eup %6650 }
 0x561   : > { %v1916_v16 = vsel %vm1909_vm1, %v6651_v15, 0.0 }
 0x562   : > { %1917 = vadd.xlane.f32.xlu0 %v1916_v16  ;;  %v6358_v16 = vld [vmem:[#allocation14 + $0xe4] ss:$8 sps:$4 sm:$0xff]  }
 0x5ef   : > { %v1918_v35 = vpop.xlane.xlu0 %1917 }
 0x5f0   : > { %6652 = vrcp.f32 %v1918_v35  ;;  %v6374_v35 = vld [vmem:[#allocation15 + $0x40] ss:$8 sps:$4 sm:$0xff]  }
 0x5fa   : > { %v6653_v36 = vpop.eup %6652 }
 0x5fb   : > { %v1920_v37 = vmul.f32 %v6653_v36, %v6651_v15  ;;  %v6353_v15 = vld [vmem:[#allocation14 + $0xd0] ss:$8 sps:$4 sm:$0xff]   ;;  %v6379_v36 = vld [vmem:[#allocation15 + $0x54] ss:$8 sps:$4 sm:$0xff]  }
 0x5fd   : > { %v1921_v38 = vpack.c.bf16 %v1920_v37, %v1920_v37  ;;  %v6377_v37 = vld [vmem:[#allocation15 + $0x50] ss:$8 sps:$4 sm:$0xff]  }
 0x5ff   : > { %5830 = vmatmul.mubr.msk.bf16.vlgmr.msra.gmra.mrb[4].mxu1 %vm1909_vm1, %v1921_v38  ;;  %v6382_v38 = vld [vmem:[#allocation15 + $0x64] ss:$8 sps:$4 sm:$0xff]  }
 0x600   : > { %5834 = vmatpush3.bf16.xpose.msra.mxu1 %v1862_v39  ;;  %5835 = vmatprep.mubr.msk.bf16.mxu1 %vm7121_vm0, %v7120_v30  ;;  %v6380_v39 = vld [vmem:[#allocation15 + $0x60] ss:$8 sps:$4 sm:$0xff]  }
 0x601   : > { %5839 = vmatprep.subr.bf16.mxu1 %v7120_v30 }
 0x607   : > { %5836 = vmatmul.mubr.bf16.vlgmr.msra.gmra.mrb[8].mxu1 %v1868_v41  ;;  %v6383_v41 = vld [vmem:[#allocation15 + $0x70] ss:$8 sps:$4 sm:$0xff]  }
 0x608   : > { %5841 = vmatprep.mubr.msk.bf16.mxu1 %vm7121_vm0, %v7120_v30  ;;  %5840 = vmatpush3.bf16.msra.mxu1 %v1864_v59 }
 0x609   : > { %2174 = vmatprep.subr.bf16.mxu1 %v6340_v60 }
 0x6d2   : > { %v1959_v44 = vpop.f32.mrb[4].mxu1 }
 0x6d3   : > { %v1965_v45 = vpack.c.bf16 %v1959_v44, %v1959_v44  ;;  %v5831_v46 = vpop.f32.mrb[5].mxu1  ;;  %v6388_v44 = vld [vmem:[#allocation15 + $0x84] ss:$8 sps:$4 sm:$0xff]  }
 0x6d4   : > { %v1962_v47 = vpop.f32.mrb[6].mxu1  ;;  %v6391_v46 = vld [vmem:[#allocation15 + $0x94] ss:$8 sps:$4 sm:$0xff]  }
 0x6d5   : > { %v5832_v48 = vpop.f32.mrb[7].mxu1  ;;  %2328 = vmatmul.mubr.bf16.vlgmr.msra.gmra.mrb[4].mxu0 %v1965_v45  ;;  %v6386_v45 = vld [vmem:[#allocation15 + $0x80] ss:$8 sps:$4 sm:$0xff]   ;;  %v6389_v47 = vld [vmem:[#allocation15 + $0x90] ss:$8 sps:$4 sm:$0xff]  }
 0x6d6   : > { %5847 = vmatprep.mubr.msk.bf16.mxu0 %vm7121_vm0, %v7120_v30  ;;  %v2336_v48 = vunpack.c.l.bf16 %v7648_v43 }
 0x6da   : > { %v2016_v49 = vpop.f32.mrb[8].mxu1 }
 0x6db   : > { %v5837_v50 = vpop.f32.mrb[9].mxu1  ;;  %v2022_v51 = vsel %vm1909_vm1, %v2016_v49, -inf }
 0x6dc   : > { %2023 = vmax.xlane.f32.xlu1 %v2022_v51  ;;  %v2019_v52 = vpop.f32.mrb[10].mxu1  ;;  %v2337_v50 = vunpack.c.h.bf16 %v7648_v43  ;;  %v6397_v43 = vld [vmem:[#allocation15 + $0xb4] ss:$8 sps:$4 sm:$0xff]  }
 0x6dd   : > { %v5838_v53 = vpop.f32.mrb[11].mxu1 }
 0x769   : > { %v2024_v54 = vpop.xlane.xlu1 %2023 }
 0x76a   : > { %v2025_v55 = vsub.f32 %v2016_v49, %v2024_v54 }
 0x76c   : > { %v2026_v56 = vmul.f32 1.442695, %v2025_v55 }
 0x76e   : > { %6654 = vpow2.f32 %v2026_v56 }
 0x778   : > { %v6655_v57 = vpop.eup %6654 }
 0x779   : > { %v2028_v58 = vsel %vm1909_vm1, %v6655_v57, 0.0 }
 0x77a   : > { %2029 = vadd.xlane.f32.xlu1 %v2028_v58 }
 0x7a8   : > { %v7677_v61 = vpop.f32.mrb[4].mxu0 }
 0x7a9   : > { %v7679_v62 = vpop.f32.mrb[5].mxu0 }
 0x7aa   : > { %v2333_v63 = vpop.f32.mrb[6].mxu0 }
 0x7ab   : > { %v2334_v0 = vpop.f32.mrb[7].mxu0 }
 0x7ac   : > { %v6394_v0 = vld [vmem:[#allocation15 + $0xa4] ss:$8 sps:$4 sm:$0xff]  }
 0x807   : > { %v2030_v1 = vpop.xlane.xlu1 %2029 }
 0x808   : > { %6656 = vrcp.f32 %v2030_v1  ;;  %v6392_v1 = vld [vmem:[#allocation15 + $0xa0] ss:$8 sps:$4 sm:$0xff]  }
 0x812   : > { %v6657_v2 = vpop.eup %6656 }
 0x813   : > { %v2032_v3 = vmul.f32 %v6657_v2, %v6655_v57  ;;  %v6395_v2 = vld [vmem:[#allocation15 + $0xb0] ss:$8 sps:$4 sm:$0xff]  }
 0x815   : > { %v2033_v5 = vpack.c.bf16 %v2032_v3, %v2032_v3  ;;  %v6403_v3 = vld [vmem:[#allocation15 + $0xd4] ss:$8 sps:$4 sm:$0xff]  }
 0x817   : > { %5842 = vmatmul.mubr.msk.bf16.vlgmr.msra.gmra.mrb[12].mxu1 %vm1909_vm1, %v2033_v5  ;;  %v6406_v5 = vld [vmem:[#allocation15 + $0xe4] ss:$8 sps:$4 sm:$0xff]  }
 0x818   : > { %2175 = vmatpush1.bf16.msra.mxu1 %v6338_v4  ;;  %2206 = vmatprep.mubr.bf16.mxu1 %v7122_v42  ;;  %v6401_v4 = vld [vmem:[#allocation15 + $0xd0] ss:$8 sps:$4 sm:$0xff]  }
 0x819   : > { %2176 = vmatprep.subr.bf16.mxu1 %v6343_v6  ;;  %v6404_v6 = vld [vmem:[#allocation15 + $0xe0] ss:$8 sps:$4 sm:$0xff]  }
 0x81c   : > { %2177 = vmatpush1.bf16.msra.mxu1 %v6341_v7  ;;  %v6409_v7 = vld [vmem:[#allocation15 + $0xf4] ss:$8 sps:$4 sm:$0xff]  }
 0x81d   : > { %2178 = vmatprep.subr.bf16.mxu1 %v6346_v8  ;;  %v6407_v8 = vld [vmem:[#allocation15 + $0xf0] ss:$8 sps:$4 sm:$0xff]  }
 0x820   : > { %2179 = vmatpush1.bf16.msra.mxu1 %v6344_v9  ;;  %v2608_v9 = vld [vmem:[#allocation4] sm:$0xff] }
 0x821   : > { %2180 = vmatprep.subr.bf16.mxu1 %v6349_v10  ;;  %5846 = vmatpush3.bf16.xpose.msra.mxu0 %v2608_v9 }
 0x822   : > { %5851 = vmatprep.subr.bf16.mxu0 %v7120_v30 }
 0x824   : > { %2181 = vmatpush1.bf16.msra.mxu1 %v6347_v11 }
 0x825   : > { %2182 = vmatprep.subr.bf16.mxu1 %v6352_v12 }
 0x828   : > { %2183 = vmatpush1.bf16.msra.mxu1 %v6350_v13 }
 0x829   : > { %2184 = vmatprep.subr.bf16.mxu1 %v6355_v14 }
 0x82c   : > { %2185 = vmatpush1.bf16.msra.mxu1 %v6353_v15 }
 0x82d   : > { %2186 = vmatprep.subr.bf16.mxu1 %v6358_v16  ;;  %v2361_v16 = vlaneseq }
 0x830   : > { %2187 = vmatpush1.bf16.msra.mxu1 %v6356_v17 }
 0x831   : > { %2188 = vmatprep.subr.bf16.mxu1 %v6361_v18  ;;  %v2362_v18 = vshrl.u32 %v2361_v16, 7 }
 0x834   : > { %2189 = vmatpush1.bf16.msra.mxu1 %v6359_v19  ;;  %v7688_v19 = vsub.s32 0, %v2362_v18 }
 0x835   : > { %2567 = vmatprep.subr.bf16.mxu1 %v6364_v26 }
 0x8ea   : > { %v2071_v20 = vpop.f32.mrb[12].mxu1 }
 0x8eb   : > { %v2077_v21 = vpack.c.bf16 %v2071_v20, %v2071_v20  ;;  %v5843_v22 = vpop.f32.mrb[13].mxu1  ;;  %v7690_v20 = vsub.s32 1, %v2362_v18 }
 0x8ec   : > { %v2074_v23 = vpop.f32.mrb[14].mxu1 }
 0x8ed   : > { %v5844_v24 = vpop.f32.mrb[15].mxu1  ;;  %2207 = vmatmul.mubr.bf16.vlgmr.msra.gmra.mrb[16].mxu1 %v2077_v21  ;;  %v2340_v21 = vld [vmem:[%s7952_s8] sm:$0x3]  ;;  %s5039_s8 = scalar_lea.sflag [#allocation8], %s626_s5 }
 0x8ee   : > { %2568 = vmatpush1.bf16.msra.mxu1 %v6362_v25  ;;  %v2364_v24 = vrot.slane %v2340_v21, %v7688_v19  ;;  %v2368_v25 = vrot.slane %v2340_v21, %v7690_v20 }
 0x8ef   : > { %2569 = vmatprep.subr.bf16.mxu1 %v6367_v27 }
 0x8f2   : > { %2570 = vmatpush1.bf16.msra.mxu1 %v6365_v28 }
 0x8f3   : > { %2571 = vmatprep.subr.bf16.mxu1 %v6370_v29 }
 0x8f6   : > { %2572 = vmatpush1.bf16.msra.mxu1 %v6368_v31 }
 0x8f7   : > { %2573 = vmatprep.subr.bf16.mxu1 %v6373_v32 }
 0x8fa   : > { %2574 = vmatpush1.bf16.msra.mxu1 %v6371_v33 }
 0x8fb   : > { %2575 = vmatprep.subr.bf16.mxu1 %v6376_v34 }
 0x8fe   : > { %2576 = vmatpush1.bf16.msra.mxu1 %v6374_v35 }
 0x8ff   : > { %2577 = vmatprep.subr.bf16.mxu1 %v6379_v36 }
 0x902   : > { %2578 = vmatpush1.bf16.msra.mxu1 %v6377_v37 }
 0x903   : > { %2579 = vmatprep.subr.bf16.mxu1 %v6382_v38 }
 0x906   : > { %2580 = vmatpush1.bf16.msra.mxu1 %v6380_v39 }
 0x907   : > { %2581 = vmatprep.subr.bf16.mxu1 %v6385_v40 }
 0x90a   : > { %2582 = vmatpush1.bf16.msra.mxu1 %v6383_v41 }
 0x90b   : > { %2583 = vmatprep.subr.bf16.mxu1 %v6388_v44 }
 0x90e   : > { %2584 = vmatpush1.bf16.msra.mxu1 %v6386_v45 }
 0x90f   : > { %2585 = vmatprep.subr.bf16.mxu1 %v6391_v46 }
 0x912   : > { %2586 = vmatpush1.bf16.msra.mxu1 %v6389_v47 }
 0x913   : > { %2587 = vmatprep.subr.bf16.mxu1 %v6394_v0  ;;  %v6422_v0 = vld [vmem:[#allocation18 + $0x40] ss:$8 sps:$4 sm:$0xff]  }
 0x916   : > { %2588 = vmatpush1.bf16.msra.mxu1 %v6392_v1  ;;  %v6427_v1 = vld [vmem:[#allocation18 + $0x54] ss:$8 sps:$4 sm:$0xff]  }
 0x917   : > { %2589 = vmatprep.subr.bf16.mxu1 %v6397_v43  ;;  %v6425_v43 = vld [vmem:[#allocation18 + $0x50] ss:$8 sps:$4 sm:$0xff]  }
 0x91a   : > { %2590 = vmatpush1.bf16.msra.mxu1 %v6395_v2  ;;  %v6430_v2 = vld [vmem:[#allocation18 + $0x64] ss:$8 sps:$4 sm:$0xff]  }
 0x9c0   : > { %v2208_v49 = vpop.f32.mrb[16].mxu1 }
 0x9c1   : > { %v2330_v51 = vadd.f32 %v7677_v61, %v2208_v49  ;;  %v2210_v52 = vpop.f32.mrb[17].mxu1  ;;  %v6398_v61 = vld [vmem:[#allocation15 + $0xc0] ss:$8 sps:$4 sm:$0xff]  }
 0x9c2   : > { %v2332_v53 = vadd.f32 %v7679_v62, %v2210_v52  ;;  %v2212_v54 = vpop.f32.mrb[18].mxu1  ;;  %v6400_v62 = vld [vmem:[#allocation15 + $0xc4] ss:$8 sps:$4 sm:$0xff]   ;;  %v2610_v52 = vld [vmem:[#allocation5] sm:$0xff] }
 0x9c3   : > { %v2338_v55 = vadd.f32 %v2336_v48, %v2330_v51  ;;  %v2213_v56 = vpop.f32.mrb[19].mxu1  ;;  %2591 = vmatprep.subr.bf16.mxu1 %v6400_v62  ;;  %v6412_v54 = vld [vmem:[#allocation18 + $0x4] ss:$8 sps:$4 sm:$0xff]   ;;  %v6433_v62 = vld [vmem:[#allocation18 + $0x74] ss:$8 sps:$4 sm:$0xff]  }
 0x9c4   : > { %v2339_v57 = vadd.f32 %v2337_v50, %v2332_v53  ;;  %2592 = vmatpush1.bf16.msra.mxu1 %v6398_v61  ;;  %v6410_v53 = vld [vmem:[#allocation18] ss:$8 sps:$4 sm:$0xff]   ;;  %v6413_v56 = vld [vmem:[#allocation18 + $0x10] ss:$8 sps:$4 sm:$0xff]  }
 0x9c5   : > { %v2346_v58 = vmul.f32 %v2338_v55, %v2338_v55  ;;  %2593 = vmatprep.subr.bf16.mxu1 %v6403_v3  ;;  %v6428_v61 = vld [vmem:[#allocation18 + $0x60] ss:$8 sps:$4 sm:$0xff]   ;;  %v6431_v3 = vld [vmem:[#allocation18 + $0x70] ss:$8 sps:$4 sm:$0xff]  }
 0x9c6   : > { %v2341_v59 = vadd.f32 %v2339_v57, %v2338_v55  ;;  %v2347_v60 = vmul.f32 %v2339_v57, %v2339_v57 }
 0x9c8   : > { %2342 = vadd.xlane.f32.xlu0 %v2341_v59  ;;  %v2348_v63 = vadd.f32 %v2347_v60, %v2346_v58  ;;  %2594 = vmatpush1.bf16.msra.mxu1 %v6401_v4  ;;  %v6416_v58 = vld [vmem:[#allocation18 + $0x20] ss:$8 sps:$4 sm:$0xff]   ;;  %v6421_v59 = vld [vmem:[#allocation18 + $0x34] ss:$8 sps:$4 sm:$0xff]   ;;  %v6419_v60 = vld [vmem:[#allocation18 + $0x30] ss:$8 sps:$4 sm:$0xff]  }
 0x9c9   : > { %2595 = vmatprep.subr.bf16.mxu1 %v6406_v5 }
 0x9ca   : > { %2349 = vadd.xlane.f32.xlu1 %v2348_v63  ;;  %v6424_v63 = vld [vmem:[#allocation18 + $0x44] ss:$8 sps:$4 sm:$0xff]  }
 0x9cc   : > { %2596 = vmatpush1.bf16.msra.mxu1 %v6404_v6 }
 0x9cd   : > { %2597 = vmatprep.subr.bf16.mxu1 %v6409_v7 }
 0x9d0   : > { %2598 = vmatpush1.bf16.msra.mxu1 %v6407_v8  ;;  %v2609_v8 = vld [vmem:[#allocation4 + $0x8] sm:$0xff] }
 0x9d1   : > { %3041 = vmatprep.subr.bf16.mxu1 %v6412_v54  ;;  %v6457_v54 = vld [vmem:[#allocation18 + $0xf4] ss:$8 sps:$4 sm:$0xff]  }
 0xa55   : > { %v2343_v10 = vpop.xlane.xlu0 %2342 }
 0xa56   : > { %v2345_v11 = vmul.f32 0.00390625, %v2343_v10 }
 0xa57   : > { %v2350_v12 = vpop.xlane.xlu1 %2349 }
 0xa58   : > { %v2351_v13 = vmul.f32 0.00390625, %v2350_v12  ;;  %v2352_v14 = vmul.f32 %v2345_v11, %v2345_v11  ;;  %v2354_v22 = vsub.f32 %v2338_v55, %v2345_v11  ;;  %v2355_v23 = vsub.f32 %v2339_v57, %v2345_v11  ;;  %v6415_v55 = vld [vmem:[#allocation18 + $0x14] ss:$8 sps:$4 sm:$0xff]   ;;  %v6418_v57 = vld [vmem:[#allocation18 + $0x24] ss:$8 sps:$4 sm:$0xff]  }
 0xa5a   : > { %v2353_v15 = vsub.f32 %v2351_v13, %v2352_v14 }
 0xa5c   : > { %v2356_v17 = vadd.f32 1e-05, %v2353_v15 }
 0xa5e   : > { %6658 = vrsqrt.f32 %v2356_v17 }
 0xa68   : > { %v6659_v26 = vpop.eup %6658 }
 0xa69   : > { %v2359_v27 = vmul.f32 %v6659_v26, %v2355_v23  ;;  %v2358_v28 = vmul.f32 %v6659_v26, %v2354_v22 }
 0xa6b   : > { %v7697_v29 = vmul.f32 %v2368_v25, %v2359_v27  ;;  %v7699_v31 = vmul.f32 %v2364_v24, %v2358_v28  ;;  %v2611_v27 = vld [vmem:[#allocation5 + $0x8] sm:$0xff]  ;;  %v6436_v28 = vld [vmem:[#allocation18 + $0x84] ss:$8 sps:$4 sm:$0xff]  }
 0xa6d   : > { %v2374_v32 = vpack.c.bf16 %v7697_v29, %v7697_v29  ;;  %v2373_v33 = vpack.c.bf16 %v7699_v31, %v7699_v31 }
 0xa6f   : > { %2599 = vmatprep.mubr.bf16.mxu1 %v2374_v32 }
 0xa70   : > { %2600 = vmatmul.mubr.bf16.vlgmr.msra.gmra.mrb[20].mxu1 %v2373_v33 }
 0xa71   : > { %3073 = vmatprep.mubr.bf16.mxu1 %v7122_v42  ;;  %3042 = vmatpush1.bf16.msra.mxu1 %v6410_v53  ;;  %v6454_v53 = vld [vmem:[#allocation18 + $0xe4] ss:$8 sps:$4 sm:$0xff]  }
 0xa72   : > { %3043 = vmatprep.subr.bf16.mxu1 %v6415_v55  ;;  %v6455_v55 = vld [vmem:[#allocation18 + $0xf0] ss:$8 sps:$4 sm:$0xff]  }
 0xa75   : > { %3044 = vmatpush1.bf16.msra.mxu1 %v6413_v56 }
 0xa76   : > { %3045 = vmatprep.subr.bf16.mxu1 %v6418_v57 }
 0xa79   : > { %3046 = vmatpush1.bf16.msra.mxu1 %v6416_v58 }
 0xa7a   : > { %3047 = vmatprep.subr.bf16.mxu1 %v6421_v59 }
 0xa7d   : > { %3048 = vmatpush1.bf16.msra.mxu1 %v6419_v60 }
 0xa7e   : > { %3049 = vmatprep.subr.bf16.mxu1 %v6424_v63  ;;  %v3118_v63 = vld [vmem:[#allocation20] sm:$0xff] }
 0xa81   : > { %3050 = vmatpush1.bf16.msra.mxu1 %v6422_v0  ;;  %v3119_v0 = vld [vmem:[#allocation20 + $0x20] sm:$0xff] }
 0xa82   : > { %3051 = vmatprep.subr.bf16.mxu1 %v6427_v1  ;;  %v3387_v1 = vld [vmem:[#allocation20 + $0x8] sm:$0xff] }
 0xa85   : > { %3052 = vmatpush1.bf16.msra.mxu1 %v6425_v43  ;;  %v5540_v43 = vcombine.low %v3118_v63, %v3119_v0 }
 0xa86   : > { %3053 = vmatprep.subr.bf16.mxu1 %v6430_v2  ;;  %v5541_v2 = vcombine.high %v3118_v63, %v3119_v0 }
 0xa89   : > { %3054 = vmatpush1.bf16.msra.mxu1 %v6428_v61  ;;  %v3388_v61 = vld [vmem:[#allocation20 + $0x28] sm:$0xff] }
 0xa8a   : > { %3055 = vmatprep.subr.bf16.mxu1 %v6433_v62  ;;  %v3120_v62 = vld [vmem:[#allocation20 + $0x40] sm:$0xff] }
 0xa8d   : > { %3056 = vmatpush1.bf16.msra.mxu1 %v6431_v3  ;;  %v3121_v3 = vld [vmem:[#allocation20 + $0x60] sm:$0xff] }
 0xb43   : > { %v2601_v34 = vpop.f32.mrb[20].mxu1 }
 0xb44   : > { %v2612_v35 = vmul.f32 0.088388346, %v2601_v34  ;;  %v7706_v36 = vpop.f32.mrb[21].mxu1 }
 0xb45   : > { %v2605_v37 = vpop.f32.mrb[22].mxu1  ;;  %v2613_v9 = vmul.f32 0.088388346, %v7706_v36 }
 0xb46   : > { %v2614_v38 = vpack.c.bf16 %v2612_v35, %v2612_v35  ;;  %v2606_v39 = vpop.f32.mrb[23].mxu1 }
 0xb47   : > { %v2615_v10 = vpack.c.bf16 %v2613_v9, %v2613_v9  ;;  %v6434_v39 = vld [vmem:[#allocation18 + $0x80] ss:$8 sps:$4 sm:$0xff]  }
 0xb48   : > { %5848 = vmatmul.mubr.bf16.vlgmr.msra.gmra.mrb[8].mxu0 %v2614_v38  ;;  %v3122_v9 = vld [vmem:[#allocation20 + $0x80] sm:$0xff] }
 0xb49   : > { %5853 = vmatprep.mubr.msk.bf16.mxu0 %vm7121_vm0, %v7120_v30  ;;  %5852 = vmatpush3.bf16.msra.mxu0 %v2610_v52  ;;  %v6449_v52 = vld [vmem:[#allocation18 + $0xd0] ss:$8 sps:$4 sm:$0xff]  }
 0xb4a   : > { %5857 = vmatprep.subr.bf16.mxu0 %v7120_v30 }
 0xc1b   : > { %v2650_v40 = vpop.f32.mrb[8].mxu0 }
 0xc1c   : > { %v5849_v41 = vpop.f32.mrb[9].mxu0  ;;  %v2656_v44 = vsel %vm1909_vm1, %v2650_v40, -inf }
 0xc1d   : > { %2657 = vmax.xlane.f32.xlu0 %v2656_v44  ;;  %v2653_v45 = vpop.f32.mrb[10].mxu0  ;;  %v6439_v41 = vld [vmem:[#allocation18 + $0x94] ss:$8 sps:$4 sm:$0xff]   ;;  %v6437_v44 = vld [vmem:[#allocation18 + $0x90] ss:$8 sps:$4 sm:$0xff]  }
 0xc1e   : > { %v5850_v46 = vpop.f32.mrb[11].mxu0  ;;  %v6442_v45 = vld [vmem:[#allocation18 + $0xa4] ss:$8 sps:$4 sm:$0xff]  }
 0xc1f   : > { %v6440_v46 = vld [vmem:[#allocation18 + $0xa0] ss:$8 sps:$4 sm:$0xff]  }
 0xcaa   : > { %v2658_v47 = vpop.xlane.xlu0 %2657 }
 0xcab   : > { %v2659_v48 = vsub.f32 %v2650_v40, %v2658_v47  ;;  %v6445_v47 = vld [vmem:[#allocation18 + $0xb4] ss:$8 sps:$4 sm:$0xff]  }
 0xcad   : > { %v2660_v49 = vmul.f32 1.442695, %v2659_v48  ;;  %v6443_v48 = vld [vmem:[#allocation18 + $0xb0] ss:$8 sps:$4 sm:$0xff]  }
 0xcaf   : > { %6660 = vpow2.f32 %v2660_v49  ;;  %v6448_v49 = vld [vmem:[#allocation18 + $0xc4] ss:$8 sps:$4 sm:$0xff]  }
 0xcb9   : > { %v6661_v50 = vpop.eup %6660 }
 0xcba   : > { %v2662_v51 = vsel %vm1909_vm1, %v6661_v50, 0.0 }
 0xcbb   : > { %2663 = vadd.xlane.f32.xlu1 %v2662_v51  ;;  %v6451_v51 = vld [vmem:[#allocation18 + $0xd4] ss:$8 sps:$4 sm:$0xff]  }
 0xd48   : > { %v2664_v4 = vpop.xlane.xlu1 %2663 }
 0xd49   : > { %6662 = vrcp.f32 %v2664_v4  ;;  %v5572_v4 = vcombine.low %v3387_v1, %v3388_v61 }
 0xd53   : > { %v6663_v5 = vpop.eup %6662 }
 0xd54   : > { %v2666_v6 = vmul.f32 %v6663_v5, %v6661_v50  ;;  %v6446_v50 = vld [vmem:[#allocation18 + $0xc0] ss:$8 sps:$4 sm:$0xff]   ;;  %v5573_v5 = vcombine.high %v3387_v1, %v3388_v61 }
 0xd55   : > { %v3135_v61 = vld [vmem:[#allocation20 + $0x220] sm:$0xff] }
 0xd56   : > { %v2667_v7 = vpack.c.bf16 %v2666_v6, %v2666_v6  ;;  %v5543_v6 = vcombine.high %v3120_v62, %v3121_v3  ;;  %3579 = vmatprep.subr.bf16.mxu1 %v5573_v5 }
 0xd58   : > { %5854 = vmatmul.mubr.msk.bf16.vlgmr.msra.gmra.mrb[12].mxu0 %vm1909_vm1, %v2667_v7  ;;  %v3389_v7 = vld [vmem:[#allocation20 + $0x48] sm:$0xff] }
 0xd59   : > { %5858 = vmatpush3.bf16.xpose.msra.mxu0 %v2609_v8  ;;  %5859 = vmatprep.mubr.msk.bf16.mxu0 %vm7121_vm0, %v7120_v30  ;;  %v3390_v8 = vld [vmem:[#allocation20 + $0x68] sm:$0xff] }
 0xd5a   : > { %5863 = vmatprep.subr.bf16.mxu0 %v7120_v30 }
 0xd60   : > { %5860 = vmatmul.mubr.bf16.vlgmr.msra.gmra.mrb[16].mxu0 %v2615_v10  ;;  %v5575_v10 = vcombine.high %v3389_v7, %v3390_v8 }
 0xd61   : > { %5865 = vmatprep.mubr.msk.bf16.mxu0 %vm7121_vm0, %v7120_v30  ;;  %5864 = vmatpush3.bf16.msra.mxu0 %v2611_v27  ;;  %v3126_v27 = vld [vmem:[#allocation20 + $0x100] sm:$0xff] }
 0xd62   : > { %2920 = vmatprep.subr.bf16.mxu0 %v6436_v28  ;;  %v3127_v28 = vld [vmem:[#allocation20 + $0x120] sm:$0xff] }
 0xe2b   : > { %v2705_v11 = vpop.f32.mrb[12].mxu0 }
 0xe2c   : > { %v2711_v12 = vpack.c.bf16 %v2705_v11, %v2705_v11  ;;  %v5855_v13 = vpop.f32.mrb[13].mxu0  ;;  %v3123_v11 = vld [vmem:[#allocation20 + $0xa0] sm:$0xff] }
 0xe2d   : > { %v2708_v14 = vpop.f32.mrb[14].mxu0  ;;  %v3392_v13 = vld [vmem:[#allocation20 + $0xa8] sm:$0xff] }
 0xe2e   : > { %v5856_v15 = vpop.f32.mrb[15].mxu0  ;;  %3074 = vmatmul.mubr.bf16.vlgmr.msra.gmra.mrb[24].mxu1 %v2711_v12  ;;  %v3391_v12 = vld [vmem:[#allocation20 + $0x88] sm:$0xff]  ;;  %v5542_v14 = vcombine.low %v3120_v62, %v3121_v3 }
 0xe2f   : > { %3580 = vmatpush1.bf16.msra.mxu1 %v5572_v4  ;;  %v5574_v15 = vcombine.low %v3389_v7, %v3390_v8  ;;  %v3403_v62 = vld [vmem:[#allocation20 + $0x208] sm:$0xff]  ;;  %v3136_v8 = vld [vmem:[#allocation20 + $0x240] sm:$0xff] }
 0xe30   : > { %3581 = vmatprep.subr.bf16.mxu1 %v5575_v10  ;;  %v3404_v3 = vld [vmem:[#allocation20 + $0x228] sm:$0xff] }
 0xe31   : > { %v5589_v7 = vcombine.high %v3403_v62, %v3404_v3  ;;  %v3405_v10 = vld [vmem:[#allocation20 + $0x248] sm:$0xff] }
 0xe33   : > { %v2762_v16 = vpop.f32.mrb[16].mxu0  ;;  %3582 = vmatpush1.bf16.msra.mxu1 %v5574_v15 }
 0xe34   : > { %v5861_v17 = vpop.f32.mrb[17].mxu0  ;;  %v2768_v18 = vsel %vm1909_vm1, %v2762_v16, -inf }
 0xe35   : > { %2769 = vmax.xlane.f32.xlu0 %v2768_v18  ;;  %v2765_v21 = vpop.f32.mrb[18].mxu0  ;;  %v5577_v17 = vcombine.high %v3391_v12, %v3392_v13  ;;  %v3124_v18 = vld [vmem:[#allocation20 + $0xc0] sm:$0xff] }
 0xe36   : > { %v5862_v22 = vpop.f32.mrb[19].mxu0  ;;  %v3125_v21 = vld [vmem:[#allocation20 + $0xe0] sm:$0xff] }
 0xe37   : > { %v3393_v22 = vld [vmem:[#allocation20 + $0xc8] sm:$0xff]  ;;  %3583 = vmatprep.subr.bf16.mxu1 %v5577_v17 }
 0xec2   : > { %v2770_v23 = vpop.xlane.xlu0 %2769 }
 0xec3   : > { %v2771_v24 = vsub.f32 %v2762_v16, %v2770_v23  ;;  %v5545_v16 = vcombine.high %v3122_v9, %v3123_v11  ;;  %v3394_v23 = vld [vmem:[#allocation20 + $0xe8] sm:$0xff] }
 0xec5   : > { %v2772_v25 = vmul.f32 1.442695, %v2771_v24  ;;  %v5544_v24 = vcombine.low %v3122_v9, %v3123_v11  ;;  %v3137_v9 = vld [vmem:[#allocation20 + $0x260] sm:$0xff]  ;;  %v3406_v11 = vld [vmem:[#allocation20 + $0x268] sm:$0xff] }
 0xec6   : > { %v5591_v15 = vcombine.high %v3405_v10, %v3406_v11  ;;  %v5590_v17 = vcombine.low %v3405_v10, %v3406_v11 }
 0xec7   : > { %6664 = vpow2.f32 %v2772_v25  ;;  %v5576_v25 = vcombine.low %v3391_v12, %v3392_v13  ;;  %v5588_v13 = vcombine.low %v3403_v62, %v3404_v3 }
 0xec9   : > { %3584 = vmatpush1.bf16.msra.mxu1 %v5576_v25 }
 0xed1   : > { %v6665_v26 = vpop.eup %6664 }
 0xed2   : > { %v2774_v30 = vsel %vm1909_vm1, %v6665_v26, 0.0 }
 0xed3   : > { %2775 = vadd.xlane.f32.xlu1 %v2774_v30  ;;  %v5579_v30 = vcombine.high %v3393_v22, %v3394_v23 }
 0xed5   : > { %3585 = vmatprep.subr.bf16.mxu1 %v5579_v30 }
 0xf01   : > { %v7722_v32 = vpop.f32.mrb[24].mxu1 }
 0xf02   : > { %v7724_v33 = vpop.f32.mrb[25].mxu1 }
 0xf03   : > { %v3079_v34 = vpop.f32.mrb[26].mxu1 }
 0xf04   : > { %v3080_v35 = vpop.f32.mrb[27].mxu1  ;;  %v3395_v34 = vld [vmem:[#allocation20 + $0x108] sm:$0xff] }
 0xf05   : > { %v3396_v35 = vld [vmem:[#allocation20 + $0x128] sm:$0xff] }
 0xf60   : > { %v2776_v36 = vpop.xlane.xlu1 %2775 }
 0xf61   : > { %6666 = vrcp.f32 %v2776_v36  ;;  %v5546_v36 = vcombine.low %v3124_v18, %v3125_v21 }
 0xf6b   : > { %v6667_v37 = vpop.eup %6666 }
 0xf6c   : > { %v2778_v38 = vmul.f32 %v6667_v37, %v6665_v26  ;;  %v5547_v26 = vcombine.high %v3124_v18, %v3125_v21  ;;  %v5578_v37 = vcombine.low %v3393_v22, %v3394_v23 }
 0xf6e   : > { %v2779_v40 = vpack.c.bf16 %v2778_v38, %v2778_v38  ;;  %v5549_v38 = vcombine.high %v3126_v27, %v3127_v28  ;;  %3586 = vmatpush1.bf16.msra.mxu1 %v5578_v37  ;;  %v3408_v37 = vld [vmem:[#allocation20 + $0x2a8] sm:$0xff] }
 0xf70   : > { %5866 = vmatmul.mubr.msk.bf16.vlgmr.msra.gmra.mrb[20].mxu0 %vm1909_vm1, %v2779_v40  ;;  %v3128_v40 = vld [vmem:[#allocation20 + $0x140] sm:$0xff] }
 0xf71   : > { %2921 = vmatpush1.bf16.msra.mxu0 %v6434_v39  ;;  %2952 = vmatprep.mubr.bf16.mxu0 %v7122_v42  ;;  %v6452_v42 = vld [vmem:[#allocation18 + $0xe0] ss:$8 sps:$4 sm:$0xff]   ;;  %v5581_v39 = vcombine.high %v3395_v34, %v3396_v35 }
 0xf72   : > { %2922 = vmatprep.subr.bf16.mxu0 %v6439_v41  ;;  %v3129_v41 = vld [vmem:[#allocation20 + $0x160] sm:$0xff] }
 0xf73   : > { %3587 = vmatprep.subr.bf16.mxu1 %v5581_v39 }
 0xf75   : > { %2923 = vmatpush1.bf16.msra.mxu0 %v6437_v44  ;;  %v3397_v44 = vld [vmem:[#allocation20 + $0x148] sm:$0xff] }
 0xf76   : > { %2924 = vmatprep.subr.bf16.mxu0 %v6442_v45  ;;  %v3398_v45 = vld [vmem:[#allocation20 + $0x168] sm:$0xff] }
 0xf79   : > { %2925 = vmatpush1.bf16.msra.mxu0 %v6440_v46  ;;  %v5548_v46 = vcombine.low %v3126_v27, %v3127_v28 }
 0xf7a   : > { %2926 = vmatprep.subr.bf16.mxu0 %v6445_v47  ;;  %v5580_v47 = vcombine.low %v3395_v34, %v3396_v35  ;;  %v3139_v35 = vld [vmem:[#allocation20 + $0x2a0] sm:$0xff] }
 0xf7c   : > { %3588 = vmatpush1.bf16.msra.mxu1 %v5580_v47 }
 0xf7d   : > { %2927 = vmatpush1.bf16.msra.mxu0 %v6443_v48  ;;  %v5551_v48 = vcombine.high %v3128_v40, %v3129_v41 }
 0xf7e   : > { %2928 = vmatprep.subr.bf16.mxu0 %v6448_v49  ;;  %v5583_v49 = vcombine.high %v3397_v44, %v3398_v45 }
 0xf80   : > { %3589 = vmatprep.subr.bf16.mxu1 %v5583_v49 }
 0xf81   : > { %2929 = vmatpush1.bf16.msra.mxu0 %v6446_v50  ;;  %v3130_v50 = vld [vmem:[#allocation20 + $0x180] sm:$0xff] }
 0xf82   : > { %2930 = vmatprep.subr.bf16.mxu0 %v6451_v51  ;;  %v3131_v51 = vld [vmem:[#allocation20 + $0x1a0] sm:$0xff] }
 0xf83   : > { %v5552_v63 = vcombine.low %v3130_v50, %v3131_v51 }
 0xf85   : > { %2931 = vmatpush1.bf16.msra.mxu0 %v6449_v52  ;;  %v3399_v52 = vld [vmem:[#allocation20 + $0x188] sm:$0xff] }
 0xf86   : > { %2932 = vmatprep.subr.bf16.mxu0 %v6454_v53  ;;  %v3400_v53 = vld [vmem:[#allocation20 + $0x1a8] sm:$0xff] }
 0xf87   : > { %v5584_v0 = vcombine.low %v3399_v52, %v3400_v53 }
 0xf89   : > { %2933 = vmatpush1.bf16.msra.mxu0 %v6452_v42  ;;  %v5550_v42 = vcombine.low %v3128_v40, %v3129_v41  ;;  %v3140_v40 = vld [vmem:[#allocation20 + $0x2c0] sm:$0xff] }
 0xf8a   : > { %2934 = vmatprep.subr.bf16.mxu0 %v6457_v54  ;;  %v5582_v54 = vcombine.low %v3397_v44, %v3398_v45  ;;  %v3141_v41 = vld [vmem:[#allocation20 + $0x2e0] sm:$0xff]  ;;  %v3409_v44 = vld [vmem:[#allocation20 + $0x2c8] sm:$0xff] }
 0xf8b   : > { %v5563_v45 = vcombine.high %v3140_v40, %v3141_v41  ;;  %v5562_v47 = vcombine.low %v3140_v40, %v3141_v41  ;;  %v6461_v40 = vld [vmem:[#allocation21] ss:$8 sps:$4 sm:$0xff]   ;;  %v6466_v41 = vld [vmem:[#allocation21 + $0x114] ss:$8 sps:$4 sm:$0xff]  }
 0xf8c   : > { %3590 = vmatpush1.bf16.msra.mxu1 %v5582_v54  ;;  %v3412_v54 = vld [vmem:[#allocation20 + $0x328] sm:$0xff] }
 0xf8d   : > { %2935 = vmatpush1.bf16.msra.mxu0 %v6455_v55  ;;  %v5553_v55 = vcombine.high %v3130_v50, %v3131_v51  ;;  %v3142_v50 = vld [vmem:[#allocation20 + $0x300] sm:$0xff] }
 0xf8e   : > { %3310 = vmatprep.subr.bf16.mxu0 %v5541_v2  ;;  %v3134_v2 = vld [vmem:[#allocation20 + $0x200] sm:$0xff] }
 0xf8f   : > { %v5556_v12 = vcombine.low %v3134_v2, %v3135_v61  ;;  %v3143_v51 = vld [vmem:[#allocation20 + $0x320] sm:$0xff] }
0x1043   : > { %v2817_v56 = vpop.f32.mrb[20].mxu0 }
0x1044   : > { %v2823_v57 = vpack.c.bf16 %v2817_v56, %v2817_v56  ;;  %v5867_v58 = vpop.f32.mrb[21].mxu0  ;;  %v5585_v56 = vcombine.high %v3399_v52, %v3400_v53  ;;  %v3411_v52 = vld [vmem:[#allocation20 + $0x308] sm:$0xff]  ;;  %v5564_v53 = vcombine.low %v3142_v50, %v3143_v51 }
0x1045   : > { %v2820_v59 = vpop.f32.mrb[22].mxu0  ;;  %v3133_v58 = vld [vmem:[#allocation20 + $0x1e0] sm:$0xff] }
0x1046   : > { %v5868_v60 = vpop.f32.mrb[23].mxu0  ;;  %2953 = vmatmul.mubr.bf16.vlgmr.msra.gmra.mrb[24].mxu0 %v2823_v57  ;;  %v3132_v57 = vld [vmem:[#allocation20 + $0x1c0] sm:$0xff]  ;;  %v3401_v59 = vld [vmem:[#allocation20 + $0x1c8] sm:$0xff]  ;;  %3591 = vmatprep.subr.bf16.mxu1 %v5585_v56 }
0x1047   : > { %3311 = vmatpush1.bf16.msra.mxu0 %v5540_v43  ;;  %v3402_v60 = vld [vmem:[#allocation20 + $0x1e8] sm:$0xff]  ;;  %v5555_v1 = vcombine.high %v3132_v57, %v3133_v58  ;;  %v5554_v4 = vcombine.low %v3132_v57, %v3133_v58  ;;  %3592 = vmatpush1.bf16.msra.mxu1 %v5584_v0  ;;  %v3145_v56 = vld [vmem:[#allocation20 + $0x360] sm:$0xff]  ;;  %v5596_v57 = vcombine.low %v3411_v52, %v3412_v54 }
0x1048   : > { %3312 = vmatprep.subr.bf16.mxu0 %v5543_v6  ;;  %v5587_v43 = vcombine.high %v3401_v59, %v3402_v60  ;;  %v5586_v5 = vcombine.low %v3401_v59, %v3402_v60  ;;  %v5557_v6 = vcombine.high %v3134_v2, %v3135_v61  ;;  %v5597_v58 = vcombine.high %v3411_v52, %v3412_v54  ;;  %v3413_v60 = vld [vmem:[#allocation20 + $0x348] sm:$0xff]  ;;  %v3146_v0 = vld [vmem:[#allocation20 + $0x380] sm:$0xff]  ;;  %v6481_v52 = vld [vmem:[#allocation21 + $0x34] ss:$8 sps:$4 sm:$0xff]  }
0x1049   : > { %v3415_v2 = vld [vmem:[#allocation20 + $0x388] sm:$0xff] }
0x104a   : > { %3593 = vmatprep.subr.bf16.mxu1 %v5587_v43  ;;  %v3147_v43 = vld [vmem:[#allocation20 + $0x3a0] sm:$0xff]  ;;  %v3416_v61 = vld [vmem:[#allocation20 + $0x3a8] sm:$0xff] }
0x104b   : > { %3313 = vmatpush1.bf16.msra.mxu0 %v5542_v14  ;;  %3594 = vmatpush1.bf16.msra.mxu1 %v5586_v5  ;;  %v5559_v14 = vcombine.high %v3136_v8, %v3137_v9  ;;  %v5601_v5 = vcombine.high %v3415_v2, %v3416_v61  ;;  %v5568_v10 = vcombine.low %v3146_v0, %v3147_v43  ;;  %v6484_v54 = vld [vmem:[#allocation21 + $0x144] ss:$8 sps:$4 sm:$0xff]  }
0x104c   : > { %3314 = vmatprep.subr.bf16.mxu0 %v5545_v16  ;;  %3595 = vmatprep.subr.bf16.mxu1 %v5589_v7  ;;  %v5558_v16 = vcombine.low %v3136_v8, %v3137_v9  ;;  %v3149_v7 = vld [vmem:[#allocation20 + $0x3e0] sm:$0xff]  ;;  %v3417_v8 = vld [vmem:[#allocation20 + $0x3c8] sm:$0xff]  ;;  %v5600_v11 = vcombine.low %v3415_v2, %v3416_v61  ;;  %v6502_v61 = vld [vmem:[#allocation21 + $0x174] ss:$8 sps:$4 sm:$0xff]  }
0x104d   : > { %v3418_v9 = vld [vmem:[#allocation20 + $0x3e8] sm:$0xff] }
0x104e   : > { %v6497_v2 = vld [vmem:[#allocation21 + $0x60] ss:$8 sps:$4 sm:$0xff]  }
0x104f   : > { %3315 = vmatpush1.bf16.msra.mxu0 %v5544_v24  ;;  %3596 = vmatpush1.bf16.msra.mxu1 %v5588_v13  ;;  %v5603_v13 = vcombine.high %v3417_v8, %v3418_v9 }
0x1050   : > { %3316 = vmatprep.subr.bf16.mxu0 %v5547_v26  ;;  %3597 = vmatprep.subr.bf16.mxu1 %v5591_v15  ;;  %v5602_v15 = vcombine.low %v3417_v8, %v3418_v9  ;;  %v6509_v8 = vld [vmem:[#allocation21 + $0x80] ss:$8 sps:$4 sm:$0xff]   ;;  %v6514_v9 = vld [vmem:[#allocation21 + $0x194] ss:$8 sps:$4 sm:$0xff]  }
0x1053   : > { %3317 = vmatpush1.bf16.msra.mxu0 %v5546_v36  ;;  %3598 = vmatpush1.bf16.msra.mxu1 %v5590_v17  ;;  %v6463_v17 = vld [vmem:[#allocation21 + $0x4] ss:$8 sps:$4 sm:$0xff]  }
0x1054   : > { %3318 = vmatprep.subr.bf16.mxu0 %v5549_v38 }
0x1057   : > { %3319 = vmatpush1.bf16.msra.mxu0 %v5548_v46  ;;  %v3410_v46 = vld [vmem:[#allocation20 + $0x2e8] sm:$0xff] }
0x1058   : > { %3320 = vmatprep.subr.bf16.mxu0 %v5551_v48  ;;  %v5594_v48 = vcombine.low %v3409_v44, %v3410_v46  ;;  %v5595_v49 = vcombine.high %v3409_v44, %v3410_v46  ;;  %v6469_v44 = vld [vmem:[#allocation21 + $0x14] ss:$8 sps:$4 sm:$0xff]   ;;  %v6467_v46 = vld [vmem:[#allocation21 + $0x10] ss:$8 sps:$4 sm:$0xff]  }
0x105b   : > { %3321 = vmatpush1.bf16.msra.mxu0 %v5550_v42  ;;  %v5565_v42 = vcombine.high %v3142_v50, %v3143_v51  ;;  %v6473_v50 = vld [vmem:[#allocation21 + $0x20] ss:$8 sps:$4 sm:$0xff]   ;;  %v6478_v51 = vld [vmem:[#allocation21 + $0x134] ss:$8 sps:$4 sm:$0xff]  }
0x105c   : > { %3322 = vmatprep.subr.bf16.mxu0 %v5553_v55  ;;  %v3144_v55 = vld [vmem:[#allocation20 + $0x340] sm:$0xff] }
0x105d   : > { %v5567_v59 = vcombine.high %v3144_v55, %v3145_v56  ;;  %v5566_v62 = vcombine.low %v3144_v55, %v3145_v56  ;;  %v6487_v55 = vld [vmem:[#allocation21 + $0x44] ss:$8 sps:$4 sm:$0xff]   ;;  %v6482_v56 = vld [vmem:[#allocation21 + $0x140] ss:$8 sps:$4 sm:$0xff]  }
0x105f   : > { %3323 = vmatpush1.bf16.msra.mxu0 %v5552_v63  ;;  %v3414_v63 = vld [vmem:[#allocation20 + $0x368] sm:$0xff] }
0x1060   : > { %3324 = vmatprep.subr.bf16.mxu0 %v5555_v1  ;;  %v5599_v1 = vcombine.high %v3413_v60, %v3414_v63  ;;  %v5598_v3 = vcombine.low %v3413_v60, %v3414_v63  ;;  %v6488_v60 = vld [vmem:[#allocation21 + $0x150] ss:$8 sps:$4 sm:$0xff]  }
0x1061   : > { %v6491_v63 = vld [vmem:[#allocation21 + $0x50] ss:$8 sps:$4 sm:$0xff]  }
0x1063   : > { %3325 = vmatpush1.bf16.msra.mxu0 %v5554_v4  ;;  %v5569_v4 = vcombine.high %v3146_v0, %v3147_v43  ;;  %v6496_v0 = vld [vmem:[#allocation21 + $0x164] ss:$8 sps:$4 sm:$0xff]   ;;  %v6494_v43 = vld [vmem:[#allocation21 + $0x160] ss:$8 sps:$4 sm:$0xff]  }
0x1064   : > { %3326 = vmatprep.subr.bf16.mxu0 %v5557_v6  ;;  %v3148_v6 = vld [vmem:[#allocation20 + $0x3c0] sm:$0xff] }
0x1067   : > { %3327 = vmatpush1.bf16.msra.mxu0 %v5556_v12  ;;  %v5571_v12 = vcombine.high %v3148_v6, %v3149_v7 }
0x1068   : > { %3328 = vmatprep.subr.bf16.mxu0 %v5559_v14  ;;  %v5570_v14 = vcombine.low %v3148_v6, %v3149_v7  ;;  %v6511_v6 = vld [vmem:[#allocation21 + $0x84] ss:$8 sps:$4 sm:$0xff]   ;;  %v6506_v7 = vld [vmem:[#allocation21 + $0x180] ss:$8 sps:$4 sm:$0xff]  }
0x106b   : > { %3329 = vmatpush1.bf16.msra.mxu0 %v5558_v16  ;;  %v6460_v16 = vld [vmem:[#allocation21 + $0x104] ss:$8 sps:$4 sm:$0xff]  }
0x1119   : > { %v2954_v18 = vpop.f32.mrb[24].mxu0 }
0x111a   : > { %v3076_v21 = vadd.f32 %v7722_v32, %v2954_v18  ;;  %v2956_v22 = vpop.f32.mrb[25].mxu0 }
0x111b   : > { %v3078_v23 = vadd.f32 %v7724_v33, %v2956_v22  ;;  %v2958_v24 = vpop.f32.mrb[26].mxu0  ;;  %v3138_v33 = vld [vmem:[#allocation20 + $0x280] sm:$0xff] }
0x111c   : > { %v7731_v25 = vadd.f32 %v3076_v21, %v7699_v31  ;;  %v2959_v26 = vpop.f32.mrb[27].mxu0  ;;  %v3407_v31 = vld [vmem:[#allocation20 + $0x288] sm:$0xff]  ;;  %v5561_v36 = vcombine.high %v3138_v33, %v3139_v35  ;;  %v5560_v38 = vcombine.low %v3138_v33, %v3139_v35 }
0x111d   : > { %v7734_v30 = vadd.f32 %v3078_v23, %v7697_v29  ;;  %v5592_v29 = vcombine.low %v3407_v31, %v3408_v37  ;;  %v5593_v39 = vcombine.high %v3407_v31, %v3408_v37 }
0x111e   : > { %v3089_v27 = vmul.f32 %v7731_v25, %v7731_v25  ;;  %3330 = vmatprep.subr.bf16.mxu0 %v5561_v36 }
0x111f   : > { %v3085_v28 = vadd.f32 %v7734_v30, %v7731_v25  ;;  %v3090_v32 = vmul.f32 %v7734_v30, %v7734_v30  ;;  %3599 = vmatprep.subr.bf16.mxu1 %v5593_v39  ;;  %3331 = vmatpush1.bf16.msra.mxu0 %v5560_v38 }
0x1120   : > { %3600 = vmatpush1.bf16.msra.mxu1 %v5592_v29  ;;  %3332 = vmatprep.subr.bf16.mxu0 %v5563_v45  ;;  %v6464_v45 = vld [vmem:[#allocation21 + $0x110] ss:$8 sps:$4 sm:$0xff]  }
0x1121   : > { %3086 = vadd.xlane.f32.xlu0 %v3085_v28  ;;  %v3091_v34 = vadd.f32 %v3090_v32, %v3089_v27  ;;  %3601 = vmatprep.subr.bf16.mxu1 %v5595_v49  ;;  %v3084_v28 = vld [vmem:[%s7953_s16] sm:$0x3]  ;;  %s6960_s16 = sshll.u32 %s7123_s21, 4  ;;  %s6961_s16 = int_to_ptr.vmem [resolvable:$false] %s6960_s16 }
0x1122   : > { %v3111_v33 = vrot.slane %v3084_v28, %v7690_v20  ;;  %v3107_v35 = vrot.slane %v3084_v28, %v7688_v19  ;;  %v6470_v49 = vld [vmem:[#allocation21 + $0x120] ss:$8 sps:$4 sm:$0xff]   ;;  %v6538_v28 = vld [vmem:[#allocation21 + $0x1d4] ss:$8 sps:$4 sm:$0xff]   ;;  %s6962_s17 = scalar_lea.vmem %s6961_s16, 512  ;;  %p6963_p11 = scmp.lt.s32.totalorder %s7790_s23, %s6961_s16 }
0x1123   : > { %3092 = vadd.xlane.f32.xlu1 %v3091_v34  ;;  %3333 = vmatpush1.bf16.msra.mxu0 %v5562_v47  ;;  %v6472_v47 = vld [vmem:[#allocation21 + $0x124] ss:$8 sps:$4 sm:$0xff]   ;;  %p6964_p5 = scmp.lt.s32.totalorder %s6962_s17, %s6956_s11 }
0x1124   : > { %3602 = vmatpush1.bf16.msra.mxu1 %v5594_v48  ;;  %3334 = vmatprep.subr.bf16.mxu0 %v5565_v42  ;;  %v6475_v48 = vld [vmem:[#allocation21 + $0x24] ss:$8 sps:$4 sm:$0xff]   ;;  %v6479_v42 = vld [vmem:[#allocation21 + $0x30] ss:$8 sps:$4 sm:$0xff]  }
0x1125   : > { %3603 = vmatprep.subr.bf16.mxu1 %v5597_v58  ;;  %v6490_v58 = vld [vmem:[#allocation21 + $0x154] ss:$8 sps:$4 sm:$0xff]   ;;  %p6965_p8 = por %p6964_p5, %p6963_p11 }
0x1127   : > { %3335 = vmatpush1.bf16.msra.mxu0 %v5564_v53  ;;  %v6476_v53 = vld [vmem:[#allocation21 + $0x130] ss:$8 sps:$4 sm:$0xff]   ;;  %p6966_p12 = pnand %p6965_p8, %p6959_p6 }
0x1128   : > { %3604 = vmatpush1.bf16.msra.mxu1 %v5596_v57  ;;  %3336 = vmatprep.subr.bf16.mxu0 %v5567_v59  ;;  %v6485_v57 = vld [vmem:[#allocation21 + $0x40] ss:$8 sps:$4 sm:$0xff]   ;;  %v6493_v59 = vld [vmem:[#allocation21 + $0x54] ss:$8 sps:$4 sm:$0xff]  }
0x1129   : > { %3605 = vmatprep.subr.bf16.mxu1 %v5599_v1  ;;  %v6499_v1 = vld [vmem:[#allocation21 + $0x64] ss:$8 sps:$4 sm:$0xff]  }
0x112b   : > { %3337 = vmatpush1.bf16.msra.mxu0 %v5566_v62  ;;  %v6505_v62 = vld [vmem:[#allocation21 + $0x74] ss:$8 sps:$4 sm:$0xff]  }
0x112c   : > { %3606 = vmatpush1.bf16.msra.mxu1 %v5598_v3  ;;  %3338 = vmatprep.subr.bf16.mxu0 %v5569_v4  ;;  %v6500_v3 = vld [vmem:[#allocation21 + $0x170] ss:$8 sps:$4 sm:$0xff]  }
0x112d   : > { %3607 = vmatprep.subr.bf16.mxu1 %v5601_v5  ;;  %v6503_v4 = vld [vmem:[#allocation21 + $0x70] ss:$8 sps:$4 sm:$0xff]   ;;  %v6508_v5 = vld [vmem:[#allocation21 + $0x184] ss:$8 sps:$4 sm:$0xff]  }
0x112f   : > { %3339 = vmatpush1.bf16.msra.mxu0 %v5568_v10  ;;  %v6517_v10 = vld [vmem:[#allocation21 + $0x94] ss:$8 sps:$4 sm:$0xff]  }
0x1130   : > { %3608 = vmatpush1.bf16.msra.mxu1 %v5600_v11  ;;  %3340 = vmatprep.subr.bf16.mxu0 %v5571_v12  ;;  %v6512_v11 = vld [vmem:[#allocation21 + $0x190] ss:$8 sps:$4 sm:$0xff]  }
0x1131   : > { %3609 = vmatprep.subr.bf16.mxu1 %v5603_v13  ;;  %v6515_v12 = vld [vmem:[#allocation21 + $0x90] ss:$8 sps:$4 sm:$0xff]   ;;  %v6520_v13 = vld [vmem:[#allocation21 + $0x1a4] ss:$8 sps:$4 sm:$0xff]  }
0x1133   : > { %3341 = vmatpush1.bf16.msra.mxu0 %v5570_v14  ;;  %v6523_v14 = vld [vmem:[#allocation21 + $0xa4] ss:$8 sps:$4 sm:$0xff]  }
0x1134   : > { %3610 = vmatpush1.bf16.msra.mxu1 %v5602_v15  ;;  %3816 = vmatprep.subr.bf16.mxu0 %v6460_v16  ;;  %v6518_v15 = vld [vmem:[#allocation21 + $0x1a0] ss:$8 sps:$4 sm:$0xff]  }
0x1135   : > { %4017 = vmatprep.subr.bf16.mxu1 %v6463_v17  ;;  %v6521_v16 = vld [vmem:[#allocation21 + $0xa0] ss:$8 sps:$4 sm:$0xff]   ;;  %v6526_v17 = vld [vmem:[#allocation21 + $0x1b4] ss:$8 sps:$4 sm:$0xff]  }
0x11ae   : > { %v3087_v18 = vpop.xlane.xlu0 %3086 }
0x11af   : > { %v3088_v21 = vmul.f32 0.00390625, %v3087_v18  ;;  %v6529_v18 = vld [vmem:[#allocation21 + $0xb4] ss:$8 sps:$4 sm:$0xff]  }
0x11b0   : > { %v3093_v22 = vpop.xlane.xlu1 %3092 }
0x11b1   : > { %v3094_v23 = vmul.f32 0.00390625, %v3093_v22  ;;  %v3095_v24 = vmul.f32 %v3088_v21, %v3088_v21  ;;  %v3097_v32 = vsub.f32 %v7731_v25, %v3088_v21  ;;  %v3098_v34 = vsub.f32 %v7734_v30, %v3088_v21  ;;  %v6458_v30 = vld [vmem:[#allocation21 + $0x100] ss:$8 sps:$4 sm:$0xff]   ;;  %v6524_v21 = vld [vmem:[#allocation21 + $0x1b0] ss:$8 sps:$4 sm:$0xff]  }
0x11b2   : > { %v6527_v22 = vld [vmem:[#allocation21 + $0xb0] ss:$8 sps:$4 sm:$0xff]  }
0x11b3   : > { %v3096_v26 = vsub.f32 %v3094_v23, %v3095_v24  ;;  %v6532_v23 = vld [vmem:[#allocation21 + $0x1c4] ss:$8 sps:$4 sm:$0xff]  }
0x11b4   : > { %v6535_v24 = vld [vmem:[#allocation21 + $0xc4] ss:$8 sps:$4 sm:$0xff]  }
0x11b5   : > { %v3099_v27 = vadd.f32 1e-05, %v3096_v26  ;;  %v6530_v26 = vld [vmem:[#allocation21 + $0x1c0] ss:$8 sps:$4 sm:$0xff]  }
0x11b7   : > { %6668 = vrsqrt.f32 %v3099_v27  ;;  %v6533_v27 = vld [vmem:[#allocation21 + $0xc0] ss:$8 sps:$4 sm:$0xff]  }
0x11c1   : > { %v6669_v31 = vpop.eup %6668 }
0x11c2   : > { %v3102_v36 = vmul.f32 %v6669_v31, %v3098_v34  ;;  %v3101_v37 = vmul.f32 %v6669_v31, %v3097_v32  ;;  %v6541_v32 = vld [vmem:[#allocation21 + $0xd4] ss:$8 sps:$4 sm:$0xff]   ;;  %v6536_v34 = vld [vmem:[#allocation21 + $0x1d0] ss:$8 sps:$4 sm:$0xff]   ;;  %v6547_v31 = vld [vmem:[#allocation21 + $0xe4] ss:$8 sps:$4 sm:$0xff]  }
0x11c4   : > { %v7749_v38 = vmul.f32 %v3111_v33, %v3102_v36  ;;  %v7751_v29 = vmul.f32 %v3107_v35, %v3101_v37  ;;  %v6539_v33 = vld [vmem:[#allocation21 + $0xd0] ss:$8 sps:$4 sm:$0xff]   ;;  %v6544_v35 = vld [vmem:[#allocation21 + $0x1e4] ss:$8 sps:$4 sm:$0xff]   ;;  %v6542_v36 = vld [vmem:[#allocation21 + $0x1e0] ss:$8 sps:$4 sm:$0xff]  }
0x11c5   : > { %v6545_v37 = vld [vmem:[#allocation21 + $0xe0] ss:$8 sps:$4 sm:$0xff]  }
0x11c6   : > { %v7755_v39 = vpack.c.bf16 %v7749_v38, %v7749_v38  ;;  %v7759_v25 = vpack.c.bf16 %v7751_v29, %v7751_v29 }
0x11c8   : > { %3342 = vmatprep.mubr.bf16.mxu0 %v7755_v39  ;;  %3611 = vmatprep.mubr.bf16.mxu1 %v7755_v39 }
0x11c9   : > { %3343 = vmatmul.mubr.bf16.vlgmr.msra.gmra.mrb[28].mxu0 %v7759_v25  ;;  %3612 = vmatmul.mubr.bf16.vlgmr.msra.gmra.mrb[28].mxu1 %v7759_v25 }
0x11ca   : > { %3817 = vmatpush1.bf16.msra.mxu0 %v6458_v30  ;;  %4018 = vmatpush1.bf16.msra.mxu1 %v6461_v40  ;;  %v6550_v30 = vld [vmem:[#allocation21 + $0x1f4] ss:$8 sps:$4 sm:$0xff]   ;;  %v6548_v40 = vld [vmem:[#allocation21 + $0x1f0] ss:$8 sps:$4 sm:$0xff]  }
0x11cb   : > { %3818 = vmatprep.subr.bf16.mxu0 %v6466_v41  ;;  %4019 = vmatprep.subr.bf16.mxu1 %v6469_v44  ;;  %v6553_v41 = vld [vmem:[#allocation21 + $0xf4] ss:$8 sps:$4 sm:$0xff]   ;;  %v6551_v44 = vld [vmem:[#allocation21 + $0xf0] ss:$8 sps:$4 sm:$0xff]  }
0x11ce   : > { %3819 = vmatpush1.bf16.msra.mxu0 %v6464_v45  ;;  %4020 = vmatpush1.bf16.msra.mxu1 %v6467_v46  ;;  %v4058_v45 = vld [vmem:[#allocation20 + $0x10] sm:$0xff] }
0x11cf   : > { %3820 = vmatprep.subr.bf16.mxu0 %v6472_v47  ;;  %4021 = vmatprep.subr.bf16.mxu1 %v6475_v48  ;;  %v4059_v46 = vld [vmem:[#allocation20 + $0x30] sm:$0xff] }
0x11d0   : > { %v5669_v47 = vcombine.high %v4058_v45, %v4059_v46  ;;  %v5668_v48 = vcombine.low %v4058_v45, %v4059_v46  ;;  %v4080_v46 = vld [vmem:[#allocation20 + $0x2d0] sm:$0xff] }
0x11d2   : > { %3821 = vmatpush1.bf16.msra.mxu0 %v6470_v49  ;;  %4022 = vmatpush1.bf16.msra.mxu1 %v6473_v50 }
0x11d3   : > { %3822 = vmatprep.subr.bf16.mxu0 %v6478_v51  ;;  %4023 = vmatprep.subr.bf16.mxu1 %v6481_v52 }
0x11d6   : > { %3823 = vmatpush1.bf16.msra.mxu0 %v6476_v53  ;;  %4024 = vmatpush1.bf16.msra.mxu1 %v6479_v42 }
0x11d7   : > { %3824 = vmatprep.subr.bf16.mxu0 %v6484_v54  ;;  %4025 = vmatprep.subr.bf16.mxu1 %v6487_v55 }
0x11da   : > { %3825 = vmatpush1.bf16.msra.mxu0 %v6482_v56  ;;  %4026 = vmatpush1.bf16.msra.mxu1 %v6485_v57 }
0x11db   : > { %3826 = vmatprep.subr.bf16.mxu0 %v6490_v58  ;;  %4027 = vmatprep.subr.bf16.mxu1 %v6493_v59  ;;  %v4060_v58 = vld [vmem:[#allocation20 + $0x50] sm:$0xff] }
0x11dc   : > { %v4061_v59 = vld [vmem:[#allocation20 + $0x70] sm:$0xff] }
0x11de   : > { %3827 = vmatpush1.bf16.msra.mxu0 %v6488_v60  ;;  %4028 = vmatpush1.bf16.msra.mxu1 %v6491_v63 }
0x11df   : > { %3828 = vmatprep.subr.bf16.mxu0 %v6496_v0  ;;  %4029 = vmatprep.subr.bf16.mxu1 %v6499_v1 }
0x11e2   : > { %3829 = vmatpush1.bf16.msra.mxu0 %v6494_v43  ;;  %4030 = vmatpush1.bf16.msra.mxu1 %v6497_v2 }
0x11e3   : > { %3830 = vmatprep.subr.bf16.mxu0 %v6502_v61  ;;  %4031 = vmatprep.subr.bf16.mxu1 %v6505_v62  ;;  %v5671_v61 = vcombine.high %v4060_v58, %v4061_v59  ;;  %v4062_v62 = vld [vmem:[#allocation20 + $0x90] sm:$0xff] }
0x11e6   : > { %3831 = vmatpush1.bf16.msra.mxu0 %v6500_v3  ;;  %4032 = vmatpush1.bf16.msra.mxu1 %v6503_v4  ;;  %v4063_v3 = vld [vmem:[#allocation20 + $0xb0] sm:$0xff]  ;;  %v5670_v4 = vcombine.low %v4060_v58, %v4061_v59 }
0x11e7   : > { %3832 = vmatprep.subr.bf16.mxu0 %v6508_v5  ;;  %4033 = vmatprep.subr.bf16.mxu1 %v6511_v6  ;;  %v5673_v5 = vcombine.high %v4062_v62, %v4063_v3  ;;  %v4064_v6 = vld [vmem:[#allocation20 + $0xd0] sm:$0xff] }
0x11e8   : > { %v4087_v58 = vld [vmem:[#allocation20 + $0x3b0] sm:$0xff] }
0x11ea   : > { %3833 = vmatpush1.bf16.msra.mxu0 %v6506_v7  ;;  %4034 = vmatpush1.bf16.msra.mxu1 %v6509_v8  ;;  %v4065_v7 = vld [vmem:[#allocation20 + $0xf0] sm:$0xff]  ;;  %v5672_v8 = vcombine.low %v4062_v62, %v4063_v3 }
0x11eb   : > { %3834 = vmatprep.subr.bf16.mxu0 %v6514_v9  ;;  %4035 = vmatprep.subr.bf16.mxu1 %v6517_v10  ;;  %v5675_v9 = vcombine.high %v4064_v6, %v4065_v7  ;;  %v4066_v10 = vld [vmem:[#allocation20 + $0x110] sm:$0xff] }
0x11ee   : > { %3835 = vmatpush1.bf16.msra.mxu0 %v6512_v11  ;;  %4036 = vmatpush1.bf16.msra.mxu1 %v6515_v12  ;;  %v4067_v11 = vld [vmem:[#allocation20 + $0x130] sm:$0xff]  ;;  %v5674_v12 = vcombine.low %v4064_v6, %v4065_v7 }
0x11ef   : > { %3836 = vmatprep.subr.bf16.mxu0 %v6520_v13  ;;  %4037 = vmatprep.subr.bf16.mxu1 %v6523_v14  ;;  %v5677_v13 = vcombine.high %v4066_v10, %v4067_v11  ;;  %v4068_v14 = vld [vmem:[#allocation20 + $0x150] sm:$0xff] }
0x11f2   : > { %3837 = vmatpush1.bf16.msra.mxu0 %v6518_v15  ;;  %4038 = vmatpush1.bf16.msra.mxu1 %v6521_v16  ;;  %v4069_v15 = vld [vmem:[#allocation20 + $0x170] sm:$0xff]  ;;  %v5676_v16 = vcombine.low %v4066_v10, %v4067_v11 }
0x11f3   : > { %3838 = vmatprep.subr.bf16.mxu0 %v6526_v17  ;;  %4039 = vmatprep.subr.bf16.mxu1 %v6529_v18  ;;  %v5679_v17 = vcombine.high %v4068_v14, %v4069_v15  ;;  %v4070_v18 = vld [vmem:[#allocation20 + $0x190] sm:$0xff] }
0x11f6   : > { %3839 = vmatpush1.bf16.msra.mxu0 %v6524_v21  ;;  %4040 = vmatpush1.bf16.msra.mxu1 %v6527_v22  ;;  %v4071_v21 = vld [vmem:[#allocation20 + $0x1b0] sm:$0xff]  ;;  %v5678_v22 = vcombine.low %v4068_v14, %v4069_v15 }
0x11f7   : > { %3840 = vmatprep.subr.bf16.mxu0 %v6532_v23  ;;  %4041 = vmatprep.subr.bf16.mxu1 %v6535_v24  ;;  %v5681_v23 = vcombine.high %v4070_v18, %v4071_v21  ;;  %v4072_v24 = vld [vmem:[#allocation20 + $0x1d0] sm:$0xff] }
0x11fa   : > { %3841 = vmatpush1.bf16.msra.mxu0 %v6530_v26  ;;  %4042 = vmatpush1.bf16.msra.mxu1 %v6533_v27  ;;  %v4073_v26 = vld [vmem:[#allocation20 + $0x1f0] sm:$0xff]  ;;  %v5680_v27 = vcombine.low %v4070_v18, %v4071_v21 }
0x11fb   : > { %3842 = vmatprep.subr.bf16.mxu0 %v6538_v28  ;;  %4043 = vmatprep.subr.bf16.mxu1 %v6541_v32  ;;  %v5683_v28 = vcombine.high %v4072_v24, %v4073_v26  ;;  %v4074_v32 = vld [vmem:[#allocation20 + $0x210] sm:$0xff] }
0x11fe   : > { %3843 = vmatpush1.bf16.msra.mxu0 %v6536_v34  ;;  %4044 = vmatpush1.bf16.msra.mxu1 %v6539_v33  ;;  %v4075_v34 = vld [vmem:[#allocation20 + $0x230] sm:$0xff]  ;;  %v5682_v33 = vcombine.low %v4072_v24, %v4073_v26  ;;  %v4542_v26 = vld [vmem:[#allocation20 + $0x198] sm:$0xff] }
0x11ff   : > { %3844 = vmatprep.subr.bf16.mxu0 %v6544_v35  ;;  %4045 = vmatprep.subr.bf16.mxu1 %v6547_v31  ;;  %v5685_v35 = vcombine.high %v4074_v32, %v4075_v34  ;;  %v4076_v31 = vld [vmem:[#allocation20 + $0x250] sm:$0xff] }
0x1202   : > { %3845 = vmatpush1.bf16.msra.mxu0 %v6542_v36  ;;  %4046 = vmatpush1.bf16.msra.mxu1 %v6545_v37  ;;  %v4077_v36 = vld [vmem:[#allocation20 + $0x270] sm:$0xff]  ;;  %v5684_v37 = vcombine.low %v4074_v32, %v4075_v34  ;;  %v4544_v34 = vld [vmem:[#allocation20 + $0x1d8] sm:$0xff] }
0x1203   : > { %3846 = vmatprep.subr.bf16.mxu0 %v6550_v30  ;;  %4047 = vmatprep.subr.bf16.mxu1 %v6553_v41  ;;  %v5687_v30 = vcombine.high %v4076_v31, %v4077_v36  ;;  %v4079_v41 = vld [vmem:[#allocation20 + $0x2b0] sm:$0xff] }
0x1206   : > { %3847 = vmatpush1.bf16.msra.mxu0 %v6548_v40  ;;  %4048 = vmatpush1.bf16.msra.mxu1 %v6551_v44  ;;  %v4078_v40 = vld [vmem:[#allocation20 + $0x290] sm:$0xff]  ;;  %v5686_v44 = vcombine.low %v4076_v31, %v4077_v36  ;;  %v6554_v36 = vld [vmem:[#allocation21 + $0x200] ss:$8 sps:$4 sm:$0xff]  }
0x1207   : > { %4250 = vmatprep.subr.bf16.mxu0 %v5669_v47  ;;  %v5689_v45 = vcombine.high %v4078_v40, %v4079_v41  ;;  %v4081_v47 = vld [vmem:[#allocation20 + $0x2f0] sm:$0xff] }
0x129c   : > { %v3344_v49 = vpop.f32.mrb[28].mxu0  ;;  %v3613_v50 = vpop.f32.mrb[28].mxu1 }
0x129d   : > { %v3351_v51 = vmax.f32 %v3344_v49, 0.0  ;;  %v3620_v52 = vmax.f32 %v3613_v50, 0.0  ;;  %v3346_v53 = vpop.f32.mrb[29].mxu0  ;;  %v3615_v42 = vpop.f32.mrb[29].mxu1  ;;  %v5691_v49 = vcombine.high %v4080_v46, %v4081_v47  ;;  %v4082_v50 = vld [vmem:[#allocation20 + $0x310] sm:$0xff] }
0x129e   : > { %v3352_v54 = vmax.f32 %v3346_v53, 0.0  ;;  %v3621_v55 = vmax.f32 %v3615_v42, 0.0  ;;  %v3348_v56 = vpop.f32.mrb[30].mxu0  ;;  %v3617_v57 = vpop.f32.mrb[30].mxu1  ;;  %v4084_v42 = vld [vmem:[#allocation20 + $0x350] sm:$0xff] }
0x129f   : > { %v3349_v60 = vpop.f32.mrb[31].mxu0  ;;  %v3618_v63 = vpop.f32.mrb[31].mxu1  ;;  %v3353_v43 = vpack.c.bf16 %v3351_v51, %v3351_v51  ;;  %v3622_v2 = vpack.c.bf16 %v3620_v52, %v3620_v52  ;;  %v4083_v51 = vld [vmem:[#allocation20 + $0x330] sm:$0xff]  ;;  %v5690_v52 = vcombine.low %v4080_v46, %v4081_v47  ;;  %v6562_v47 = vld [vmem:[#allocation21 + $0x224] ss:$8 sps:$4 sm:$0xff]  }
0x12a0   : > { %v3354_v0 = vpack.c.bf16 %v3352_v54, %v3352_v54  ;;  %v3623_v1 = vpack.c.bf16 %v3621_v55, %v3621_v55  ;;  %v5693_v53 = vcombine.high %v4082_v50, %v4083_v51  ;;  %v4085_v54 = vld [vmem:[#allocation20 + $0x370] sm:$0xff]  ;;  %v5692_v55 = vcombine.low %v4082_v50, %v4083_v51  ;;  %v6560_v51 = vld [vmem:[#allocation21 + $0x220] ss:$8 sps:$4 sm:$0xff]  }
0x12a1   : > { %v5695_v56 = vcombine.high %v4084_v42, %v4085_v54  ;;  %v4086_v57 = vld [vmem:[#allocation20 + $0x390] sm:$0xff]  ;;  %v5694_v59 = vcombine.low %v4084_v42, %v4085_v54  ;;  %v4550_v42 = vld [vmem:[#allocation20 + $0x298] sm:$0xff] }
0x12a2   : > { %3848 = vmatprep.mubr.bf16.mxu0 %v3623_v1  ;;  %4049 = vmatprep.mubr.bf16.mxu1 %v3354_v0  ;;  %v5697_v60 = vcombine.high %v4086_v57, %v4087_v58  ;;  %v4088_v63 = vld [vmem:[#allocation20 + $0x3d0] sm:$0xff]  ;;  %v5696_v1 = vcombine.low %v4086_v57, %v4087_v58  ;;  %v4551_v54 = vld [vmem:[#allocation20 + $0x2b8] sm:$0xff]  ;;  %v6568_v58 = vld [vmem:[#allocation21 + $0x244] ss:$8 sps:$4 sm:$0xff]  }
0x12a3   : > { %3849 = vmatmul.mubr.bf16.vlgmr.msra.gmra.mrb[32].mxu0 %v3622_v2  ;;  %4050 = vmatmul.mubr.bf16.vlgmr.msra.gmra.mrb[32].mxu1 %v3353_v43  ;;  %v4089_v0 = vld [vmem:[#allocation20 + $0x3f0] sm:$0xff]  ;;  %v4530_v2 = vld [vmem:[#allocation20 + $0x18] sm:$0xff]  ;;  %v5753_v57 = vcombine.high %v4550_v42, %v4551_v54 }
0x12a4   : > { %4251 = vmatpush1.bf16.msra.mxu0 %v5668_v48  ;;  %4282 = vmatprep.mubr.bf16.mxu0 %v7755_v39  ;;  %v5688_v48 = vcombine.low %v4078_v40, %v4079_v41  ;;  %v5699_v43 = vcombine.high %v4088_v63, %v4089_v0  ;;  %v5698_v62 = vcombine.low %v4088_v63, %v4089_v0  ;;  %v4547_v40 = vld [vmem:[#allocation20 + $0x238] sm:$0xff]  ;;  %v6566_v0 = vld [vmem:[#allocation21 + $0x240] ss:$8 sps:$4 sm:$0xff]  }
0x12a5   : > { %4252 = vmatprep.subr.bf16.mxu0 %v5671_v61  ;;  %v4531_v61 = vld [vmem:[#allocation20 + $0x38] sm:$0xff]  ;;  %v5752_v63 = vcombine.low %v4550_v42, %v4551_v54 }
0x12a6   : > { %v5733_v3 = vcombine.high %v4530_v2, %v4531_v61  ;;  %v5732_v6 = vcombine.low %v4530_v2, %v4531_v61  ;;  %v6559_v41 = vld [vmem:[#allocation21 + $0x214] ss:$8 sps:$4 sm:$0xff]  }
0x12a7   : > { %v4554_v2 = vld [vmem:[#allocation20 + $0x318] sm:$0xff] }
0x12a8   : > { %4253 = vmatpush1.bf16.msra.mxu0 %v5670_v4  ;;  %v4532_v4 = vld [vmem:[#allocation20 + $0x58] sm:$0xff] }
0x12a9   : > { %4254 = vmatprep.subr.bf16.mxu0 %v5673_v5  ;;  %v4533_v5 = vld [vmem:[#allocation20 + $0x78] sm:$0xff] }
0x12aa   : > { %v5735_v7 = vcombine.high %v4532_v4, %v4533_v5  ;;  %v5734_v10 = vcombine.low %v4532_v4, %v4533_v5  ;;  %v4555_v61 = vld [vmem:[#allocation20 + $0x338] sm:$0xff]  ;;  %v6574_v5 = vld [vmem:[#allocation21 + $0x264] ss:$8 sps:$4 sm:$0xff]  }
0x12ab   : > { %v5757_v4 = vcombine.high %v4554_v2, %v4555_v61 }
0x12ac   : > { %4255 = vmatpush1.bf16.msra.mxu0 %v5672_v8  ;;  %v4534_v8 = vld [vmem:[#allocation20 + $0x98] sm:$0xff] }
0x12ad   : > { %4256 = vmatprep.subr.bf16.mxu0 %v5675_v9  ;;  %v4535_v9 = vld [vmem:[#allocation20 + $0xb8] sm:$0xff] }
0x12ae   : > { %v5737_v11 = vcombine.high %v4534_v8, %v4535_v9  ;;  %v5736_v14 = vcombine.low %v4534_v8, %v4535_v9  ;;  %v5756_v8 = vcombine.low %v4554_v2, %v4555_v61  ;;  %v6572_v9 = vld [vmem:[#allocation21 + $0x260] ss:$8 sps:$4 sm:$0xff]   ;;  %v6610_v2 = vld [vmem:[#allocation21 + $0x324] ss:$8 sps:$4 sm:$0xff]  }
0x12af   : > { %v6608_v61 = vld [vmem:[#allocation21 + $0x320] ss:$8 sps:$4 sm:$0xff]  }
0x12b0   : > { %4257 = vmatpush1.bf16.msra.mxu0 %v5674_v12  ;;  %v4536_v12 = vld [vmem:[#allocation20 + $0xd8] sm:$0xff] }
0x12b1   : > { %4258 = vmatprep.subr.bf16.mxu0 %v5677_v13  ;;  %v4537_v13 = vld [vmem:[#allocation20 + $0xf8] sm:$0xff] }
0x12b2   : > { %v5739_v15 = vcombine.high %v4536_v12, %v4537_v13  ;;  %v5738_v18 = vcombine.low %v4536_v12, %v4537_v13  ;;  %v4558_v12 = vld [vmem:[#allocation20 + $0x398] sm:$0xff] }
0x12b3   : > { %v4559_v13 = vld [vmem:[#allocation20 + $0x3b8] sm:$0xff] }
0x12b4   : > { %4259 = vmatpush1.bf16.msra.mxu0 %v5676_v16  ;;  %v4538_v16 = vld [vmem:[#allocation20 + $0x118] sm:$0xff] }
0x12b5   : > { %4260 = vmatprep.subr.bf16.mxu0 %v5679_v17  ;;  %v4539_v17 = vld [vmem:[#allocation20 + $0x138] sm:$0xff] }
0x12b6   : > { %v5741_v21 = vcombine.high %v4538_v16, %v4539_v17  ;;  %v5740_v24 = vcombine.low %v4538_v16, %v4539_v17  ;;  %v5761_v16 = vcombine.high %v4558_v12, %v4559_v13  ;;  %v6580_v17 = vld [vmem:[#allocation21 + $0x284] ss:$8 sps:$4 sm:$0xff]  }
0x12b8   : > { %4261 = vmatpush1.bf16.msra.mxu0 %v5678_v22  ;;  %v4540_v22 = vld [vmem:[#allocation20 + $0x158] sm:$0xff] }
0x12b9   : > { %4262 = vmatprep.subr.bf16.mxu0 %v5681_v23  ;;  %v4541_v23 = vld [vmem:[#allocation20 + $0x178] sm:$0xff] }
0x12bc   : > { %4263 = vmatpush1.bf16.msra.mxu0 %v5680_v27  ;;  %v4543_v27 = vld [vmem:[#allocation20 + $0x1b8] sm:$0xff] }
0x12bd   : > { %4264 = vmatprep.subr.bf16.mxu0 %v5683_v28  ;;  %v5742_v28 = vcombine.low %v4540_v22, %v4541_v23  ;;  %v5745_v32 = vcombine.high %v4542_v26, %v4543_v27 }
0x12c0   : > { %4265 = vmatpush1.bf16.msra.mxu0 %v5682_v33  ;;  %v4545_v33 = vld [vmem:[#allocation20 + $0x1f8] sm:$0xff] }
0x12c1   : > { %4266 = vmatprep.subr.bf16.mxu0 %v5685_v35  ;;  %v5744_v35 = vcombine.low %v4542_v26, %v4543_v27  ;;  %v5747_v31 = vcombine.high %v4544_v34, %v4545_v33  ;;  %v6581_v27 = vld [vmem:[#allocation21 + $0x290] ss:$8 sps:$4 sm:$0xff]  }
0x12c4   : > { %4267 = vmatpush1.bf16.msra.mxu0 %v5684_v37  ;;  %v6556_v37 = vld [vmem:[#allocation21 + $0x204] ss:$8 sps:$4 sm:$0xff]  }
0x12c5   : > { %4268 = vmatprep.subr.bf16.mxu0 %v5687_v30  ;;  %v4546_v30 = vld [vmem:[#allocation20 + $0x218] sm:$0xff]  ;;  %4487 = vmatprep.subr.bf16.mxu1 %v6556_v37 }
0x12c6   : > { %4488 = vmatpush1.bf16.msra.mxu1 %v6554_v36  ;;  %v5749_v46 = vcombine.high %v4546_v30, %v4547_v40  ;;  %v5748_v50 = vcombine.low %v4546_v30, %v4547_v40  ;;  %v6595_v36 = vld [vmem:[#allocation21 + $0x2d4] ss:$8 sps:$4 sm:$0xff]   ;;  %v6593_v37 = vld [vmem:[#allocation21 + $0x2d0] ss:$8 sps:$4 sm:$0xff]   ;;  %v6598_v30 = vld [vmem:[#allocation21 + $0x2e4] ss:$8 sps:$4 sm:$0xff]  }
0x12c7   : > { %4489 = vmatprep.subr.bf16.mxu1 %v6559_v41  ;;  %v6596_v40 = vld [vmem:[#allocation21 + $0x2e0] ss:$8 sps:$4 sm:$0xff]   ;;  %v6601_v41 = vld [vmem:[#allocation21 + $0x2f4] ss:$8 sps:$4 sm:$0xff]  }
0x12c8   : > { %4269 = vmatpush1.bf16.msra.mxu0 %v5686_v44  ;;  %v5746_v44 = vcombine.low %v4544_v34, %v4545_v33  ;;  %v6589_v34 = vld [vmem:[#allocation21 + $0x2b4] ss:$8 sps:$4 sm:$0xff]   ;;  %v6587_v33 = vld [vmem:[#allocation21 + $0x2b0] ss:$8 sps:$4 sm:$0xff]  }
0x12c9   : > { %4270 = vmatprep.subr.bf16.mxu0 %v5689_v45  ;;  %v6557_v45 = vld [vmem:[#allocation21 + $0x210] ss:$8 sps:$4 sm:$0xff]  }
0x12ca   : > { %4490 = vmatpush1.bf16.msra.mxu1 %v6557_v45 }
0x12cb   : > { %4491 = vmatprep.subr.bf16.mxu1 %v6562_v47 }
0x12cc   : > { %4271 = vmatpush1.bf16.msra.mxu0 %v5688_v48  ;;  %v4548_v48 = vld [vmem:[#allocation20 + $0x258] sm:$0xff] }
0x12cd   : > { %4272 = vmatprep.subr.bf16.mxu0 %v5691_v49  ;;  %v4549_v49 = vld [vmem:[#allocation20 + $0x278] sm:$0xff] }
0x12ce   : > { %4492 = vmatpush1.bf16.msra.mxu1 %v6560_v51 }
0x12d0   : > { %4273 = vmatpush1.bf16.msra.mxu0 %v5690_v52  ;;  %v5751_v52 = vcombine.high %v4548_v48, %v4549_v49 }
0x12d1   : > { %4274 = vmatprep.subr.bf16.mxu0 %v5693_v53  ;;  %v6565_v53 = vld [vmem:[#allocation21 + $0x234] ss:$8 sps:$4 sm:$0xff]  }
0x12d2   : > { %4493 = vmatprep.subr.bf16.mxu1 %v6565_v53 }
0x12d4   : > { %4275 = vmatpush1.bf16.msra.mxu0 %v5692_v55  ;;  %v5750_v55 = vcombine.low %v4548_v48, %v4549_v49 }
0x12d5   : > { %4276 = vmatprep.subr.bf16.mxu0 %v5695_v56  ;;  %v6563_v56 = vld [vmem:[#allocation21 + $0x230] ss:$8 sps:$4 sm:$0xff]  }
0x12d6   : > { %4494 = vmatpush1.bf16.msra.mxu1 %v6563_v56 }
0x12d7   : > { %4495 = vmatprep.subr.bf16.mxu1 %v6568_v58 }
0x12d8   : > { %4277 = vmatpush1.bf16.msra.mxu0 %v5694_v59  ;;  %v4552_v59 = vld [vmem:[#allocation20 + $0x2d8] sm:$0xff] }
0x12d9   : > { %4278 = vmatprep.subr.bf16.mxu0 %v5697_v60  ;;  %v4553_v60 = vld [vmem:[#allocation20 + $0x2f8] sm:$0xff] }
0x12da   : > { %4496 = vmatpush1.bf16.msra.mxu1 %v6566_v0 }
0x12dc   : > { %4279 = vmatpush1.bf16.msra.mxu0 %v5696_v1  ;;  %v5755_v1 = vcombine.high %v4552_v59, %v4553_v60 }
0x12dd   : > { %4280 = vmatprep.subr.bf16.mxu0 %v5699_v43  ;;  %v6571_v43 = vld [vmem:[#allocation21 + $0x254] ss:$8 sps:$4 sm:$0xff]  }
0x12de   : > { %4497 = vmatprep.subr.bf16.mxu1 %v6571_v43  ;;  %v6605_v43 = vld [vmem:[#allocation21 + $0x310] ss:$8 sps:$4 sm:$0xff]  }
0x12e0   : > { %4281 = vmatpush1.bf16.msra.mxu0 %v5698_v62  ;;  %v5754_v62 = vcombine.low %v4552_v59, %v4553_v60 }
0x12e1   : > { %4722 = vmatprep.subr.bf16.mxu0 %v5733_v3  ;;  %v6569_v3 = vld [vmem:[#allocation21 + $0x250] ss:$8 sps:$4 sm:$0xff]  }
0x12e2   : > { %4498 = vmatpush1.bf16.msra.mxu1 %v6569_v3  ;;  %v6611_v3 = vld [vmem:[#allocation21 + $0x330] ss:$8 sps:$4 sm:$0xff]  }
0x12e3   : > { %4283 = vmatmul.mubr.bf16.vlgmr.msra.gmra.mrb[36].mxu0 %v7759_v25  ;;  %4499 = vmatprep.subr.bf16.mxu1 %v6574_v5  ;;  %v6614_v5 = vld [vmem:[#allocation21 + $0x340] ss:$8 sps:$4 sm:$0xff]  }
0x12e4   : > { %4723 = vmatpush1.bf16.msra.mxu0 %v5732_v6  ;;  %4754 = vmatprep.mubr.bf16.mxu0 %v7755_v39  ;;  %v5743_v39 = vcombine.high %v4540_v22, %v4541_v23  ;;  %v4556_v6 = vld [vmem:[#allocation20 + $0x358] sm:$0xff]  ;;  %v5760_v22 = vcombine.low %v4558_v12, %v4559_v13  ;;  %v6578_v23 = vld [vmem:[#allocation21 + $0x280] ss:$8 sps:$4 sm:$0xff]   ;;  %v6628_v12 = vld [vmem:[#allocation21 + $0x384] ss:$8 sps:$4 sm:$0xff]  }
0x12e5   : > { %4724 = vmatprep.subr.bf16.mxu0 %v5735_v7  ;;  %v4557_v7 = vld [vmem:[#allocation20 + $0x378] sm:$0xff]  ;;  %v6626_v13 = vld [vmem:[#allocation21 + $0x380] ss:$8 sps:$4 sm:$0xff]  }
0x12e6   : > { %4500 = vmatpush1.bf16.msra.mxu1 %v6572_v9  ;;  %v6620_v9 = vld [vmem:[#allocation21 + $0x360] ss:$8 sps:$4 sm:$0xff]  }
0x12e8   : > { %4725 = vmatpush1.bf16.msra.mxu0 %v5734_v10  ;;  %v5759_v10 = vcombine.high %v4556_v6, %v4557_v7 }
0x12e9   : > { %4726 = vmatprep.subr.bf16.mxu0 %v5737_v11  ;;  %v6577_v11 = vld [vmem:[#allocation21 + $0x274] ss:$8 sps:$4 sm:$0xff]  }
0x12ea   : > { %4501 = vmatprep.subr.bf16.mxu1 %v6577_v11  ;;  %v6623_v11 = vld [vmem:[#allocation21 + $0x370] ss:$8 sps:$4 sm:$0xff]  }
0x12ec   : > { %4727 = vmatpush1.bf16.msra.mxu0 %v5736_v14  ;;  %v5758_v14 = vcombine.low %v4556_v6, %v4557_v7  ;;  %v6619_v6 = vld [vmem:[#allocation21 + $0x354] ss:$8 sps:$4 sm:$0xff]   ;;  %v6617_v7 = vld [vmem:[#allocation21 + $0x350] ss:$8 sps:$4 sm:$0xff]  }
0x12ed   : > { %4728 = vmatprep.subr.bf16.mxu0 %v5739_v15  ;;  %v6575_v15 = vld [vmem:[#allocation21 + $0x270] ss:$8 sps:$4 sm:$0xff]  }
0x12ee   : > { %4502 = vmatpush1.bf16.msra.mxu1 %v6575_v15  ;;  %v6629_v15 = vld [vmem:[#allocation21 + $0x390] ss:$8 sps:$4 sm:$0xff]  }
0x12ef   : > { %4503 = vmatprep.subr.bf16.mxu1 %v6580_v17  ;;  %v6632_v17 = vld [vmem:[#allocation21 + $0x3a0] ss:$8 sps:$4 sm:$0xff]  }
0x12f0   : > { %4729 = vmatpush1.bf16.msra.mxu0 %v5738_v18  ;;  %v4560_v18 = vld [vmem:[#allocation20 + $0x3d8] sm:$0xff] }
0x12f1   : > { %4730 = vmatprep.subr.bf16.mxu0 %v5741_v21  ;;  %v4561_v21 = vld [vmem:[#allocation20 + $0x3f8] sm:$0xff] }
0x12f2   : > { %v5762_v26 = vcombine.low %v4560_v18, %v4561_v21  ;;  %4504 = vmatpush1.bf16.msra.mxu1 %v6578_v23  ;;  %v6638_v23 = vld [vmem:[#allocation21 + $0x3c0] ss:$8 sps:$4 sm:$0xff]  }
0x12f4   : > { %4731 = vmatpush1.bf16.msra.mxu0 %v5740_v24  ;;  %v5763_v24 = vcombine.high %v4560_v18, %v4561_v21  ;;  %v6637_v18 = vld [vmem:[#allocation21 + $0x3b4] ss:$8 sps:$4 sm:$0xff]   ;;  %v6635_v21 = vld [vmem:[#allocation21 + $0x3b0] ss:$8 sps:$4 sm:$0xff]  }
0x12f5   : > { %4732 = vmatprep.subr.bf16.mxu0 %v5743_v39  ;;  %v6583_v39 = vld [vmem:[#allocation21 + $0x294] ss:$8 sps:$4 sm:$0xff]  }
0x12f6   : > { %4505 = vmatprep.subr.bf16.mxu1 %v6583_v39  ;;  %v6641_v39 = vld [vmem:[#allocation21 + $0x3d0] ss:$8 sps:$4 sm:$0xff]  }
0x12f7   : > { %4506 = vmatpush1.bf16.msra.mxu1 %v6581_v27  ;;  %v6644_v27 = vld [vmem:[#allocation21 + $0x3e0] ss:$8 sps:$4 sm:$0xff]  }
0x12f8   : > { %4733 = vmatpush1.bf16.msra.mxu0 %v5742_v28  ;;  %v6586_v28 = vld [vmem:[#allocation21 + $0x2a4] ss:$8 sps:$4 sm:$0xff]  }
0x12f9   : > { %4734 = vmatprep.subr.bf16.mxu0 %v5745_v32  ;;  %v6584_v32 = vld [vmem:[#allocation21 + $0x2a0] ss:$8 sps:$4 sm:$0xff]   ;;  %4507 = vmatprep.subr.bf16.mxu1 %v6586_v28  ;;  %v6649_v28 = vld [vmem:[#allocation21 + $0x3f4] ss:$8 sps:$4 sm:$0xff]  }
0x12fb   : > { %4508 = vmatpush1.bf16.msra.mxu1 %v6584_v32 }
0x12fc   : > { %4735 = vmatpush1.bf16.msra.mxu0 %v5744_v35  ;;  %4509 = vmatprep.subr.bf16.mxu1 %v6589_v34  ;;  %v6592_v35 = vld [vmem:[#allocation21 + $0x2c4] ss:$8 sps:$4 sm:$0xff]   ;;  %v6647_v34 = vld [vmem:[#allocation21 + $0x3f0] ss:$8 sps:$4 sm:$0xff]  }
0x12fd   : > { %4736 = vmatprep.subr.bf16.mxu0 %v5747_v31  ;;  %v6590_v31 = vld [vmem:[#allocation21 + $0x2c0] ss:$8 sps:$4 sm:$0xff]  }
0x12ff   : > { %4510 = vmatpush1.bf16.msra.mxu1 %v6587_v33 }
0x1300   : > { %4737 = vmatpush1.bf16.msra.mxu0 %v5746_v44  ;;  %4511 = vmatprep.subr.bf16.mxu1 %v6592_v35  ;;  %v6599_v44 = vld [vmem:[#allocation21 + $0x2f0] ss:$8 sps:$4 sm:$0xff]  }
0x1301   : > { %4738 = vmatprep.subr.bf16.mxu0 %v5749_v46 }
0x1303   : > { %4512 = vmatpush1.bf16.msra.mxu1 %v6590_v31 }
0x1304   : > { %4739 = vmatpush1.bf16.msra.mxu0 %v5748_v50  ;;  %4513 = vmatprep.subr.bf16.mxu1 %v6595_v36 }
0x1305   : > { %4740 = vmatprep.subr.bf16.mxu0 %v5751_v52 }
0x1307   : > { %4514 = vmatpush1.bf16.msra.mxu1 %v6593_v37 }
0x1308   : > { %4741 = vmatpush1.bf16.msra.mxu0 %v5750_v55  ;;  %4515 = vmatprep.subr.bf16.mxu1 %v6598_v30 }
0x1309   : > { %4742 = vmatprep.subr.bf16.mxu0 %v5753_v57 }
0x130b   : > { %4516 = vmatpush1.bf16.msra.mxu1 %v6596_v40 }
0x130c   : > { %4743 = vmatpush1.bf16.msra.mxu0 %v5752_v63  ;;  %4517 = vmatprep.subr.bf16.mxu1 %v6601_v41  ;;  %v6602_v63 = vld [vmem:[#allocation21 + $0x300] ss:$8 sps:$4 sm:$0xff]  }
0x130d   : > { %4744 = vmatprep.subr.bf16.mxu0 %v5755_v1  ;;  %v6607_v1 = vld [vmem:[#allocation21 + $0x314] ss:$8 sps:$4 sm:$0xff]  }
0x130f   : > { %4518 = vmatpush1.bf16.msra.mxu1 %v6599_v44 }
0x1310   : > { %4745 = vmatpush1.bf16.msra.mxu0 %v5754_v62  ;;  %v6613_v62 = vld [vmem:[#allocation21 + $0x334] ss:$8 sps:$4 sm:$0xff]  }
0x1311   : > { %4746 = vmatprep.subr.bf16.mxu0 %v5757_v4  ;;  %v6616_v4 = vld [vmem:[#allocation21 + $0x344] ss:$8 sps:$4 sm:$0xff]  }
0x1314   : > { %4747 = vmatpush1.bf16.msra.mxu0 %v5756_v8  ;;  %v6622_v8 = vld [vmem:[#allocation21 + $0x364] ss:$8 sps:$4 sm:$0xff]  }
0x1315   : > { %4748 = vmatprep.subr.bf16.mxu0 %v5759_v10  ;;  %v6625_v10 = vld [vmem:[#allocation21 + $0x374] ss:$8 sps:$4 sm:$0xff]  }
0x1318   : > { %4749 = vmatpush1.bf16.msra.mxu0 %v5758_v14  ;;  %v6631_v14 = vld [vmem:[#allocation21 + $0x394] ss:$8 sps:$4 sm:$0xff]  }
0x1319   : > { %4750 = vmatprep.subr.bf16.mxu0 %v5761_v16  ;;  %v6634_v16 = vld [vmem:[#allocation21 + $0x3a4] ss:$8 sps:$4 sm:$0xff]  }
0x131c   : > { %4751 = vmatpush1.bf16.msra.mxu0 %v5760_v22  ;;  %v6640_v22 = vld [vmem:[#allocation21 + $0x3c4] ss:$8 sps:$4 sm:$0xff]  }
0x131d   : > { %4752 = vmatprep.subr.bf16.mxu0 %v5763_v24  ;;  %v6643_v24 = vld [vmem:[#allocation21 + $0x3d4] ss:$8 sps:$4 sm:$0xff]  }
0x1320   : > { %4753 = vmatpush1.bf16.msra.mxu0 %v5762_v26  ;;  %v6646_v26 = vld [vmem:[#allocation21 + $0x3e4] ss:$8 sps:$4 sm:$0xff]  }
0x1323   : > { %4755 = vmatmul.mubr.bf16.vlgmr.msra.gmra.mrb[40].mxu0 %v7759_v25  ;;  %v6604_v25 = vld [vmem:[#allocation21 + $0x304] ss:$8 sps:$4 sm:$0xff]  }
0x1324   : > { %4959 = vmatprep.subr.bf16.mxu1 %v6604_v25 }
0x1376   : > { %v3850_v45 = vpop.f32.mrb[32].mxu0  ;;  %v4051_v46 = vpop.f32.mrb[32].mxu1 }
0x1377   : > { %v7769_v47 = vadd.f32 %v4051_v46, %v3850_v45  ;;  %v3852_v48 = vpop.f32.mrb[33].mxu0  ;;  %v4053_v49 = vpop.f32.mrb[33].mxu1 }
0x1378   : > { %v7771_v50 = vadd.f32 %v4053_v49, %v3852_v48  ;;  %v3854_v51 = vpop.f32.mrb[34].mxu0  ;;  %v4055_v52 = vpop.f32.mrb[34].mxu1 }
0x1379   : > { %v3855_v53 = vpop.f32.mrb[35].mxu0  ;;  %v4056_v42 = vpop.f32.mrb[35].mxu1 }
0x13b6   : > { %v4284_v54 = vpop.f32.mrb[36].mxu0 }
0x13b7   : > { %v4291_v55 = vmax.f32 %v4284_v54, 0.0  ;;  %v4286_v56 = vpop.f32.mrb[37].mxu0 }
0x13b8   : > { %v4292_v57 = vmax.f32 %v4286_v56, 0.0  ;;  %v4288_v58 = vpop.f32.mrb[38].mxu0 }
0x13b9   : > { %v4289_v59 = vpop.f32.mrb[39].mxu0  ;;  %v4293_v0 = vpack.c.bf16 %v4291_v55, %v4291_v55 }
0x13ba   : > { %v4294_v60 = vpack.c.bf16 %v4292_v57, %v4292_v57 }
0x13bc   : > { %4519 = vmatprep.mubr.bf16.mxu1 %v4294_v60 }
0x13bd   : > { %4520 = vmatmul.mubr.bf16.vlgmr.msra.gmra.mrb[36].mxu1 %v4293_v0 }
0x13be   : > { %4960 = vmatpush1.bf16.msra.mxu1 %v6602_v63 }
0x13bf   : > { %4961 = vmatprep.subr.bf16.mxu1 %v6607_v1 }
0x13c2   : > { %4962 = vmatpush1.bf16.msra.mxu1 %v6605_v43 }
0x13c3   : > { %4963 = vmatprep.subr.bf16.mxu1 %v6610_v2 }
0x13c6   : > { %4964 = vmatpush1.bf16.msra.mxu1 %v6608_v61 }
0x13c7   : > { %4965 = vmatprep.subr.bf16.mxu1 %v6613_v62 }
0x13ca   : > { %4966 = vmatpush1.bf16.msra.mxu1 %v6611_v3 }
0x13cb   : > { %4967 = vmatprep.subr.bf16.mxu1 %v6616_v4 }
0x13ce   : > { %4968 = vmatpush1.bf16.msra.mxu1 %v6614_v5 }
0x13cf   : > { %4969 = vmatprep.subr.bf16.mxu1 %v6619_v6 }
0x13d2   : > { %4970 = vmatpush1.bf16.msra.mxu1 %v6617_v7 }
0x13d3   : > { %4971 = vmatprep.subr.bf16.mxu1 %v6622_v8 }
0x13d6   : > { %4972 = vmatpush1.bf16.msra.mxu1 %v6620_v9 }
0x13d7   : > { %4973 = vmatprep.subr.bf16.mxu1 %v6625_v10 }
0x13da   : > { %4974 = vmatpush1.bf16.msra.mxu1 %v6623_v11 }
0x13db   : > { %4975 = vmatprep.subr.bf16.mxu1 %v6628_v12 }
0x13de   : > { %4976 = vmatpush1.bf16.msra.mxu1 %v6626_v13 }
0x13df   : > { %4977 = vmatprep.subr.bf16.mxu1 %v6631_v14 }
0x13e2   : > { %4978 = vmatpush1.bf16.msra.mxu1 %v6629_v15 }
0x13e3   : > { %4979 = vmatprep.subr.bf16.mxu1 %v6634_v16 }
0x13e6   : > { %4980 = vmatpush1.bf16.msra.mxu1 %v6632_v17 }
0x13e7   : > { %4981 = vmatprep.subr.bf16.mxu1 %v6637_v18 }
0x13ea   : > { %4982 = vmatpush1.bf16.msra.mxu1 %v6635_v21 }
0x13eb   : > { %4983 = vmatprep.subr.bf16.mxu1 %v6640_v22 }
0x13ee   : > { %4984 = vmatpush1.bf16.msra.mxu1 %v6638_v23 }
0x13ef   : > { %4985 = vmatprep.subr.bf16.mxu1 %v6643_v24 }
0x13f2   : > { %4986 = vmatpush1.bf16.msra.mxu1 %v6641_v39 }
0x13f3   : > { %4987 = vmatprep.subr.bf16.mxu1 %v6646_v26 }
0x13f6   : > { %v4756_v32 = vpop.f32.mrb[40].mxu0  ;;  %4988 = vmatpush1.bf16.msra.mxu1 %v6644_v27 }
0x13f7   : > { %v4763_v33 = vmax.f32 %v4756_v32, 0.0  ;;  %v4758_v35 = vpop.f32.mrb[41].mxu0  ;;  %4989 = vmatprep.subr.bf16.mxu1 %v6649_v28 }
0x13f8   : > { %v4764_v31 = vmax.f32 %v4758_v35, 0.0  ;;  %v4760_v36 = vpop.f32.mrb[42].mxu0 }
0x13f9   : > { %v4761_v37 = vpop.f32.mrb[43].mxu0  ;;  %v4765_v40 = vpack.c.bf16 %v4763_v33, %v4763_v33 }
0x13fa   : > { %v4766_v30 = vpack.c.bf16 %v4764_v31, %v4764_v31  ;;  %4990 = vmatpush1.bf16.msra.mxu1 %v6647_v34 }
0x13fc   : > { %4991 = vmatprep.mubr.bf16.mxu1 %v4766_v30 }
0x13fd   : > { %4992 = vmatmul.mubr.bf16.vlgmr.msra.gmra.mrb[40].mxu1 %v4765_v40 }
0x1490   : > { %v4521_v41 = vpop.f32.mrb[36].mxu1 }
0x1491   : > { %v4528_v44 = vadd.f32 %v4521_v41, %v7769_v47  ;;  %v4523_v25 = vpop.f32.mrb[37].mxu1 }
0x1492   : > { %v4529_v45 = vadd.f32 %v4523_v25, %v7771_v50  ;;  %v4525_v46 = vpop.f32.mrb[38].mxu1 }
0x1493   : > { %v4526_v48 = vpop.f32.mrb[39].mxu1 }
0x14d0   : > { %v4993_v49 = vpop.f32.mrb[40].mxu1 }
0x14d1   : > { %v5000_v51 = vadd.f32 %v4993_v49, %v4528_v44  ;;  %v4995_v52 = vpop.f32.mrb[41].mxu1 }
0x14d2   : > { %v5001_v53 = vadd.f32 %v4995_v52, %v4529_v45  ;;  %v4997_v42 = vpop.f32.mrb[42].mxu1 }
0x14d3   : > { %v5002_v54 = vadd.f32 %v5000_v51, %v7751_v29  ;;  %v4998_v55 = vpop.f32.mrb[43].mxu1 }
0x14d4   : > { %v5003_v56 = vadd.f32 %v5001_v53, %v7749_v38  ;;  %v5004_v38 = vld [vmem:[%s7955_s2] sm:$0x3] }
0x14d5   : > { %v5009_v57 = vmul.f32 %v5002_v54, %v5002_v54  ;;  %v5027_v62 = vrot.slane %v5004_v38, %v7688_v19  ;;  %v5031_v3 = vrot.slane %v5004_v38, %v7690_v20 }
0x14d6   : > { %v5005_v58 = vadd.f32 %v5003_v56, %v5002_v54  ;;  %v5010_v47 = vmul.f32 %v5003_v56, %v5003_v56 }
0x14d8   : > { %5006 = vadd.xlane.f32.xlu0 %v5005_v58  ;;  %v5011_v59 = vadd.f32 %v5010_v47, %v5009_v57 }
0x14da   : > { %5012 = vadd.xlane.f32.xlu1 %v5011_v59 }
0x1565   : > { %v5007_v50 = vpop.xlane.xlu0 %5006 }
0x1566   : > { %v5008_v60 = vmul.f32 0.00390625, %v5007_v50 }
0x1567   : > { %v5013_v63 = vpop.xlane.xlu1 %5012 }
0x1568   : > { %v5014_v0 = vmul.f32 0.00390625, %v5013_v63  ;;  %v5015_v1 = vmul.f32 %v5008_v60, %v5008_v60  ;;  %v5017_v29 = vsub.f32 %v5002_v54, %v5008_v60  ;;  %v5018_v61 = vsub.f32 %v5003_v56, %v5008_v60 }
0x156a   : > { %v5016_v43 = vsub.f32 %v5014_v0, %v5015_v1 }
0x156c   : > { %v5019_v2 = vadd.f32 1e-05, %v5016_v43 }
0x156e   : > { %6670 = vrsqrt.f32 %v5019_v2 }
0x1578   : > { %v6671_v4 = vpop.eup %6670 }
0x1579   : > { %v5021_v5 = vmul.f32 %v6671_v4, %v5017_v29  ;;  %v5022_v6 = vmul.f32 %v6671_v4, %v5018_v61 }
0x157b   : > { %v5034_v7 = vmul.f32 %v5027_v62, %v5021_v5  ;;  %v5035_v8 = vmul.f32 %v5031_v3, %v5022_v6 }
0x157d   : > { %5036 = vst [vmem:[%s7636_s0] sm:$0xff] %v5034_v7  ;;  %5037 = vst [vmem:[%s7636_s0 + $0x8] sm:$0xff] %v5035_v8 }
0x157e   : > { %6969 = shalt.err (!%p6966_p12)
}
0x157f   : > { %s6970_s5 = scalar_lea.hbm %s7788_s6, 256  ;;  %s6974_s28 = scalar_lea.hbm %s7958_s12, 1024 }
0x1580   : > { %p6971_p13 = scmp.ne.s32.totalorder %s7788_s6, %s6970_s5  ;;  %p6975_p2 = scmp.lt.u32.totalorder %s7788_s6, %s7958_s12 }
0x1581   : > { %p6976_p3 = scmp.lt.u32.totalorder %s6974_s28, %s6970_s5  ;;  %p6978_p7 = scmp.lt.u32.totalorder %s6970_s5, %s7788_s6 }
0x1582   : > { %p6972_p10 = pnand %p6971_p13, %p7959_p1 }
0x1583   : > { %p6977_p4 = por %p6976_p3, %p6975_p2 }
0x1584   : > { %p6973_p0 = pneg %p6972_p10 }
0x1585   : > { %p6979_p9 = por %p6978_p7, %p6977_p4 }
0x1587   : > { %p6980_p6 = pnand %p6979_p9, %p6973_p0 }
0x1589   : > { %6983 = shalt.err (!%p6980_p6)
}
0x158a   : > { %5905 = dma.vmem_to_hbm [thread:$0]  (%p7959_p1), %s7790_s23, 256, %s7788_s6, %s5039_s8  }
0x158b PF: > { %s7960_s2 = sld [smem:[#allocation32_spill]]  ;;  %p5960_p11 = scmp.ge.s32.totalorder %s7102_s18, 2 }
0x158c   : > { %p7961_p5 = scmp.ne.s32.totalorder %s7932_s1, 0 }
0x158e   : > { %p5940_p8 = pnand %p5960_p11, %p7961_p5 }
0x1591   : > { %s5067_s14 = sand.u32 1, %s7960_s2  }
0x1592   : > { %s5068_s15 = scalar_lea.sflag [#allocation8], %s5067_s14 }
0x1593   : > { %7057 = dma.done.wait (!%p5940_p8), %s5068_s15, 256  }
0x1594   : > { %7059 = vsyncadd (!%p5940_p8), %s5068_s15, 4294967040  ;;  %s36_s18 = sadd.s32 1, %s7102_s18   ;;  %s7962_s25 = sld [smem:[#allocation33_spill]] }
0x1595   : > { %p33_p12 = scmp.ge.s32.totalorder %s36_s18, 6   ;;  %s7963_s14 = sld [smem:[#allocation36_spill]] }
0x1596   : > { %s7964_s15 = sld [smem:[#allocation37_spill]]  ;;  %s7965_s16 = sld [smem:[#allocation39_spill]] }
0x1597   : > { %s7966_s17 = sld [smem:[#allocation40_spill]]  ;;  %s7967_s26 = smov %s7070_s27 }
0x1598   : > { %s7968_s27 = smov %s7499_s13  ;;  %s7969_s28 = smov %s7078_s29 }
0x1599   : > { %s7970_s29 = smov %s7082_s30  ;;  %s7971_s30 = smov %s7496_s22 }
0x159a   :  { %35 = sbr.rel (!%p33_p12) target bundleno = 30 (0x1e), region = 167 }
0x15a1   :  { %5073 = vsyncpa [#allocation7], 1 }
0x15a2   :  { %5075 = vsyncpa [#allocation7 + $0x1], 1 }
0x15a3   :  { %5076 = vsyncpa [#allocation10], 1 }
0x15a4   :  { %5078 = vsyncpa [#allocation10 + $0x1], 1 }
0x15a5   :  { %5079 = vsyncpa [#allocation13], 1 }
0x15a6   :  { %5080 = vsyncpa [#allocation16], 1 }
0x15a7   :  { %5081 = vsyncpa [#allocation19], 1 }
0x15a8   :  { %5082 = vsyncpa [#allocation22], 1 }
0x15a9   :  { %5083 = vsyncpa [#allocation8], 1 }
0x15aa   :  { %5085 = vsyncpa [#allocation8 + $0x1], 1 }

// kernel: tpu_custom_call.1
= control target key start
LH: loop header
LB: loop body
LE: loop exit
PB: predicated region body
PF: predicated region fallthrough
CT: control target
= control target key end

     0   :  { %s7854_s0 = inlined_call_operand.hbm [shape: bf16[2,16,256], index: 0, kind: input, shape index: {}]   ;;  %s7855_s1 = inlined_call_operand.hbm [shape: bf16[2,16,256], index: 1, kind: input, shape index: {}]   ;;  %s7856_s2 = inlined_call_operand.hbm [shape: bf16[256,256], index: 2, kind: input, shape index: {}]   ;;  %s7857_s3 = inlined_call_operand.hbm [shape: bf16[256,512], index: 3, kind: input, shape index: {}]   ;;  %s7858_s4 = inlined_call_operand.hbm [shape: bf16[256,256], index: 4, kind: input, shape index: {}]   ;;  %s7859_s5 = inlined_call_operand.vmem [shape: f32[1,256], index: 5, kind: input, shape index: {}]   ;;  %s7860_s6 = inlined_call_operand.hbm [shape: bf16[256,256], index: 6, kind: input, shape index: {}]   ;;  %s7861_s7 = inlined_call_operand.hbm [shape: bf16[256,512], index: 7, kind: input, shape index: {}]   ;;  %s7862_s8 = inlined_call_operand.hbm [shape: bf16[256,256], index: 8, kind: input, shape index: {}]   ;;  %s7863_s9 = inlined_call_operand.vmem [shape: f32[1,256], index: 9, kind: input, shape index: {}]   ;;  %s7864_s10 = inlined_call_operand.hbm [shape: bf16[256,1024], index: 10, kind: input, shape index: {}]   ;;  %s7865_s11 = inlined_call_operand.hbm [shape: bf16[1024,256], index: 11, kind: input, shape index: {}]   ;;  %s7866_s12 = inlined_call_operand.vmem [shape: f32[1,256], index: 12, kind: input, shape index: {}]   ;;  %s7867_s13 = inlined_call_operand.hbm [shape: f32[2,16,256], index: 13, kind: output, shape index: {}]  }
   0x1   :  { %7888 = sst [smem:[#allocation41_spill]] %s7854_s0 }
   0x2   :  { %7889 = sst [smem:[#allocation42_spill]] %s7855_s1 }
   0x3   :  { %7890 = sst [smem:[#allocation43_spill]] %s7856_s2 }
   0x4   :  { %7891 = sst [smem:[#allocation44_spill]] %s7857_s3 }
   0x5   :  { %7892 = sst [smem:[#allocation45_spill]] %s7858_s4 }
   0x6   :  { %7893 = sst [smem:[#allocation46_spill]] %s7859_s5 }
   0x7   :  { %7894 = sst [smem:[#allocation47_spill]] %s7860_s6 }
   0x8   :  { %7895 = sst [smem:[#allocation48_spill]] %s7861_s7 }
   0x9   :  { %7896 = sst [smem:[#allocation49_spill]] %s7862_s8 }
   0xa   :  { %7897 = sst [smem:[#allocation50_spill]] %s7863_s9 }
   0xb   :  { %7898 = sst [smem:[#allocation51_spill]] %s7864_s10 }
   0xc   :  { %7899 = sst [smem:[#allocation52_spill]] %s7865_s11 }
   0xd   :  { %7900 = sst [smem:[#allocation53_spill]] %s7866_s12 }
   0xe   :  { %7901 = sst [smem:[#allocation54_spill]] %s7867_s13 }
   0xf   :  { %18 = vsyncpa [#allocation7], 0 }
  0x10   :  { %20 = vsyncpa [#allocation7 + $0x1], 0 }
  0x11   :  { %21 = vsyncpa [#allocation10], 0 }
  0x12   :  { %23 = vsyncpa [#allocation10 + $0x1], 0 }
  0x13   :  { %24 = vsyncpa [#allocation13], 0 }
  0x14   :  { %25 = vsyncpa [#allocation16], 0 }
  0x15   :  { %26 = vsyncpa [#allocation19], 0 }
  0x16   :  { %27 = vsyncpa [#allocation22], 0 }
  0x17   :  { %28 = vsyncpa [#allocation8], 0 }
  0x18   :  { %30 = vsyncpa [#allocation8 + $0x1], 0  ;;  %s7194_s25 = smov 0   ;;  %s7196_s26 = smov 0  }
  0x19   :  { %s7198_s27 = smov 0   ;;  %s7200_s28 = smov 0  }
  0x1a   :  { %s7202_s29 = smov 0   ;;  %s7204_s30 = smov 0  }
  0x1b   :  { %s7206_s14 = smov 0   ;;  %s7208_s15 = smov 0  }
  0x1c   :  { %s7210_s16 = smov 0   ;;  %s7212_s17 = smov 0  }
  0x1d   :  { %s7214_s18 = smov 0  }
  0x1e LB: > { %7902 = sst [smem:[#allocation32_spill]] %s7062_s25  ;;  %s7250_s19 = sadd.s32 4294967295, %s7102_s18   ;;  %s7102_s18 = sphi %s7214_s18, %s36_s18   ;;  %s7098_s17 = sphi %s7212_s17, %s7966_s17   ;;  %s7094_s16 = sphi %s7210_s16, %s7965_s16   ;;  %s7090_s15 = sphi %s7208_s15, %s7964_s15   ;;  %s7086_s14 = sphi %s7206_s14, %s7963_s14   ;;  %s7082_s30 = sphi %s7204_s30, %s7971_s30   ;;  %s7078_s29 = sphi %s7202_s29, %s7970_s29   ;;  %s7074_s28 = sphi %s7200_s28, %s7969_s28   ;;  %s7070_s27 = sphi %s7198_s27, %s7968_s27   ;;  %s7066_s26 = sphi %s7196_s26, %s7967_s26   ;;  %s7062_s25 = sphi %s7194_s25, %s7962_s25  }
  0x1f   : > { %7903 = sst [smem:[#allocation33_spill]] %s7066_s26  ;;  %p5242_p0 = scmp.ge.s32.totalorder %s7102_s18, 1 }
  0x20   : > { %7904 = sst [smem:[#allocation34_spill]] %s7086_s14  ;;  %p7871_p1 = scmp.eq.s32.totalorder %s7250_s19, 0 }
  0x21   : > { %7905 = sst [smem:[#allocation35_spill]] %s7090_s15  ;;  %p364_p2 = scmp.lt.s32.totalorder %s7102_s18, 5 }
  0x22   : > { %7906 = sst [smem:[#allocation36_spill]] %s7094_s16  ;;  %s7104_s21 = smov [#allocation11]  }
  0x23   : > { %7907 = sst [smem:[#allocation37_spill]] %s7098_s17  ;;  %p7255_p3 = pnand %p5242_p0, %p364_p2 }
  0x24   : > { %s376_s22 = sshll.u32 %s7104_s21, 4  ;;  %s7105_s24 = smov [#allocation12]   ;;  %s377_s22 = int_to_ptr.vmem [resolvable:$true] %s376_s22 }
  0x25   : > { %s7908_s20 = scalar_select %p7255_p3, 1, 0 }
  0x26   : > { %p5907_p4 = pneg %p7255_p3  ;;  %s389_s13 = sshll.u32 %s7105_s24, 4  ;;  %s7267_s13 = int_to_ptr.vmem [resolvable:$true] %s389_s13 }
  0x27   : > { %7909 = sst [smem:[#allocation38_spill]] %s7908_s20  ;;  %s7911_s2 = sld [smem:[#allocation43_spill]] }
  0x28   : > { %p7263_p5 = pnand %p5907_p4, %p7871_p1 }
  0x2a   : > { %p7277_p7 = pneg %p7263_p5 }
  0x2d   : > { %s6672_s9 = scalar_lea.hbm %s7911_s2, 4096 }
  0x2e   : > { %p6673_p6 = scmp.ne.s32.totalorder %s7911_s2, %s6672_s9  ;;  %p6679_p10 = scmp.lt.u32.totalorder %s6672_s9, %s7911_s2 }
  0x30   : > { %p6675_p8 = pnand %p7277_p7, %p6673_p6 }
  0x32   : > { %p6676_p9 = pneg %p6675_p8 }
  0x34   : > { %p6681_p11 = pnand %p6679_p10, %p6676_p9 }
  0x36   : > { %6684 = shalt.err (!%p6681_p11)
}
  0x37   : > { %s6685_s12 = scalar_lea.vmem %s377_s22, 4096  ;;  %p6693_p2 = scmp.lt.s32.totalorder %s377_s22, %s377_s22 }
  0x38   : > { %p6686_p12 = scmp.ne.s32.totalorder %s377_s22, %s6685_s12  ;;  %p6694_p4 = scmp.lt.s32.totalorder %s6685_s12, %s6685_s12 }
  0x3a   : > { %p6688_p13 = pnand %p6686_p12, %p7277_p7  ;;  %p6695_p1 = por %p6694_p4, %p6693_p2 }
  0x3c   : > { %p6689_p0 = pneg %p6688_p13 }
  0x3e   : > { %p6696_p3 = pnand %p6695_p1, %p6689_p0 }
  0x40   : > { %6699 = shalt.err (!%p6696_p3)
}
  0x41   : > { %s7877_s5 = smov 128   ;;  %s7879_s14 = smov 8  }
  0x42   : > { %5910 = dma.hbm_to_vmem [thread:$0]  (!%p7263_p5), %s7911_s2, 4096, %s377_s22, [#allocation10], %s7877_s5, %s7877_s5, %s7879_s14  }
  0x43   : > { %s7913_s3 = sld [smem:[#allocation44_spill]] }
  0x49   : > { %s6700_s1 = scalar_lea.hbm %s7913_s3, 8192 }
  0x4a   : > { %p6701_p1 = scmp.ne.s32.totalorder %s7913_s3, %s6700_s1  ;;  %p6707_p8 = scmp.lt.u32.totalorder %s6700_s1, %s7913_s3 }
  0x4c   : > { %p6703_p3 = pnand %p6701_p1, %p7277_p7 }
  0x4e   : > { %p6704_p6 = pneg %p6703_p3 }
  0x50   : > { %p6709_p9 = pnand %p6707_p8, %p6704_p6 }
  0x52   : > { %6712 = shalt.err (!%p6709_p9)
}
  0x53   : > { %s6713_s22 = scalar_lea.vmem %s7267_s13, 8192  ;;  %p6721_p13 = scmp.lt.s32.totalorder %s7267_s13, %s7267_s13 }
  0x54   : > { %p6714_p10 = scmp.ne.s32.totalorder %s7267_s13, %s6713_s22  ;;  %p6722_p0 = scmp.lt.s32.totalorder %s6713_s22, %s6713_s22 }
  0x56   : > { %p6716_p11 = pnand %p6714_p10, %p7277_p7  ;;  %p6723_p2 = por %p6722_p0, %p6721_p13 }
  0x58   : > { %p6717_p12 = pneg %p6716_p11 }
  0x5a   : > { %p6724_p4 = pnand %p6723_p2, %p6717_p12 }
  0x5c   : > { %6727 = shalt.err (!%p6724_p4)
}
  0x5d   : > { %s7881_s0 = smov 256   ;;  %s7882_s1 = smov 16  }
  0x5e   : > { %5913 = dma.hbm_to_vmem [thread:$0]  (!%p7263_p5), %s7913_s3, 8192, %s7267_s13, [#allocation13], %s7881_s0, %s7881_s0, %s7882_s1  }
  0x5f   : > { %s7110_s9 = smov [#allocation15]   ;;  %s7111_s20 = smov [#allocation18]  }
  0x60   : > { %s418_s15 = sshll.u32 %s7110_s9, 4  ;;  %s444_s24 = sshll.u32 %s7111_s20, 4  ;;  %s419_s15 = int_to_ptr.vmem [resolvable:$true] %s418_s15  ;;  %s7322_s24 = int_to_ptr.vmem [resolvable:$true] %s444_s24 }
  0x61   : > { %s7914_s6 = sld [smem:[#allocation47_spill]] }
  0x67   : > { %s6728_s5 = scalar_lea.hbm %s7914_s6, 4096 }
  0x68   : > { %p6729_p1 = scmp.ne.s32.totalorder %s7914_s6, %s6728_s5  ;;  %p6735_p8 = scmp.lt.u32.totalorder %s6728_s5, %s7914_s6 }
  0x6a   : > { %p6731_p3 = pnand %p6729_p1, %p7277_p7 }
  0x6c   : > { %p6732_p6 = pneg %p6731_p3 }
  0x6e   : > { %p6737_p9 = pnand %p6735_p8, %p6732_p6 }
  0x70   : > { %6740 = shalt.err (!%p6737_p9)
}
  0x71   : > { %s6741_s26 = scalar_lea.vmem %s419_s15, 4096  ;;  %p6749_p13 = scmp.lt.s32.totalorder %s419_s15, %s419_s15 }
  0x72   : > { %p6742_p10 = scmp.ne.s32.totalorder %s419_s15, %s6741_s26  ;;  %p6750_p0 = scmp.lt.s32.totalorder %s6741_s26, %s6741_s26 }
  0x74   : > { %p6744_p11 = pnand %p6742_p10, %p7277_p7  ;;  %p6751_p2 = por %p6750_p0, %p6749_p13 }
  0x76   : > { %p6745_p12 = pneg %p6744_p11 }
  0x78   : > { %p6752_p4 = pnand %p6751_p2, %p6745_p12 }
  0x7a   : > { %6755 = shalt.err (!%p6752_p4)
}
  0x7b   : > { %s7915_s2 = smov 8   ;;  %s7916_s14 = smov 128  }
  0x7c   : > { %5919 = dma.hbm_to_vmem [thread:$0]  (!%p7263_p5), %s7914_s6, 4096, %s419_s15, [#allocation16], %s7916_s14, %s7916_s14, %s7915_s2  }
  0x7d   : > { %s7917_s8 = sld [smem:[#allocation49_spill]] }
  0x83   : > { %s6756_s22 = scalar_lea.hbm %s7917_s8, 4096 }
  0x84   : > { %p6757_p1 = scmp.ne.s32.totalorder %s7917_s8, %s6756_s22  ;;  %p6763_p8 = scmp.lt.u32.totalorder %s6756_s22, %s7917_s8 }
  0x86   : > { %p6759_p3 = pnand %p6757_p1, %p7277_p7 }
  0x88   : > { %p6760_p6 = pneg %p6759_p3 }
  0x8a   : > { %p6765_p9 = pnand %p6763_p8, %p6760_p6 }
  0x8c   : > { %6768 = shalt.err (!%p6765_p9)
}
  0x8d   : > { %s6769_s15 = scalar_lea.vmem %s7322_s24, 4096  ;;  %p6777_p13 = scmp.lt.s32.totalorder %s7322_s24, %s7322_s24 }
  0x8e   : > { %p6770_p10 = scmp.ne.s32.totalorder %s7322_s24, %s6769_s15  ;;  %p6778_p0 = scmp.lt.s32.totalorder %s6769_s15, %s6769_s15 }
  0x90   : > { %p6772_p11 = pnand %p6770_p10, %p7277_p7  ;;  %p6779_p2 = por %p6778_p0, %p6777_p13 }
  0x92   : > { %p6773_p12 = pneg %p6772_p11 }
  0x94   : > { %p6780_p4 = pnand %p6779_p2, %p6773_p12 }
  0x96   : > { %6783 = shalt.err (!%p6780_p4)
}
  0x97   : > { %5925 = dma.hbm_to_vmem [thread:$0]  (!%p7263_p5), %s7917_s8, 4096, %s7322_s24, [#allocation19], %s7916_s14, %s7916_s14, %s7915_s2  }
  0x98   : > { %s7112_s5 = smov [#allocation14]   ;;  %s7113_s12 = smov [#allocation17]  }
  0x99   : > { %s402_s20 = sshll.u32 %s7112_s5, 4  ;;  %s431_s22 = sshll.u32 %s7113_s12, 4  ;;  %s403_s20 = int_to_ptr.vmem [resolvable:$true] %s402_s20  ;;  %s7371_s22 = int_to_ptr.vmem [resolvable:$true] %s431_s22 }
  0x9a   : > { %s7918_s4 = sld [smem:[#allocation45_spill]] }
  0xa0   : > { %s6784_s26 = scalar_lea.hbm %s7918_s4, 4096 }
  0xa1   : > { %p6785_p1 = scmp.ne.s32.totalorder %s7918_s4, %s6784_s26  ;;  %p6791_p8 = scmp.lt.u32.totalorder %s6784_s26, %s7918_s4 }
  0xa3   : > { %p6787_p3 = pnand %p6785_p1, %p7277_p7 }
  0xa5   : > { %p6788_p6 = pneg %p6787_p3 }
  0xa7   : > { %p6793_p9 = pnand %p6791_p8, %p6788_p6 }
  0xa9   : > { %6796 = shalt.err (!%p6793_p9)
}
  0xaa   : > { %s6797_s9 = scalar_lea.vmem %s403_s20, 4096  ;;  %p6805_p13 = scmp.lt.s32.totalorder %s403_s20, %s403_s20 }
  0xab   : > { %p6798_p10 = scmp.ne.s32.totalorder %s403_s20, %s6797_s9  ;;  %p6806_p0 = scmp.lt.s32.totalorder %s6797_s9, %s6797_s9 }
  0xad   : > { %p6800_p11 = pnand %p6798_p10, %p7277_p7  ;;  %p6807_p2 = por %p6806_p0, %p6805_p13 }
  0xaf   : > { %p6801_p12 = pneg %p6800_p11 }
  0xb1   : > { %p6808_p4 = pnand %p6807_p2, %p6801_p12 }
  0xb3   : > { %6811 = shalt.err (!%p6808_p4)
}
  0xb4   : > { %5916 = dma.hbm_to_vmem [thread:$0]  (!%p7263_p5), %s7918_s4, 4096, %s403_s20, [#allocation13], %s7916_s14, %s7916_s14, %s7915_s2  }
  0xb5   : > { %s7919_s7 = sld [smem:[#allocation48_spill]] }
  0xbb   : > { %s6812_s13 = scalar_lea.hbm %s7919_s7, 8192 }
  0xbc   : > { %p6813_p1 = scmp.ne.s32.totalorder %s7919_s7, %s6812_s13  ;;  %p6819_p8 = scmp.lt.u32.totalorder %s6812_s13, %s7919_s7 }
  0xbe   : > { %p6815_p3 = pnand %p6813_p1, %p7277_p7 }
  0xc0   : > { %p6816_p6 = pneg %p6815_p3 }
  0xc2   : > { %p6821_p9 = pnand %p6819_p8, %p6816_p6 }
  0xc4   : > { %6824 = shalt.err (!%p6821_p9)
}
  0xc5   : > { %s6825_s20 = scalar_lea.vmem %s7371_s22, 8192  ;;  %p6833_p13 = scmp.lt.s32.totalorder %s7371_s22, %s7371_s22 }
  0xc6   : > { %p6826_p10 = scmp.ne.s32.totalorder %s7371_s22, %s6825_s20  ;;  %p6834_p0 = scmp.lt.s32.totalorder %s6825_s20, %s6825_s20 }
  0xc8   : > { %p6828_p11 = pnand %p6826_p10, %p7277_p7  ;;  %p6835_p2 = por %p6834_p0, %p6833_p13 }
  0xca   : > { %p6829_p12 = pneg %p6828_p11 }
  0xcc   : > { %p6836_p4 = pnand %p6835_p2, %p6829_p12 }
  0xce   : > { %6839 = shalt.err (!%p6836_p4)
}
  0xcf   : > { %s7920_s9 = smov 16   ;;  %s7921_s1 = smov 256  }
  0xd0   : > { %5922 = dma.hbm_to_vmem [thread:$0]  (!%p7263_p5), %s7919_s7, 8192, %s7371_s22, [#allocation16], %s7921_s1, %s7921_s1, %s7920_s9  }
  0xd1   : > { %s7114_s25 = smov [#allocation20]   ;;  %s7922_s10 = sld [smem:[#allocation51_spill]] }
  0xd2   : > { %s460_s13 = sshll.u32 %s7114_s25, 4  ;;  %s461_s13 = int_to_ptr.vmem [resolvable:$true] %s460_s13 }
  0xd7   : > { %s6840_s0 = scalar_lea.hbm %s7922_s10, 16384 }
  0xd8   : > { %p6841_p1 = scmp.ne.s32.totalorder %s7922_s10, %s6840_s0  ;;  %p6847_p8 = scmp.lt.u32.totalorder %s6840_s0, %s7922_s10 }
  0xda   : > { %p6843_p3 = pnand %p6841_p1, %p7277_p7 }
  0xdc   : > { %p6844_p6 = pneg %p6843_p3 }
  0xde   : > { %p6849_p9 = pnand %p6847_p8, %p6844_p6 }
  0xe0   : > { %6852 = shalt.err (!%p6849_p9)
}
  0xe1   : > { %s6853_s22 = scalar_lea.vmem %s461_s13, 16384  ;;  %p6861_p13 = scmp.lt.s32.totalorder %s461_s13, %s461_s13 }
  0xe2   : > { %p6854_p10 = scmp.ne.s32.totalorder %s461_s13, %s6853_s22  ;;  %p6862_p0 = scmp.lt.s32.totalorder %s6853_s22, %s6853_s22 }
  0xe4   : > { %p6856_p11 = pnand %p6854_p10, %p7277_p7  ;;  %p6863_p2 = por %p6862_p0, %p6861_p13 }
  0xe6   : > { %p6857_p12 = pneg %p6856_p11 }
  0xe8   : > { %p6864_p4 = pnand %p6863_p2, %p6857_p12 }
  0xea   : > { %6867 = shalt.err (!%p6864_p4)
}
  0xeb   : > { %s7115_s9 = smov 512   ;;  %s7116_s1 = smov 32  }
  0xec   : > { %5928 = dma.hbm_to_vmem [thread:$0]  (!%p7263_p5), %s7922_s10, 16384, %s461_s13, [#allocation19], %s7115_s9, %s7115_s9, %s7116_s1  }
  0xed   : > { %s7117_s5 = smov [#allocation21]   ;;  %s7923_s11 = sld [smem:[#allocation52_spill]] }
  0xee   : > { %s473_s12 = sshll.u32 %s7117_s5, 4  ;;  %s474_s12 = int_to_ptr.vmem [resolvable:$true] %s473_s12 }
  0xf3   : > { %s6868_s15 = scalar_lea.hbm %s7923_s11, 16384 }
  0xf4   : > { %p6869_p1 = scmp.ne.s32.totalorder %s7923_s11, %s6868_s15  ;;  %p6875_p8 = scmp.lt.u32.totalorder %s6868_s15, %s7923_s11 }
  0xf6   : > { %p6871_p3 = pnand %p6869_p1, %p7277_p7 }
  0xf8   : > { %p6872_p6 = pneg %p6871_p3 }
  0xfa   : > { %p6877_p9 = pnand %p6875_p8, %p6872_p6 }
  0xfc   : > { %6880 = shalt.err (!%p6877_p9)
}
  0xfd   : > { %s6881_s13 = scalar_lea.vmem %s474_s12, 16384  ;;  %p6889_p13 = scmp.lt.s32.totalorder %s474_s12, %s474_s12 }
  0xfe   : > { %p6882_p10 = scmp.ne.s32.totalorder %s474_s12, %s6881_s13  ;;  %p6890_p0 = scmp.lt.s32.totalorder %s6881_s13, %s6881_s13 }
 0x100   : > { %p6884_p11 = pnand %p6882_p10, %p7277_p7  ;;  %p6891_p2 = por %p6890_p0, %p6889_p13 }
 0x102   : > { %p6885_p12 = pneg %p6884_p11 }
 0x104   : > { %p6892_p4 = pnand %p6891_p2, %p6885_p12 }
 0x106   : > { %6895 = shalt.err (!%p6892_p4)
}
 0x107   : > { %5931 = dma.hbm_to_vmem [thread:$0]  (!%p7263_p5), %s7923_s11, 16384, %s474_s12, [#allocation22], %s7916_s14, %s7916_s14, %s7915_s2  }
 0x108   : > { %s5241_s23 = sadd.s32 4294967294, %s7102_s18   ;;  %s7924_s21 = sld [smem:[#allocation33_spill]] }
 0x109   : > { %s45_s3 = sadd.s32 1, %s7094_s16  ;;  %s48_s4 = sadd.s32 1, %s7098_s17 }
 0x10a   : > { %p46_p7 = scmp.ge.s32.totalorder %s45_s3, 2  ;;  %s55_s5 = sadd.s32 1, %s7082_s30 }
 0x10b   : > { %p62_p1 = scmp.ne.s32.totalorder %s7082_s30, %s7078_s29  ;;  %p63_p3 = scmp.eq.s32.totalorder %s7102_s18, 0 }
 0x10c   : > { %s7973_s3 = smov (%p46_p7, %s45_s3), 0  ;;  %s7975_s4 = smov (!%p46_p7, %s48_s4), %s7098_s17 }
 0x10d   : > { %7925 = sst [smem:[#allocation39_spill]] %s7973_s3  ;;  %p68_p6 = scmp.ne.s32.totalorder %s7078_s29, %s7074_s28 }
 0x10e   : > { %s7926_s12 = sld [smem:[#allocation32_spill]]  ;;  %p50_p5 = scmp.ge.s32.totalorder %s7975_s4, 2 }
 0x10f   : > { %s336_s25 = ssub.s32 %s7094_s16, %s7973_s3  ;;  %p7473_p8 = por %p63_p3, %p62_p1 }
 0x110   : > { %p7928_p9 = scmp.eq.s32.totalorder %s7250_s19, 0  ;;  %s7977_s4 = smov (%p50_p5, %s7975_s4), 0 }
 0x111   : > { %7930 = sst [smem:[#allocation40_spill]] %s7977_s4  ;;  %s340_s0 = sadd.s32 1, %s7070_s27 }
 0x112   : > { %p7479_p10 = por %p7928_p9, %p68_p6  ;;  %p350_p11 = scmp.ne.s32.totalorder %s7070_s27, %s7924_s21 }
 0x113   : > { %s52_s28 = ssub.s32 %s7098_s17, %s7977_s4  ;;  %p351_p12 = scmp.eq.s32.totalorder %s7250_s19, 3 }
 0x114   : > { %p53_p13 = scmp.eq.s32.totalorder %s52_s28, 0  ;;  %s337_s24 = sor.u32 %s336_s25, %s52_s28 }
 0x115   : > { %p338_p0 = scmp.eq.s32.totalorder %s337_s24, 0  ;;  %p7491_p2 = por %p351_p12, %p350_p11 }
 0x116   : > { %s7496_s22 = scalar_select %p53_p13, %s7082_s30, %s55_s5  }
 0x117   : > { %s7931_s20 = scalar_select %p7491_p2, 1, 0 }
 0x118   : > { %s7499_s13 = scalar_select %p338_p0, %s7070_s27, %s340_s0  }
 0x119   : > { %p356_p4 = scmp.ne.s32.totalorder %s7924_s21, %s7926_s12  ;;  %p357_p7 = scmp.eq.s32.totalorder %s5241_s23, 3 }
 0x11a   : > { %p5951_p1 = scmp.lt.s32.totalorder %s7102_s18, 4  ;;  %s490_s9 = sand.u32 1, %s7082_s30  }
 0x11b   : > { %p7505_p3 = por %p357_p7, %p356_p4  ;;  %s7509_s6 = sshll.u32 %s490_s9, 4 }
 0x11c   : > { %s5802_s25 = sshll.u32 %s7098_s17, 8  ;;  %s7933_s7 = sld [smem:[#allocation41_spill]] }
 0x11d   : > { %s7932_s1 = scalar_select %p7505_p3, 1, 0 }
 0x11e   : > { %s494_s23 = scalar_lea.vmem [#allocation6], %s7509_s6  ;;  %p7520_p6 = pnand %p5951_p1, %p7473_p8 }
 0x11f   : > { %s501_s21 = sshll.u32 %s494_s23, 4  ;;  %s7935_s28 = sld [smem:[#allocation42_spill]]  ;;  %s7524_s21 = int_to_ptr.vmem [resolvable:$true] %s501_s21 }
 0x120   : > { %s7531_s11 = scalar_lea.sflag [#allocation7], %s490_s9  ;;  %p6898_p9 = pneg %p7520_p6 }
 0x122   : > { %s7515_s8 = scalar_lea.hbm %s7933_s7, %s5802_s25  ;;  %s6901_s3 = scalar_lea.hbm %s7933_s7, 512 }
 0x123   : > { %s6896_s4 = scalar_lea.hbm %s7515_s8, 256  ;;  %p6902_p12 = scmp.lt.u32.totalorder %s7515_s8, %s7933_s7 }
 0x124   : > { %p6897_p5 = scmp.ne.s32.totalorder %s7515_s8, %s6896_s4  ;;  %p6903_p13 = scmp.lt.u32.totalorder %s6901_s3, %s6896_s4 }
 0x125   : > { %s7936_s24 = smov %s7935_s28  ;;  %s7529_s10 = scalar_lea.hbm %s7935_s28, %s5802_s25 }
 0x126   : > { %p6899_p8 = pnand %p6898_p9, %p6897_p5  ;;  %p6904_p0 = por %p6903_p13, %p6902_p12 }
 0x127   : > { %p6905_p4 = scmp.lt.u32.totalorder %s6896_s4, %s7515_s8 }
 0x128   : > { %p6900_p11 = pneg %p6899_p8 }
 0x129   : > { %p6906_p7 = por %p6905_p4, %p6904_p0 }
 0x12b   : > { %p6907_p1 = pnand %p6906_p7, %p6900_p11 }
 0x12d   : > { %6910 = shalt.err (!%p6907_p1)
}
 0x12e   : > { %s6911_s9 = scalar_lea.vmem %s7524_s21, 256  ;;  %s7118_s25 = smov [#allocation6]  }
 0x12f   : > { %p6912_p5 = scmp.ne.s32.totalorder %s7524_s21, %s6911_s9  ;;  %s6916_s12 = sshll.u32 %s7118_s25, 4  ;;  %s6917_s12 = int_to_ptr.vmem [resolvable:$false] %s6916_s12 }
 0x130   : > { %s6918_s16 = scalar_lea.vmem %s6917_s12, 512  ;;  %p6919_p2 = scmp.lt.s32.totalorder %s7524_s21, %s6917_s12 }
 0x131   : > { %p6914_p8 = pnand %p6912_p5, %p6898_p9  ;;  %p6920_p12 = scmp.lt.s32.totalorder %s6918_s16, %s6911_s9 }
 0x133   : > { %p6915_p3 = pneg %p6914_p8  ;;  %p6921_p13 = por %p6920_p12, %p6919_p2 }
 0x135   : > { %p6922_p0 = pnand %p6921_p13, %p6915_p3 }
 0x137   : > { %6925 = shalt.err (!%p6922_p0)
}
 0x138   : > { %5935 = dma.hbm_to_vmem [thread:$0]  (!%p7520_p6), %s7515_s8, 256, %s7524_s21, %s7531_s11, %s7916_s14, %s7916_s14, %s7915_s2  }
 0x139   : > { %s515_s17 = scalar_lea.vmem [#allocation9], %s7509_s6  ;;  %s511_s4 = sand.u32 1, %s7102_s18  }
 0x13a   : > { %s522_s3 = sshll.u32 %s515_s17, 4  ;;  %s7566_s0 = scalar_lea.sflag [#allocation10], %s511_s4  ;;  %s7564_s3 = int_to_ptr.vmem [resolvable:$true] %s522_s3 }
 0x13b   : > { %s6926_s28 = scalar_lea.hbm %s7529_s10, 256  ;;  %s6931_s9 = scalar_lea.hbm %s7936_s24, 512 }
 0x13c   : > { %p6927_p2 = scmp.ne.s32.totalorder %s7529_s10, %s6926_s28  ;;  %p6932_p4 = scmp.lt.u32.totalorder %s7529_s10, %s7936_s24 }
 0x13d   : > { %p6933_p7 = scmp.lt.u32.totalorder %s6931_s9, %s6926_s28  ;;  %p6935_p5 = scmp.lt.u32.totalorder %s6926_s28, %s7529_s10 }
 0x13e   : > { %p6929_p3 = pnand %p6927_p2, %p6898_p9 }
 0x13f   : > { %p6934_p1 = por %p6933_p7, %p6932_p4 }
 0x140   : > { %p6930_p11 = pneg %p6929_p3 }
 0x141   : > { %p6936_p8 = por %p6935_p5, %p6934_p1 }
 0x143   : > { %p6937_p12 = pnand %p6936_p8, %p6930_p11 }
 0x145   : > { %6940 = shalt.err (!%p6937_p12)
}
 0x146   : > { %s6941_s6 = scalar_lea.vmem %s7564_s3, 256  ;;  %s7119_s8 = smov [#allocation9]  }
 0x147   : > { %p6942_p13 = scmp.ne.s32.totalorder %s7564_s3, %s6941_s6  ;;  %s6946_s11 = sshll.u32 %s7119_s8, 4  ;;  %s6947_s11 = int_to_ptr.vmem [resolvable:$false] %s6946_s11 }
 0x148   : > { %s6948_s21 = scalar_lea.vmem %s6947_s11, 512  ;;  %p6949_p3 = scmp.lt.s32.totalorder %s7564_s3, %s6947_s11 }
 0x149   : > { %p6944_p0 = pnand %p6942_p13, %p6898_p9  ;;  %p6950_p4 = scmp.lt.s32.totalorder %s6948_s21, %s6941_s6 }
 0x14b   : > { %p6945_p2 = pneg %p6944_p0  ;;  %p6951_p7 = por %p6950_p4, %p6949_p3 }
 0x14d   : > { %p6952_p1 = pnand %p6951_p7, %p6945_p2 }
 0x14f   : > { %6955 = shalt.err (!%p6952_p1)
}
 0x150   : > { %5938 = dma.hbm_to_vmem [thread:$0]  (!%p7520_p6), %s7529_s10, 256, %s7564_s3, %s7566_s0, %s7916_s14, %s7916_s14, %s7915_s2  }
 0x151   : > { %s7937_s16 = sld [smem:[#allocation38_spill]] }
 0x157   : > { %p7938_p9 = scmp.ne.s32.totalorder %s7937_s16, 0 }
 0x158   : > { %s536_s17 = sand.u32 (!%p7938_p9), 1, %s7078_s29  }
 0x159   : > { %534 = sbr.rel (%p7938_p9) target bundleno = 5515 (0x158b), region = 72  ;;  %s7598_s4 = sshll.u32 (!%p7938_p9), %s536_s17, 4 }
 0x15a   : > { %s537_s28 = scalar_lea.sflag (!%p7938_p9), [#allocation7], %s536_s17  ;;  %s7601_s26 = scalar_lea.vmem (!%p7938_p9), [#allocation6], %s7598_s4 }
 0x160   : > { %7029 = dma.done.wait (%p7479_p10), %s537_s28, 256  }
 0x161   : > { %7031 = vsyncadd (%p7479_p10), %s537_s28, 4294967040  ;;  %s545_s10 = sand.u32 1, %s7250_s19   ;;  %s549_s14 = scalar_lea.vmem [#allocation9], %s7598_s4 }
 0x162   : > { %s546_s2 = scalar_lea.sflag [#allocation10], %s545_s10 }
 0x163   : > { %7033 = dma.done.wait (%p7479_p10), %s546_s2, 256  }
 0x164   : > { %7035 = vsyncadd (%p7479_p10), %s546_s2, 4294967040  ;;  %p7939_p6 = scmp.eq.s32.totalorder %s7250_s19, 0 }
 0x166   : > { %7037 = dma.done.wait (%p7939_p6), [#allocation10], 4096   ;;  %p7940_p11 = pmov %p7939_p6 }
 0x167   : > { %p7941_p5 = pmov %p7939_p6 }
 0x168   : > { %7039 = vsyncadd (%p7940_p11), [#allocation10], 4294963200 }
 0x169   : > { %7041 = dma.done.wait (%p7941_p5), [#allocation13], 12288   ;;  %p7942_p8 = pmov %p7941_p5 }
 0x16a   : > { %p7943_p12 = pmov %p7941_p5 }
 0x16b   : > { %7043 = vsyncadd (%p7942_p8), [#allocation13], 4294955008 }
 0x16c   : > { %7045 = dma.done.wait (%p7943_p12), [#allocation16], 12288   ;;  %p7944_p13 = pmov %p7941_p5 }
 0x16d   : > { %p7945_p10 = pmov %p7941_p5 }
 0x16e   : > { %7047 = vsyncadd (%p7944_p13), [#allocation16], 4294955008 }
 0x16f   : > { %7049 = dma.done.wait (%p7945_p10), [#allocation19], 20480   ;;  %p7946_p0 = pmov %p7941_p5 }
 0x171   : > { %7051 = vsyncadd (%p7946_p0), [#allocation19], 4294946816  ;;  %p7947_p2 = pmov %p7946_p0 }
 0x172   : > { %p7948_p3 = pmov %p7946_p0 }
 0x173   : > { %7053 = dma.done.wait (%p7947_p2), [#allocation22], 16384  }
 0x174   : > { %7055 = vsyncadd (%p7948_p3), [#allocation22], 4294950912  ;;  %s7949_s15 = sld [smem:[#allocation33_spill]]  ;;  %s7950_s23 = sld [smem:[#allocation34_spill]] }
 0x17a   : > { %s626_s5 = sand.u32 1, %s7949_s15   ;;  %p5270_p4 = scmp.ne.s32.totalorder %s7950_s23, 0 }
 0x17b   : > { %s5269_s3 = sshll.u32 %s626_s5, 4  ;;  %v6066_v0 = vld [vmem:[#allocation12 + $0x4] ss:$16 sps:$4 sm:$0xff] (!%p5270_p4)   ;;  %v6068_v1 = vld [vmem:[#allocation12 + $0xc] ss:$16 sps:$4 sm:$0xff] (!%p5270_p4)  }
 0x17c   : > { %s7636_s0 = scalar_lea.vmem [#allocation23], %s5269_s3  ;;  %633 = sbr.rel (%p5270_p4) target bundleno = 726 (0x2d6), region = 116  ;;  %1030 = vmatprep.subr.bf16.mxu0 (!%p5270_p4), %v6066_v0  ;;  %v6070_v2 = vld [vmem:[#allocation12] ss:$16 sps:$4 sm:$0xff] (!%p5270_p4)   ;;  %v6071_v3 = vld [vmem:[#allocation12 + $0x8] ss:$16 sps:$4 sm:$0xff] (!%p5270_p4)   ;;  %1073 = vmatprep.subr.bf16.mxu1 (!%p5270_p4), %v6068_v1 }
 0x17d   : > { %v6072_v4 = vld [vmem:[#allocation12 + $0x24] ss:$16 sps:$4 sm:$0xff] (!%p5270_p4)   ;;  %1031 = vmatpush1.bf16.msra.mxu0 (!%p5270_p4), %v6070_v2  ;;  %1074 = vmatpush1.bf16.msra.mxu1 (!%p5270_p4), %v6071_v3  ;;  %v6074_v5 = vld [vmem:[#allocation12 + $0x2c] ss:$16 sps:$4 sm:$0xff] (!%p5270_p4)   ;;  %v6076_v6 = vld [vmem:[#allocation12 + $0x20] ss:$16 sps:$4 sm:$0xff] (!%p5270_p4)  }
 0x17e   : > { %1032 = vmatprep.subr.bf16.mxu0 (!%p5270_p4), %v6072_v4  ;;  %v6077_v7 = vld [vmem:[#allocation12 + $0x28] ss:$16 sps:$4 sm:$0xff] (!%p5270_p4)   ;;  %1075 = vmatprep.subr.bf16.mxu1 (!%p5270_p4), %v6074_v5  ;;  %v6078_v8 = vld [vmem:[#allocation12 + $0x44] ss:$16 sps:$4 sm:$0xff] (!%p5270_p4)   ;;  %v6080_v9 = vld [vmem:[#allocation12 + $0x4c] ss:$16 sps:$4 sm:$0xff] (!%p5270_p4)  }
 0x17f   : > { %v6082_v10 = vld [vmem:[#allocation12 + $0x40] ss:$16 sps:$4 sm:$0xff] (!%p5270_p4)   ;;  %v6083_v11 = vld [vmem:[#allocation12 + $0x48] ss:$16 sps:$4 sm:$0xff] (!%p5270_p4)   ;;  %v6084_v12 = vld [vmem:[#allocation12 + $0x64] ss:$16 sps:$4 sm:$0xff] (!%p5270_p4)  }
 0x180   : > { %v6086_v13 = vld [vmem:[#allocation12 + $0x6c] ss:$16 sps:$4 sm:$0xff] (!%p5270_p4)   ;;  %v6088_v14 = vld [vmem:[#allocation12 + $0x60] ss:$16 sps:$4 sm:$0xff] (!%p5270_p4)   ;;  %v6089_v15 = vld [vmem:[#allocation12 + $0x68] ss:$16 sps:$4 sm:$0xff] (!%p5270_p4)  }
 0x181   : > { %1033 = vmatpush1.bf16.msra.mxu0 (!%p5270_p4), %v6076_v6  ;;  %1076 = vmatpush1.bf16.msra.mxu1 (!%p5270_p4), %v6077_v7  ;;  %v6090_v16 = vld [vmem:[#allocation12 + $0x84] ss:$16 sps:$4 sm:$0xff] (!%p5270_p4)   ;;  %v6092_v17 = vld [vmem:[#allocation12 + $0x8c] ss:$16 sps:$4 sm:$0xff] (!%p5270_p4)   ;;  %v6094_v18 = vld [vmem:[#allocation12 + $0x80] ss:$16 sps:$4 sm:$0xff] (!%p5270_p4)  }
 0x182   : > { %1034 = vmatprep.subr.bf16.mxu0 (!%p5270_p4), %v6078_v8  ;;  %1077 = vmatprep.subr.bf16.mxu1 (!%p5270_p4), %v6080_v9  ;;  %v6095_v19 = vld [vmem:[#allocation12 + $0x88] ss:$16 sps:$4 sm:$0xff] (!%p5270_p4)   ;;  %v6096_v20 = vld [vmem:[#allocation12 + $0xa4] ss:$16 sps:$4 sm:$0xff] (!%p5270_p4)   ;;  %v6098_v21 = vld [vmem:[#allocation12 + $0xac] ss:$16 sps:$4 sm:$0xff] (!%p5270_p4)  }
 0x183   : > { %v6100_v22 = vld [vmem:[#allocation12 + $0xa0] ss:$16 sps:$4 sm:$0xff]   ;;  %v6101_v23 = vld [vmem:[#allocation12 + $0xa8] ss:$16 sps:$4 sm:$0xff]   ;;  %v6102_v24 = vld [vmem:[#allocation12 + $0xc4] ss:$16 sps:$4 sm:$0xff]  }
 0x184   : > { %v6104_v25 = vld [vmem:[#allocation12 + $0xcc] ss:$16 sps:$4 sm:$0xff]   ;;  %v6106_v26 = vld [vmem:[#allocation12 + $0xc0] ss:$16 sps:$4 sm:$0xff]   ;;  %v6107_v27 = vld [vmem:[#allocation12 + $0xc8] ss:$16 sps:$4 sm:$0xff]  }
 0x185   : > { %1035 = vmatpush1.bf16.msra.mxu0 %v6082_v10  ;;  %1078 = vmatpush1.bf16.msra.mxu1 %v6083_v11  ;;  %v6108_v28 = vld [vmem:[#allocation12 + $0xe4] ss:$16 sps:$4 sm:$0xff]   ;;  %v6110_v29 = vld [vmem:[#allocation12 + $0xec] ss:$16 sps:$4 sm:$0xff]   ;;  %v6112_v30 = vld [vmem:[#allocation12 + $0xe0] ss:$16 sps:$4 sm:$0xff]  }
 0x186   : > { %1036 = vmatprep.subr.bf16.mxu0 %v6084_v12  ;;  %1079 = vmatprep.subr.bf16.mxu1 %v6086_v13  ;;  %v6113_v31 = vld [vmem:[#allocation12 + $0xe8] ss:$16 sps:$4 sm:$0xff]   ;;  %v6114_v32 = vld [vmem:[#allocation12 + $0x104] ss:$16 sps:$4 sm:$0xff]   ;;  %v6116_v33 = vld [vmem:[#allocation12 + $0x10c] ss:$16 sps:$4 sm:$0xff]  }
 0x187   : > { %v6118_v34 = vld [vmem:[#allocation12 + $0x100] ss:$16 sps:$4 sm:$0xff]   ;;  %v6119_v35 = vld [vmem:[#allocation12 + $0x108] ss:$16 sps:$4 sm:$0xff]   ;;  %v6120_v36 = vld [vmem:[#allocation12 + $0x124] ss:$16 sps:$4 sm:$0xff]  }
 0x188   : > { %v6122_v37 = vld [vmem:[#allocation12 + $0x12c] ss:$16 sps:$4 sm:$0xff]   ;;  %v6124_v38 = vld [vmem:[#allocation12 + $0x120] ss:$16 sps:$4 sm:$0xff]   ;;  %v6125_v39 = vld [vmem:[#allocation12 + $0x128] ss:$16 sps:$4 sm:$0xff]  }
 0x189   : > { %1037 = vmatpush1.bf16.msra.mxu0 %v6088_v14  ;;  %1080 = vmatpush1.bf16.msra.mxu1 %v6089_v15  ;;  %v6126_v40 = vld [vmem:[#allocation12 + $0x144] ss:$16 sps:$4 sm:$0xff]   ;;  %v6128_v41 = vld [vmem:[#allocation12 + $0x14c] ss:$16 sps:$4 sm:$0xff]   ;;  %v6130_v42 = vld [vmem:[#allocation12 + $0x140] ss:$16 sps:$4 sm:$0xff]  }
 0x18a   : > { %1038 = vmatprep.subr.bf16.mxu0 %v6090_v16  ;;  %1081 = vmatprep.subr.bf16.mxu1 %v6092_v17  ;;  %v6131_v43 = vld [vmem:[#allocation12 + $0x148] ss:$16 sps:$4 sm:$0xff]   ;;  %v6132_v44 = vld [vmem:[#allocation12 + $0x164] ss:$16 sps:$4 sm:$0xff]   ;;  %v6134_v45 = vld [vmem:[#allocation12 + $0x16c] ss:$16 sps:$4 sm:$0xff]  }
 0x18b   : > { %v6136_v46 = vld [vmem:[#allocation12 + $0x160] ss:$16 sps:$4 sm:$0xff]   ;;  %v6137_v47 = vld [vmem:[#allocation12 + $0x168] ss:$16 sps:$4 sm:$0xff]   ;;  %v6164_v48 = vld [vmem:[%s7601_s26 + $0x4] ss:$8 sps:$4 sm:$0xff]  }
 0x18c   : > { %v6138_v49 = vld [vmem:[#allocation12 + $0x184] ss:$16 sps:$4 sm:$0xff]   ;;  %v6140_v50 = vld [vmem:[#allocation12 + $0x18c] ss:$16 sps:$4 sm:$0xff]   ;;  %1062 = vmatprep.mubr.bf16.mxu0 %v6164_v48  ;;  %1105 = vmatprep.mubr.bf16.mxu1 %v6164_v48  ;;  %v6142_v51 = vld [vmem:[#allocation12 + $0x180] ss:$16 sps:$4 sm:$0xff]  }
 0x18d   : > { %1039 = vmatpush1.bf16.msra.mxu0 %v6094_v18  ;;  %1082 = vmatpush1.bf16.msra.mxu1 %v6095_v19  ;;  %v6143_v52 = vld [vmem:[#allocation12 + $0x188] ss:$16 sps:$4 sm:$0xff]   ;;  %v6144_v53 = vld [vmem:[#allocation12 + $0x1a4] ss:$16 sps:$4 sm:$0xff]   ;;  %v6146_v54 = vld [vmem:[#allocation12 + $0x1ac] ss:$16 sps:$4 sm:$0xff]  }
 0x18e   : > { %1040 = vmatprep.subr.bf16.mxu0 %v6096_v20  ;;  %1083 = vmatprep.subr.bf16.mxu1 %v6098_v21  ;;  %v6148_v55 = vld [vmem:[#allocation12 + $0x1a0] ss:$16 sps:$4 sm:$0xff]   ;;  %v6149_v56 = vld [vmem:[#allocation12 + $0x1a8] ss:$16 sps:$4 sm:$0xff]   ;;  %v6150_v57 = vld [vmem:[#allocation12 + $0x1c4] ss:$16 sps:$4 sm:$0xff]  }
 0x18f   : > { %v6152_v58 = vld [vmem:[#allocation12 + $0x1cc] ss:$16 sps:$4 sm:$0xff]   ;;  %v6154_v59 = vld [vmem:[#allocation12 + $0x1c0] ss:$16 sps:$4 sm:$0xff]   ;;  %v6155_v60 = vld [vmem:[#allocation12 + $0x1c8] ss:$16 sps:$4 sm:$0xff]  }
 0x190   : > { %v6156_v61 = vld [vmem:[#allocation12 + $0x1e4] ss:$16 sps:$4 sm:$0xff]   ;;  %v6158_v62 = vld [vmem:[#allocation12 + $0x1ec] ss:$16 sps:$4 sm:$0xff]   ;;  %v6160_v63 = vld [vmem:[#allocation12 + $0x1e0] ss:$16 sps:$4 sm:$0xff]  }
 0x191   : > { %1041 = vmatpush1.bf16.msra.mxu0 %v6100_v22  ;;  %1084 = vmatpush1.bf16.msra.mxu1 %v6101_v23  ;;  %v6161_v0 = vld [vmem:[#allocation12 + $0x1e8] ss:$16 sps:$4 sm:$0xff]   ;;  %v6167_v1 = vld [vmem:[#allocation17 + $0x4] ss:$16 sps:$4 sm:$0xff]   ;;  %v6170_v2 = vld [vmem:[#allocation17 + $0xc] ss:$16 sps:$4 sm:$0xff]  }
 0x192   : > { %1042 = vmatprep.subr.bf16.mxu0 %v6102_v24  ;;  %1085 = vmatprep.subr.bf16.mxu1 %v6104_v25  ;;  %v6162_v3 = vld [vmem:[%s7601_s26] ss:$8 sps:$4 sm:$0xff]   ;;  %v6173_v6 = vld [vmem:[#allocation17 + $0x24] ss:$16 sps:$4 sm:$0xff]   ;;  %v6176_v7 = vld [vmem:[#allocation17 + $0x2c] ss:$16 sps:$4 sm:$0xff]  }
 0x193   : > { %v6165_v4 = vld [vmem:[#allocation17] ss:$16 sps:$4 sm:$0xff]   ;;  %v6168_v5 = vld [vmem:[#allocation17 + $0x8] ss:$16 sps:$4 sm:$0xff]   ;;  %v6179_v10 = vld [vmem:[#allocation17 + $0x44] ss:$16 sps:$4 sm:$0xff]  }
 0x194   : > { %v6171_v8 = vld [vmem:[#allocation17 + $0x20] ss:$16 sps:$4 sm:$0xff]   ;;  %v6174_v9 = vld [vmem:[#allocation17 + $0x28] ss:$16 sps:$4 sm:$0xff]   ;;  %v6182_v11 = vld [vmem:[#allocation17 + $0x4c] ss:$16 sps:$4 sm:$0xff]  }
 0x195   : > { %1043 = vmatpush1.bf16.msra.mxu0 %v6106_v26  ;;  %1086 = vmatpush1.bf16.msra.mxu1 %v6107_v27  ;;  %v6177_v12 = vld [vmem:[#allocation17 + $0x40] ss:$16 sps:$4 sm:$0xff]   ;;  %v6180_v13 = vld [vmem:[#allocation17 + $0x48] ss:$16 sps:$4 sm:$0xff]   ;;  %v6185_v14 = vld [vmem:[#allocation17 + $0x64] ss:$16 sps:$4 sm:$0xff]  }
 0x196   : > { %1044 = vmatprep.subr.bf16.mxu0 %v6108_v28  ;;  %1087 = vmatprep.subr.bf16.mxu1 %v6110_v29  ;;  %v6188_v15 = vld [vmem:[#allocation17 + $0x6c] ss:$16 sps:$4 sm:$0xff]   ;;  %v6183_v16 = vld [vmem:[#allocation17 + $0x60] ss:$16 sps:$4 sm:$0xff]   ;;  %v6186_v17 = vld [vmem:[#allocation17 + $0x68] ss:$16 sps:$4 sm:$0xff]  }
 0x197   : > { %v6191_v18 = vld [vmem:[#allocation17 + $0x84] ss:$16 sps:$4 sm:$0xff]   ;;  %v6194_v19 = vld [vmem:[#allocation17 + $0x8c] ss:$16 sps:$4 sm:$0xff]   ;;  %v6189_v20 = vld [vmem:[#allocation17 + $0x80] ss:$16 sps:$4 sm:$0xff]  }
 0x198   : > { %v6192_v21 = vld [vmem:[#allocation17 + $0x88] ss:$16 sps:$4 sm:$0xff]   ;;  %v6197_v22 = vld [vmem:[#allocation17 + $0xa4] ss:$16 sps:$4 sm:$0xff]   ;;  %v6200_v23 = vld [vmem:[#allocation17 + $0xac] ss:$16 sps:$4 sm:$0xff]  }
 0x199   : > { %1045 = vmatpush1.bf16.msra.mxu0 %v6112_v30  ;;  %1088 = vmatpush1.bf16.msra.mxu1 %v6113_v31  ;;  %v6195_v24 = vld [vmem:[#allocation17 + $0xa0] ss:$16 sps:$4 sm:$0xff]   ;;  %v6198_v25 = vld [vmem:[#allocation17 + $0xa8] ss:$16 sps:$4 sm:$0xff]   ;;  %v6203_v26 = vld [vmem:[#allocation17 + $0xc4] ss:$16 sps:$4 sm:$0xff]  }
 0x19a   : > { %1046 = vmatprep.subr.bf16.mxu0 %v6114_v32  ;;  %1089 = vmatprep.subr.bf16.mxu1 %v6116_v33  ;;  %v6206_v27 = vld [vmem:[#allocation17 + $0xcc] ss:$16 sps:$4 sm:$0xff]   ;;  %v6201_v29 = vld [vmem:[#allocation17 + $0xc0] ss:$16 sps:$4 sm:$0xff]   ;;  %v6204_v30 = vld [vmem:[#allocation17 + $0xc8] ss:$16 sps:$4 sm:$0xff]  }
 0x19b   : > { %v6263_v28 = vld [vmem:[%s549_s14 + $0x4] ss:$8 sps:$4 sm:$0xff]   ;;  %v6207_v33 = vld [vmem:[#allocation17 + $0xe0] ss:$16 sps:$4 sm:$0xff]  }
 0x19c   : > { %v6209_v31 = vld [vmem:[#allocation17 + $0xe4] ss:$16 sps:$4 sm:$0xff]   ;;  %v6212_v32 = vld [vmem:[#allocation17 + $0xec] ss:$16 sps:$4 sm:$0xff]  }
 0x19d   : > { %1047 = vmatpush1.bf16.msra.mxu0 %v6118_v34  ;;  %1090 = vmatpush1.bf16.msra.mxu1 %v6119_v35  ;;  %v6210_v34 = vld [vmem:[#allocation17 + $0xe8] ss:$16 sps:$4 sm:$0xff]   ;;  %v6215_v35 = vld [vmem:[#allocation17 + $0x104] ss:$16 sps:$4 sm:$0xff]   ;;  %v6236_v48 = vld [vmem:[#allocation17 + $0x16c] ss:$16 sps:$4 sm:$0xff]  }
 0x19e   : > { %1048 = vmatprep.subr.bf16.mxu0 %v6120_v36  ;;  %1091 = vmatprep.subr.bf16.mxu1 %v6122_v37  ;;  %v6218_v36 = vld [vmem:[#allocation17 + $0x10c] ss:$16 sps:$4 sm:$0xff]   ;;  %v6213_v37 = vld [vmem:[#allocation17 + $0x100] ss:$16 sps:$4 sm:$0xff]  }
 0x1a1   : > { %1049 = vmatpush1.bf16.msra.mxu0 %v6124_v38  ;;  %1092 = vmatpush1.bf16.msra.mxu1 %v6125_v39  ;;  %v6216_v38 = vld [vmem:[#allocation17 + $0x108] ss:$16 sps:$4 sm:$0xff]   ;;  %v6221_v39 = vld [vmem:[#allocation17 + $0x124] ss:$16 sps:$4 sm:$0xff]  }
 0x1a2   : > { %1050 = vmatprep.subr.bf16.mxu0 %v6126_v40  ;;  %1093 = vmatprep.subr.bf16.mxu1 %v6128_v41  ;;  %v6224_v40 = vld [vmem:[#allocation17 + $0x12c] ss:$16 sps:$4 sm:$0xff]   ;;  %v6219_v41 = vld [vmem:[#allocation17 + $0x120] ss:$16 sps:$4 sm:$0xff]  }
 0x1a5   : > { %1051 = vmatpush1.bf16.msra.mxu0 %v6130_v42  ;;  %1094 = vmatpush1.bf16.msra.mxu1 %v6131_v43  ;;  %v6222_v42 = vld [vmem:[#allocation17 + $0x128] ss:$16 sps:$4 sm:$0xff]   ;;  %v6227_v43 = vld [vmem:[#allocation17 + $0x144] ss:$16 sps:$4 sm:$0xff]  }
 0x1a6   : > { %1052 = vmatprep.subr.bf16.mxu0 %v6132_v44  ;;  %1095 = vmatprep.subr.bf16.mxu1 %v6134_v45  ;;  %v6230_v44 = vld [vmem:[#allocation17 + $0x14c] ss:$16 sps:$4 sm:$0xff]   ;;  %v6225_v45 = vld [vmem:[#allocation17 + $0x140] ss:$16 sps:$4 sm:$0xff]  }
 0x1a9   : > { %1053 = vmatpush1.bf16.msra.mxu0 %v6136_v46  ;;  %1096 = vmatpush1.bf16.msra.mxu1 %v6137_v47  ;;  %v6228_v46 = vld [vmem:[#allocation17 + $0x148] ss:$16 sps:$4 sm:$0xff]   ;;  %v6233_v47 = vld [vmem:[#allocation17 + $0x164] ss:$16 sps:$4 sm:$0xff]  }
 0x1aa   : > { %1054 = vmatprep.subr.bf16.mxu0 %v6138_v49  ;;  %1097 = vmatprep.subr.bf16.mxu1 %v6140_v50  ;;  %v6231_v49 = vld [vmem:[#allocation17 + $0x160] ss:$16 sps:$4 sm:$0xff]   ;;  %v6234_v50 = vld [vmem:[#allocation17 + $0x168] ss:$16 sps:$4 sm:$0xff]  }
 0x1ad   : > { %1055 = vmatpush1.bf16.msra.mxu0 %v6142_v51  ;;  %1098 = vmatpush1.bf16.msra.mxu1 %v6143_v52  ;;  %v6239_v51 = vld [vmem:[#allocation17 + $0x184] ss:$16 sps:$4 sm:$0xff]   ;;  %v6242_v52 = vld [vmem:[#allocation17 + $0x18c] ss:$16 sps:$4 sm:$0xff]  }
 0x1ae   : > { %1056 = vmatprep.subr.bf16.mxu0 %v6144_v53  ;;  %1099 = vmatprep.subr.bf16.mxu1 %v6146_v54  ;;  %v6237_v53 = vld [vmem:[#allocation17 + $0x180] ss:$16 sps:$4 sm:$0xff]   ;;  %v6240_v54 = vld [vmem:[#allocation17 + $0x188] ss:$16 sps:$4 sm:$0xff]  }
 0x1b1   : > { %1057 = vmatpush1.bf16.msra.mxu0 %v6148_v55  ;;  %1100 = vmatpush1.bf16.msra.mxu1 %v6149_v56  ;;  %v6245_v55 = vld [vmem:[#allocation17 + $0x1a4] ss:$16 sps:$4 sm:$0xff]   ;;  %v6248_v56 = vld [vmem:[#allocation17 + $0x1ac] ss:$16 sps:$4 sm:$0xff]  }
 0x1b2   : > { %1058 = vmatprep.subr.bf16.mxu0 %v6150_v57  ;;  %1101 = vmatprep.subr.bf16.mxu1 %v6152_v58  ;;  %v6243_v57 = vld [vmem:[#allocation17 + $0x1a0] ss:$16 sps:$4 sm:$0xff]   ;;  %v6246_v58 = vld [vmem:[#allocation17 + $0x1a8] ss:$16 sps:$4 sm:$0xff]  }
 0x1b5   : > { %1059 = vmatpush1.bf16.msra.mxu0 %v6154_v59  ;;  %1102 = vmatpush1.bf16.msra.mxu1 %v6155_v60  ;;  %v6251_v59 = vld [vmem:[#allocation17 + $0x1c4] ss:$16 sps:$4 sm:$0xff]   ;;  %v6254_v60 = vld [vmem:[#allocation17 + $0x1cc] ss:$16 sps:$4 sm:$0xff]  }
 0x1b6   : > { %1060 = vmatprep.subr.bf16.mxu0 %v6156_v61  ;;  %1103 = vmatprep.subr.bf16.mxu1 %v6158_v62  ;;  %v6249_v61 = vld [vmem:[#allocation17 + $0x1c0] ss:$16 sps:$4 sm:$0xff]   ;;  %v6252_v62 = vld [vmem:[#allocation17 + $0x1c8] ss:$16 sps:$4 sm:$0xff]  }
 0x1b9   : > { %1061 = vmatpush1.bf16.msra.mxu0 %v6160_v63  ;;  %1104 = vmatpush1.bf16.msra.mxu1 %v6161_v0  ;;  %v6257_v63 = vld [vmem:[#allocation17 + $0x1e4] ss:$16 sps:$4 sm:$0xff]   ;;  %v6260_v0 = vld [vmem:[#allocation17 + $0x1ec] ss:$16 sps:$4 sm:$0xff]  }
 0x1ba   : > { %1520 = vmatprep.subr.bf16.mxu0 %v6167_v1  ;;  %1563 = vmatprep.subr.bf16.mxu1 %v6170_v2  ;;  %v6255_v1 = vld [vmem:[#allocation17 + $0x1e0] ss:$16 sps:$4 sm:$0xff]   ;;  %v6258_v2 = vld [vmem:[#allocation17 + $0x1e8] ss:$16 sps:$4 sm:$0xff]  }
 0x1bc   : > { %1063 = vmatmul.mubr.bf16.vlgmr.msra.gmra.mrb[0].mxu0 %v6162_v3  ;;  %1106 = vmatmul.mubr.bf16.vlgmr.msra.gmra.mrb[0].mxu1 %v6162_v3  ;;  %v6261_v3 = vld [vmem:[%s549_s14] ss:$8 sps:$4 sm:$0xff]  }
 0x1bd   : > { %1521 = vmatpush1.bf16.msra.mxu0 %v6165_v4  ;;  %1564 = vmatpush1.bf16.msra.mxu1 %v6168_v5 }
 0x1be   : > { %1522 = vmatprep.subr.bf16.mxu0 %v6173_v6  ;;  %1565 = vmatprep.subr.bf16.mxu1 %v6176_v7 }
 0x1bf   : > { %1552 = vmatprep.mubr.bf16.mxu0 %v6263_v28  ;;  %1595 = vmatprep.mubr.bf16.mxu1 %v6263_v28 }
 0x1c1   : > { %1523 = vmatpush1.bf16.msra.mxu0 %v6171_v8  ;;  %1566 = vmatpush1.bf16.msra.mxu1 %v6174_v9 }
 0x1c2   : > { %1524 = vmatprep.subr.bf16.mxu0 %v6179_v10  ;;  %1567 = vmatprep.subr.bf16.mxu1 %v6182_v11 }
 0x1c5   : > { %1525 = vmatpush1.bf16.msra.mxu0 %v6177_v12  ;;  %1568 = vmatpush1.bf16.msra.mxu1 %v6180_v13 }
 0x1c6   : > { %1526 = vmatprep.subr.bf16.mxu0 %v6185_v14  ;;  %1569 = vmatprep.subr.bf16.mxu1 %v6188_v15 }
 0x1c9   : > { %1527 = vmatpush1.bf16.msra.mxu0 %v6183_v16  ;;  %1570 = vmatpush1.bf16.msra.mxu1 %v6186_v17 }
 0x1ca   : > { %1528 = vmatprep.subr.bf16.mxu0 %v6191_v18  ;;  %1571 = vmatprep.subr.bf16.mxu1 %v6194_v19 }
 0x1cd   : > { %1529 = vmatpush1.bf16.msra.mxu0 %v6189_v20  ;;  %1572 = vmatpush1.bf16.msra.mxu1 %v6192_v21 }
 0x1ce   : > { %1530 = vmatprep.subr.bf16.mxu0 %v6197_v22  ;;  %1573 = vmatprep.subr.bf16.mxu1 %v6200_v23 }
 0x1d1   : > { %1531 = vmatpush1.bf16.msra.mxu0 %v6195_v24  ;;  %1574 = vmatpush1.bf16.msra.mxu1 %v6198_v25 }
 0x1d2   : > { %1532 = vmatprep.subr.bf16.mxu0 %v6203_v26  ;;  %1575 = vmatprep.subr.bf16.mxu1 %v6206_v27 }
 0x1d5   : > { %1533 = vmatpush1.bf16.msra.mxu0 %v6201_v29  ;;  %1576 = vmatpush1.bf16.msra.mxu1 %v6204_v30 }
 0x1d6   : > { %1534 = vmatprep.subr.bf16.mxu0 %v6209_v31  ;;  %1577 = vmatprep.subr.bf16.mxu1 %v6212_v32 }
 0x1d9   : > { %1535 = vmatpush1.bf16.msra.mxu0 %v6207_v33  ;;  %1578 = vmatpush1.bf16.msra.mxu1 %v6210_v34 }
 0x1da   : > { %1536 = vmatprep.subr.bf16.mxu0 %v6215_v35  ;;  %1579 = vmatprep.subr.bf16.mxu1 %v6218_v36 }
 0x1dd   : > { %1537 = vmatpush1.bf16.msra.mxu0 %v6213_v37  ;;  %1580 = vmatpush1.bf16.msra.mxu1 %v6216_v38 }
 0x1de   : > { %1538 = vmatprep.subr.bf16.mxu0 %v6221_v39  ;;  %1581 = vmatprep.subr.bf16.mxu1 %v6224_v40 }
 0x1e1   : > { %1539 = vmatpush1.bf16.msra.mxu0 %v6219_v41  ;;  %1582 = vmatpush1.bf16.msra.mxu1 %v6222_v42 }
 0x1e2   : > { %1540 = vmatprep.subr.bf16.mxu0 %v6227_v43  ;;  %1583 = vmatprep.subr.bf16.mxu1 %v6230_v44 }
 0x1e5   : > { %1541 = vmatpush1.bf16.msra.mxu0 %v6225_v45  ;;  %1584 = vmatpush1.bf16.msra.mxu1 %v6228_v46 }
 0x1e6   : > { %1542 = vmatprep.subr.bf16.mxu0 %v6233_v47  ;;  %1585 = vmatprep.subr.bf16.mxu1 %v6236_v48 }
 0x1e9   : > { %1543 = vmatpush1.bf16.msra.mxu0 %v6231_v49  ;;  %1586 = vmatpush1.bf16.msra.mxu1 %v6234_v50 }
 0x1ea   : > { %1544 = vmatprep.subr.bf16.mxu0 %v6239_v51  ;;  %1587 = vmatprep.subr.bf16.mxu1 %v6242_v52 }
 0x1ed   : > { %1545 = vmatpush1.bf16.msra.mxu0 %v6237_v53  ;;  %1588 = vmatpush1.bf16.msra.mxu1 %v6240_v54 }
 0x1ee   : > { %1546 = vmatprep.subr.bf16.mxu0 %v6245_v55  ;;  %1589 = vmatprep.subr.bf16.mxu1 %v6248_v56 }
 0x1f1   : > { %1547 = vmatpush1.bf16.msra.mxu0 %v6243_v57  ;;  %1590 = vmatpush1.bf16.msra.mxu1 %v6246_v58 }
 0x1f2   : > { %1548 = vmatprep.subr.bf16.mxu0 %v6251_v59  ;;  %1591 = vmatprep.subr.bf16.mxu1 %v6254_v60 }
 0x1f5   : > { %1549 = vmatpush1.bf16.msra.mxu0 %v6249_v61  ;;  %1592 = vmatpush1.bf16.msra.mxu1 %v6252_v62 }
 0x1f6   : > { %1550 = vmatprep.subr.bf16.mxu0 %v6257_v63  ;;  %1593 = vmatprep.subr.bf16.mxu1 %v6260_v0 }
 0x1f9   : > { %1551 = vmatpush1.bf16.msra.mxu0 %v6255_v1  ;;  %1594 = vmatpush1.bf16.msra.mxu1 %v6258_v2 }
 0x1fc   : > { %1553 = vmatmul.mubr.bf16.vlgmr.msra.gmra.mrb[4].mxu0 %v6261_v3  ;;  %1596 = vmatmul.mubr.bf16.vlgmr.msra.gmra.mrb[4].mxu1 %v6261_v3 }
 0x28f   : > { %v1064_v4 = vpop.f32.mrb[0].mxu0  ;;  %v1107_v5 = vpop.f32.mrb[0].mxu1 }
 0x290   : > { %v1066_v6 = vpop.f32.mrb[1].mxu0  ;;  %v1109_v7 = vpop.f32.mrb[1].mxu1 }
 0x291   : > { %v1068_v8 = vpop.f32.mrb[2].mxu0  ;;  %v1111_v9 = vpop.f32.mrb[2].mxu1 }
 0x292   : > { %v1116_v10 = vpack.c.bf16 %v1068_v8, %v1064_v4  ;;  %v1120_v11 = vpack.c.bf16 %v1111_v9, %v1107_v5  ;;  %v1070_v12 = vpop.f32.mrb[3].mxu0  ;;  %v1113_v13 = vpop.f32.mrb[3].mxu1 }
 0x293   : > { %v1117_v14 = vpack.c.bf16 %v1070_v12, %v1066_v6  ;;  %v1121_v15 = vpack.c.bf16 %v1113_v13, %v1109_v7 }
 0x294   : > { %1118 = vst [vmem:[#allocation2] sm:$0xff] %v1116_v10  ;;  %1122 = vst [vmem:[#allocation3] sm:$0xff] %v1120_v11 }
 0x295   : > { %1119 = vst [vmem:[#allocation2 + $0x8] sm:$0xff] %v1117_v14  ;;  %1123 = vst [vmem:[#allocation3 + $0x8] sm:$0xff] %v1121_v15 }
 0x2cf   : > { %v1554_v16 = vpop.f32.mrb[4].mxu0  ;;  %v1597_v17 = vpop.f32.mrb[4].mxu1 }
 0x2d0   : > { %v1556_v18 = vpop.f32.mrb[5].mxu0  ;;  %v1599_v19 = vpop.f32.mrb[5].mxu1 }
 0x2d1   : > { %v1558_v20 = vpop.f32.mrb[6].mxu0  ;;  %v1601_v21 = vpop.f32.mrb[6].mxu1 }
 0x2d2   : > { %v1606_v22 = vpack.c.bf16 %v1558_v20, %v1554_v16  ;;  %v1610_v23 = vpack.c.bf16 %v1601_v21, %v1597_v17  ;;  %v1560_v24 = vpop.f32.mrb[7].mxu0  ;;  %v1603_v25 = vpop.f32.mrb[7].mxu1 }
 0x2d3   : > { %v1607_v26 = vpack.c.bf16 %v1560_v24, %v1556_v18  ;;  %v1611_v27 = vpack.c.bf16 %v1603_v25, %v1599_v19 }
 0x2d4   : > { %1608 = vst [vmem:[#allocation4] sm:$0xff] %v1606_v22  ;;  %1612 = vst [vmem:[#allocation5] sm:$0xff] %v1610_v23 }
 0x2d5   : > { %1609 = vst [vmem:[#allocation4 + $0x8] sm:$0xff] %v1607_v26  ;;  %1613 = vst [vmem:[#allocation5 + $0x8] sm:$0xff] %v1611_v27 }
 0x2d6 PF: > { %v6264_v28 = vld [vmem:[#allocation11 + $0x4] ss:$8 sps:$4 sm:$0xff]   ;;  %v6266_v29 = vld [vmem:[#allocation11] ss:$8 sps:$4 sm:$0xff]   ;;  %v7120_v30 = vmov 0.0   ;;  %s7951_s19 = sld [smem:[#allocation34_spill]] }
 0x2d7   : > { %5821 = vmatprep.subr.bf16.mxu1 %v7120_v30  ;;  %1820 = vmatprep.subr.bf16.mxu0 %v6264_v28  ;;  %v6267_v31 = vld [vmem:[#allocation11 + $0x14] ss:$8 sps:$4 sm:$0xff]   ;;  %v6269_v32 = vld [vmem:[#allocation11 + $0x10] ss:$8 sps:$4 sm:$0xff]   ;;  %v6270_v33 = vld [vmem:[#allocation11 + $0x24] ss:$8 sps:$4 sm:$0xff]  }
 0x2d8   : > { %1821 = vmatpush1.bf16.msra.mxu0 %v6266_v29  ;;  %v6272_v34 = vld [vmem:[#allocation11 + $0x20] ss:$8 sps:$4 sm:$0xff]   ;;  %v6273_v35 = vld [vmem:[#allocation11 + $0x34] ss:$8 sps:$4 sm:$0xff]   ;;  %v6275_v36 = vld [vmem:[#allocation11 + $0x30] ss:$8 sps:$4 sm:$0xff]  }
 0x2d9   : > { %1822 = vmatprep.subr.bf16.mxu0 %v6267_v31  ;;  %v6276_v37 = vld [vmem:[#allocation11 + $0x44] ss:$8 sps:$4 sm:$0xff]   ;;  %v6278_v38 = vld [vmem:[#allocation11 + $0x40] ss:$8 sps:$4 sm:$0xff]   ;;  %v6279_v39 = vld [vmem:[#allocation11 + $0x54] ss:$8 sps:$4 sm:$0xff]  }
 0x2da   : > { %v6281_v40 = vld [vmem:[#allocation11 + $0x50] ss:$8 sps:$4 sm:$0xff]   ;;  %v6282_v41 = vld [vmem:[#allocation11 + $0x64] ss:$8 sps:$4 sm:$0xff]   ;;  %v6284_v42 = vld [vmem:[#allocation11 + $0x60] ss:$8 sps:$4 sm:$0xff]  }
 0x2db   : > { %v1861_v44 = vld [vmem:[#allocation2] sm:$0xff]  ;;  %v6285_v45 = vld [vmem:[#allocation11 + $0x74] ss:$8 sps:$4 sm:$0xff]   ;;  %v6287_v47 = vld [vmem:[#allocation11 + $0x70] ss:$8 sps:$4 sm:$0xff]   ;;  %vm7121_vm0 = vmmov 0  }
 0x2dc   : > { %1823 = vmatpush1.bf16.msra.mxu0 %v6269_v32  ;;  %s5403_s9 = sshll.u32 %s7951_s19, 3  ;;  %5822 = vmatpush3.bf16.xpose.msra.mxu1 %v1861_v44  ;;  %v6288_v48 = vld [vmem:[#allocation11 + $0x84] ss:$8 sps:$4 sm:$0xff]   ;;  %v6290_v49 = vld [vmem:[#allocation11 + $0x80] ss:$8 sps:$4 sm:$0xff]   ;;  %vm1909_vm1 = vcmask 130048  }
 0x2dd   : > { %1824 = vmatprep.subr.bf16.mxu0 %v6270_v33  ;;  %s1619_s25 = scalar_lea.vmem %s7601_s26, %s5403_s9 [#allocation6]  ;;  %5827 = vmatprep.subr.bf16.mxu1 %v7120_v30  ;;  %v6291_v50 = vld [vmem:[#allocation11 + $0x94] ss:$8 sps:$4 sm:$0xff]   ;;  %v6293_v51 = vld [vmem:[#allocation11 + $0x90] ss:$8 sps:$4 sm:$0xff]   ;;  %v6294_v52 = vld [vmem:[#allocation11 + $0xa4] ss:$8 sps:$4 sm:$0xff]  }
 0x2de   : > { %v7648_v43 = vld [vmem:[%s1619_s25] sm:$0xff]  ;;  %v6297_v54 = vld [vmem:[#allocation11 + $0xb4] ss:$8 sps:$4 sm:$0xff]   ;;  %v6299_v55 = vld [vmem:[#allocation11 + $0xb0] ss:$8 sps:$4 sm:$0xff]   ;;  %5823 = vmatprep.mubr.msk.bf16.mxu1 %vm7121_vm0, %v7120_v30  ;;  %s7952_s8 = sld [smem:[#allocation46_spill]] }
 0x2df   : > { %v5407_v46 = vcombine.high %v7648_v43, %v7648_v43  ;;  %v6296_v53 = vld [vmem:[#allocation11 + $0xa0] ss:$8 sps:$4 sm:$0xff]   ;;  %v6300_v56 = vld [vmem:[#allocation11 + $0xc4] ss:$8 sps:$4 sm:$0xff]   ;;  %v6303_v58 = vld [vmem:[#allocation11 + $0xd4] ss:$8 sps:$4 sm:$0xff]   ;;  %v5406_v0 = vcombine.low %v7648_v43, %v7648_v43 }
 0x2e0   : > { %1825 = vmatpush1.bf16.msra.mxu0 %v6272_v34  ;;  %v6302_v57 = vld [vmem:[#allocation11 + $0xc0] ss:$8 sps:$4 sm:$0xff]   ;;  %v6305_v59 = vld [vmem:[#allocation11 + $0xd0] ss:$8 sps:$4 sm:$0xff]   ;;  %v6306_v60 = vld [vmem:[#allocation11 + $0xe4] ss:$8 sps:$4 sm:$0xff]  }
 0x2e1   : > { %1826 = vmatprep.subr.bf16.mxu0 %v6273_v35  ;;  %1852 = vmatprep.mubr.bf16.mxu0 %v5407_v46  ;;  %v6308_v61 = vld [vmem:[#allocation11 + $0xe0] ss:$8 sps:$4 sm:$0xff]   ;;  %v6309_v62 = vld [vmem:[#allocation11 + $0xf4] ss:$8 sps:$4 sm:$0xff]   ;;  %v6311_v63 = vld [vmem:[#allocation11 + $0xf0] ss:$8 sps:$4 sm:$0xff]  }
 0x2e2   : > { %v1863_v17 = vld [vmem:[#allocation3] sm:$0xff]  ;;  %v6314_v18 = vld [vmem:[#allocation14] ss:$8 sps:$4 sm:$0xff]   ;;  %v6316_v19 = vld [vmem:[#allocation14 + $0x4] ss:$8 sps:$4 sm:$0xff]   ;;  %s7953_s16 = sld [smem:[#allocation50_spill]] }
 0x2e3   : > { %v6319_v20 = vld [vmem:[#allocation14 + $0x14] ss:$8 sps:$4 sm:$0xff]   ;;  %v6317_v21 = vld [vmem:[#allocation14 + $0x10] ss:$8 sps:$4 sm:$0xff]   ;;  %v6322_v22 = vld [vmem:[#allocation14 + $0x24] ss:$8 sps:$4 sm:$0xff]  }
 0x2e4   : > { %1827 = vmatpush1.bf16.msra.mxu0 %v6275_v36  ;;  %v6320_v23 = vld [vmem:[#allocation14 + $0x20] ss:$8 sps:$4 sm:$0xff]   ;;  %v6325_v24 = vld [vmem:[#allocation14 + $0x34] ss:$8 sps:$4 sm:$0xff]   ;;  %v6323_v25 = vld [vmem:[#allocation14 + $0x30] ss:$8 sps:$4 sm:$0xff]  }
 0x2e5   : > { %1828 = vmatprep.subr.bf16.mxu0 %v6276_v37  ;;  %v6328_v26 = vld [vmem:[#allocation14 + $0x44] ss:$8 sps:$4 sm:$0xff]   ;;  %v6326_v27 = vld [vmem:[#allocation14 + $0x40] ss:$8 sps:$4 sm:$0xff]   ;;  %v6331_v28 = vld [vmem:[#allocation14 + $0x54] ss:$8 sps:$4 sm:$0xff]  }
 0x2e6   : > { %v6329_v29 = vld [vmem:[#allocation14 + $0x50] ss:$8 sps:$4 sm:$0xff]   ;;  %v6334_v31 = vld [vmem:[#allocation14 + $0x64] ss:$8 sps:$4 sm:$0xff]   ;;  %v6332_v32 = vld [vmem:[#allocation14 + $0x60] ss:$8 sps:$4 sm:$0xff]  }
 0x2e7   : > { %v6337_v33 = vld [vmem:[#allocation14 + $0x74] ss:$8 sps:$4 sm:$0xff]   ;;  %v6335_v34 = vld [vmem:[#allocation14 + $0x70] ss:$8 sps:$4 sm:$0xff]   ;;  %s7954_s17 = sld [smem:[#allocation35_spill]]  ;;  %s5797_s4 = sshll.u32 %s7951_s19, 1 }
 0x2e8   : > { %1829 = vmatpush1.bf16.msra.mxu0 %v6278_v38  ;;  %s7955_s2 = sld [smem:[#allocation53_spill]]  ;;  %s5055_s23 = sshll.u32 %s7636_s0, 4  ;;  %s7790_s23 = int_to_ptr.vmem [resolvable:$true] %s5055_s23 }
 0x2e9   : > { %1830 = vmatprep.subr.bf16.mxu0 %v6279_v39  ;;  %v1862_v39 = vld [vmem:[#allocation2 + $0x8] sm:$0xff]  ;;  %s7957_s25 = sld [smem:[#allocation54_spill]]  ;;  %s6956_s11 = scalar_lea.vmem %s7790_s23, 256 }
 0x2ea   : > { %p6957_p7 = scmp.ne.s32.totalorder %s7790_s23, %s6956_s11  ;;  %p7959_p1 = scmp.ne.s32.totalorder %s7931_s20, 0 }
 0x2eb   : > { %s7123_s21 = smov [#allocation23]  }
 0x2ec   : > { %1831 = vmatpush1.bf16.msra.mxu0 %v6281_v40  ;;  %p6958_p9 = pnand %p6957_p7, %p7959_p1 }
 0x2ed   : > { %1832 = vmatprep.subr.bf16.mxu0 %v6282_v41  ;;  %s5798_s28 = sshll.u32 %s7954_s17, 2 }
 0x2ee   : > { %s5051_s14 = sadd.s32 %s5798_s28, %s5797_s4  ;;  %p6959_p6 = pneg %p6958_p9 }
 0x2ef   : > { %s5799_s3 = sshll.u32 %s5051_s14, 7  ;;  %s7958_s12 = smov %s7957_s25 }
 0x2f0   : > { %1833 = vmatpush1.bf16.msra.mxu0 %v6284_v42  ;;  %v7122_v42 = vmov 0   ;;  %s7788_s6 = scalar_lea.hbm %s7957_s25, %s5799_s3 }
 0x2f1   : > { %1834 = vmatprep.subr.bf16.mxu0 %v6285_v45 }
 0x2f4   : > { %1835 = vmatpush1.bf16.msra.mxu0 %v6287_v47 }
 0x2f5   : > { %1836 = vmatprep.subr.bf16.mxu0 %v6288_v48 }
 0x2f8   : > { %1837 = vmatpush1.bf16.msra.mxu0 %v6290_v49 }
 0x2f9   : > { %1838 = vmatprep.subr.bf16.mxu0 %v6291_v50 }
 0x2fc   : > { %1839 = vmatpush1.bf16.msra.mxu0 %v6293_v51 }
 0x2fd   : > { %1840 = vmatprep.subr.bf16.mxu0 %v6294_v52 }
 0x300   : > { %1841 = vmatpush1.bf16.msra.mxu0 %v6296_v53 }
 0x301   : > { %1842 = vmatprep.subr.bf16.mxu0 %v6297_v54 }
 0x304   : > { %1843 = vmatpush1.bf16.msra.mxu0 %v6299_v55 }
 0x305   : > { %1844 = vmatprep.subr.bf16.mxu0 %v6300_v56 }
 0x308   : > { %1845 = vmatpush1.bf16.msra.mxu0 %v6302_v57 }
 0x309   : > { %1846 = vmatprep.subr.bf16.mxu0 %v6303_v58 }
 0x30c   : > { %1847 = vmatpush1.bf16.msra.mxu0 %v6305_v59  ;;  %v1864_v59 = vld [vmem:[#allocation3 + $0x8] sm:$0xff] }
 0x30d   : > { %1848 = vmatprep.subr.bf16.mxu0 %v6306_v60  ;;  %v6340_v60 = vld [vmem:[#allocation14 + $0x84] ss:$8 sps:$4 sm:$0xff]  }
 0x310   : > { %1849 = vmatpush1.bf16.msra.mxu0 %v6308_v61 }
 0x311   : > { %1850 = vmatprep.subr.bf16.mxu0 %v6309_v62 }
 0x314   : > { %1851 = vmatpush1.bf16.msra.mxu0 %v6311_v63 }
 0x315   : > { %2295 = vmatprep.subr.bf16.mxu0 %v6316_v19  ;;  %v6359_v19 = vld [vmem:[#allocation14 + $0xf0] ss:$8 sps:$4 sm:$0xff]  }
 0x317   : > { %1853 = vmatmul.mubr.bf16.vlgmr.msra.gmra.mrb[0].mxu0 %v5406_v0 }
 0x318   : > { %2296 = vmatpush1.bf16.msra.mxu0 %v6314_v18  ;;  %2327 = vmatprep.mubr.bf16.mxu0 %v7122_v42  ;;  %v6361_v18 = vld [vmem:[#allocation14 + $0xf4] ss:$8 sps:$4 sm:$0xff]  }
 0x319   : > { %2297 = vmatprep.subr.bf16.mxu0 %v6319_v20 }
 0x31c   : > { %2298 = vmatpush1.bf16.msra.mxu0 %v6317_v21 }
 0x31d   : > { %2299 = vmatprep.subr.bf16.mxu0 %v6322_v22 }
 0x320   : > { %2300 = vmatpush1.bf16.msra.mxu0 %v6320_v23 }
 0x321   : > { %2301 = vmatprep.subr.bf16.mxu0 %v6325_v24 }
 0x324   : > { %2302 = vmatpush1.bf16.msra.mxu0 %v6323_v25  ;;  %v6362_v25 = vld [vmem:[#allocation15] ss:$8 sps:$4 sm:$0xff]  }
 0x325   : > { %2303 = vmatprep.subr.bf16.mxu0 %v6328_v26  ;;  %v6364_v26 = vld [vmem:[#allocation15 + $0x4] ss:$8 sps:$4 sm:$0xff]  }
 0x328   : > { %2304 = vmatpush1.bf16.msra.mxu0 %v6326_v27  ;;  %v6367_v27 = vld [vmem:[#allocation15 + $0x14] ss:$8 sps:$4 sm:$0xff]  }
 0x329   : > { %2305 = vmatprep.subr.bf16.mxu0 %v6331_v28  ;;  %v6365_v28 = vld [vmem:[#allocation15 + $0x10] ss:$8 sps:$4 sm:$0xff]  }
 0x32c   : > { %2306 = vmatpush1.bf16.msra.mxu0 %v6329_v29  ;;  %v6370_v29 = vld [vmem:[#allocation15 + $0x24] ss:$8 sps:$4 sm:$0xff]  }
 0x32d   : > { %2307 = vmatprep.subr.bf16.mxu0 %v6334_v31  ;;  %v6368_v31 = vld [vmem:[#allocation15 + $0x20] ss:$8 sps:$4 sm:$0xff]  }
 0x330   : > { %2308 = vmatpush1.bf16.msra.mxu0 %v6332_v32  ;;  %v6373_v32 = vld [vmem:[#allocation15 + $0x34] ss:$8 sps:$4 sm:$0xff]  }
 0x331   : > { %2309 = vmatprep.subr.bf16.mxu0 %v6337_v33  ;;  %v6371_v33 = vld [vmem:[#allocation15 + $0x30] ss:$8 sps:$4 sm:$0xff]  }
 0x334   : > { %2310 = vmatpush1.bf16.msra.mxu0 %v6335_v34  ;;  %v6376_v34 = vld [vmem:[#allocation15 + $0x44] ss:$8 sps:$4 sm:$0xff]  }
 0x335   : > { %5845 = vmatprep.subr.bf16.mxu0 %v7120_v30 }
 0x3ea   : > { %v1854_v1 = vpop.f32.mrb[0].mxu0 }
 0x3eb   : > { %v1865_v2 = vmul.f32 0.088388346, %v1854_v1  ;;  %v7657_v3 = vpop.f32.mrb[1].mxu0 }
 0x3ec   : > { %v1858_v4 = vpop.f32.mrb[2].mxu0  ;;  %v1866_v40 = vmul.f32 0.088388346, %v7657_v3 }
 0x3ed   : > { %v1867_v5 = vpack.c.bf16 %v1865_v2, %v1865_v2  ;;  %v1859_v6 = vpop.f32.mrb[3].mxu0  ;;  %v6338_v4 = vld [vmem:[#allocation14 + $0x80] ss:$8 sps:$4 sm:$0xff]  }
 0x3ee   : > { %v1868_v41 = vpack.c.bf16 %v1866_v40, %v1866_v40  ;;  %v6343_v6 = vld [vmem:[#allocation14 + $0x94] ss:$8 sps:$4 sm:$0xff]  }
 0x3ef   : > { %5824 = vmatmul.mubr.bf16.vlgmr.msra.gmra.mrb[0].mxu1 %v1867_v5  ;;  %v6385_v40 = vld [vmem:[#allocation15 + $0x74] ss:$8 sps:$4 sm:$0xff]  }
 0x3f0   : > { %5829 = vmatprep.mubr.msk.bf16.mxu1 %vm7121_vm0, %v7120_v30  ;;  %5828 = vmatpush3.bf16.msra.mxu1 %v1863_v17  ;;  %v6356_v17 = vld [vmem:[#allocation14 + $0xe0] ss:$8 sps:$4 sm:$0xff]  }
 0x3f1   : > { %5833 = vmatprep.subr.bf16.mxu1 %v7120_v30 }
 0x4c2   : > { %v1903_v7 = vpop.f32.mrb[0].mxu1 }
 0x4c3   : > { %v5825_v8 = vpop.f32.mrb[1].mxu1  ;;  %v1910_v9 = vsel %vm1909_vm1, %v1903_v7, -inf }
 0x4c4   : > { %1911 = vmax.xlane.f32.xlu0 %v1910_v9  ;;  %v1906_v10 = vpop.f32.mrb[2].mxu1  ;;  %v6346_v8 = vld [vmem:[#allocation14 + $0xa4] ss:$8 sps:$4 sm:$0xff]   ;;  %v6344_v9 = vld [vmem:[#allocation14 + $0xa0] ss:$8 sps:$4 sm:$0xff]  }
 0x4c5   : > { %v5826_v11 = vpop.f32.mrb[3].mxu1  ;;  %v6349_v10 = vld [vmem:[#allocation14 + $0xb4] ss:$8 sps:$4 sm:$0xff]  }
 0x4c6   : > { %v6347_v11 = vld [vmem:[#allocation14 + $0xb0] ss:$8 sps:$4 sm:$0xff]  }
 0x551   : > { %v1912_v12 = vpop.xlane.xlu0 %1911 }
 0x552   : > { %v1913_v13 = vsub.f32 %v1903_v7, %v1912_v12  ;;  %v6341_v7 = vld [vmem:[#allocation14 + $0x90] ss:$8 sps:$4 sm:$0xff]   ;;  %v6352_v12 = vld [vmem:[#allocation14 + $0xc4] ss:$8 sps:$4 sm:$0xff]  }
 0x554   : > { %v1914_v14 = vmul.f32 1.442695, %v1913_v13  ;;  %v6350_v13 = vld [vmem:[#allocation14 + $0xc0] ss:$8 sps:$4 sm:$0xff]  }
 0x556   : > { %6650 = vpow2.f32 %v1914_v14  ;;  %v6355_v14 = vld [vmem:[#allocation14 + $0xd4] ss:$8 sps:$4 sm:$0xff]  }
 0x560   : > { %v6651_v15 = vpop.eup %6650 }
 0x561   : > { %v1916_v16 = vsel %vm1909_vm1, %v6651_v15, 0.0 }
 0x562   : > { %1917 = vadd.xlane.f32.xlu0 %v1916_v16  ;;  %v6358_v16 = vld [vmem:[#allocation14 + $0xe4] ss:$8 sps:$4 sm:$0xff]  }
 0x5ef   : > { %v1918_v35 = vpop.xlane.xlu0 %1917 }
 0x5f0   : > { %6652 = vrcp.f32 %v1918_v35  ;;  %v6374_v35 = vld [vmem:[#allocation15 + $0x40] ss:$8 sps:$4 sm:$0xff]  }
 0x5fa   : > { %v6653_v36 = vpop.eup %6652 }
 0x5fb   : > { %v1920_v37 = vmul.f32 %v6653_v36, %v6651_v15  ;;  %v6353_v15 = vld [vmem:[#allocation14 + $0xd0] ss:$8 sps:$4 sm:$0xff]   ;;  %v6379_v36 = vld [vmem:[#allocation15 + $0x54] ss:$8 sps:$4 sm:$0xff]  }
 0x5fd   : > { %v1921_v38 = vpack.c.bf16 %v1920_v37, %v1920_v37  ;;  %v6377_v37 = vld [vmem:[#allocation15 + $0x50] ss:$8 sps:$4 sm:$0xff]  }
 0x5ff   : > { %5830 = vmatmul.mubr.msk.bf16.vlgmr.msra.gmra.mrb[4].mxu1 %vm1909_vm1, %v1921_v38  ;;  %v6382_v38 = vld [vmem:[#allocation15 + $0x64] ss:$8 sps:$4 sm:$0xff]  }
 0x600   : > { %5834 = vmatpush3.bf16.xpose.msra.mxu1 %v1862_v39  ;;  %5835 = vmatprep.mubr.msk.bf16.mxu1 %vm7121_vm0, %v7120_v30  ;;  %v6380_v39 = vld [vmem:[#allocation15 + $0x60] ss:$8 sps:$4 sm:$0xff]  }
 0x601   : > { %5839 = vmatprep.subr.bf16.mxu1 %v7120_v30 }
 0x607   : > { %5836 = vmatmul.mubr.bf16.vlgmr.msra.gmra.mrb[8].mxu1 %v1868_v41  ;;  %v6383_v41 = vld [vmem:[#allocation15 + $0x70] ss:$8 sps:$4 sm:$0xff]  }
 0x608   : > { %5841 = vmatprep.mubr.msk.bf16.mxu1 %vm7121_vm0, %v7120_v30  ;;  %5840 = vmatpush3.bf16.msra.mxu1 %v1864_v59 }
 0x609   : > { %2174 = vmatprep.subr.bf16.mxu1 %v6340_v60 }
 0x6d2   : > { %v1959_v44 = vpop.f32.mrb[4].mxu1 }
 0x6d3   : > { %v1965_v45 = vpack.c.bf16 %v1959_v44, %v1959_v44  ;;  %v5831_v46 = vpop.f32.mrb[5].mxu1  ;;  %v6388_v44 = vld [vmem:[#allocation15 + $0x84] ss:$8 sps:$4 sm:$0xff]  }
 0x6d4   : > { %v1962_v47 = vpop.f32.mrb[6].mxu1  ;;  %v6391_v46 = vld [vmem:[#allocation15 + $0x94] ss:$8 sps:$4 sm:$0xff]  }
 0x6d5   : > { %v5832_v48 = vpop.f32.mrb[7].mxu1  ;;  %2328 = vmatmul.mubr.bf16.vlgmr.msra.gmra.mrb[4].mxu0 %v1965_v45  ;;  %v6386_v45 = vld [vmem:[#allocation15 + $0x80] ss:$8 sps:$4 sm:$0xff]   ;;  %v6389_v47 = vld [vmem:[#allocation15 + $0x90] ss:$8 sps:$4 sm:$0xff]  }
 0x6d6   : > { %5847 = vmatprep.mubr.msk.bf16.mxu0 %vm7121_vm0, %v7120_v30  ;;  %v2336_v48 = vunpack.c.l.bf16 %v7648_v43 }
 0x6da   : > { %v2016_v49 = vpop.f32.mrb[8].mxu1 }
 0x6db   : > { %v5837_v50 = vpop.f32.mrb[9].mxu1  ;;  %v2022_v51 = vsel %vm1909_vm1, %v2016_v49, -inf }
 0x6dc   : > { %2023 = vmax.xlane.f32.xlu1 %v2022_v51  ;;  %v2019_v52 = vpop.f32.mrb[10].mxu1  ;;  %v2337_v50 = vunpack.c.h.bf16 %v7648_v43  ;;  %v6397_v43 = vld [vmem:[#allocation15 + $0xb4] ss:$8 sps:$4 sm:$0xff]  }
 0x6dd   : > { %v5838_v53 = vpop.f32.mrb[11].mxu1 }
 0x769   : > { %v2024_v54 = vpop.xlane.xlu1 %2023 }
 0x76a   : > { %v2025_v55 = vsub.f32 %v2016_v49, %v2024_v54 }
 0x76c   : > { %v2026_v56 = vmul.f32 1.442695, %v2025_v55 }
 0x76e   : > { %6654 = vpow2.f32 %v2026_v56 }
 0x778   : > { %v6655_v57 = vpop.eup %6654 }
 0x779   : > { %v2028_v58 = vsel %vm1909_vm1, %v6655_v57, 0.0 }
 0x77a   : > { %2029 = vadd.xlane.f32.xlu1 %v2028_v58 }
 0x7a8   : > { %v7677_v61 = vpop.f32.mrb[4].mxu0 }
 0x7a9   : > { %v7679_v62 = vpop.f32.mrb[5].mxu0 }
 0x7aa   : > { %v2333_v63 = vpop.f32.mrb[6].mxu0 }
 0x7ab   : > { %v2334_v0 = vpop.f32.mrb[7].mxu0 }
 0x7ac   : > { %v6394_v0 = vld [vmem:[#allocation15 + $0xa4] ss:$8 sps:$4 sm:$0xff]  }
 0x807   : > { %v2030_v1 = vpop.xlane.xlu1 %2029 }
 0x808   : > { %6656 = vrcp.f32 %v2030_v1  ;;  %v6392_v1 = vld [vmem:[#allocation15 + $0xa0] ss:$8 sps:$4 sm:$0xff]  }
 0x812   : > { %v6657_v2 = vpop.eup %6656 }
 0x813   : > { %v2032_v3 = vmul.f32 %v6657_v2, %v6655_v57  ;;  %v6395_v2 = vld [vmem:[#allocation15 + $0xb0] ss:$8 sps:$4 sm:$0xff]  }
 0x815   : > { %v2033_v5 = vpack.c.bf16 %v2032_v3, %v2032_v3  ;;  %v6403_v3 = vld [vmem:[#allocation15 + $0xd4] ss:$8 sps:$4 sm:$0xff]  }
 0x817   : > { %5842 = vmatmul.mubr.msk.bf16.vlgmr.msra.gmra.mrb[12].mxu1 %vm1909_vm1, %v2033_v5  ;;  %v6406_v5 = vld [vmem:[#allocation15 + $0xe4] ss:$8 sps:$4 sm:$0xff]  }
 0x818   : > { %2175 = vmatpush1.bf16.msra.mxu1 %v6338_v4  ;;  %2206 = vmatprep.mubr.bf16.mxu1 %v7122_v42  ;;  %v6401_v4 = vld [vmem:[#allocation15 + $0xd0] ss:$8 sps:$4 sm:$0xff]  }
 0x819   : > { %2176 = vmatprep.subr.bf16.mxu1 %v6343_v6  ;;  %v6404_v6 = vld [vmem:[#allocation15 + $0xe0] ss:$8 sps:$4 sm:$0xff]  }
 0x81c   : > { %2177 = vmatpush1.bf16.msra.mxu1 %v6341_v7  ;;  %v6409_v7 = vld [vmem:[#allocation15 + $0xf4] ss:$8 sps:$4 sm:$0xff]  }
 0x81d   : > { %2178 = vmatprep.subr.bf16.mxu1 %v6346_v8  ;;  %v6407_v8 = vld [vmem:[#allocation15 + $0xf0] ss:$8 sps:$4 sm:$0xff]  }
 0x820   : > { %2179 = vmatpush1.bf16.msra.mxu1 %v6344_v9  ;;  %v2608_v9 = vld [vmem:[#allocation4] sm:$0xff] }
 0x821   : > { %2180 = vmatprep.subr.bf16.mxu1 %v6349_v10  ;;  %5846 = vmatpush3.bf16.xpose.msra.mxu0 %v2608_v9 }
 0x822   : > { %5851 = vmatprep.subr.bf16.mxu0 %v7120_v30 }
 0x824   : > { %2181 = vmatpush1.bf16.msra.mxu1 %v6347_v11 }
 0x825   : > { %2182 = vmatprep.subr.bf16.mxu1 %v6352_v12 }
 0x828   : > { %2183 = vmatpush1.bf16.msra.mxu1 %v6350_v13 }
 0x829   : > { %2184 = vmatprep.subr.bf16.mxu1 %v6355_v14 }
 0x82c   : > { %2185 = vmatpush1.bf16.msra.mxu1 %v6353_v15 }
 0x82d   : > { %2186 = vmatprep.subr.bf16.mxu1 %v6358_v16  ;;  %v2361_v16 = vlaneseq }
 0x830   : > { %2187 = vmatpush1.bf16.msra.mxu1 %v6356_v17 }
 0x831   : > { %2188 = vmatprep.subr.bf16.mxu1 %v6361_v18  ;;  %v2362_v18 = vshrl.u32 %v2361_v16, 7 }
 0x834   : > { %2189 = vmatpush1.bf16.msra.mxu1 %v6359_v19  ;;  %v7688_v19 = vsub.s32 0, %v2362_v18 }
 0x835   : > { %2567 = vmatprep.subr.bf16.mxu1 %v6364_v26 }
 0x8ea   : > { %v2071_v20 = vpop.f32.mrb[12].mxu1 }
 0x8eb   : > { %v2077_v21 = vpack.c.bf16 %v2071_v20, %v2071_v20  ;;  %v5843_v22 = vpop.f32.mrb[13].mxu1  ;;  %v7690_v20 = vsub.s32 1, %v2362_v18 }
 0x8ec   : > { %v2074_v23 = vpop.f32.mrb[14].mxu1 }
 0x8ed   : > { %v5844_v24 = vpop.f32.mrb[15].mxu1  ;;  %2207 = vmatmul.mubr.bf16.vlgmr.msra.gmra.mrb[16].mxu1 %v2077_v21  ;;  %v2340_v21 = vld [vmem:[%s7952_s8] sm:$0x3]  ;;  %s5039_s8 = scalar_lea.sflag [#allocation8], %s626_s5 }
 0x8ee   : > { %2568 = vmatpush1.bf16.msra.mxu1 %v6362_v25  ;;  %v2364_v24 = vrot.slane %v2340_v21, %v7688_v19  ;;  %v2368_v25 = vrot.slane %v2340_v21, %v7690_v20 }
 0x8ef   : > { %2569 = vmatprep.subr.bf16.mxu1 %v6367_v27 }
 0x8f2   : > { %2570 = vmatpush1.bf16.msra.mxu1 %v6365_v28 }
 0x8f3   : > { %2571 = vmatprep.subr.bf16.mxu1 %v6370_v29 }
 0x8f6   : > { %2572 = vmatpush1.bf16.msra.mxu1 %v6368_v31 }
 0x8f7   : > { %2573 = vmatprep.subr.bf16.mxu1 %v6373_v32 }
 0x8fa   : > { %2574 = vmatpush1.bf16.msra.mxu1 %v6371_v33 }
 0x8fb   : > { %2575 = vmatprep.subr.bf16.mxu1 %v6376_v34 }
 0x8fe   : > { %2576 = vmatpush1.bf16.msra.mxu1 %v6374_v35 }
 0x8ff   : > { %2577 = vmatprep.subr.bf16.mxu1 %v6379_v36 }
 0x902   : > { %2578 = vmatpush1.bf16.msra.mxu1 %v6377_v37 }
 0x903   : > { %2579 = vmatprep.subr.bf16.mxu1 %v6382_v38 }
 0x906   : > { %2580 = vmatpush1.bf16.msra.mxu1 %v6380_v39 }
 0x907   : > { %2581 = vmatprep.subr.bf16.mxu1 %v6385_v40 }
 0x90a   : > { %2582 = vmatpush1.bf16.msra.mxu1 %v6383_v41 }
 0x90b   : > { %2583 = vmatprep.subr.bf16.mxu1 %v6388_v44 }
 0x90e   : > { %2584 = vmatpush1.bf16.msra.mxu1 %v6386_v45 }
 0x90f   : > { %2585 = vmatprep.subr.bf16.mxu1 %v6391_v46 }
 0x912   : > { %2586 = vmatpush1.bf16.msra.mxu1 %v6389_v47 }
 0x913   : > { %2587 = vmatprep.subr.bf16.mxu1 %v6394_v0  ;;  %v6422_v0 = vld [vmem:[#allocation18 + $0x40] ss:$8 sps:$4 sm:$0xff]  }
 0x916   : > { %2588 = vmatpush1.bf16.msra.mxu1 %v6392_v1  ;;  %v6427_v1 = vld [vmem:[#allocation18 + $0x54] ss:$8 sps:$4 sm:$0xff]  }
 0x917   : > { %2589 = vmatprep.subr.bf16.mxu1 %v6397_v43  ;;  %v6425_v43 = vld [vmem:[#allocation18 + $0x50] ss:$8 sps:$4 sm:$0xff]  }
 0x91a   : > { %2590 = vmatpush1.bf16.msra.mxu1 %v6395_v2  ;;  %v6430_v2 = vld [vmem:[#allocation18 + $0x64] ss:$8 sps:$4 sm:$0xff]  }
 0x9c0   : > { %v2208_v49 = vpop.f32.mrb[16].mxu1 }
 0x9c1   : > { %v2330_v51 = vadd.f32 %v7677_v61, %v2208_v49  ;;  %v2210_v52 = vpop.f32.mrb[17].mxu1  ;;  %v6398_v61 = vld [vmem:[#allocation15 + $0xc0] ss:$8 sps:$4 sm:$0xff]  }
 0x9c2   : > { %v2332_v53 = vadd.f32 %v7679_v62, %v2210_v52  ;;  %v2212_v54 = vpop.f32.mrb[18].mxu1  ;;  %v6400_v62 = vld [vmem:[#allocation15 + $0xc4] ss:$8 sps:$4 sm:$0xff]   ;;  %v2610_v52 = vld [vmem:[#allocation5] sm:$0xff] }
 0x9c3   : > { %v2338_v55 = vadd.f32 %v2336_v48, %v2330_v51  ;;  %v2213_v56 = vpop.f32.mrb[19].mxu1  ;;  %2591 = vmatprep.subr.bf16.mxu1 %v6400_v62  ;;  %v6412_v54 = vld [vmem:[#allocation18 + $0x4] ss:$8 sps:$4 sm:$0xff]   ;;  %v6433_v62 = vld [vmem:[#allocation18 + $0x74] ss:$8 sps:$4 sm:$0xff]  }
 0x9c4   : > { %v2339_v57 = vadd.f32 %v2337_v50, %v2332_v53  ;;  %2592 = vmatpush1.bf16.msra.mxu1 %v6398_v61  ;;  %v6410_v53 = vld [vmem:[#allocation18] ss:$8 sps:$4 sm:$0xff]   ;;  %v6413_v56 = vld [vmem:[#allocation18 + $0x10] ss:$8 sps:$4 sm:$0xff]  }
 0x9c5   : > { %v2346_v58 = vmul.f32 %v2338_v55, %v2338_v55  ;;  %2593 = vmatprep.subr.bf16.mxu1 %v6403_v3  ;;  %v6428_v61 = vld [vmem:[#allocation18 + $0x60] ss:$8 sps:$4 sm:$0xff]   ;;  %v6431_v3 = vld [vmem:[#allocation18 + $0x70] ss:$8 sps:$4 sm:$0xff]  }
 0x9c6   : > { %v2341_v59 = vadd.f32 %v2339_v57, %v2338_v55  ;;  %v2347_v60 = vmul.f32 %v2339_v57, %v2339_v57 }
 0x9c8   : > { %2342 = vadd.xlane.f32.xlu0 %v2341_v59  ;;  %v2348_v63 = vadd.f32 %v2347_v60, %v2346_v58  ;;  %2594 = vmatpush1.bf16.msra.mxu1 %v6401_v4  ;;  %v6416_v58 = vld [vmem:[#allocation18 + $0x20] ss:$8 sps:$4 sm:$0xff]   ;;  %v6421_v59 = vld [vmem:[#allocation18 + $0x34] ss:$8 sps:$4 sm:$0xff]   ;;  %v6419_v60 = vld [vmem:[#allocation18 + $0x30] ss:$8 sps:$4 sm:$0xff]  }
 0x9c9   : > { %2595 = vmatprep.subr.bf16.mxu1 %v6406_v5 }
 0x9ca   : > { %2349 = vadd.xlane.f32.xlu1 %v2348_v63  ;;  %v6424_v63 = vld [vmem:[#allocation18 + $0x44] ss:$8 sps:$4 sm:$0xff]  }
 0x9cc   : > { %2596 = vmatpush1.bf16.msra.mxu1 %v6404_v6 }
 0x9cd   : > { %2597 = vmatprep.subr.bf16.mxu1 %v6409_v7 }
 0x9d0   : > { %2598 = vmatpush1.bf16.msra.mxu1 %v6407_v8  ;;  %v2609_v8 = vld [vmem:[#allocation4 + $0x8] sm:$0xff] }
 0x9d1   : > { %3041 = vmatprep.subr.bf16.mxu1 %v6412_v54  ;;  %v6457_v54 = vld [vmem:[#allocation18 + $0xf4] ss:$8 sps:$4 sm:$0xff]  }
 0xa55   : > { %v2343_v10 = vpop.xlane.xlu0 %2342 }
 0xa56   : > { %v2345_v11 = vmul.f32 0.00390625, %v2343_v10 }
 0xa57   : > { %v2350_v12 = vpop.xlane.xlu1 %2349 }
 0xa58   : > { %v2351_v13 = vmul.f32 0.00390625, %v2350_v12  ;;  %v2352_v14 = vmul.f32 %v2345_v11, %v2345_v11  ;;  %v2354_v22 = vsub.f32 %v2338_v55, %v2345_v11  ;;  %v2355_v23 = vsub.f32 %v2339_v57, %v2345_v11  ;;  %v6415_v55 = vld [vmem:[#allocation18 + $0x14] ss:$8 sps:$4 sm:$0xff]   ;;  %v6418_v57 = vld [vmem:[#allocation18 + $0x24] ss:$8 sps:$4 sm:$0xff]  }
 0xa5a   : > { %v2353_v15 = vsub.f32 %v2351_v13, %v2352_v14 }
 0xa5c   : > { %v2356_v17 = vadd.f32 1e-05, %v2353_v15 }
 0xa5e   : > { %6658 = vrsqrt.f32 %v2356_v17 }
 0xa68   : > { %v6659_v26 = vpop.eup %6658 }
 0xa69   : > { %v2359_v27 = vmul.f32 %v6659_v26, %v2355_v23  ;;  %v2358_v28 = vmul.f32 %v6659_v26, %v2354_v22 }
 0xa6b   : > { %v7697_v29 = vmul.f32 %v2368_v25, %v2359_v27  ;;  %v7699_v31 = vmul.f32 %v2364_v24, %v2358_v28  ;;  %v2611_v27 = vld [vmem:[#allocation5 + $0x8] sm:$0xff]  ;;  %v6436_v28 = vld [vmem:[#allocation18 + $0x84] ss:$8 sps:$4 sm:$0xff]  }
 0xa6d   : > { %v2374_v32 = vpack.c.bf16 %v7697_v29, %v7697_v29  ;;  %v2373_v33 = vpack.c.bf16 %v7699_v31, %v7699_v31 }
 0xa6f   : > { %2599 = vmatprep.mubr.bf16.mxu1 %v2374_v32 }
 0xa70   : > { %2600 = vmatmul.mubr.bf16.vlgmr.msra.gmra.mrb[20].mxu1 %v2373_v33 }
 0xa71   : > { %3073 = vmatprep.mubr.bf16.mxu1 %v7122_v42  ;;  %3042 = vmatpush1.bf16.msra.mxu1 %v6410_v53  ;;  %v6454_v53 = vld [vmem:[#allocation18 + $0xe4] ss:$8 sps:$4 sm:$0xff]  }
 0xa72   : > { %3043 = vmatprep.subr.bf16.mxu1 %v6415_v55  ;;  %v6455_v55 = vld [vmem:[#allocation18 + $0xf0] ss:$8 sps:$4 sm:$0xff]  }
 0xa75   : > { %3044 = vmatpush1.bf16.msra.mxu1 %v6413_v56 }
 0xa76   : > { %3045 = vmatprep.subr.bf16.mxu1 %v6418_v57 }
 0xa79   : > { %3046 = vmatpush1.bf16.msra.mxu1 %v6416_v58 }
 0xa7a   : > { %3047 = vmatprep.subr.bf16.mxu1 %v6421_v59 }
 0xa7d   : > { %3048 = vmatpush1.bf16.msra.mxu1 %v6419_v60 }
 0xa7e   : > { %3049 = vmatprep.subr.bf16.mxu1 %v6424_v63  ;;  %v3118_v63 = vld [vmem:[#allocation20] sm:$0xff] }
 0xa81   : > { %3050 = vmatpush1.bf16.msra.mxu1 %v6422_v0  ;;  %v3119_v0 = vld [vmem:[#allocation20 + $0x20] sm:$0xff] }
 0xa82   : > { %3051 = vmatprep.subr.bf16.mxu1 %v6427_v1  ;;  %v3387_v1 = vld [vmem:[#allocation20 + $0x8] sm:$0xff] }
 0xa85   : > { %3052 = vmatpush1.bf16.msra.mxu1 %v6425_v43  ;;  %v5540_v43 = vcombine.low %v3118_v63, %v3119_v0 }
 0xa86   : > { %3053 = vmatprep.subr.bf16.mxu1 %v6430_v2  ;;  %v5541_v2 = vcombine.high %v3118_v63, %v3119_v0 }
 0xa89   : > { %3054 = vmatpush1.bf16.msra.mxu1 %v6428_v61  ;;  %v3388_v61 = vld [vmem:[#allocation20 + $0x28] sm:$0xff] }
 0xa8a   : > { %3055 = vmatprep.subr.bf16.mxu1 %v6433_v62  ;;  %v3120_v62 = vld [vmem:[#allocation20 + $0x40] sm:$0xff] }
 0xa8d   : > { %3056 = vmatpush1.bf16.msra.mxu1 %v6431_v3  ;;  %v3121_v3 = vld [vmem:[#allocation20 + $0x60] sm:$0xff] }
 0xb43   : > { %v2601_v34 = vpop.f32.mrb[20].mxu1 }
 0xb44   : > { %v2612_v35 = vmul.f32 0.088388346, %v2601_v34  ;;  %v7706_v36 = vpop.f32.mrb[21].mxu1 }
 0xb45   : > { %v2605_v37 = vpop.f32.mrb[22].mxu1  ;;  %v2613_v9 = vmul.f32 0.088388346, %v7706_v36 }
 0xb46   : > { %v2614_v38 = vpack.c.bf16 %v2612_v35, %v2612_v35  ;;  %v2606_v39 = vpop.f32.mrb[23].mxu1 }
 0xb47   : > { %v2615_v10 = vpack.c.bf16 %v2613_v9, %v2613_v9  ;;  %v6434_v39 = vld [vmem:[#allocation18 + $0x80] ss:$8 sps:$4 sm:$0xff]  }
 0xb48   : > { %5848 = vmatmul.mubr.bf16.vlgmr.msra.gmra.mrb[8].mxu0 %v2614_v38  ;;  %v3122_v9 = vld [vmem:[#allocation20 + $0x80] sm:$0xff] }
 0xb49   : > { %5853 = vmatprep.mubr.msk.bf16.mxu0 %vm7121_vm0, %v7120_v30  ;;  %5852 = vmatpush3.bf16.msra.mxu0 %v2610_v52  ;;  %v6449_v52 = vld [vmem:[#allocation18 + $0xd0] ss:$8 sps:$4 sm:$0xff]  }
 0xb4a   : > { %5857 = vmatprep.subr.bf16.mxu0 %v7120_v30 }
 0xc1b   : > { %v2650_v40 = vpop.f32.mrb[8].mxu0 }
 0xc1c   : > { %v5849_v41 = vpop.f32.mrb[9].mxu0  ;;  %v2656_v44 = vsel %vm1909_vm1, %v2650_v40, -inf }
 0xc1d   : > { %2657 = vmax.xlane.f32.xlu0 %v2656_v44  ;;  %v2653_v45 = vpop.f32.mrb[10].mxu0  ;;  %v6439_v41 = vld [vmem:[#allocation18 + $0x94] ss:$8 sps:$4 sm:$0xff]   ;;  %v6437_v44 = vld [vmem:[#allocation18 + $0x90] ss:$8 sps:$4 sm:$0xff]  }
 0xc1e   : > { %v5850_v46 = vpop.f32.mrb[11].mxu0  ;;  %v6442_v45 = vld [vmem:[#allocation18 + $0xa4] ss:$8 sps:$4 sm:$0xff]  }
 0xc1f   : > { %v6440_v46 = vld [vmem:[#allocation18 + $0xa0] ss:$8 sps:$4 sm:$0xff]  }
 0xcaa   : > { %v2658_v47 = vpop.xlane.xlu0 %2657 }
 0xcab   : > { %v2659_v48 = vsub.f32 %v2650_v40, %v2658_v47  ;;  %v6445_v47 = vld [vmem:[#allocation18 + $0xb4] ss:$8 sps:$4 sm:$0xff]  }
 0xcad   : > { %v2660_v49 = vmul.f32 1.442695, %v2659_v48  ;;  %v6443_v48 = vld [vmem:[#allocation18 + $0xb0] ss:$8 sps:$4 sm:$0xff]  }
 0xcaf   : > { %6660 = vpow2.f32 %v2660_v49  ;;  %v6448_v49 = vld [vmem:[#allocation18 + $0xc4] ss:$8 sps:$4 sm:$0xff]  }
 0xcb9   : > { %v6661_v50 = vpop.eup %6660 }
 0xcba   : > { %v2662_v51 = vsel %vm1909_vm1, %v6661_v50, 0.0 }
 0xcbb   : > { %2663 = vadd.xlane.f32.xlu1 %v2662_v51  ;;  %v6451_v51 = vld [vmem:[#allocation18 + $0xd4] ss:$8 sps:$4 sm:$0xff]  }
 0xd48   : > { %v2664_v4 = vpop.xlane.xlu1 %2663 }
 0xd49   : > { %6662 = vrcp.f32 %v2664_v4  ;;  %v5572_v4 = vcombine.low %v3387_v1, %v3388_v61 }
 0xd53   : > { %v6663_v5 = vpop.eup %6662 }
 0xd54   : > { %v2666_v6 = vmul.f32 %v6663_v5, %v6661_v50  ;;  %v6446_v50 = vld [vmem:[#allocation18 + $0xc0] ss:$8 sps:$4 sm:$0xff]   ;;  %v5573_v5 = vcombine.high %v3387_v1, %v3388_v61 }
 0xd55   : > { %v3135_v61 = vld [vmem:[#allocation20 + $0x220] sm:$0xff] }
 0xd56   : > { %v2667_v7 = vpack.c.bf16 %v2666_v6, %v2666_v6  ;;  %v5543_v6 = vcombine.high %v3120_v62, %v3121_v3  ;;  %3579 = vmatprep.subr.bf16.mxu1 %v5573_v5 }
 0xd58   : > { %5854 = vmatmul.mubr.msk.bf16.vlgmr.msra.gmra.mrb[12].mxu0 %vm1909_vm1, %v2667_v7  ;;  %v3389_v7 = vld [vmem:[#allocation20 + $0x48] sm:$0xff] }
 0xd59   : > { %5858 = vmatpush3.bf16.xpose.msra.mxu0 %v2609_v8  ;;  %5859 = vmatprep.mubr.msk.bf16.mxu0 %vm7121_vm0, %v7120_v30  ;;  %v3390_v8 = vld [vmem:[#allocation20 + $0x68] sm:$0xff] }
 0xd5a   : > { %5863 = vmatprep.subr.bf16.mxu0 %v7120_v30 }
 0xd60   : > { %5860 = vmatmul.mubr.bf16.vlgmr.msra.gmra.mrb[16].mxu0 %v2615_v10  ;;  %v5575_v10 = vcombine.high %v3389_v7, %v3390_v8 }
 0xd61   : > { %5865 = vmatprep.mubr.msk.bf16.mxu0 %vm7121_vm0, %v7120_v30  ;;  %5864 = vmatpush3.bf16.msra.mxu0 %v2611_v27  ;;  %v3126_v27 = vld [vmem:[#allocation20 + $0x100] sm:$0xff] }
 0xd62   : > { %2920 = vmatprep.subr.bf16.mxu0 %v6436_v28  ;;  %v3127_v28 = vld [vmem:[#allocation20 + $0x120] sm:$0xff] }
 0xe2b   : > { %v2705_v11 = vpop.f32.mrb[12].mxu0 }
 0xe2c   : > { %v2711_v12 = vpack.c.bf16 %v2705_v11, %v2705_v11  ;;  %v5855_v13 = vpop.f32.mrb[13].mxu0  ;;  %v3123_v11 = vld [vmem:[#allocation20 + $0xa0] sm:$0xff] }
 0xe2d   : > { %v2708_v14 = vpop.f32.mrb[14].mxu0  ;;  %v3392_v13 = vld [vmem:[#allocation20 + $0xa8] sm:$0xff] }
 0xe2e   : > { %v5856_v15 = vpop.f32.mrb[15].mxu0  ;;  %3074 = vmatmul.mubr.bf16.vlgmr.msra.gmra.mrb[24].mxu1 %v2711_v12  ;;  %v3391_v12 = vld [vmem:[#allocation20 + $0x88] sm:$0xff]  ;;  %v5542_v14 = vcombine.low %v3120_v62, %v3121_v3 }
 0xe2f   : > { %3580 = vmatpush1.bf16.msra.mxu1 %v5572_v4  ;;  %v5574_v15 = vcombine.low %v3389_v7, %v3390_v8  ;;  %v3403_v62 = vld [vmem:[#allocation20 + $0x208] sm:$0xff]  ;;  %v3136_v8 = vld [vmem:[#allocation20 + $0x240] sm:$0xff] }
 0xe30   : > { %3581 = vmatprep.subr.bf16.mxu1 %v5575_v10  ;;  %v3404_v3 = vld [vmem:[#allocation20 + $0x228] sm:$0xff] }
 0xe31   : > { %v5589_v7 = vcombine.high %v3403_v62, %v3404_v3  ;;  %v3405_v10 = vld [vmem:[#allocation20 + $0x248] sm:$0xff] }
 0xe33   : > { %v2762_v16 = vpop.f32.mrb[16].mxu0  ;;  %3582 = vmatpush1.bf16.msra.mxu1 %v5574_v15 }
 0xe34   : > { %v5861_v17 = vpop.f32.mrb[17].mxu0  ;;  %v2768_v18 = vsel %vm1909_vm1, %v2762_v16, -inf }
 0xe35   : > { %2769 = vmax.xlane.f32.xlu0 %v2768_v18  ;;  %v2765_v21 = vpop.f32.mrb[18].mxu0  ;;  %v5577_v17 = vcombine.high %v3391_v12, %v3392_v13  ;;  %v3124_v18 = vld [vmem:[#allocation20 + $0xc0] sm:$0xff] }
 0xe36   : > { %v5862_v22 = vpop.f32.mrb[19].mxu0  ;;  %v3125_v21 = vld [vmem:[#allocation20 + $0xe0] sm:$0xff] }
 0xe37   : > { %v3393_v22 = vld [vmem:[#allocation20 + $0xc8] sm:$0xff]  ;;  %3583 = vmatprep.subr.bf16.mxu1 %v5577_v17 }
 0xec2   : > { %v2770_v23 = vpop.xlane.xlu0 %2769 }
 0xec3   : > { %v2771_v24 = vsub.f32 %v2762_v16, %v2770_v23  ;;  %v5545_v16 = vcombine.high %v3122_v9, %v3123_v11  ;;  %v3394_v23 = vld [vmem:[#allocation20 + $0xe8] sm:$0xff] }
 0xec5   : > { %v2772_v25 = vmul.f32 1.442695, %v2771_v24  ;;  %v5544_v24 = vcombine.low %v3122_v9, %v3123_v11  ;;  %v3137_v9 = vld [vmem:[#allocation20 + $0x260] sm:$0xff]  ;;  %v3406_v11 = vld [vmem:[#allocation20 + $0x268] sm:$0xff] }
 0xec6   : > { %v5591_v15 = vcombine.high %v3405_v10, %v3406_v11  ;;  %v5590_v17 = vcombine.low %v3405_v10, %v3406_v11 }
 0xec7   : > { %6664 = vpow2.f32 %v2772_v25  ;;  %v5576_v25 = vcombine.low %v3391_v12, %v3392_v13  ;;  %v5588_v13 = vcombine.low %v3403_v62, %v3404_v3 }
 0xec9   : > { %3584 = vmatpush1.bf16.msra.mxu1 %v5576_v25 }
 0xed1   : > { %v6665_v26 = vpop.eup %6664 }
 0xed2   : > { %v2774_v30 = vsel %vm1909_vm1, %v6665_v26, 0.0 }
 0xed3   : > { %2775 = vadd.xlane.f32.xlu1 %v2774_v30  ;;  %v5579_v30 = vcombine.high %v3393_v22, %v3394_v23 }
 0xed5   : > { %3585 = vmatprep.subr.bf16.mxu1 %v5579_v30 }
 0xf01   : > { %v7722_v32 = vpop.f32.mrb[24].mxu1 }
 0xf02   : > { %v7724_v33 = vpop.f32.mrb[25].mxu1 }
 0xf03   : > { %v3079_v34 = vpop.f32.mrb[26].mxu1 }
 0xf04   : > { %v3080_v35 = vpop.f32.mrb[27].mxu1  ;;  %v3395_v34 = vld [vmem:[#allocation20 + $0x108] sm:$0xff] }
 0xf05   : > { %v3396_v35 = vld [vmem:[#allocation20 + $0x128] sm:$0xff] }
 0xf60   : > { %v2776_v36 = vpop.xlane.xlu1 %2775 }
 0xf61   : > { %6666 = vrcp.f32 %v2776_v36  ;;  %v5546_v36 = vcombine.low %v3124_v18, %v3125_v21 }
 0xf6b   : > { %v6667_v37 = vpop.eup %6666 }
 0xf6c   : > { %v2778_v38 = vmul.f32 %v6667_v37, %v6665_v26  ;;  %v5547_v26 = vcombine.high %v3124_v18, %v3125_v21  ;;  %v5578_v37 = vcombine.low %v3393_v22, %v3394_v23 }
 0xf6e   : > { %v2779_v40 = vpack.c.bf16 %v2778_v38, %v2778_v38  ;;  %v5549_v38 = vcombine.high %v3126_v27, %v3127_v28  ;;  %3586 = vmatpush1.bf16.msra.mxu1 %v5578_v37  ;;  %v3408_v37 = vld [vmem:[#allocation20 + $0x2a8] sm:$0xff] }
 0xf70   : > { %5866 = vmatmul.mubr.msk.bf16.vlgmr.msra.gmra.mrb[20].mxu0 %vm1909_vm1, %v2779_v40  ;;  %v3128_v40 = vld [vmem:[#allocation20 + $0x140] sm:$0xff] }
 0xf71   : > { %2921 = vmatpush1.bf16.msra.mxu0 %v6434_v39  ;;  %2952 = vmatprep.mubr.bf16.mxu0 %v7122_v42  ;;  %v6452_v42 = vld [vmem:[#allocation18 + $0xe0] ss:$8 sps:$4 sm:$0xff]   ;;  %v5581_v39 = vcombine.high %v3395_v34, %v3396_v35 }
 0xf72   : > { %2922 = vmatprep.subr.bf16.mxu0 %v6439_v41  ;;  %v3129_v41 = vld [vmem:[#allocation20 + $0x160] sm:$0xff] }
 0xf73   : > { %3587 = vmatprep.subr.bf16.mxu1 %v5581_v39 }
 0xf75   : > { %2923 = vmatpush1.bf16.msra.mxu0 %v6437_v44  ;;  %v3397_v44 = vld [vmem:[#allocation20 + $0x148] sm:$0xff] }
 0xf76   : > { %2924 = vmatprep.subr.bf16.mxu0 %v6442_v45  ;;  %v3398_v45 = vld [vmem:[#allocation20 + $0x168] sm:$0xff] }
 0xf79   : > { %2925 = vmatpush1.bf16.msra.mxu0 %v6440_v46  ;;  %v5548_v46 = vcombine.low %v3126_v27, %v3127_v28 }
 0xf7a   : > { %2926 = vmatprep.subr.bf16.mxu0 %v6445_v47  ;;  %v5580_v47 = vcombine.low %v3395_v34, %v3396_v35  ;;  %v3139_v35 = vld [vmem:[#allocation20 + $0x2a0] sm:$0xff] }
 0xf7c   : > { %3588 = vmatpush1.bf16.msra.mxu1 %v5580_v47 }
 0xf7d   : > { %2927 = vmatpush1.bf16.msra.mxu0 %v6443_v48  ;;  %v5551_v48 = vcombine.high %v3128_v40, %v3129_v41 }
 0xf7e   : > { %2928 = vmatprep.subr.bf16.mxu0 %v6448_v49  ;;  %v5583_v49 = vcombine.high %v3397_v44, %v3398_v45 }
 0xf80   : > { %3589 = vmatprep.subr.bf16.mxu1 %v5583_v49 }
 0xf81   : > { %2929 = vmatpush1.bf16.msra.mxu0 %v6446_v50  ;;  %v3130_v50 = vld [vmem:[#allocation20 + $0x180] sm:$0xff] }
 0xf82   : > { %2930 = vmatprep.subr.bf16.mxu0 %v6451_v51  ;;  %v3131_v51 = vld [vmem:[#allocation20 + $0x1a0] sm:$0xff] }
 0xf83   : > { %v5552_v63 = vcombine.low %v3130_v50, %v3131_v51 }
 0xf85   : > { %2931 = vmatpush1.bf16.msra.mxu0 %v6449_v52  ;;  %v3399_v52 = vld [vmem:[#allocation20 + $0x188] sm:$0xff] }
 0xf86   : > { %2932 = vmatprep.subr.bf16.mxu0 %v6454_v53  ;;  %v3400_v53 = vld [vmem:[#allocation20 + $0x1a8] sm:$0xff] }
 0xf87   : > { %v5584_v0 = vcombine.low %v3399_v52, %v3400_v53 }
 0xf89   : > { %2933 = vmatpush1.bf16.msra.mxu0 %v6452_v42  ;;  %v5550_v42 = vcombine.low %v3128_v40, %v3129_v41  ;;  %v3140_v40 = vld [vmem:[#allocation20 + $0x2c0] sm:$0xff] }
 0xf8a   : > { %2934 = vmatprep.subr.bf16.mxu0 %v6457_v54  ;;  %v5582_v54 = vcombine.low %v3397_v44, %v3398_v45  ;;  %v3141_v41 = vld [vmem:[#allocation20 + $0x2e0] sm:$0xff]  ;;  %v3409_v44 = vld [vmem:[#allocation20 + $0x2c8] sm:$0xff] }
 0xf8b   : > { %v5563_v45 = vcombine.high %v3140_v40, %v3141_v41  ;;  %v5562_v47 = vcombine.low %v3140_v40, %v3141_v41  ;;  %v6461_v40 = vld [vmem:[#allocation21] ss:$8 sps:$4 sm:$0xff]   ;;  %v6466_v41 = vld [vmem:[#allocation21 + $0x114] ss:$8 sps:$4 sm:$0xff]  }
 0xf8c   : > { %3590 = vmatpush1.bf16.msra.mxu1 %v5582_v54  ;;  %v3412_v54 = vld [vmem:[#allocation20 + $0x328] sm:$0xff] }
 0xf8d   : > { %2935 = vmatpush1.bf16.msra.mxu0 %v6455_v55  ;;  %v5553_v55 = vcombine.high %v3130_v50, %v3131_v51  ;;  %v3142_v50 = vld [vmem:[#allocation20 + $0x300] sm:$0xff] }
 0xf8e   : > { %3310 = vmatprep.subr.bf16.mxu0 %v5541_v2  ;;  %v3134_v2 = vld [vmem:[#allocation20 + $0x200] sm:$0xff] }
 0xf8f   : > { %v5556_v12 = vcombine.low %v3134_v2, %v3135_v61  ;;  %v3143_v51 = vld [vmem:[#allocation20 + $0x320] sm:$0xff] }
0x1043   : > { %v2817_v56 = vpop.f32.mrb[20].mxu0 }
0x1044   : > { %v2823_v57 = vpack.c.bf16 %v2817_v56, %v2817_v56  ;;  %v5867_v58 = vpop.f32.mrb[21].mxu0  ;;  %v5585_v56 = vcombine.high %v3399_v52, %v3400_v53  ;;  %v3411_v52 = vld [vmem:[#allocation20 + $0x308] sm:$0xff]  ;;  %v5564_v53 = vcombine.low %v3142_v50, %v3143_v51 }
0x1045   : > { %v2820_v59 = vpop.f32.mrb[22].mxu0  ;;  %v3133_v58 = vld [vmem:[#allocation20 + $0x1e0] sm:$0xff] }
0x1046   : > { %v5868_v60 = vpop.f32.mrb[23].mxu0  ;;  %2953 = vmatmul.mubr.bf16.vlgmr.msra.gmra.mrb[24].mxu0 %v2823_v57  ;;  %v3132_v57 = vld [vmem:[#allocation20 + $0x1c0] sm:$0xff]  ;;  %v3401_v59 = vld [vmem:[#allocation20 + $0x1c8] sm:$0xff]  ;;  %3591 = vmatprep.subr.bf16.mxu1 %v5585_v56 }
0x1047   : > { %3311 = vmatpush1.bf16.msra.mxu0 %v5540_v43  ;;  %v3402_v60 = vld [vmem:[#allocation20 + $0x1e8] sm:$0xff]  ;;  %v5555_v1 = vcombine.high %v3132_v57, %v3133_v58  ;;  %v5554_v4 = vcombine.low %v3132_v57, %v3133_v58  ;;  %3592 = vmatpush1.bf16.msra.mxu1 %v5584_v0  ;;  %v3145_v56 = vld [vmem:[#allocation20 + $0x360] sm:$0xff]  ;;  %v5596_v57 = vcombine.low %v3411_v52, %v3412_v54 }
0x1048   : > { %3312 = vmatprep.subr.bf16.mxu0 %v5543_v6  ;;  %v5587_v43 = vcombine.high %v3401_v59, %v3402_v60  ;;  %v5586_v5 = vcombine.low %v3401_v59, %v3402_v60  ;;  %v5557_v6 = vcombine.high %v3134_v2, %v3135_v61  ;;  %v5597_v58 = vcombine.high %v3411_v52, %v3412_v54  ;;  %v3413_v60 = vld [vmem:[#allocation20 + $0x348] sm:$0xff]  ;;  %v3146_v0 = vld [vmem:[#allocation20 + $0x380] sm:$0xff]  ;;  %v6481_v52 = vld [vmem:[#allocation21 + $0x34] ss:$8 sps:$4 sm:$0xff]  }
0x1049   : > { %v3415_v2 = vld [vmem:[#allocation20 + $0x388] sm:$0xff] }
0x104a   : > { %3593 = vmatprep.subr.bf16.mxu1 %v5587_v43  ;;  %v3147_v43 = vld [vmem:[#allocation20 + $0x3a0] sm:$0xff]  ;;  %v3416_v61 = vld [vmem:[#allocation20 + $0x3a8] sm:$0xff] }
0x104b   : > { %3313 = vmatpush1.bf16.msra.mxu0 %v5542_v14  ;;  %3594 = vmatpush1.bf16.msra.mxu1 %v5586_v5  ;;  %v5559_v14 = vcombine.high %v3136_v8, %v3137_v9  ;;  %v5601_v5 = vcombine.high %v3415_v2, %v3416_v61  ;;  %v5568_v10 = vcombine.low %v3146_v0, %v3147_v43  ;;  %v6484_v54 = vld [vmem:[#allocation21 + $0x144] ss:$8 sps:$4 sm:$0xff]  }
0x104c   : > { %3314 = vmatprep.subr.bf16.mxu0 %v5545_v16  ;;  %3595 = vmatprep.subr.bf16.mxu1 %v5589_v7  ;;  %v5558_v16 = vcombine.low %v3136_v8, %v3137_v9  ;;  %v3149_v7 = vld [vmem:[#allocation20 + $0x3e0] sm:$0xff]  ;;  %v3417_v8 = vld [vmem:[#allocation20 + $0x3c8] sm:$0xff]  ;;  %v5600_v11 = vcombine.low %v3415_v2, %v3416_v61  ;;  %v6502_v61 = vld [vmem:[#allocation21 + $0x174] ss:$8 sps:$4 sm:$0xff]  }
0x104d   : > { %v3418_v9 = vld [vmem:[#allocation20 + $0x3e8] sm:$0xff] }
0x104e   : > { %v6497_v2 = vld [vmem:[#allocation21 + $0x60] ss:$8 sps:$4 sm:$0xff]  }
0x104f   : > { %3315 = vmatpush1.bf16.msra.mxu0 %v5544_v24  ;;  %3596 = vmatpush1.bf16.msra.mxu1 %v5588_v13  ;;  %v5603_v13 = vcombine.high %v3417_v8, %v3418_v9 }
0x1050   : > { %3316 = vmatprep.subr.bf16.mxu0 %v5547_v26  ;;  %3597 = vmatprep.subr.bf16.mxu1 %v5591_v15  ;;  %v5602_v15 = vcombine.low %v3417_v8, %v3418_v9  ;;  %v6509_v8 = vld [vmem:[#allocation21 + $0x80] ss:$8 sps:$4 sm:$0xff]   ;;  %v6514_v9 = vld [vmem:[#allocation21 + $0x194] ss:$8 sps:$4 sm:$0xff]  }
0x1053   : > { %3317 = vmatpush1.bf16.msra.mxu0 %v5546_v36  ;;  %3598 = vmatpush1.bf16.msra.mxu1 %v5590_v17  ;;  %v6463_v17 = vld [vmem:[#allocation21 + $0x4] ss:$8 sps:$4 sm:$0xff]  }
0x1054   : > { %3318 = vmatprep.subr.bf16.mxu0 %v5549_v38 }
0x1057   : > { %3319 = vmatpush1.bf16.msra.mxu0 %v5548_v46  ;;  %v3410_v46 = vld [vmem:[#allocation20 + $0x2e8] sm:$0xff] }
0x1058   : > { %3320 = vmatprep.subr.bf16.mxu0 %v5551_v48  ;;  %v5594_v48 = vcombine.low %v3409_v44, %v3410_v46  ;;  %v5595_v49 = vcombine.high %v3409_v44, %v3410_v46  ;;  %v6469_v44 = vld [vmem:[#allocation21 + $0x14] ss:$8 sps:$4 sm:$0xff]   ;;  %v6467_v46 = vld [vmem:[#allocation21 + $0x10] ss:$8 sps:$4 sm:$0xff]  }
0x105b   : > { %3321 = vmatpush1.bf16.msra.mxu0 %v5550_v42  ;;  %v5565_v42 = vcombine.high %v3142_v50, %v3143_v51  ;;  %v6473_v50 = vld [vmem:[#allocation21 + $0x20] ss:$8 sps:$4 sm:$0xff]   ;;  %v6478_v51 = vld [vmem:[#allocation21 + $0x134] ss:$8 sps:$4 sm:$0xff]  }
0x105c   : > { %3322 = vmatprep.subr.bf16.mxu0 %v5553_v55  ;;  %v3144_v55 = vld [vmem:[#allocation20 + $0x340] sm:$0xff] }
0x105d   : > { %v5567_v59 = vcombine.high %v3144_v55, %v3145_v56  ;;  %v5566_v62 = vcombine.low %v3144_v55, %v3145_v56  ;;  %v6487_v55 = vld [vmem:[#allocation21 + $0x44] ss:$8 sps:$4 sm:$0xff]   ;;  %v6482_v56 = vld [vmem:[#allocation21 + $0x140] ss:$8 sps:$4 sm:$0xff]  }
0x105f   : > { %3323 = vmatpush1.bf16.msra.mxu0 %v5552_v63  ;;  %v3414_v63 = vld [vmem:[#allocation20 + $0x368] sm:$0xff] }
0x1060   : > { %3324 = vmatprep.subr.bf16.mxu0 %v5555_v1  ;;  %v5599_v1 = vcombine.high %v3413_v60, %v3414_v63  ;;  %v5598_v3 = vcombine.low %v3413_v60, %v3414_v63  ;;  %v6488_v60 = vld [vmem:[#allocation21 + $0x150] ss:$8 sps:$4 sm:$0xff]  }
0x1061   : > { %v6491_v63 = vld [vmem:[#allocation21 + $0x50] ss:$8 sps:$4 sm:$0xff]  }
0x1063   : > { %3325 = vmatpush1.bf16.msra.mxu0 %v5554_v4  ;;  %v5569_v4 = vcombine.high %v3146_v0, %v3147_v43  ;;  %v6496_v0 = vld [vmem:[#allocation21 + $0x164] ss:$8 sps:$4 sm:$0xff]   ;;  %v6494_v43 = vld [vmem:[#allocation21 + $0x160] ss:$8 sps:$4 sm:$0xff]  }
0x1064   : > { %3326 = vmatprep.subr.bf16.mxu0 %v5557_v6  ;;  %v3148_v6 = vld [vmem:[#allocation20 + $0x3c0] sm:$0xff] }
0x1067   : > { %3327 = vmatpush1.bf16.msra.mxu0 %v5556_v12  ;;  %v5571_v12 = vcombine.high %v3148_v6, %v3149_v7 }
0x1068   : > { %3328 = vmatprep.subr.bf16.mxu0 %v5559_v14  ;;  %v5570_v14 = vcombine.low %v3148_v6, %v3149_v7  ;;  %v6511_v6 = vld [vmem:[#allocation21 + $0x84] ss:$8 sps:$4 sm:$0xff]   ;;  %v6506_v7 = vld [vmem:[#allocation21 + $0x180] ss:$8 sps:$4 sm:$0xff]  }
0x106b   : > { %3329 = vmatpush1.bf16.msra.mxu0 %v5558_v16  ;;  %v6460_v16 = vld [vmem:[#allocation21 + $0x104] ss:$8 sps:$4 sm:$0xff]  }
0x1119   : > { %v2954_v18 = vpop.f32.mrb[24].mxu0 }
0x111a   : > { %v3076_v21 = vadd.f32 %v7722_v32, %v2954_v18  ;;  %v2956_v22 = vpop.f32.mrb[25].mxu0 }
0x111b   : > { %v3078_v23 = vadd.f32 %v7724_v33, %v2956_v22  ;;  %v2958_v24 = vpop.f32.mrb[26].mxu0  ;;  %v3138_v33 = vld [vmem:[#allocation20 + $0x280] sm:$0xff] }
0x111c   : > { %v7731_v25 = vadd.f32 %v3076_v21, %v7699_v31  ;;  %v2959_v26 = vpop.f32.mrb[27].mxu0  ;;  %v3407_v31 = vld [vmem:[#allocation20 + $0x288] sm:$0xff]  ;;  %v5561_v36 = vcombine.high %v3138_v33, %v3139_v35  ;;  %v5560_v38 = vcombine.low %v3138_v33, %v3139_v35 }
0x111d   : > { %v7734_v30 = vadd.f32 %v3078_v23, %v7697_v29  ;;  %v5592_v29 = vcombine.low %v3407_v31, %v3408_v37  ;;  %v5593_v39 = vcombine.high %v3407_v31, %v3408_v37 }
0x111e   : > { %v3089_v27 = vmul.f32 %v7731_v25, %v7731_v25  ;;  %3330 = vmatprep.subr.bf16.mxu0 %v5561_v36 }
0x111f   : > { %v3085_v28 = vadd.f32 %v7734_v30, %v7731_v25  ;;  %v3090_v32 = vmul.f32 %v7734_v30, %v7734_v30  ;;  %3599 = vmatprep.subr.bf16.mxu1 %v5593_v39  ;;  %3331 = vmatpush1.bf16.msra.mxu0 %v5560_v38 }
0x1120   : > { %3600 = vmatpush1.bf16.msra.mxu1 %v5592_v29  ;;  %3332 = vmatprep.subr.bf16.mxu0 %v5563_v45  ;;  %v6464_v45 = vld [vmem:[#allocation21 + $0x110] ss:$8 sps:$4 sm:$0xff]  }
0x1121   : > { %3086 = vadd.xlane.f32.xlu0 %v3085_v28  ;;  %v3091_v34 = vadd.f32 %v3090_v32, %v3089_v27  ;;  %3601 = vmatprep.subr.bf16.mxu1 %v5595_v49  ;;  %v3084_v28 = vld [vmem:[%s7953_s16] sm:$0x3]  ;;  %s6960_s16 = sshll.u32 %s7123_s21, 4  ;;  %s6961_s16 = int_to_ptr.vmem [resolvable:$false] %s6960_s16 }
0x1122   : > { %v3111_v33 = vrot.slane %v3084_v28, %v7690_v20  ;;  %v3107_v35 = vrot.slane %v3084_v28, %v7688_v19  ;;  %v6470_v49 = vld [vmem:[#allocation21 + $0x120] ss:$8 sps:$4 sm:$0xff]   ;;  %v6538_v28 = vld [vmem:[#allocation21 + $0x1d4] ss:$8 sps:$4 sm:$0xff]   ;;  %s6962_s17 = scalar_lea.vmem %s6961_s16, 512  ;;  %p6963_p11 = scmp.lt.s32.totalorder %s7790_s23, %s6961_s16 }
0x1123   : > { %3092 = vadd.xlane.f32.xlu1 %v3091_v34  ;;  %3333 = vmatpush1.bf16.msra.mxu0 %v5562_v47  ;;  %v6472_v47 = vld [vmem:[#allocation21 + $0x124] ss:$8 sps:$4 sm:$0xff]   ;;  %p6964_p5 = scmp.lt.s32.totalorder %s6962_s17, %s6956_s11 }
0x1124   : > { %3602 = vmatpush1.bf16.msra.mxu1 %v5594_v48  ;;  %3334 = vmatprep.subr.bf16.mxu0 %v5565_v42  ;;  %v6475_v48 = vld [vmem:[#allocation21 + $0x24] ss:$8 sps:$4 sm:$0xff]   ;;  %v6479_v42 = vld [vmem:[#allocation21 + $0x30] ss:$8 sps:$4 sm:$0xff]  }
0x1125   : > { %3603 = vmatprep.subr.bf16.mxu1 %v5597_v58  ;;  %v6490_v58 = vld [vmem:[#allocation21 + $0x154] ss:$8 sps:$4 sm:$0xff]   ;;  %p6965_p8 = por %p6964_p5, %p6963_p11 }
0x1127   : > { %3335 = vmatpush1.bf16.msra.mxu0 %v5564_v53  ;;  %v6476_v53 = vld [vmem:[#allocation21 + $0x130] ss:$8 sps:$4 sm:$0xff]   ;;  %p6966_p12 = pnand %p6965_p8, %p6959_p6 }
0x1128   : > { %3604 = vmatpush1.bf16.msra.mxu1 %v5596_v57  ;;  %3336 = vmatprep.subr.bf16.mxu0 %v5567_v59  ;;  %v6485_v57 = vld [vmem:[#allocation21 + $0x40] ss:$8 sps:$4 sm:$0xff]   ;;  %v6493_v59 = vld [vmem:[#allocation21 + $0x54] ss:$8 sps:$4 sm:$0xff]  }
0x1129   : > { %3605 = vmatprep.subr.bf16.mxu1 %v5599_v1  ;;  %v6499_v1 = vld [vmem:[#allocation21 + $0x64] ss:$8 sps:$4 sm:$0xff]  }
0x112b   : > { %3337 = vmatpush1.bf16.msra.mxu0 %v5566_v62  ;;  %v6505_v62 = vld [vmem:[#allocation21 + $0x74] ss:$8 sps:$4 sm:$0xff]  }
0x112c   : > { %3606 = vmatpush1.bf16.msra.mxu1 %v5598_v3  ;;  %3338 = vmatprep.subr.bf16.mxu0 %v5569_v4  ;;  %v6500_v3 = vld [vmem:[#allocation21 + $0x170] ss:$8 sps:$4 sm:$0xff]  }
0x112d   : > { %3607 = vmatprep.subr.bf16.mxu1 %v5601_v5  ;;  %v6503_v4 = vld [vmem:[#allocation21 + $0x70] ss:$8 sps:$4 sm:$0xff]   ;;  %v6508_v5 = vld [vmem:[#allocation21 + $0x184] ss:$8 sps:$4 sm:$0xff]  }
0x112f   : > { %3339 = vmatpush1.bf16.msra.mxu0 %v5568_v10  ;;  %v6517_v10 = vld [vmem:[#allocation21 + $0x94] ss:$8 sps:$4 sm:$0xff]  }
0x1130   : > { %3608 = vmatpush1.bf16.msra.mxu1 %v5600_v11  ;;  %3340 = vmatprep.subr.bf16.mxu0 %v5571_v12  ;;  %v6512_v11 = vld [vmem:[#allocation21 + $0x190] ss:$8 sps:$4 sm:$0xff]  }
0x1131   : > { %3609 = vmatprep.subr.bf16.mxu1 %v5603_v13  ;;  %v6515_v12 = vld [vmem:[#allocation21 + $0x90] ss:$8 sps:$4 sm:$0xff]   ;;  %v6520_v13 = vld [vmem:[#allocation21 + $0x1a4] ss:$8 sps:$4 sm:$0xff]  }
0x1133   : > { %3341 = vmatpush1.bf16.msra.mxu0 %v5570_v14  ;;  %v6523_v14 = vld [vmem:[#allocation21 + $0xa4] ss:$8 sps:$4 sm:$0xff]  }
0x1134   : > { %3610 = vmatpush1.bf16.msra.mxu1 %v5602_v15  ;;  %3816 = vmatprep.subr.bf16.mxu0 %v6460_v16  ;;  %v6518_v15 = vld [vmem:[#allocation21 + $0x1a0] ss:$8 sps:$4 sm:$0xff]  }
0x1135   : > { %4017 = vmatprep.subr.bf16.mxu1 %v6463_v17  ;;  %v6521_v16 = vld [vmem:[#allocation21 + $0xa0] ss:$8 sps:$4 sm:$0xff]   ;;  %v6526_v17 = vld [vmem:[#allocation21 + $0x1b4] ss:$8 sps:$4 sm:$0xff]  }
0x11ae   : > { %v3087_v18 = vpop.xlane.xlu0 %3086 }
0x11af   : > { %v3088_v21 = vmul.f32 0.00390625, %v3087_v18  ;;  %v6529_v18 = vld [vmem:[#allocation21 + $0xb4] ss:$8 sps:$4 sm:$0xff]  }
0x11b0   : > { %v3093_v22 = vpop.xlane.xlu1 %3092 }
0x11b1   : > { %v3094_v23 = vmul.f32 0.00390625, %v3093_v22  ;;  %v3095_v24 = vmul.f32 %v3088_v21, %v3088_v21  ;;  %v3097_v32 = vsub.f32 %v7731_v25, %v3088_v21  ;;  %v3098_v34 = vsub.f32 %v7734_v30, %v3088_v21  ;;  %v6458_v30 = vld [vmem:[#allocation21 + $0x100] ss:$8 sps:$4 sm:$0xff]   ;;  %v6524_v21 = vld [vmem:[#allocation21 + $0x1b0] ss:$8 sps:$4 sm:$0xff]  }
0x11b2   : > { %v6527_v22 = vld [vmem:[#allocation21 + $0xb0] ss:$8 sps:$4 sm:$0xff]  }
0x11b3   : > { %v3096_v26 = vsub.f32 %v3094_v23, %v3095_v24  ;;  %v6532_v23 = vld [vmem:[#allocation21 + $0x1c4] ss:$8 sps:$4 sm:$0xff]  }
0x11b4   : > { %v6535_v24 = vld [vmem:[#allocation21 + $0xc4] ss:$8 sps:$4 sm:$0xff]  }
0x11b5   : > { %v3099_v27 = vadd.f32 1e-05, %v3096_v26  ;;  %v6530_v26 = vld [vmem:[#allocation21 + $0x1c0] ss:$8 sps:$4 sm:$0xff]  }
0x11b7   : > { %6668 = vrsqrt.f32 %v3099_v27  ;;  %v6533_v27 = vld [vmem:[#allocation21 + $0xc0] ss:$8 sps:$4 sm:$0xff]  }
0x11c1   : > { %v6669_v31 = vpop.eup %6668 }
0x11c2   : > { %v3102_v36 = vmul.f32 %v6669_v31, %v3098_v34  ;;  %v3101_v37 = vmul.f32 %v6669_v31, %v3097_v32  ;;  %v6541_v32 = vld [vmem:[#allocation21 + $0xd4] ss:$8 sps:$4 sm:$0xff]   ;;  %v6536_v34 = vld [vmem:[#allocation21 + $0x1d0] ss:$8 sps:$4 sm:$0xff]   ;;  %v6547_v31 = vld [vmem:[#allocation21 + $0xe4] ss:$8 sps:$4 sm:$0xff]  }
0x11c4   : > { %v7749_v38 = vmul.f32 %v3111_v33, %v3102_v36  ;;  %v7751_v29 = vmul.f32 %v3107_v35, %v3101_v37  ;;  %v6539_v33 = vld [vmem:[#allocation21 + $0xd0] ss:$8 sps:$4 sm:$0xff]   ;;  %v6544_v35 = vld [vmem:[#allocation21 + $0x1e4] ss:$8 sps:$4 sm:$0xff]   ;;  %v6542_v36 = vld [vmem:[#allocation21 + $0x1e0] ss:$8 sps:$4 sm:$0xff]  }
0x11c5   : > { %v6545_v37 = vld [vmem:[#allocation21 + $0xe0] ss:$8 sps:$4 sm:$0xff]  }
0x11c6   : > { %v7755_v39 = vpack.c.bf16 %v7749_v38, %v7749_v38  ;;  %v7759_v25 = vpack.c.bf16 %v7751_v29, %v7751_v29 }
0x11c8   : > { %3342 = vmatprep.mubr.bf16.mxu0 %v7755_v39  ;;  %3611 = vmatprep.mubr.bf16.mxu1 %v7755_v39 }
0x11c9   : > { %3343 = vmatmul.mubr.bf16.vlgmr.msra.gmra.mrb[28].mxu0 %v7759_v25  ;;  %3612 = vmatmul.mubr.bf16.vlgmr.msra.gmra.mrb[28].mxu1 %v7759_v25 }
0x11ca   : > { %3817 = vmatpush1.bf16.msra.mxu0 %v6458_v30  ;;  %4018 = vmatpush1.bf16.msra.mxu1 %v6461_v40  ;;  %v6550_v30 = vld [vmem:[#allocation21 + $0x1f4] ss:$8 sps:$4 sm:$0xff]   ;;  %v6548_v40 = vld [vmem:[#allocation21 + $0x1f0] ss:$8 sps:$4 sm:$0xff]  }
0x11cb   : > { %3818 = vmatprep.subr.bf16.mxu0 %v6466_v41  ;;  %4019 = vmatprep.subr.bf16.mxu1 %v6469_v44  ;;  %v6553_v41 = vld [vmem:[#allocation21 + $0xf4] ss:$8 sps:$4 sm:$0xff]   ;;  %v6551_v44 = vld [vmem:[#allocation21 + $0xf0] ss:$8 sps:$4 sm:$0xff]  }
0x11ce   : > { %3819 = vmatpush1.bf16.msra.mxu0 %v6464_v45  ;;  %4020 = vmatpush1.bf16.msra.mxu1 %v6467_v46  ;;  %v4058_v45 = vld [vmem:[#allocation20 + $0x10] sm:$0xff] }
0x11cf   : > { %3820 = vmatprep.subr.bf16.mxu0 %v6472_v47  ;;  %4021 = vmatprep.subr.bf16.mxu1 %v6475_v48  ;;  %v4059_v46 = vld [vmem:[#allocation20 + $0x30] sm:$0xff] }
0x11d0   : > { %v5669_v47 = vcombine.high %v4058_v45, %v4059_v46  ;;  %v5668_v48 = vcombine.low %v4058_v45, %v4059_v46  ;;  %v4080_v46 = vld [vmem:[#allocation20 + $0x2d0] sm:$0xff] }
0x11d2   : > { %3821 = vmatpush1.bf16.msra.mxu0 %v6470_v49  ;;  %4022 = vmatpush1.bf16.msra.mxu1 %v6473_v50 }
0x11d3   : > { %3822 = vmatprep.subr.bf16.mxu0 %v6478_v51  ;;  %4023 = vmatprep.subr.bf16.mxu1 %v6481_v52 }
0x11d6   : > { %3823 = vmatpush1.bf16.msra.mxu0 %v6476_v53  ;;  %4024 = vmatpush1.bf16.msra.mxu1 %v6479_v42 }
0x11d7   : > { %3824 = vmatprep.subr.bf16.mxu0 %v6484_v54  ;;  %4025 = vmatprep.subr.bf16.mxu1 %v6487_v55 }
0x11da   : > { %3825 = vmatpush1.bf16.msra.mxu0 %v6482_v56  ;;  %4026 = vmatpush1.bf16.msra.mxu1 %v6485_v57 }
0x11db   : > { %3826 = vmatprep.subr.bf16.mxu0 %v6490_v58  ;;  %4027 = vmatprep.subr.bf16.mxu1 %v6493_v59  ;;  %v4060_v58 = vld [vmem:[#allocation20 + $0x50] sm:$0xff] }
0x11dc   : > { %v4061_v59 = vld [vmem:[#allocation20 + $0x70] sm:$0xff] }
0x11de   : > { %3827 = vmatpush1.bf16.msra.mxu0 %v6488_v60  ;;  %4028 = vmatpush1.bf16.msra.mxu1 %v6491_v63 }
0x11df   : > { %3828 = vmatprep.subr.bf16.mxu0 %v6496_v0  ;;  %4029 = vmatprep.subr.bf16.mxu1 %v6499_v1 }
0x11e2   : > { %3829 = vmatpush1.bf16.msra.mxu0 %v6494_v43  ;;  %4030 = vmatpush1.bf16.msra.mxu1 %v6497_v2 }
0x11e3   : > { %3830 = vmatprep.subr.bf16.mxu0 %v6502_v61  ;;  %4031 = vmatprep.subr.bf16.mxu1 %v6505_v62  ;;  %v5671_v61 = vcombine.high %v4060_v58, %v4061_v59  ;;  %v4062_v62 = vld [vmem:[#allocation20 + $0x90] sm:$0xff] }
0x11e6   : > { %3831 = vmatpush1.bf16.msra.mxu0 %v6500_v3  ;;  %4032 = vmatpush1.bf16.msra.mxu1 %v6503_v4  ;;  %v4063_v3 = vld [vmem:[#allocation20 + $0xb0] sm:$0xff]  ;;  %v5670_v4 = vcombine.low %v4060_v58, %v4061_v59 }
0x11e7   : > { %3832 = vmatprep.subr.bf16.mxu0 %v6508_v5  ;;  %4033 = vmatprep.subr.bf16.mxu1 %v6511_v6  ;;  %v5673_v5 = vcombine.high %v4062_v62, %v4063_v3  ;;  %v4064_v6 = vld [vmem:[#allocation20 + $0xd0] sm:$0xff] }
0x11e8   : > { %v4087_v58 = vld [vmem:[#allocation20 + $0x3b0] sm:$0xff] }
0x11ea   : > { %3833 = vmatpush1.bf16.msra.mxu0 %v6506_v7  ;;  %4034 = vmatpush1.bf16.msra.mxu1 %v6509_v8  ;;  %v4065_v7 = vld [vmem:[#allocation20 + $0xf0] sm:$0xff]  ;;  %v5672_v8 = vcombine.low %v4062_v62, %v4063_v3 }
0x11eb   : > { %3834 = vmatprep.subr.bf16.mxu0 %v6514_v9  ;;  %4035 = vmatprep.subr.bf16.mxu1 %v6517_v10  ;;  %v5675_v9 = vcombine.high %v4064_v6, %v4065_v7  ;;  %v4066_v10 = vld [vmem:[#allocation20 + $0x110] sm:$0xff] }
0x11ee   : > { %3835 = vmatpush1.bf16.msra.mxu0 %v6512_v11  ;;  %4036 = vmatpush1.bf16.msra.mxu1 %v6515_v12  ;;  %v4067_v11 = vld [vmem:[#allocation20 + $0x130] sm:$0xff]  ;;  %v5674_v12 = vcombine.low %v4064_v6, %v4065_v7 }
0x11ef   : > { %3836 = vmatprep.subr.bf16.mxu0 %v6520_v13  ;;  %4037 = vmatprep.subr.bf16.mxu1 %v6523_v14  ;;  %v5677_v13 = vcombine.high %v4066_v10, %v4067_v11  ;;  %v4068_v14 = vld [vmem:[#allocation20 + $0x150] sm:$0xff] }
0x11f2   : > { %3837 = vmatpush1.bf16.msra.mxu0 %v6518_v15  ;;  %4038 = vmatpush1.bf16.msra.mxu1 %v6521_v16  ;;  %v4069_v15 = vld [vmem:[#allocation20 + $0x170] sm:$0xff]  ;;  %v5676_v16 = vcombine.low %v4066_v10, %v4067_v11 }
0x11f3   : > { %3838 = vmatprep.subr.bf16.mxu0 %v6526_v17  ;;  %4039 = vmatprep.subr.bf16.mxu1 %v6529_v18  ;;  %v5679_v17 = vcombine.high %v4068_v14, %v4069_v15  ;;  %v4070_v18 = vld [vmem:[#allocation20 + $0x190] sm:$0xff] }
0x11f6   : > { %3839 = vmatpush1.bf16.msra.mxu0 %v6524_v21  ;;  %4040 = vmatpush1.bf16.msra.mxu1 %v6527_v22  ;;  %v4071_v21 = vld [vmem:[#allocation20 + $0x1b0] sm:$0xff]  ;;  %v5678_v22 = vcombine.low %v4068_v14, %v4069_v15 }
0x11f7   : > { %3840 = vmatprep.subr.bf16.mxu0 %v6532_v23  ;;  %4041 = vmatprep.subr.bf16.mxu1 %v6535_v24  ;;  %v5681_v23 = vcombine.high %v4070_v18, %v4071_v21  ;;  %v4072_v24 = vld [vmem:[#allocation20 + $0x1d0] sm:$0xff] }
0x11fa   : > { %3841 = vmatpush1.bf16.msra.mxu0 %v6530_v26  ;;  %4042 = vmatpush1.bf16.msra.mxu1 %v6533_v27  ;;  %v4073_v26 = vld [vmem:[#allocation20 + $0x1f0] sm:$0xff]  ;;  %v5680_v27 = vcombine.low %v4070_v18, %v4071_v21 }
0x11fb   : > { %3842 = vmatprep.subr.bf16.mxu0 %v6538_v28  ;;  %4043 = vmatprep.subr.bf16.mxu1 %v6541_v32  ;;  %v5683_v28 = vcombine.high %v4072_v24, %v4073_v26  ;;  %v4074_v32 = vld [vmem:[#allocation20 + $0x210] sm:$0xff] }
0x11fe   : > { %3843 = vmatpush1.bf16.msra.mxu0 %v6536_v34  ;;  %4044 = vmatpush1.bf16.msra.mxu1 %v6539_v33  ;;  %v4075_v34 = vld [vmem:[#allocation20 + $0x230] sm:$0xff]  ;;  %v5682_v33 = vcombine.low %v4072_v24, %v4073_v26  ;;  %v4542_v26 = vld [vmem:[#allocation20 + $0x198] sm:$0xff] }
0x11ff   : > { %3844 = vmatprep.subr.bf16.mxu0 %v6544_v35  ;;  %4045 = vmatprep.subr.bf16.mxu1 %v6547_v31  ;;  %v5685_v35 = vcombine.high %v4074_v32, %v4075_v34  ;;  %v4076_v31 = vld [vmem:[#allocation20 + $0x250] sm:$0xff] }
0x1202   : > { %3845 = vmatpush1.bf16.msra.mxu0 %v6542_v36  ;;  %4046 = vmatpush1.bf16.msra.mxu1 %v6545_v37  ;;  %v4077_v36 = vld [vmem:[#allocation20 + $0x270] sm:$0xff]  ;;  %v5684_v37 = vcombine.low %v4074_v32, %v4075_v34  ;;  %v4544_v34 = vld [vmem:[#allocation20 + $0x1d8] sm:$0xff] }
0x1203   : > { %3846 = vmatprep.subr.bf16.mxu0 %v6550_v30  ;;  %4047 = vmatprep.subr.bf16.mxu1 %v6553_v41  ;;  %v5687_v30 = vcombine.high %v4076_v31, %v4077_v36  ;;  %v4079_v41 = vld [vmem:[#allocation20 + $0x2b0] sm:$0xff] }
0x1206   : > { %3847 = vmatpush1.bf16.msra.mxu0 %v6548_v40  ;;  %4048 = vmatpush1.bf16.msra.mxu1 %v6551_v44  ;;  %v4078_v40 = vld [vmem:[#allocation20 + $0x290] sm:$0xff]  ;;  %v5686_v44 = vcombine.low %v4076_v31, %v4077_v36  ;;  %v6554_v36 = vld [vmem:[#allocation21 + $0x200] ss:$8 sps:$4 sm:$0xff]  }
0x1207   : > { %4250 = vmatprep.subr.bf16.mxu0 %v5669_v47  ;;  %v5689_v45 = vcombine.high %v4078_v40, %v4079_v41  ;;  %v4081_v47 = vld [vmem:[#allocation20 + $0x2f0] sm:$0xff] }
0x129c   : > { %v3344_v49 = vpop.f32.mrb[28].mxu0  ;;  %v3613_v50 = vpop.f32.mrb[28].mxu1 }
0x129d   : > { %v3351_v51 = vmax.f32 %v3344_v49, 0.0  ;;  %v3620_v52 = vmax.f32 %v3613_v50, 0.0  ;;  %v3346_v53 = vpop.f32.mrb[29].mxu0  ;;  %v3615_v42 = vpop.f32.mrb[29].mxu1  ;;  %v5691_v49 = vcombine.high %v4080_v46, %v4081_v47  ;;  %v4082_v50 = vld [vmem:[#allocation20 + $0x310] sm:$0xff] }
0x129e   : > { %v3352_v54 = vmax.f32 %v3346_v53, 0.0  ;;  %v3621_v55 = vmax.f32 %v3615_v42, 0.0  ;;  %v3348_v56 = vpop.f32.mrb[30].mxu0  ;;  %v3617_v57 = vpop.f32.mrb[30].mxu1  ;;  %v4084_v42 = vld [vmem:[#allocation20 + $0x350] sm:$0xff] }
0x129f   : > { %v3349_v60 = vpop.f32.mrb[31].mxu0  ;;  %v3618_v63 = vpop.f32.mrb[31].mxu1  ;;  %v3353_v43 = vpack.c.bf16 %v3351_v51, %v3351_v51  ;;  %v3622_v2 = vpack.c.bf16 %v3620_v52, %v3620_v52  ;;  %v4083_v51 = vld [vmem:[#allocation20 + $0x330] sm:$0xff]  ;;  %v5690_v52 = vcombine.low %v4080_v46, %v4081_v47  ;;  %v6562_v47 = vld [vmem:[#allocation21 + $0x224] ss:$8 sps:$4 sm:$0xff]  }
0x12a0   : > { %v3354_v0 = vpack.c.bf16 %v3352_v54, %v3352_v54  ;;  %v3623_v1 = vpack.c.bf16 %v3621_v55, %v3621_v55  ;;  %v5693_v53 = vcombine.high %v4082_v50, %v4083_v51  ;;  %v4085_v54 = vld [vmem:[#allocation20 + $0x370] sm:$0xff]  ;;  %v5692_v55 = vcombine.low %v4082_v50, %v4083_v51  ;;  %v6560_v51 = vld [vmem:[#allocation21 + $0x220] ss:$8 sps:$4 sm:$0xff]  }
0x12a1   : > { %v5695_v56 = vcombine.high %v4084_v42, %v4085_v54  ;;  %v4086_v57 = vld [vmem:[#allocation20 + $0x390] sm:$0xff]  ;;  %v5694_v59 = vcombine.low %v4084_v42, %v4085_v54  ;;  %v4550_v42 = vld [vmem:[#allocation20 + $0x298] sm:$0xff] }
0x12a2   : > { %3848 = vmatprep.mubr.bf16.mxu0 %v3623_v1  ;;  %4049 = vmatprep.mubr.bf16.mxu1 %v3354_v0  ;;  %v5697_v60 = vcombine.high %v4086_v57, %v4087_v58  ;;  %v4088_v63 = vld [vmem:[#allocation20 + $0x3d0] sm:$0xff]  ;;  %v5696_v1 = vcombine.low %v4086_v57, %v4087_v58  ;;  %v4551_v54 = vld [vmem:[#allocation20 + $0x2b8] sm:$0xff]  ;;  %v6568_v58 = vld [vmem:[#allocation21 + $0x244] ss:$8 sps:$4 sm:$0xff]  }
0x12a3   : > { %3849 = vmatmul.mubr.bf16.vlgmr.msra.gmra.mrb[32].mxu0 %v3622_v2  ;;  %4050 = vmatmul.mubr.bf16.vlgmr.msra.gmra.mrb[32].mxu1 %v3353_v43  ;;  %v4089_v0 = vld [vmem:[#allocation20 + $0x3f0] sm:$0xff]  ;;  %v4530_v2 = vld [vmem:[#allocation20 + $0x18] sm:$0xff]  ;;  %v5753_v57 = vcombine.high %v4550_v42, %v4551_v54 }
0x12a4   : > { %4251 = vmatpush1.bf16.msra.mxu0 %v5668_v48  ;;  %4282 = vmatprep.mubr.bf16.mxu0 %v7755_v39  ;;  %v5688_v48 = vcombine.low %v4078_v40, %v4079_v41  ;;  %v5699_v43 = vcombine.high %v4088_v63, %v4089_v0  ;;  %v5698_v62 = vcombine.low %v4088_v63, %v4089_v0  ;;  %v4547_v40 = vld [vmem:[#allocation20 + $0x238] sm:$0xff]  ;;  %v6566_v0 = vld [vmem:[#allocation21 + $0x240] ss:$8 sps:$4 sm:$0xff]  }
0x12a5   : > { %4252 = vmatprep.subr.bf16.mxu0 %v5671_v61  ;;  %v4531_v61 = vld [vmem:[#allocation20 + $0x38] sm:$0xff]  ;;  %v5752_v63 = vcombine.low %v4550_v42, %v4551_v54 }
0x12a6   : > { %v5733_v3 = vcombine.high %v4530_v2, %v4531_v61  ;;  %v5732_v6 = vcombine.low %v4530_v2, %v4531_v61  ;;  %v6559_v41 = vld [vmem:[#allocation21 + $0x214] ss:$8 sps:$4 sm:$0xff]  }
0x12a7   : > { %v4554_v2 = vld [vmem:[#allocation20 + $0x318] sm:$0xff] }
0x12a8   : > { %4253 = vmatpush1.bf16.msra.mxu0 %v5670_v4  ;;  %v4532_v4 = vld [vmem:[#allocation20 + $0x58] sm:$0xff] }
0x12a9   : > { %4254 = vmatprep.subr.bf16.mxu0 %v5673_v5  ;;  %v4533_v5 = vld [vmem:[#allocation20 + $0x78] sm:$0xff] }
0x12aa   : > { %v5735_v7 = vcombine.high %v4532_v4, %v4533_v5  ;;  %v5734_v10 = vcombine.low %v4532_v4, %v4533_v5  ;;  %v4555_v61 = vld [vmem:[#allocation20 + $0x338] sm:$0xff]  ;;  %v6574_v5 = vld [vmem:[#allocation21 + $0x264] ss:$8 sps:$4 sm:$0xff]  }
0x12ab   : > { %v5757_v4 = vcombine.high %v4554_v2, %v4555_v61 }
0x12ac   : > { %4255 = vmatpush1.bf16.msra.mxu0 %v5672_v8  ;;  %v4534_v8 = vld [vmem:[#allocation20 + $0x98] sm:$0xff] }
0x12ad   : > { %4256 = vmatprep.subr.bf16.mxu0 %v5675_v9  ;;  %v4535_v9 = vld [vmem:[#allocation20 + $0xb8] sm:$0xff] }
0x12ae   : > { %v5737_v11 = vcombine.high %v4534_v8, %v4535_v9  ;;  %v5736_v14 = vcombine.low %v4534_v8, %v4535_v9  ;;  %v5756_v8 = vcombine.low %v4554_v2, %v4555_v61  ;;  %v6572_v9 = vld [vmem:[#allocation21 + $0x260] ss:$8 sps:$4 sm:$0xff]   ;;  %v6610_v2 = vld [vmem:[#allocation21 + $0x324] ss:$8 sps:$4 sm:$0xff]  }
0x12af   : > { %v6608_v61 = vld [vmem:[#allocation21 + $0x320] ss:$8 sps:$4 sm:$0xff]  }
0x12b0   : > { %4257 = vmatpush1.bf16.msra.mxu0 %v5674_v12  ;;  %v4536_v12 = vld [vmem:[#allocation20 + $0xd8] sm:$0xff] }
0x12b1   : > { %4258 = vmatprep.subr.bf16.mxu0 %v5677_v13  ;;  %v4537_v13 = vld [vmem:[#allocation20 + $0xf8] sm:$0xff] }
0x12b2   : > { %v5739_v15 = vcombine.high %v4536_v12, %v4537_v13  ;;  %v5738_v18 = vcombine.low %v4536_v12, %v4537_v13  ;;  %v4558_v12 = vld [vmem:[#allocation20 + $0x398] sm:$0xff] }
0x12b3   : > { %v4559_v13 = vld [vmem:[#allocation20 + $0x3b8] sm:$0xff] }
0x12b4   : > { %4259 = vmatpush1.bf16.msra.mxu0 %v5676_v16  ;;  %v4538_v16 = vld [vmem:[#allocation20 + $0x118] sm:$0xff] }
0x12b5   : > { %4260 = vmatprep.subr.bf16.mxu0 %v5679_v17  ;;  %v4539_v17 = vld [vmem:[#allocation20 + $0x138] sm:$0xff] }
0x12b6   : > { %v5741_v21 = vcombine.high %v4538_v16, %v4539_v17  ;;  %v5740_v24 = vcombine.low %v4538_v16, %v4539_v17  ;;  %v5761_v16 = vcombine.high %v4558_v12, %v4559_v13  ;;  %v6580_v17 = vld [vmem:[#allocation21 + $0x284] ss:$8 sps:$4 sm:$0xff]  }
0x12b8   : > { %4261 = vmatpush1.bf16.msra.mxu0 %v5678_v22  ;;  %v4540_v22 = vld [vmem:[#allocation20 + $0x158] sm:$0xff] }
0x12b9   : > { %4262 = vmatprep.subr.bf16.mxu0 %v5681_v23  ;;  %v4541_v23 = vld [vmem:[#allocation20 + $0x178] sm:$0xff] }
0x12bc   : > { %4263 = vmatpush1.bf16.msra.mxu0 %v5680_v27  ;;  %v4543_v27 = vld [vmem:[#allocation20 + $0x1b8] sm:$0xff] }
0x12bd   : > { %4264 = vmatprep.subr.bf16.mxu0 %v5683_v28  ;;  %v5742_v28 = vcombine.low %v4540_v22, %v4541_v23  ;;  %v5745_v32 = vcombine.high %v4542_v26, %v4543_v27 }
0x12c0   : > { %4265 = vmatpush1.bf16.msra.mxu0 %v5682_v33  ;;  %v4545_v33 = vld [vmem:[#allocation20 + $0x1f8] sm:$0xff] }
0x12c1   : > { %4266 = vmatprep.subr.bf16.mxu0 %v5685_v35  ;;  %v5744_v35 = vcombine.low %v4542_v26, %v4543_v27  ;;  %v5747_v31 = vcombine.high %v4544_v34, %v4545_v33  ;;  %v6581_v27 = vld [vmem:[#allocation21 + $0x290] ss:$8 sps:$4 sm:$0xff]  }
0x12c4   : > { %4267 = vmatpush1.bf16.msra.mxu0 %v5684_v37  ;;  %v6556_v37 = vld [vmem:[#allocation21 + $0x204] ss:$8 sps:$4 sm:$0xff]  }
0x12c5   : > { %4268 = vmatprep.subr.bf16.mxu0 %v5687_v30  ;;  %v4546_v30 = vld [vmem:[#allocation20 + $0x218] sm:$0xff]  ;;  %4487 = vmatprep.subr.bf16.mxu1 %v6556_v37 }
0x12c6   : > { %4488 = vmatpush1.bf16.msra.mxu1 %v6554_v36  ;;  %v5749_v46 = vcombine.high %v4546_v30, %v4547_v40  ;;  %v5748_v50 = vcombine.low %v4546_v30, %v4547_v40  ;;  %v6595_v36 = vld [vmem:[#allocation21 + $0x2d4] ss:$8 sps:$4 sm:$0xff]   ;;  %v6593_v37 = vld [vmem:[#allocation21 + $0x2d0] ss:$8 sps:$4 sm:$0xff]   ;;  %v6598_v30 = vld [vmem:[#allocation21 + $0x2e4] ss:$8 sps:$4 sm:$0xff]  }
0x12c7   : > { %4489 = vmatprep.subr.bf16.mxu1 %v6559_v41  ;;  %v6596_v40 = vld [vmem:[#allocation21 + $0x2e0] ss:$8 sps:$4 sm:$0xff]   ;;  %v6601_v41 = vld [vmem:[#allocation21 + $0x2f4] ss:$8 sps:$4 sm:$0xff]  }
0x12c8   : > { %4269 = vmatpush1.bf16.msra.mxu0 %v5686_v44  ;;  %v5746_v44 = vcombine.low %v4544_v34, %v4545_v33  ;;  %v6589_v34 = vld [vmem:[#allocation21 + $0x2b4] ss:$8 sps:$4 sm:$0xff]   ;;  %v6587_v33 = vld [vmem:[#allocation21 + $0x2b0] ss:$8 sps:$4 sm:$0xff]  }
0x12c9   : > { %4270 = vmatprep.subr.bf16.mxu0 %v5689_v45  ;;  %v6557_v45 = vld [vmem:[#allocation21 + $0x210] ss:$8 sps:$4 sm:$0xff]  }
0x12ca   : > { %4490 = vmatpush1.bf16.msra.mxu1 %v6557_v45 }
0x12cb   : > { %4491 = vmatprep.subr.bf16.mxu1 %v6562_v47 }
0x12cc   : > { %4271 = vmatpush1.bf16.msra.mxu0 %v5688_v48  ;;  %v4548_v48 = vld [vmem:[#allocation20 + $0x258] sm:$0xff] }
0x12cd   : > { %4272 = vmatprep.subr.bf16.mxu0 %v5691_v49  ;;  %v4549_v49 = vld [vmem:[#allocation20 + $0x278] sm:$0xff] }
0x12ce   : > { %4492 = vmatpush1.bf16.msra.mxu1 %v6560_v51 }
0x12d0   : > { %4273 = vmatpush1.bf16.msra.mxu0 %v5690_v52  ;;  %v5751_v52 = vcombine.high %v4548_v48, %v4549_v49 }
0x12d1   : > { %4274 = vmatprep.subr.bf16.mxu0 %v5693_v53  ;;  %v6565_v53 = vld [vmem:[#allocation21 + $0x234] ss:$8 sps:$4 sm:$0xff]  }
0x12d2   : > { %4493 = vmatprep.subr.bf16.mxu1 %v6565_v53 }
0x12d4   : > { %4275 = vmatpush1.bf16.msra.mxu0 %v5692_v55  ;;  %v5750_v55 = vcombine.low %v4548_v48, %v4549_v49 }
0x12d5   : > { %4276 = vmatprep.subr.bf16.mxu0 %v5695_v56  ;;  %v6563_v56 = vld [vmem:[#allocation21 + $0x230] ss:$8 sps:$4 sm:$0xff]  }
0x12d6   : > { %4494 = vmatpush1.bf16.msra.mxu1 %v6563_v56 }
0x12d7   : > { %4495 = vmatprep.subr.bf16.mxu1 %v6568_v58 }
0x12d8   : > { %4277 = vmatpush1.bf16.msra.mxu0 %v5694_v59  ;;  %v4552_v59 = vld [vmem:[#allocation20 + $0x2d8] sm:$0xff] }
0x12d9   : > { %4278 = vmatprep.subr.bf16.mxu0 %v5697_v60  ;;  %v4553_v60 = vld [vmem:[#allocation20 + $0x2f8] sm:$0xff] }
0x12da   : > { %4496 = vmatpush1.bf16.msra.mxu1 %v6566_v0 }
0x12dc   : > { %4279 = vmatpush1.bf16.msra.mxu0 %v5696_v1  ;;  %v5755_v1 = vcombine.high %v4552_v59, %v4553_v60 }
0x12dd   : > { %4280 = vmatprep.subr.bf16.mxu0 %v5699_v43  ;;  %v6571_v43 = vld [vmem:[#allocation21 + $0x254] ss:$8 sps:$4 sm:$0xff]  }
0x12de   : > { %4497 = vmatprep.subr.bf16.mxu1 %v6571_v43  ;;  %v6605_v43 = vld [vmem:[#allocation21 + $0x310] ss:$8 sps:$4 sm:$0xff]  }
0x12e0   : > { %4281 = vmatpush1.bf16.msra.mxu0 %v5698_v62  ;;  %v5754_v62 = vcombine.low %v4552_v59, %v4553_v60 }
0x12e1   : > { %4722 = vmatprep.subr.bf16.mxu0 %v5733_v3  ;;  %v6569_v3 = vld [vmem:[#allocation21 + $0x250] ss:$8 sps:$4 sm:$0xff]  }
0x12e2   : > { %4498 = vmatpush1.bf16.msra.mxu1 %v6569_v3  ;;  %v6611_v3 = vld [vmem:[#allocation21 + $0x330] ss:$8 sps:$4 sm:$0xff]  }
0x12e3   : > { %4283 = vmatmul.mubr.bf16.vlgmr.msra.gmra.mrb[36].mxu0 %v7759_v25  ;;  %4499 = vmatprep.subr.bf16.mxu1 %v6574_v5  ;;  %v6614_v5 = vld [vmem:[#allocation21 + $0x340] ss:$8 sps:$4 sm:$0xff]  }
0x12e4   : > { %4723 = vmatpush1.bf16.msra.mxu0 %v5732_v6  ;;  %4754 = vmatprep.mubr.bf16.mxu0 %v7755_v39  ;;  %v5743_v39 = vcombine.high %v4540_v22, %v4541_v23  ;;  %v4556_v6 = vld [vmem:[#allocation20 + $0x358] sm:$0xff]  ;;  %v5760_v22 = vcombine.low %v4558_v12, %v4559_v13  ;;  %v6578_v23 = vld [vmem:[#allocation21 + $0x280] ss:$8 sps:$4 sm:$0xff]   ;;  %v6628_v12 = vld [vmem:[#allocation21 + $0x384] ss:$8 sps:$4 sm:$0xff]  }
0x12e5   : > { %4724 = vmatprep.subr.bf16.mxu0 %v5735_v7  ;;  %v4557_v7 = vld [vmem:[#allocation20 + $0x378] sm:$0xff]  ;;  %v6626_v13 = vld [vmem:[#allocation21 + $0x380] ss:$8 sps:$4 sm:$0xff]  }
0x12e6   : > { %4500 = vmatpush1.bf16.msra.mxu1 %v6572_v9  ;;  %v6620_v9 = vld [vmem:[#allocation21 + $0x360] ss:$8 sps:$4 sm:$0xff]  }
0x12e8   : > { %4725 = vmatpush1.bf16.msra.mxu0 %v5734_v10  ;;  %v5759_v10 = vcombine.high %v4556_v6, %v4557_v7 }
0x12e9   : > { %4726 = vmatprep.subr.bf16.mxu0 %v5737_v11  ;;  %v6577_v11 = vld [vmem:[#allocation21 + $0x274] ss:$8 sps:$4 sm:$0xff]  }
0x12ea   : > { %4501 = vmatprep.subr.bf16.mxu1 %v6577_v11  ;;  %v6623_v11 = vld [vmem:[#allocation21 + $0x370] ss:$8 sps:$4 sm:$0xff]  }
0x12ec   : > { %4727 = vmatpush1.bf16.msra.mxu0 %v5736_v14  ;;  %v5758_v14 = vcombine.low %v4556_v6, %v4557_v7  ;;  %v6619_v6 = vld [vmem:[#allocation21 + $0x354] ss:$8 sps:$4 sm:$0xff]   ;;  %v6617_v7 = vld [vmem:[#allocation21 + $0x350] ss:$8 sps:$4 sm:$0xff]  }
0x12ed   : > { %4728 = vmatprep.subr.bf16.mxu0 %v5739_v15  ;;  %v6575_v15 = vld [vmem:[#allocation21 + $0x270] ss:$8 sps:$4 sm:$0xff]  }
0x12ee   : > { %4502 = vmatpush1.bf16.msra.mxu1 %v6575_v15  ;;  %v6629_v15 = vld [vmem:[#allocation21 + $0x390] ss:$8 sps:$4 sm:$0xff]  }
0x12ef   : > { %4503 = vmatprep.subr.bf16.mxu1 %v6580_v17  ;;  %v6632_v17 = vld [vmem:[#allocation21 + $0x3a0] ss:$8 sps:$4 sm:$0xff]  }
0x12f0   : > { %4729 = vmatpush1.bf16.msra.mxu0 %v5738_v18  ;;  %v4560_v18 = vld [vmem:[#allocation20 + $0x3d8] sm:$0xff] }
0x12f1   : > { %4730 = vmatprep.subr.bf16.mxu0 %v5741_v21  ;;  %v4561_v21 = vld [vmem:[#allocation20 + $0x3f8] sm:$0xff] }
0x12f2   : > { %v5762_v26 = vcombine.low %v4560_v18, %v4561_v21  ;;  %4504 = vmatpush1.bf16.msra.mxu1 %v6578_v23  ;;  %v6638_v23 = vld [vmem:[#allocation21 + $0x3c0] ss:$8 sps:$4 sm:$0xff]  }
0x12f4   : > { %4731 = vmatpush1.bf16.msra.mxu0 %v5740_v24  ;;  %v5763_v24 = vcombine.high %v4560_v18, %v4561_v21  ;;  %v6637_v18 = vld [vmem:[#allocation21 + $0x3b4] ss:$8 sps:$4 sm:$0xff]   ;;  %v6635_v21 = vld [vmem:[#allocation21 + $0x3b0] ss:$8 sps:$4 sm:$0xff]  }
0x12f5   : > { %4732 = vmatprep.subr.bf16.mxu0 %v5743_v39  ;;  %v6583_v39 = vld [vmem:[#allocation21 + $0x294] ss:$8 sps:$4 sm:$0xff]  }
0x12f6   : > { %4505 = vmatprep.subr.bf16.mxu1 %v6583_v39  ;;  %v6641_v39 = vld [vmem:[#allocation21 + $0x3d0] ss:$8 sps:$4 sm:$0xff]  }
0x12f7   : > { %4506 = vmatpush1.bf16.msra.mxu1 %v6581_v27  ;;  %v6644_v27 = vld [vmem:[#allocation21 + $0x3e0] ss:$8 sps:$4 sm:$0xff]  }
0x12f8   : > { %4733 = vmatpush1.bf16.msra.mxu0 %v5742_v28  ;;  %v6586_v28 = vld [vmem:[#allocation21 + $0x2a4] ss:$8 sps:$4 sm:$0xff]  }
0x12f9   : > { %4734 = vmatprep.subr.bf16.mxu0 %v5745_v32  ;;  %v6584_v32 = vld [vmem:[#allocation21 + $0x2a0] ss:$8 sps:$4 sm:$0xff]   ;;  %4507 = vmatprep.subr.bf16.mxu1 %v6586_v28  ;;  %v6649_v28 = vld [vmem:[#allocation21 + $0x3f4] ss:$8 sps:$4 sm:$0xff]  }
0x12fb   : > { %4508 = vmatpush1.bf16.msra.mxu1 %v6584_v32 }
0x12fc   : > { %4735 = vmatpush1.bf16.msra.mxu0 %v5744_v35  ;;  %4509 = vmatprep.subr.bf16.mxu1 %v6589_v34  ;;  %v6592_v35 = vld [vmem:[#allocation21 + $0x2c4] ss:$8 sps:$4 sm:$0xff]   ;;  %v6647_v34 = vld [vmem:[#allocation21 + $0x3f0] ss:$8 sps:$4 sm:$0xff]  }
0x12fd   : > { %4736 = vmatprep.subr.bf16.mxu0 %v5747_v31  ;;  %v6590_v31 = vld [vmem:[#allocation21 + $0x2c0] ss:$8 sps:$4 sm:$0xff]  }
0x12ff   : > { %4510 = vmatpush1.bf16.msra.mxu1 %v6587_v33 }
0x1300   : > { %4737 = vmatpush1.bf16.msra.mxu0 %v5746_v44  ;;  %4511 = vmatprep.subr.bf16.mxu1 %v6592_v35  ;;  %v6599_v44 = vld [vmem:[#allocation21 + $0x2f0] ss:$8 sps:$4 sm:$0xff]  }
0x1301   : > { %4738 = vmatprep.subr.bf16.mxu0 %v5749_v46 }
0x1303   : > { %4512 = vmatpush1.bf16.msra.mxu1 %v6590_v31 }
0x1304   : > { %4739 = vmatpush1.bf16.msra.mxu0 %v5748_v50  ;;  %4513 = vmatprep.subr.bf16.mxu1 %v6595_v36 }
0x1305   : > { %4740 = vmatprep.subr.bf16.mxu0 %v5751_v52 }
0x1307   : > { %4514 = vmatpush1.bf16.msra.mxu1 %v6593_v37 }
0x1308   : > { %4741 = vmatpush1.bf16.msra.mxu0 %v5750_v55  ;;  %4515 = vmatprep.subr.bf16.mxu1 %v6598_v30 }
0x1309   : > { %4742 = vmatprep.subr.bf16.mxu0 %v5753_v57 }
0x130b   : > { %4516 = vmatpush1.bf16.msra.mxu1 %v6596_v40 }
0x130c   : > { %4743 = vmatpush1.bf16.msra.mxu0 %v5752_v63  ;;  %4517 = vmatprep.subr.bf16.mxu1 %v6601_v41  ;;  %v6602_v63 = vld [vmem:[#allocation21 + $0x300] ss:$8 sps:$4 sm:$0xff]  }
0x130d   : > { %4744 = vmatprep.subr.bf16.mxu0 %v5755_v1  ;;  %v6607_v1 = vld [vmem:[#allocation21 + $0x314] ss:$8 sps:$4 sm:$0xff]  }
0x130f   : > { %4518 = vmatpush1.bf16.msra.mxu1 %v6599_v44 }
0x1310   : > { %4745 = vmatpush1.bf16.msra.mxu0 %v5754_v62  ;;  %v6613_v62 = vld [vmem:[#allocation21 + $0x334] ss:$8 sps:$4 sm:$0xff]  }
0x1311   : > { %4746 = vmatprep.subr.bf16.mxu0 %v5757_v4  ;;  %v6616_v4 = vld [vmem:[#allocation21 + $0x344] ss:$8 sps:$4 sm:$0xff]  }
0x1314   : > { %4747 = vmatpush1.bf16.msra.mxu0 %v5756_v8  ;;  %v6622_v8 = vld [vmem:[#allocation21 + $0x364] ss:$8 sps:$4 sm:$0xff]  }
0x1315   : > { %4748 = vmatprep.subr.bf16.mxu0 %v5759_v10  ;;  %v6625_v10 = vld [vmem:[#allocation21 + $0x374] ss:$8 sps:$4 sm:$0xff]  }
0x1318   : > { %4749 = vmatpush1.bf16.msra.mxu0 %v5758_v14  ;;  %v6631_v14 = vld [vmem:[#allocation21 + $0x394] ss:$8 sps:$4 sm:$0xff]  }
0x1319   : > { %4750 = vmatprep.subr.bf16.mxu0 %v5761_v16  ;;  %v6634_v16 = vld [vmem:[#allocation21 + $0x3a4] ss:$8 sps:$4 sm:$0xff]  }
0x131c   : > { %4751 = vmatpush1.bf16.msra.mxu0 %v5760_v22  ;;  %v6640_v22 = vld [vmem:[#allocation21 + $0x3c4] ss:$8 sps:$4 sm:$0xff]  }
0x131d   : > { %4752 = vmatprep.subr.bf16.mxu0 %v5763_v24  ;;  %v6643_v24 = vld [vmem:[#allocation21 + $0x3d4] ss:$8 sps:$4 sm:$0xff]  }
0x1320   : > { %4753 = vmatpush1.bf16.msra.mxu0 %v5762_v26  ;;  %v6646_v26 = vld [vmem:[#allocation21 + $0x3e4] ss:$8 sps:$4 sm:$0xff]  }
0x1323   : > { %4755 = vmatmul.mubr.bf16.vlgmr.msra.gmra.mrb[40].mxu0 %v7759_v25  ;;  %v6604_v25 = vld [vmem:[#allocation21 + $0x304] ss:$8 sps:$4 sm:$0xff]  }
0x1324   : > { %4959 = vmatprep.subr.bf16.mxu1 %v6604_v25 }
0x1376   : > { %v3850_v45 = vpop.f32.mrb[32].mxu0  ;;  %v4051_v46 = vpop.f32.mrb[32].mxu1 }
0x1377   : > { %v7769_v47 = vadd.f32 %v4051_v46, %v3850_v45  ;;  %v3852_v48 = vpop.f32.mrb[33].mxu0  ;;  %v4053_v49 = vpop.f32.mrb[33].mxu1 }
0x1378   : > { %v7771_v50 = vadd.f32 %v4053_v49, %v3852_v48  ;;  %v3854_v51 = vpop.f32.mrb[34].mxu0  ;;  %v4055_v52 = vpop.f32.mrb[34].mxu1 }
0x1379   : > { %v3855_v53 = vpop.f32.mrb[35].mxu0  ;;  %v4056_v42 = vpop.f32.mrb[35].mxu1 }
0x13b6   : > { %v4284_v54 = vpop.f32.mrb[36].mxu0 }
0x13b7   : > { %v4291_v55 = vmax.f32 %v4284_v54, 0.0  ;;  %v4286_v56 = vpop.f32.mrb[37].mxu0 }
0x13b8   : > { %v4292_v57 = vmax.f32 %v4286_v56, 0.0  ;;  %v4288_v58 = vpop.f32.mrb[38].mxu0 }
0x13b9   : > { %v4289_v59 = vpop.f32.mrb[39].mxu0  ;;  %v4293_v0 = vpack.c.bf16 %v4291_v55, %v4291_v55 }
0x13ba   : > { %v4294_v60 = vpack.c.bf16 %v4292_v57, %v4292_v57 }
0x13bc   : > { %4519 = vmatprep.mubr.bf16.mxu1 %v4294_v60 }
0x13bd   : > { %4520 = vmatmul.mubr.bf16.vlgmr.msra.gmra.mrb[36].mxu1 %v4293_v0 }
0x13be   : > { %4960 = vmatpush1.bf16.msra.mxu1 %v6602_v63 }
0x13bf   : > { %4961 = vmatprep.subr.bf16.mxu1 %v6607_v1 }
0x13c2   : > { %4962 = vmatpush1.bf16.msra.mxu1 %v6605_v43 }
0x13c3   : > { %4963 = vmatprep.subr.bf16.mxu1 %v6610_v2 }
0x13c6   : > { %4964 = vmatpush1.bf16.msra.mxu1 %v6608_v61 }
0x13c7   : > { %4965 = vmatprep.subr.bf16.mxu1 %v6613_v62 }
0x13ca   : > { %4966 = vmatpush1.bf16.msra.mxu1 %v6611_v3 }
0x13cb   : > { %4967 = vmatprep.subr.bf16.mxu1 %v6616_v4 }
0x13ce   : > { %4968 = vmatpush1.bf16.msra.mxu1 %v6614_v5 }
0x13cf   : > { %4969 = vmatprep.subr.bf16.mxu1 %v6619_v6 }
0x13d2   : > { %4970 = vmatpush1.bf16.msra.mxu1 %v6617_v7 }
0x13d3   : > { %4971 = vmatprep.subr.bf16.mxu1 %v6622_v8 }
0x13d6   : > { %4972 = vmatpush1.bf16.msra.mxu1 %v6620_v9 }
0x13d7   : > { %4973 = vmatprep.subr.bf16.mxu1 %v6625_v10 }
0x13da   : > { %4974 = vmatpush1.bf16.msra.mxu1 %v6623_v11 }
0x13db   : > { %4975 = vmatprep.subr.bf16.mxu1 %v6628_v12 }
0x13de   : > { %4976 = vmatpush1.bf16.msra.mxu1 %v6626_v13 }
0x13df   : > { %4977 = vmatprep.subr.bf16.mxu1 %v6631_v14 }
0x13e2   : > { %4978 = vmatpush1.bf16.msra.mxu1 %v6629_v15 }
0x13e3   : > { %4979 = vmatprep.subr.bf16.mxu1 %v6634_v16 }
0x13e6   : > { %4980 = vmatpush1.bf16.msra.mxu1 %v6632_v17 }
0x13e7   : > { %4981 = vmatprep.subr.bf16.mxu1 %v6637_v18 }
0x13ea   : > { %4982 = vmatpush1.bf16.msra.mxu1 %v6635_v21 }
0x13eb   : > { %4983 = vmatprep.subr.bf16.mxu1 %v6640_v22 }
0x13ee   : > { %4984 = vmatpush1.bf16.msra.mxu1 %v6638_v23 }
0x13ef   : > { %4985 = vmatprep.subr.bf16.mxu1 %v6643_v24 }
0x13f2   : > { %4986 = vmatpush1.bf16.msra.mxu1 %v6641_v39 }
0x13f3   : > { %4987 = vmatprep.subr.bf16.mxu1 %v6646_v26 }
0x13f6   : > { %v4756_v32 = vpop.f32.mrb[40].mxu0  ;;  %4988 = vmatpush1.bf16.msra.mxu1 %v6644_v27 }
0x13f7   : > { %v4763_v33 = vmax.f32 %v4756_v32, 0.0  ;;  %v4758_v35 = vpop.f32.mrb[41].mxu0  ;;  %4989 = vmatprep.subr.bf16.mxu1 %v6649_v28 }
0x13f8   : > { %v4764_v31 = vmax.f32 %v4758_v35, 0.0  ;;  %v4760_v36 = vpop.f32.mrb[42].mxu0 }
0x13f9   : > { %v4761_v37 = vpop.f32.mrb[43].mxu0  ;;  %v4765_v40 = vpack.c.bf16 %v4763_v33, %v4763_v33 }
0x13fa   : > { %v4766_v30 = vpack.c.bf16 %v4764_v31, %v4764_v31  ;;  %4990 = vmatpush1.bf16.msra.mxu1 %v6647_v34 }
0x13fc   : > { %4991 = vmatprep.mubr.bf16.mxu1 %v4766_v30 }
0x13fd   : > { %4992 = vmatmul.mubr.bf16.vlgmr.msra.gmra.mrb[40].mxu1 %v4765_v40 }
0x1490   : > { %v4521_v41 = vpop.f32.mrb[36].mxu1 }
0x1491   : > { %v4528_v44 = vadd.f32 %v4521_v41, %v7769_v47  ;;  %v4523_v25 = vpop.f32.mrb[37].mxu1 }
0x1492   : > { %v4529_v45 = vadd.f32 %v4523_v25, %v7771_v50  ;;  %v4525_v46 = vpop.f32.mrb[38].mxu1 }
0x1493   : > { %v4526_v48 = vpop.f32.mrb[39].mxu1 }
0x14d0   : > { %v4993_v49 = vpop.f32.mrb[40].mxu1 }
0x14d1   : > { %v5000_v51 = vadd.f32 %v4993_v49, %v4528_v44  ;;  %v4995_v52 = vpop.f32.mrb[41].mxu1 }
0x14d2   : > { %v5001_v53 = vadd.f32 %v4995_v52, %v4529_v45  ;;  %v4997_v42 = vpop.f32.mrb[42].mxu1 }
0x14d3   : > { %v5002_v54 = vadd.f32 %v5000_v51, %v7751_v29  ;;  %v4998_v55 = vpop.f32.mrb[43].mxu1 }
0x14d4   : > { %v5003_v56 = vadd.f32 %v5001_v53, %v7749_v38  ;;  %v5004_v38 = vld [vmem:[%s7955_s2] sm:$0x3] }
0x14d5   : > { %v5009_v57 = vmul.f32 %v5002_v54, %v5002_v54  ;;  %v5027_v62 = vrot.slane %v5004_v38, %v7688_v19  ;;  %v5031_v3 = vrot.slane %v5004_v38, %v7690_v20 }
0x14d6   : > { %v5005_v58 = vadd.f32 %v5003_v56, %v5002_v54  ;;  %v5010_v47 = vmul.f32 %v5003_v56, %v5003_v56 }
0x14d8   : > { %5006 = vadd.xlane.f32.xlu0 %v5005_v58  ;;  %v5011_v59 = vadd.f32 %v5010_v47, %v5009_v57 }
0x14da   : > { %5012 = vadd.xlane.f32.xlu1 %v5011_v59 }
0x1565   : > { %v5007_v50 = vpop.xlane.xlu0 %5006 }
0x1566   : > { %v5008_v60 = vmul.f32 0.00390625, %v5007_v50 }
0x1567   : > { %v5013_v63 = vpop.xlane.xlu1 %5012 }
0x1568   : > { %v5014_v0 = vmul.f32 0.00390625, %v5013_v63  ;;  %v5015_v1 = vmul.f32 %v5008_v60, %v5008_v60  ;;  %v5017_v29 = vsub.f32 %v5002_v54, %v5008_v60  ;;  %v5018_v61 = vsub.f32 %v5003_v56, %v5008_v60 }
0x156a   : > { %v5016_v43 = vsub.f32 %v5014_v0, %v5015_v1 }
0x156c   : > { %v5019_v2 = vadd.f32 1e-05, %v5016_v43 }
0x156e   : > { %6670 = vrsqrt.f32 %v5019_v2 }
0x1578   : > { %v6671_v4 = vpop.eup %6670 }
0x1579   : > { %v5021_v5 = vmul.f32 %v6671_v4, %v5017_v29  ;;  %v5022_v6 = vmul.f32 %v6671_v4, %v5018_v61 }
0x157b   : > { %v5034_v7 = vmul.f32 %v5027_v62, %v5021_v5  ;;  %v5035_v8 = vmul.f32 %v5031_v3, %v5022_v6 }
0x157d   : > { %5036 = vst [vmem:[%s7636_s0] sm:$0xff] %v5034_v7  ;;  %5037 = vst [vmem:[%s7636_s0 + $0x8] sm:$0xff] %v5035_v8 }
0x157e   : > { %6969 = shalt.err (!%p6966_p12)
}
0x157f   : > { %s6970_s5 = scalar_lea.hbm %s7788_s6, 256  ;;  %s6974_s28 = scalar_lea.hbm %s7958_s12, 1024 }
0x1580   : > { %p6971_p13 = scmp.ne.s32.totalorder %s7788_s6, %s6970_s5  ;;  %p6975_p2 = scmp.lt.u32.totalorder %s7788_s6, %s7958_s12 }
0x1581   : > { %p6976_p3 = scmp.lt.u32.totalorder %s6974_s28, %s6970_s5  ;;  %p6978_p7 = scmp.lt.u32.totalorder %s6970_s5, %s7788_s6 }
0x1582   : > { %p6972_p10 = pnand %p6971_p13, %p7959_p1 }
0x1583   : > { %p6977_p4 = por %p6976_p3, %p6975_p2 }
0x1584   : > { %p6973_p0 = pneg %p6972_p10 }
0x1585   : > { %p6979_p9 = por %p6978_p7, %p6977_p4 }
0x1587   : > { %p6980_p6 = pnand %p6979_p9, %p6973_p0 }
0x1589   : > { %6983 = shalt.err (!%p6980_p6)
}
0x158a   : > { %5905 = dma.vmem_to_hbm [thread:$0]  (%p7959_p1), %s7790_s23, 256, %s7788_s6, %s5039_s8  }
0x158b PF: > { %s7960_s2 = sld [smem:[#allocation32_spill]]  ;;  %p5960_p11 = scmp.ge.s32.totalorder %s7102_s18, 2 }
0x158c   : > { %p7961_p5 = scmp.ne.s32.totalorder %s7932_s1, 0 }
0x158e   : > { %p5940_p8 = pnand %p5960_p11, %p7961_p5 }
0x1591   : > { %s5067_s14 = sand.u32 1, %s7960_s2  }
0x1592   : > { %s5068_s15 = scalar_lea.sflag [#allocation8], %s5067_s14 }
0x1593   : > { %7057 = dma.done.wait (!%p5940_p8), %s5068_s15, 256  }
0x1594   : > { %7059 = vsyncadd (!%p5940_p8), %s5068_s15, 4294967040  ;;  %s36_s18 = sadd.s32 1, %s7102_s18   ;;  %s7962_s25 = sld [smem:[#allocation33_spill]] }
0x1595   : > { %p33_p12 = scmp.ge.s32.totalorder %s36_s18, 6   ;;  %s7963_s14 = sld [smem:[#allocation36_spill]] }
0x1596   : > { %s7964_s15 = sld [smem:[#allocation37_spill]]  ;;  %s7965_s16 = sld [smem:[#allocation39_spill]] }
0x1597   : > { %s7966_s17 = sld [smem:[#allocation40_spill]]  ;;  %s7967_s26 = smov %s7070_s27 }
0x1598   : > { %s7968_s27 = smov %s7499_s13  ;;  %s7969_s28 = smov %s7078_s29 }
0x1599   : > { %s7970_s29 = smov %s7082_s30  ;;  %s7971_s30 = smov %s7496_s22 }
0x159a   :  { %35 = sbr.rel (!%p33_p12) target bundleno = 30 (0x1e), region = 167 }
0x15a1   :  { %5073 = vsyncpa [#allocation7], 1 }
0x15a2   :  { %5075 = vsyncpa [#allocation7 + $0x1], 1 }
0x15a3   :  { %5076 = vsyncpa [#allocation10], 1 }
0x15a4   :  { %5078 = vsyncpa [#allocation10 + $0x1], 1 }
0x15a5   :  { %5079 = vsyncpa [#allocation13], 1 }
0x15a6   :  { %5080 = vsyncpa [#allocation16], 1 }
0x15a7   :  { %5081 = vsyncpa [#allocation19], 1 }
0x15a8   :  { %5082 = vsyncpa [#allocation22], 1 }
0x15a9   :  { %5083 = vsyncpa [#allocation8], 1 }
0x15aa   :  { %5085 = vsyncpa [#allocation8 + $0x1], 1 }

</bundles_post_ra>
